<compile_context>
chip_gen: v7x
topology: tpu7x:2x2x1
jax: 0.10.0
libtpu: 0.0.40
codegen_flags: <defaults>
</compile_context>

<pallas_src>
import functools

import numpy as np

import jax
import jax.numpy as jnp
from jax.experimental import pallas as pl
from jax.experimental.pallas import tpu as pltpu

_VMEM = pl.BlockSpec(memory_space=pltpu.MemorySpace.VMEM)
_BN_EPS = 1e-5


# --------------------------------------------------------------------------
# small in-kernel helpers (pure value ops: static slices / concats only)
# --------------------------------------------------------------------------
def _cat(parts, axis=0):
    return parts[0] if len(parts) == 1 else jnp.concatenate(parts, axis=axis)


def _tap_rows(x, b, h_in, h_out, stride, ki, ncols):
    """Rows of the (zero-padded along H) input feeding conv row-tap `ki`, batch `b`.

    Returns an (h_out, ncols) value whose row `ho` is input row (ho*stride+ki-1),
    or zeros when that row lies in the H padding border.
    """
    base = b * h_in
    if stride == 1:
        lo = ki - 1
        hi = lo + h_out
        parts = []
        if lo < 0:
            parts.append(jnp.zeros((-lo, ncols), x.dtype))
        a, z = max(lo, 0), min(hi, h_in)
        if z > a:
            parts.append(x[base + a:base + z, :])
        if hi > h_in:
            parts.append(jnp.zeros((hi - h_in, ncols), x.dtype))
        return _cat(parts, axis=0)
    parts = []
    for ho in range(h_out):
        r = ho * stride + ki - 1
        if 0 <= r < h_in:
            parts.append(x[base + r:base + r + 1, :])
        else:
            parts.append(jnp.zeros((1, ncols), x.dtype))
    return _cat(parts, axis=0)


# --------------------------------------------------------------------------
# Kernel 1: layer1 = Conv(1->32, 3x3, pad=1) + BN + ReLU + MaxPool(2)
# --------------------------------------------------------------------------
def _stage1_kernel(x_ref, w0_ref, w1_ref, w2_ref, b_ref,
                   rse_ref, rso_ref, cse_ref, cso_ref, o_ref,
                   *, B, H, W, Cin, Cout):
    x = x_ref[...]                                        # (B*H, W*Cin) bf16
    taps = (w0_ref, w1_ref, w2_ref)
    acc = jnp.zeros((B * H, W * Cout), jnp.float32)
    for ki in range(3):
        rows = _cat([_tap_rows(x, b, H, H, 1, ki, W * Cin) for b in range(B)], axis=0)
        acc = acc + jnp.dot(rows, taps[ki][...], preferred_element_type=jnp.float32)
    y = jnp.maximum(acc + b_ref[...], 0.0).astype(jnp.bfloat16)   # conv + BN + ReLU

    # fused 2x2 max-pool: 0/1 row- and column-selection matmuls, max of 4 phases
    r_e = jnp.dot(rse_ref[...], y, preferred_element_type=jnp.float32).astype(jnp.bfloat16)
    r_o = jnp.dot(rso_ref[...], y, preferred_element_type=jnp.float32).astype(jnp.bfloat16)
    cse, cso = cse_ref[...], cso_ref[...]
    p = jnp.maximum(
        jnp.maximum(jnp.dot(r_e, cse, preferred_element_type=jnp.float32),
                    jnp.dot(r_e, cso, preferred_element_type=jnp.float32)),
        jnp.maximum(jnp.dot(r_o, cse, preferred_element_type=jnp.float32),
                    jnp.dot(r_o, cso, preferred_element_type=jnp.float32)))
    o_ref[...] = p.astype(o_ref.dtype)


# --------------------------------------------------------------------------
# Kernel 2: residual block + channel attention (+ optional classifier head)
# --------------------------------------------------------------------------
def _block_kernel(x_ref, w1a_ref, w1b_ref, w1c_ref, b1_ref,
                  w2a_ref, w2b_ref, w2c_ref, b2_ref, ws_ref, bs_ref,
                  wa1_ref, ba1_ref, wa2_ref, ba2_ref, *rest,
                  B, Hin, Win, Cin, Cout, stride, with_head):
    if with_head:
        f1w_ref, f1b_ref, f2w_ref, f2b_ref, o_ref = rest
    else:
        (o_ref,) = rest
    Ho, Wo = Hin // stride, Win // stride

    x = x_ref[...]                                        # (B*Hin, Win*Cin) bf16

    # conv1 (3x3, stride, pad=1) + BN1 + ReLU -------------------------------
    taps1 = (w1a_ref, w1b_ref, w1c_ref)
    acc1 = jnp.zeros((B * Ho, Wo * Cout), jnp.float32)
    for ki in range(3):
        rows = _cat([_tap_rows(x, b, Hin, Ho, stride, ki, Win * Cin) for b in range(B)], axis=0)
        acc1 = acc1 + jnp.dot(rows, taps1[ki][...], preferred_element_type=jnp.float32)
    y1 = jnp.maximum(acc1 + b1_ref[...], 0.0).astype(jnp.bfloat16)   # (B*Ho, Wo*Cout)

    # conv2 (3x3, stride 1, pad=1) + BN2 ------------------------------------
    taps2 = (w2a_ref, w2b_ref, w2c_ref)
    acc2 = jnp.zeros((B * Ho, Wo * Cout), jnp.float32)
    for ki in range(3):
        rows = _cat([_tap_rows(y1, b, Ho, Ho, 1, ki, Wo * Cout) for b in range(B)], axis=0)
        acc2 = acc2 + jnp.dot(rows, taps2[ki][...], preferred_element_type=jnp.float32)
    acc2 = acc2 + b2_ref[...]

    # skip path: 1x1 conv (stride) + BN --------------------------------------
    xs = _cat([
        _cat([x[b * Hin + ho * stride:b * Hin + ho * stride + 1, :] for ho in range(Ho)], axis=0)
        for b in range(B)], axis=0)
    skip = jnp.dot(xs, ws_ref[...], preferred_element_type=jnp.float32) + bs_ref[...]

    # residual add + ReLU (fused epilogue) -----------------------------------
    y = jnp.maximum(acc2 + skip, 0.0)                     # (B*Ho, Wo*Cout) f32

    # channel attention: avg/max pool -> shared MLP on stacked (2B,C) -> gate -
    pooled = []
    for b in range(B):
        yb = y[b * Ho:(b + 1) * Ho, :]
        am = jnp.mean(yb, axis=0, keepdims=True)          # (1, Wo*Cout)
        mm = jnp.max(yb, axis=0, keepdims=True)
        a_c, m_c = am[:, 0:Cout], mm[:, 0:Cout]
        for w in range(1, Wo):
            a_c = a_c + am[:, w * Cout:(w + 1) * Cout]
            m_c = jnp.maximum(m_c, mm[:, w * Cout:(w + 1) * Cout])
        pooled.append(a_c * (1.0 / Wo))
        pooled.append(m_c)
    pooled = _cat(pooled, axis=0)                         # (2B, Cout): [avg_b, max_b]
    h = jnp.dot(pooled.astype(jnp.bfloat16), wa1_ref[...],
                preferred_element_type=jnp.float32) + ba1_ref[...]
    h = jnp.maximum(h, 0.0)
    sall = jnp.dot(h.astype(jnp.bfloat16), wa2_ref[...],
                   preferred_element_type=jnp.float32) + ba2_ref[...]   # (2B, Cout)

    outs = []
    for b in range(B):
        s_b = jax.nn.sigmoid(sall[2 * b:2 * b + 1, :] + sall[2 * b + 1:2 * b + 2, :])
        g_b = _cat([s_b] * Wo, axis=1)                    # (1, Wo*Cout)
        outs.append(y[b * Ho:(b + 1) * Ho, :] * g_b)
    out = _cat(outs, axis=0)                              # (B*Ho, Wo*Cout) f32

    if not with_head:
        o_ref[...] = out.astype(o_ref.dtype)
        return

    # head: GAP + fc1(+BN1d folded)+ReLU + fc2 (lane-padded to 128) ----------
    feats = []
    for b in range(B):
        m = jnp.mean(out[b * Ho:(b + 1) * Ho, :], axis=0, keepdims=True)
        f = m[:, 0:Cout]
        for w in range(1, Wo):
            f = f + m[:, w * Cout:(w + 1) * Cout]
        feats.append(f * (1.0 / Wo))
    feat = _cat(feats, axis=0)                            # (B, Cout) f32
    # TODO(synk): Dropout(0.5) is inference-mode identity; training-mode masking omitted.
    h1 = jnp.dot(feat.astype(jnp.bfloat16), f1w_ref[...],
                 preferred_element_type=jnp.float32) + f1b_ref[...]
    h1 = jnp.maximum(h1, 0.0)
    logits = jnp.dot(h1.astype(jnp.bfloat16), f2w_ref[...],
                     preferred_element_type=jnp.float32) + f2b_ref[...]
    o_ref[...] = logits.astype(o_ref.dtype)


# --------------------------------------------------------------------------
# Host-side weight preparation (BN folding + lane-Toeplitz assembly, once)
# --------------------------------------------------------------------------
def _npf(x):
    return np.asarray(x, dtype=np.float32)


def _fold_bn(w, b, bn):
    scale = _npf(bn["gamma"]) / np.sqrt(_npf(bn["var"]) + _BN_EPS)
    wf = _npf(w) * scale
    bb = _npf(b) if b is not None else np.float32(0.0)
    bf = (bb - _npf(bn["mean"])) * scale + _npf(bn["beta"])
    return wf, bf


def _toeplitz3(wf, ki, win, wo_n, stride):
    """(3,3,Cin,Cout) conv weights -> (Win*Cin, Wo*Cout) lane-Toeplitz for row tap ki.
    The W-direction zero padding (pad=1) is folded into the sparsity pattern."""
    cin, cout = wf.shape[2], wf.shape[3]
    t = np.zeros((win * cin, wo_n * cout), np.float32)
    for wo in range(wo_n):
        for kj in range(3):
            wi = wo * stride + kj - 1
            if 0 <= wi < win:
                t[wi * cin:(wi + 1) * cin, wo * cout:(wo + 1) * cout] = wf[ki, kj]
    return t


def _toeplitz1(wf, win, wo_n, stride):
    """(Cin,Cout) 1x1 conv weights -> (Win*Cin, Wo*Cout) strided lane matrix."""
    cin, cout = wf.shape
    t = np.zeros((win * cin, wo_n * cout), np.float32)
    for wo in range(wo_n):
        wi = wo * stride
        t[wi * cin:(wi + 1) * cin, wo * cout:(wo + 1) * cout] = wf
    return t


def _row_select(B, H, parity):
    s = np.zeros((B * (H // 2), B * H), np.float32)
    for b in range(B):
        for r in range(H // 2):
            s[b * (H // 2) + r, b * H + 2 * r + parity] = 1.0
    return s


def _col_select(W, C, parity):
    s = np.zeros((W * C, (W // 2) * C), np.float32)
    eye = np.eye(C, dtype=np.float32)
    for wo in range(W // 2):
        wi = 2 * wo + parity
        s[wi * C:(wi + 1) * C, wo * C:(wo + 1) * C] = eye
    return s


def _bf16(a):
    return jnp.asarray(np.asarray(a, np.float32), dtype=jnp.bfloat16)


def _f32row(a):
    return jnp.asarray(np.asarray(a, np.float32).reshape(1, -1))


def prepare(params, *, B, H, W, n_classes, n_pad=128):
    """Fold BN, build lane-Toeplitz conv weights and pooling selectors, cast to bf16."""
    assert n_classes <= n_pad
    prep = {}

    # layer1
    wf, bf = _fold_bn(params["l1_w"], params["l1_b"], params["l1_bn"])
    prep["s1"] = dict(
        w=[_bf16(_toeplitz3(wf, ki, W, W, 1)) for ki in range(3)],
        b=_f32row(np.tile(bf, W)),
        rse=_bf16(_row_select(B, H, 0)), rso=_bf16(_row_select(B, H, 1)),
        cse=_bf16(_col_select(W, 32, 0)), cso=_bf16(_col_select(W, 32, 1)),
    )

    def prep_block(pb, pa, win):
        wo_n = win // 2
        w1, b1 = _fold_bn(pb["conv1_w"], None, pb["bn1"])
        w2, b2 = _fold_bn(pb["conv2_w"], None, pb["bn2"])
        ws, bs = _fold_bn(pb["skip_w"], None, pb["skip_bn"])
        return dict(
            w1=[_bf16(_toeplitz3(w1, ki, win, wo_n, 2)) for ki in range(3)],
            b1=_f32row(np.tile(b1, wo_n)),
            w2=[_bf16(_toeplitz3(w2, ki, wo_n, wo_n, 1)) for ki in range(3)],
            b2=_f32row(np.tile(b2, wo_n)),
            ws=_bf16(_toeplitz1(ws, win, wo_n, 2)),
            bs=_f32row(np.tile(bs, wo_n)),
            wa1=_bf16(pa["w1"]), ba1=_f32row(pa["b1"]),
            wa2=_bf16(pa["w2"]), ba2=_f32row(pa["b2"]),
        )

    prep["b2"] = prep_block(params["l2"], params["a1"], W // 2)
    prep["b3"] = prep_block(params["l3"], params["a2"], W // 4)
    prep["b4"] = prep_block(params["l4"], params["a3"], W // 8)

    # head: fc1 + BatchNorm1d folded; fc2 zero-padded to 128 output lanes
    w1f, b1f = _fold_bn(params["fc1_w"], params["fc1_b"], params["bn_fc"])
    w2 = _npf(params["fc2_w"]); b2 = _npf(params["fc2_b"])
    w2p = np.zeros((w2.shape[0], n_pad), np.float32); w2p[:, :w2.shape[1]] = w2
    b2p = np.zeros((n_pad,), np.float32); b2p[:w2.shape[1]] = b2
    prep["head"] = dict(f1w=_bf16(w1f), f1b=_f32row(b1f),
                        f2w=_bf16(w2p), f2b=_f32row(b2p))
    return prep


# --------------------------------------------------------------------------
# pallas_call wrappers + forward pass (4 launches total)
# --------------------------------------------------------------------------
def _run_stage1(p1, x, *, B, H, W):
    H2, W2 = H // 2, W // 2
    kern = functools.partial(_stage1_kernel, B=B, H=H, W=W, Cin=1, Cout=32)
    return pl.pallas_call(
        kern,
        out_shape=jax.ShapeDtypeStruct((B * H2, W2 * 32), jnp.bfloat16),
        in_specs=[_VMEM] * 9,
        out_specs=_VMEM,
    )(x, p1["w"][0], p1["w"][1], p1["w"][2], p1["b"],
      p1["rse"], p1["rso"], p1["cse"], p1["cso"])


def _run_block(pb, x, *, B, Hin, Win, Cin, Cout, head=None):
    Ho, Wo = Hin // 2, Win // 2
    args = [x, pb["w1"][0], pb["w1"][1], pb["w1"][2], pb["b1"],
            pb["w2"][0], pb["w2"][1], pb["w2"][2], pb["b2"], pb["ws"], pb["bs"],
            pb["wa1"], pb["ba1"], pb["wa2"], pb["ba2"]]
    if head is None:
        out_shape = jax.ShapeDtypeStruct((B * Ho, Wo * Cout), jnp.bfloat16)
        with_head = False
    else:
        args += [head["f1w"], head["f1b"], head["f2w"], head["f2b"]]
        out_shape = jax.ShapeDtypeStruct((B, head["f2w"].shape[1]), jnp.float32)
        with_head = True
    kern = functools.partial(_block_kernel, B=B, Hin=Hin, Win=Win, Cin=Cin,
                             Cout=Cout, stride=2, with_head=with_head)
    return pl.pallas_call(
        kern, out_shape=out_shape,
        in_specs=[_VMEM] * len(args), out_specs=_VMEM,
    )(*args)


@functools.partial(jax.jit, static_argnames=("n_classes",))
def forward(prep, x_nchw, *, n_classes=10):
    B, C, H, W = x_nchw.shape
    assert C == 1
    x = x_nchw.reshape(B * H, W).astype(jnp.bfloat16)        # (B*H, W*Cin), Cin=1
    y = _run_stage1(prep["s1"], x, B=B, H=H, W=W)            # (B*H/2, (W/2)*32)
    y = _run_block(prep["b2"], y, B=B, Hin=H // 2, Win=W // 2, Cin=32, Cout=64)
    y = _run_block(prep["b3"], y, B=B, Hin=H // 4, Win=W // 4, Cin=64, Cout=128)
    logits = _run_block(prep["b4"], y, B=B, Hin=H // 8, Win=W // 8, Cin=128,
                        Cout=256, head=prep["head"])          # (B, 128) lane-dense
    return logits[:, :n_classes]


# --------------------------------------------------------------------------
# Deterministic synthetic parameters (same structure as the PyTorch module)
# --------------------------------------------------------------------------
def init_params(key, n_classes=10):
    keys = iter(jax.random.split(key, 128))

    def nrm(shape, s=0.1):
        return (s * jax.random.normal(next(keys), shape)).astype(jnp.float32)

    def bn(c):
        return dict(gamma=1.0 + nrm((c,)), beta=nrm((c,)),
                    mean=nrm((c,)), var=1.0 + jnp.abs(nrm((c,))))

    def resblock(cin, cout):
        return dict(conv1_w=nrm((3, 3, cin, cout)), bn1=bn(cout),
                    conv2_w=nrm((3, 3, cout, cout)), bn2=bn(cout),
                    skip_w=nrm((cin, cout)), skip_bn=bn(cout))

    def attn(c, reduction=16):
        cr = c // reduction
        return dict(w1=nrm((c, cr)), b1=nrm((cr,)), w2=nrm((cr, c)), b2=nrm((c,)))

    p = {}
    p["l1_w"] = nrm((3, 3, 1, 32))
    p["l1_b"] = nrm((32,))
    p["l1_bn"] = bn(32)
    p["l2"] = resblock(32, 64)
    p["a1"] = attn(64)
    p["l3"] = resblock(64, 128)
    p["a2"] = attn(128)
    p["l4"] = resblock(128, 256)
    p["a3"] = attn(256)
    p["fc1_w"] = nrm((256, 512))
    p["fc1_b"] = nrm((512,))
    p["bn_fc"] = bn(512)
    p["fc2_w"] = nrm((512, n_classes))
    p["fc2_b"] = nrm((n_classes,))
    return p


# --------------------------------------------------------------------------
if __name__ == "__main__":
    key = jax.random.PRNGKey(0)
    k_in, k_par = jax.random.split(key)

    B, H, W, n_classes = 2, 16, 16, 10
    # NCHW input, single channel (mel-spectrogram slice), small spatial 16x16.
    x = jax.random.normal(k_in, (B, 1, H, W), dtype=jnp.float32)
    params = init_params(k_par, n_classes=n_classes)
    prepped = prepare(params, B=B, H=H, W=W, n_classes=n_classes)

    logits = forward(prepped, x, n_classes=n_classes)
    jax.block_until_ready(logits)
    assert logits.shape == (B, n_classes), logits.shape
    print("KERNEL_OK")
</pallas_src>

<mosaic_0001>
module attributes {stable_mosaic.version = 11 : i64} {
  func.func @_block_kernel(%arg0: memref<16x256xbf16, #tpu.memory_space<vmem>>, %arg1: memref<256x256xbf16, #tpu.memory_space<vmem>>, %arg2: memref<256x256xbf16, #tpu.memory_space<vmem>>, %arg3: memref<256x256xbf16, #tpu.memory_space<vmem>>, %arg4: memref<1x256xf32, #tpu.memory_space<vmem>>, %arg5: memref<256x256xbf16, #tpu.memory_space<vmem>>, %arg6: memref<256x256xbf16, #tpu.memory_space<vmem>>, %arg7: memref<256x256xbf16, #tpu.memory_space<vmem>>, %arg8: memref<1x256xf32, #tpu.memory_space<vmem>>, %arg9: memref<256x256xbf16, #tpu.memory_space<vmem>>, %arg10: memref<1x256xf32, #tpu.memory_space<vmem>>, %arg11: memref<64x4xbf16, #tpu.memory_space<vmem>>, %arg12: memref<1x4xf32, #tpu.memory_space<vmem>>, %arg13: memref<4x64xbf16, #tpu.memory_space<vmem>>, %arg14: memref<1x64xf32, #tpu.memory_space<vmem>>, %arg15: memref<8x256xbf16, #tpu.memory_space<vmem>>) attributes {dimension_semantics = [], scalar_prefetch = 0 : i64, scratch_operands = 0 : i64, tpu.core_type = #tpu.core_type<tc>} {
    %c0 = arith.constant 0 : index
    %c0_0 = arith.constant 0 : index
    %0 = vector.load %arg0[%c0, %c0_0] : memref<16x256xbf16, #tpu.memory_space<vmem>>, vector<16x256xbf16>
    %cst = arith.constant 0.000000e+00 : f32
    %1 = vector.broadcast %cst : f32 to vector<8x256xf32>
    %cst_1 = arith.constant 0.000000e+00 : bf16
    %2 = vector.broadcast %cst_1 : bf16 to vector<1x256xbf16>
    %3 = vector.extract_strided_slice %0 {offsets = [1, 0], sizes = [1, 256], strides = [1, 1]} : vector<16x256xbf16> to vector<1x256xbf16>
    %4 = vector.extract_strided_slice %0 {offsets = [3, 0], sizes = [1, 256], strides = [1, 1]} : vector<16x256xbf16> to vector<1x256xbf16>
    %5 = vector.extract_strided_slice %0 {offsets = [5, 0], sizes = [1, 256], strides = [1, 1]} : vector<16x256xbf16> to vector<1x256xbf16>
    %6 = tpu.concatenate %2, %3, %4, %5 in 0 : vector<1x256xbf16>, vector<1x256xbf16>, vector<1x256xbf16>, vector<1x256xbf16> -> vector<4x256xbf16>
    %cst_2 = arith.constant 0.000000e+00 : bf16
    %7 = vector.broadcast %cst_2 : bf16 to vector<1x256xbf16>
    %8 = vector.extract_strided_slice %0 {offsets = [9, 0], sizes = [1, 256], strides = [1, 1]} : vector<16x256xbf16> to vector<1x256xbf16>
    %9 = vector.extract_strided_slice %0 {offsets = [11, 0], sizes = [1, 256], strides = [1, 1]} : vector<16x256xbf16> to vector<1x256xbf16>
    %10 = vector.extract_strided_slice %0 {offsets = [13, 0], sizes = [1, 256], strides = [1, 1]} : vector<16x256xbf16> to vector<1x256xbf16>
    %11 = tpu.concatenate %7, %8, %9, %10 in 0 : vector<1x256xbf16>, vector<1x256xbf16>, vector<1x256xbf16>, vector<1x256xbf16> -> vector<4x256xbf16>
    %12 = tpu.concatenate %6, %11 in 0 : vector<4x256xbf16>, vector<4x256xbf16> -> vector<8x256xbf16>
    %c0_3 = arith.constant 0 : index
    %c0_4 = arith.constant 0 : index
    %13 = vector.load %arg1[%c0_3, %c0_4] : memref<256x256xbf16, #tpu.memory_space<vmem>>, vector<256x256xbf16>
    %cst_5 = arith.constant dense<0.000000e+00> : vector<8x256xf32>
    %14 = tpu.matmul %12, %13, %cst_5 {dimension_numbers = #tpu.dot_dimension_numbers<[1], [0], [0], [1], [0, 0, 1, 1], [], []>} : vector<8x256xbf16>, vector<256x256xbf16>, vector<8x256xf32> -> vector<8x256xf32>
    %15 = arith.addf %1, %14 : vector<8x256xf32>
    %16 = vector.extract_strided_slice %0 {offsets = [0, 0], sizes = [1, 256], strides = [1, 1]} : vector<16x256xbf16> to vector<1x256xbf16>
    %17 = vector.extract_strided_slice %0 {offsets = [2, 0], sizes = [1, 256], strides = [1, 1]} : vector<16x256xbf16> to vector<1x256xbf16>
    %18 = vector.extract_strided_slice %0 {offsets = [4, 0], sizes = [1, 256], strides = [1, 1]} : vector<16x256xbf16> to vector<1x256xbf16>
    %19 = vector.extract_strided_slice %0 {offsets = [6, 0], sizes = [1, 256], strides = [1, 1]} : vector<16x256xbf16> to vector<1x256xbf16>
    %20 = tpu.concatenate %16, %17, %18, %19 in 0 : vector<1x256xbf16>, vector<1x256xbf16>, vector<1x256xbf16>, vector<1x256xbf16> -> vector<4x256xbf16>
    %21 = vector.extract_strided_slice %0 {offsets = [8, 0], sizes = [1, 256], strides = [1, 1]} : vector<16x256xbf16> to vector<1x256xbf16>
    %22 = vector.extract_strided_slice %0 {offsets = [10, 0], sizes = [1, 256], strides = [1, 1]} : vector<16x256xbf16> to vector<1x256xbf16>
    %23 = vector.extract_strided_slice %0 {offsets = [12, 0], sizes = [1, 256], strides = [1, 1]} : vector<16x256xbf16> to vector<1x256xbf16>
    %24 = vector.extract_strided_slice %0 {offsets = [14, 0], sizes = [1, 256], strides = [1, 1]} : vector<16x256xbf16> to vector<1x256xbf16>
    %25 = tpu.concatenate %21, %22, %23, %24 in 0 : vector<1x256xbf16>, vector<1x256xbf16>, vector<1x256xbf16>, vector<1x256xbf16> -> vector<4x256xbf16>
    %26 = tpu.concatenate %20, %25 in 0 : vector<4x256xbf16>, vector<4x256xbf16> -> vector<8x256xbf16>
    %c0_6 = arith.constant 0 : index
    %c0_7 = arith.constant 0 : index
    %27 = vector.load %arg2[%c0_6, %c0_7] : memref<256x256xbf16, #tpu.memory_space<vmem>>, vector<256x256xbf16>
    %cst_8 = arith.constant dense<0.000000e+00> : vector<8x256xf32>
    %28 = tpu.matmul %26, %27, %cst_8 {dimension_numbers = #tpu.dot_dimension_numbers<[1], [0], [0], [1], [0, 0, 1, 1], [], []>} : vector<8x256xbf16>, vector<256x256xbf16>, vector<8x256xf32> -> vector<8x256xf32>
    %29 = arith.addf %15, %28 : vector<8x256xf32>
    %30 = vector.extract_strided_slice %0 {offsets = [1, 0], sizes = [1, 256], strides = [1, 1]} : vector<16x256xbf16> to vector<1x256xbf16>
    %31 = vector.extract_strided_slice %0 {offsets = [3, 0], sizes = [1, 256], strides = [1, 1]} : vector<16x256xbf16> to vector<1x256xbf16>
    %32 = vector.extract_strided_slice %0 {offsets = [5, 0], sizes = [1, 256], strides = [1, 1]} : vector<16x256xbf16> to vector<1x256xbf16>
    %33 = vector.extract_strided_slice %0 {offsets = [7, 0], sizes = [1, 256], strides = [1, 1]} : vector<16x256xbf16> to vector<1x256xbf16>
    %34 = tpu.concatenate %30, %31, %32, %33 in 0 : vector<1x256xbf16>, vector<1x256xbf16>, vector<1x256xbf16>, vector<1x256xbf16> -> vector<4x256xbf16>
    %35 = vector.extract_strided_slice %0 {offsets = [9, 0], sizes = [1, 256], strides = [1, 1]} : vector<16x256xbf16> to vector<1x256xbf16>
    %36 = vector.extract_strided_slice %0 {offsets = [11, 0], sizes = [1, 256], strides = [1, 1]} : vector<16x256xbf16> to vector<1x256xbf16>
    %37 = vector.extract_strided_slice %0 {offsets = [13, 0], sizes = [1, 256], strides = [1, 1]} : vector<16x256xbf16> to vector<1x256xbf16>
    %38 = vector.extract_strided_slice %0 {offsets = [15, 0], sizes = [1, 256], strides = [1, 1]} : vector<16x256xbf16> to vector<1x256xbf16>
    %39 = tpu.concatenate %35, %36, %37, %38 in 0 : vector<1x256xbf16>, vector<1x256xbf16>, vector<1x256xbf16>, vector<1x256xbf16> -> vector<4x256xbf16>
    %40 = tpu.concatenate %34, %39 in 0 : vector<4x256xbf16>, vector<4x256xbf16> -> vector<8x256xbf16>
    %c0_9 = arith.constant 0 : index
    %c0_10 = arith.constant 0 : index
    %41 = vector.load %arg3[%c0_9, %c0_10] : memref<256x256xbf16, #tpu.memory_space<vmem>>, vector<256x256xbf16>
    %cst_11 = arith.constant dense<0.000000e+00> : vector<8x256xf32>
    %42 = tpu.matmul %40, %41, %cst_11 {dimension_numbers = #tpu.dot_dimension_numbers<[1], [0], [0], [1], [0, 0, 1, 1], [], []>} : vector<8x256xbf16>, vector<256x256xbf16>, vector<8x256xf32> -> vector<8x256xf32>
    %43 = arith.addf %29, %42 : vector<8x256xf32>
    %c0_12 = arith.constant 0 : index
    %c0_13 = arith.constant 0 : index
    %44 = vector.load %arg4[%c0_12, %c0_13] : memref<1x256xf32, #tpu.memory_space<vmem>>, vector<1x256xf32>
    %45 = vector.broadcast %44 : vector<1x256xf32> to vector<8x256xf32>
    %46 = arith.addf %43, %45 : vector<8x256xf32>
    %cst_14 = arith.constant 0.000000e+00 : f32
    %47 = vector.broadcast %cst_14 : f32 to vector<8x256xf32>
    %48 = arith.maximumf %46, %47 : vector<8x256xf32>
    %49 = arith.truncf %48 : vector<8x256xf32> to vector<8x256xbf16>
    %cst_15 = arith.constant 0.000000e+00 : f32
    %50 = vector.broadcast %cst_15 : f32 to vector<8x256xf32>
    %cst_16 = arith.constant 0.000000e+00 : bf16
    %51 = vector.broadcast %cst_16 : bf16 to vector<1x256xbf16>
    %52 = vector.extract_strided_slice %49 {offsets = [0, 0], sizes = [3, 256], strides = [1, 1]} : vector<8x256xbf16> to vector<3x256xbf16>
    %53 = tpu.concatenate %51, %52 in 0 : vector<1x256xbf16>, vector<3x256xbf16> -> vector<4x256xbf16>
    %cst_17 = arith.constant 0.000000e+00 : bf16
    %54 = vector.broadcast %cst_17 : bf16 to vector<1x256xbf16>
    %55 = vector.extract_strided_slice %49 {offsets = [4, 0], sizes = [3, 256], strides = [1, 1]} : vector<8x256xbf16> to vector<3x256xbf16>
    %56 = tpu.concatenate %54, %55 in 0 : vector<1x256xbf16>, vector<3x256xbf16> -> vector<4x256xbf16>
    %57 = tpu.concatenate %53, %56 in 0 : vector<4x256xbf16>, vector<4x256xbf16> -> vector<8x256xbf16>
    %c0_18 = arith.constant 0 : index
    %c0_19 = arith.constant 0 : index
    %58 = vector.load %arg5[%c0_18, %c0_19] : memref<256x256xbf16, #tpu.memory_space<vmem>>, vector<256x256xbf16>
    %cst_20 = arith.constant dense<0.000000e+00> : vector<8x256xf32>
    %59 = tpu.matmul %57, %58, %cst_20 {dimension_numbers = #tpu.dot_dimension_numbers<[1], [0], [0], [1], [0, 0, 1, 1], [], []>} : vector<8x256xbf16>, vector<256x256xbf16>, vector<8x256xf32> -> vector<8x256xf32>
    %60 = arith.addf %50, %59 : vector<8x256xf32>
    %61 = vector.extract_strided_slice %49 {offsets = [0, 0], sizes = [4, 256], strides = [1, 1]} : vector<8x256xbf16> to vector<4x256xbf16>
    %62 = vector.extract_strided_slice %49 {offsets = [4, 0], sizes = [4, 256], strides = [1, 1]} : vector<8x256xbf16> to vector<4x256xbf16>
    %63 = tpu.concatenate %61, %62 in 0 : vector<4x256xbf16>, vector<4x256xbf16> -> vector<8x256xbf16>
    %c0_21 = arith.constant 0 : index
    %c0_22 = arith.constant 0 : index
    %64 = vector.load %arg6[%c0_21, %c0_22] : memref<256x256xbf16, #tpu.memory_space<vmem>>, vector<256x256xbf16>
    %cst_23 = arith.constant dense<0.000000e+00> : vector<8x256xf32>
    %65 = tpu.matmul %63, %64, %cst_23 {dimension_numbers = #tpu.dot_dimension_numbers<[1], [0], [0], [1], [0, 0, 1, 1], [], []>} : vector<8x256xbf16>, vector<256x256xbf16>, vector<8x256xf32> -> vector<8x256xf32>
    %66 = arith.addf %60, %65 : vector<8x256xf32>
    %67 = vector.extract_strided_slice %49 {offsets = [1, 0], sizes = [3, 256], strides = [1, 1]} : vector<8x256xbf16> to vector<3x256xbf16>
    %cst_24 = arith.constant 0.000000e+00 : bf16
    %68 = vector.broadcast %cst_24 : bf16 to vector<1x256xbf16>
    %69 = tpu.concatenate %67, %68 in 0 : vector<3x256xbf16>, vector<1x256xbf16> -> vector<4x256xbf16>
    %70 = vector.extract_strided_slice %49 {offsets = [5, 0], sizes = [3, 256], strides = [1, 1]} : vector<8x256xbf16> to vector<3x256xbf16>
    %cst_25 = arith.constant 0.000000e+00 : bf16
    %71 = vector.broadcast %cst_25 : bf16 to vector<1x256xbf16>
    %72 = tpu.concatenate %70, %71 in 0 : vector<3x256xbf16>, vector<1x256xbf16> -> vector<4x256xbf16>
    %73 = tpu.concatenate %69, %72 in 0 : vector<4x256xbf16>, vector<4x256xbf16> -> vector<8x256xbf16>
    %c0_26 = arith.constant 0 : index
    %c0_27 = arith.constant 0 : index
    %74 = vector.load %arg7[%c0_26, %c0_27] : memref<256x256xbf16, #tpu.memory_space<vmem>>, vector<256x256xbf16>
    %cst_28 = arith.constant dense<0.000000e+00> : vector<8x256xf32>
    %75 = tpu.matmul %73, %74, %cst_28 {dimension_numbers = #tpu.dot_dimension_numbers<[1], [0], [0], [1], [0, 0, 1, 1], [], []>} : vector<8x256xbf16>, vector<256x256xbf16>, vector<8x256xf32> -> vector<8x256xf32>
    %76 = arith.addf %66, %75 : vector<8x256xf32>
    %c0_29 = arith.constant 0 : index
    %c0_30 = arith.constant 0 : index
    %77 = vector.load %arg8[%c0_29, %c0_30] : memref<1x256xf32, #tpu.memory_space<vmem>>, vector<1x256xf32>
    %78 = vector.broadcast %77 : vector<1x256xf32> to vector<8x256xf32>
    %79 = arith.addf %76, %78 : vector<8x256xf32>
    %80 = vector.extract_strided_slice %0 {offsets = [0, 0], sizes = [1, 256], strides = [1, 1]} : vector<16x256xbf16> to vector<1x256xbf16>
    %81 = vector.extract_strided_slice %0 {offsets = [2, 0], sizes = [1, 256], strides = [1, 1]} : vector<16x256xbf16> to vector<1x256xbf16>
    %82 = vector.extract_strided_slice %0 {offsets = [4, 0], sizes = [1, 256], strides = [1, 1]} : vector<16x256xbf16> to vector<1x256xbf16>
    %83 = vector.extract_strided_slice %0 {offsets = [6, 0], sizes = [1, 256], strides = [1, 1]} : vector<16x256xbf16> to vector<1x256xbf16>
    %84 = tpu.concatenate %80, %81, %82, %83 in 0 : vector<1x256xbf16>, vector<1x256xbf16>, vector<1x256xbf16>, vector<1x256xbf16> -> vector<4x256xbf16>
    %85 = vector.extract_strided_slice %0 {offsets = [8, 0], sizes = [1, 256], strides = [1, 1]} : vector<16x256xbf16> to vector<1x256xbf16>
    %86 = vector.extract_strided_slice %0 {offsets = [10, 0], sizes = [1, 256], strides = [1, 1]} : vector<16x256xbf16> to vector<1x256xbf16>
    %87 = vector.extract_strided_slice %0 {offsets = [12, 0], sizes = [1, 256], strides = [1, 1]} : vector<16x256xbf16> to vector<1x256xbf16>
    %88 = vector.extract_strided_slice %0 {offsets = [14, 0], sizes = [1, 256], strides = [1, 1]} : vector<16x256xbf16> to vector<1x256xbf16>
    %89 = tpu.concatenate %85, %86, %87, %88 in 0 : vector<1x256xbf16>, vector<1x256xbf16>, vector<1x256xbf16>, vector<1x256xbf16> -> vector<4x256xbf16>
    %90 = tpu.concatenate %84, %89 in 0 : vector<4x256xbf16>, vector<4x256xbf16> -> vector<8x256xbf16>
    %c0_31 = arith.constant 0 : index
    %c0_32 = arith.constant 0 : index
    %91 = vector.load %arg9[%c0_31, %c0_32] : memref<256x256xbf16, #tpu.memory_space<vmem>>, vector<256x256xbf16>
    %cst_33 = arith.constant dense<0.000000e+00> : vector<8x256xf32>
    %92 = tpu.matmul %90, %91, %cst_33 {dimension_numbers = #tpu.dot_dimension_numbers<[1], [0], [0], [1], [0, 0, 1, 1], [], []>} : vector<8x256xbf16>, vector<256x256xbf16>, vector<8x256xf32> -> vector<8x256xf32>
    %c0_34 = arith.constant 0 : index
    %c0_35 = arith.constant 0 : index
    %93 = vector.load %arg10[%c0_34, %c0_35] : memref<1x256xf32, #tpu.memory_space<vmem>>, vector<1x256xf32>
    %94 = vector.broadcast %93 : vector<1x256xf32> to vector<8x256xf32>
    %95 = arith.addf %92, %94 : vector<8x256xf32>
    %96 = arith.addf %79, %95 : vector<8x256xf32>
    %cst_36 = arith.constant 0.000000e+00 : f32
    %97 = vector.broadcast %cst_36 : f32 to vector<8x256xf32>
    %98 = arith.maximumf %96, %97 : vector<8x256xf32>
    %99 = vector.extract_strided_slice %98 {offsets = [0, 0], sizes = [4, 256], strides = [1, 1]} : vector<8x256xf32> to vector<4x256xf32>
    %cst_37 = arith.constant dense<0.000000e+00> : vector<256xf32>
    %100 = vector.multi_reduction <add>, %99, %cst_37 [0] : vector<4x256xf32> to vector<256xf32>
    %101 = vector.shape_cast %100 : vector<256xf32> to vector<1x256xf32>
    %cst_38 = arith.constant 4.000000e+00 : f32
    %102 = vector.broadcast %cst_38 : f32 to vector<1x256xf32>
    %103 = arith.divf %101, %102 : vector<1x256xf32>
    %cst_39 = arith.constant dense<0xFF800000> : vector<256xf32>
    %104 = vector.multi_reduction <maximumf>, %99, %cst_39 [0] : vector<4x256xf32> to vector<256xf32>
    %105 = vector.shape_cast %104 : vector<256xf32> to vector<1x256xf32>
    %106 = vector.extract_strided_slice %103 {offsets = [0, 0], sizes = [1, 64], strides = [1, 1]} : vector<1x256xf32> to vector<1x64xf32>
    %107 = vector.extract_strided_slice %105 {offsets = [0, 0], sizes = [1, 64], strides = [1, 1]} : vector<1x256xf32> to vector<1x64xf32>
    %108 = vector.extract_strided_slice %103 {offsets = [0, 64], sizes = [1, 64], strides = [1, 1]} : vector<1x256xf32> to vector<1x64xf32>
    %109 = arith.addf %106, %108 : vector<1x64xf32>
    %110 = vector.extract_strided_slice %105 {offsets = [0, 64], sizes = [1, 64], strides = [1, 1]} : vector<1x256xf32> to vector<1x64xf32>
    %111 = arith.maximumf %107, %110 : vector<1x64xf32>
    %112 = vector.extract_strided_slice %103 {offsets = [0, 128], sizes = [1, 64], strides = [1, 1]} : vector<1x256xf32> to vector<1x64xf32>
    %113 = arith.addf %109, %112 : vector<1x64xf32>
    %114 = vector.extract_strided_slice %105 {offsets = [0, 128], sizes = [1, 64], strides = [1, 1]} : vector<1x256xf32> to vector<1x64xf32>
    %115 = arith.maximumf %111, %114 : vector<1x64xf32>
    %116 = vector.extract_strided_slice %103 {offsets = [0, 192], sizes = [1, 64], strides = [1, 1]} : vector<1x256xf32> to vector<1x64xf32>
    %117 = arith.addf %113, %116 : vector<1x64xf32>
    %118 = vector.extract_strided_slice %105 {offsets = [0, 192], sizes = [1, 64], strides = [1, 1]} : vector<1x256xf32> to vector<1x64xf32>
    %119 = arith.maximumf %115, %118 : vector<1x64xf32>
    %cst_40 = arith.constant 2.500000e-01 : f32
    %120 = vector.broadcast %cst_40 : f32 to vector<1x64xf32>
    %121 = arith.mulf %117, %120 : vector<1x64xf32>
    %122 = vector.extract_strided_slice %98 {offsets = [4, 0], sizes = [4, 256], strides = [1, 1]} : vector<8x256xf32> to vector<4x256xf32>
    %cst_41 = arith.constant dense<0.000000e+00> : vector<256xf32>
    %123 = vector.multi_reduction <add>, %122, %cst_41 [0] : vector<4x256xf32> to vector<256xf32>
    %124 = vector.shape_cast %123 : vector<256xf32> to vector<1x256xf32>
    %cst_42 = arith.constant 4.000000e+00 : f32
    %125 = vector.broadcast %cst_42 : f32 to vector<1x256xf32>
    %126 = arith.divf %124, %125 : vector<1x256xf32>
    %cst_43 = arith.constant dense<0xFF800000> : vector<256xf32>
    %127 = vector.multi_reduction <maximumf>, %122, %cst_43 [0] : vector<4x256xf32> to vector<256xf32>
    %128 = vector.shape_cast %127 : vector<256xf32> to vector<1x256xf32>
    %129 = vector.extract_strided_slice %126 {offsets = [0, 0], sizes = [1, 64], strides = [1, 1]} : vector<1x256xf32> to vector<1x64xf32>
    %130 = vector.extract_strided_slice %128 {offsets = [0, 0], sizes = [1, 64], strides = [1, 1]} : vector<1x256xf32> to vector<1x64xf32>
    %131 = vector.extract_strided_slice %126 {offsets = [0, 64], sizes = [1, 64], strides = [1, 1]} : vector<1x256xf32> to vector<1x64xf32>
    %132 = arith.addf %129, %131 : vector<1x64xf32>
    %133 = vector.extract_strided_slice %128 {offsets = [0, 64], sizes = [1, 64], strides = [1, 1]} : vector<1x256xf32> to vector<1x64xf32>
    %134 = arith.maximumf %130, %133 : vector<1x64xf32>
    %135 = vector.extract_strided_slice %126 {offsets = [0, 128], sizes = [1, 64], strides = [1, 1]} : vector<1x256xf32> to vector<1x64xf32>
    %136 = arith.addf %132, %135 : vector<1x64xf32>
    %137 = vector.extract_strided_slice %128 {offsets = [0, 128], sizes = [1, 64], strides = [1, 1]} : vector<1x256xf32> to vector<1x64xf32>
    %138 = arith.maximumf %134, %137 : vector<1x64xf32>
    %139 = vector.extract_strided_slice %126 {offsets = [0, 192], sizes = [1, 64], strides = [1, 1]} : vector<1x256xf32> to vector<1x64xf32>
    %140 = arith.addf %136, %139 : vector<1x64xf32>
    %141 = vector.extract_strided_slice %128 {offsets = [0, 192], sizes = [1, 64], strides = [1, 1]} : vector<1x256xf32> to vector<1x64xf32>
    %142 = arith.maximumf %138, %141 : vector<1x64xf32>
    %cst_44 = arith.constant 2.500000e-01 : f32
    %143 = vector.broadcast %cst_44 : f32 to vector<1x64xf32>
    %144 = arith.mulf %140, %143 : vector<1x64xf32>
    %145 = tpu.concatenate %121, %119, %144, %142 in 0 : vector<1x64xf32>, vector<1x64xf32>, vector<1x64xf32>, vector<1x64xf32> -> vector<4x64xf32>
    %146 = arith.truncf %145 : vector<4x64xf32> to vector<4x64xbf16>
    %c0_45 = arith.constant 0 : index
    %c0_46 = arith.constant 0 : index
    %147 = vector.load %arg11[%c0_45, %c0_46] : memref<64x4xbf16, #tpu.memory_space<vmem>>, vector<64x4xbf16>
    %cst_47 = arith.constant dense<0.000000e+00> : vector<4x4xf32>
    %148 = tpu.matmul %146, %147, %cst_47 {dimension_numbers = #tpu.dot_dimension_numbers<[1], [0], [0], [1], [0, 0, 1, 1], [], []>} : vector<4x64xbf16>, vector<64x4xbf16>, vector<4x4xf32> -> vector<4x4xf32>
    %c0_48 = arith.constant 0 : index
    %c0_49 = arith.constant 0 : index
    %149 = vector.load %arg12[%c0_48, %c0_49] : memref<1x4xf32, #tpu.memory_space<vmem>>, vector<1x4xf32>
    %150 = vector.broadcast %149 : vector<1x4xf32> to vector<4x4xf32>
    %151 = arith.addf %148, %150 : vector<4x4xf32>
    %cst_50 = arith.constant 0.000000e+00 : f32
    %152 = vector.broadcast %cst_50 : f32 to vector<4x4xf32>
    %153 = arith.maximumf %151, %152 : vector<4x4xf32>
    %154 = arith.truncf %153 : vector<4x4xf32> to vector<4x4xbf16>
    %c0_51 = arith.constant 0 : index
    %c0_52 = arith.constant 0 : index
    %155 = vector.load %arg13[%c0_51, %c0_52] : memref<4x64xbf16, #tpu.memory_space<vmem>>, vector<4x64xbf16>
    %cst_53 = arith.constant dense<0.000000e+00> : vector<4x64xf32>
    %156 = tpu.matmul %154, %155, %cst_53 {dimension_numbers = #tpu.dot_dimension_numbers<[1], [0], [0], [1], [0, 0, 1, 1], [], []>} : vector<4x4xbf16>, vector<4x64xbf16>, vector<4x64xf32> -> vector<4x64xf32>
    %c0_54 = arith.constant 0 : index
    %c0_55 = arith.constant 0 : index
    %157 = vector.load %arg14[%c0_54, %c0_55] : memref<1x64xf32, #tpu.memory_space<vmem>>, vector<1x64xf32>
    %158 = vector.broadcast %157 : vector<1x64xf32> to vector<4x64xf32>
    %159 = arith.addf %156, %158 : vector<4x64xf32>
    %160 = vector.extract_strided_slice %159 {offsets = [0, 0], sizes = [1, 64], strides = [1, 1]} : vector<4x64xf32> to vector<1x64xf32>
    %161 = vector.extract_strided_slice %159 {offsets = [1, 0], sizes = [1, 64], strides = [1, 1]} : vector<4x64xf32> to vector<1x64xf32>
    %162 = arith.addf %160, %161 : vector<1x64xf32>
    %163 = arith.negf %162 : vector<1x64xf32>
    %164 = math.exp %163 : vector<1x64xf32>
    %cst_56 = arith.constant 1.000000e+00 : f32
    %165 = vector.broadcast %cst_56 : f32 to vector<1x64xf32>
    %166 = arith.addf %165, %164 : vector<1x64xf32>
    %167 = arith.divf %165, %166 : vector<1x64xf32>
    %168 = tpu.concatenate %167, %167, %167, %167 in 1 : vector<1x64xf32>, vector<1x64xf32>, vector<1x64xf32>, vector<1x64xf32> -> vector<1x256xf32>
    %169 = vector.extract_strided_slice %98 {offsets = [0, 0], sizes = [4, 256], strides = [1, 1]} : vector<8x256xf32> to vector<4x256xf32>
    %170 = vector.broadcast %168 : vector<1x256xf32> to vector<4x256xf32>
    %171 = arith.mulf %169, %170 : vector<4x256xf32>
    %172 = vector.extract_strided_slice %159 {offsets = [2, 0], sizes = [1, 64], strides = [1, 1]} : vector<4x64xf32> to vector<1x64xf32>
    %173 = vector.extract_strided_slice %159 {offsets = [3, 0], sizes = [1, 64], strides = [1, 1]} : vector<4x64xf32> to vector<1x64xf32>
    %174 = arith.addf %172, %173 : vector<1x64xf32>
    %175 = arith.negf %174 : vector<1x64xf32>
    %176 = math.exp %175 : vector<1x64xf32>
    %cst_57 = arith.constant 1.000000e+00 : f32
    %177 = vector.broadcast %cst_57 : f32 to vector<1x64xf32>
    %178 = arith.addf %177, %176 : vector<1x64xf32>
    %179 = arith.divf %177, %178 : vector<1x64xf32>
    %180 = tpu.concatenate %179, %179, %179, %179 in 1 : vector<1x64xf32>, vector<1x64xf32>, vector<1x64xf32>, vector<1x64xf32> -> vector<1x256xf32>
    %181 = vector.extract_strided_slice %98 {offsets = [4, 0], sizes = [4, 256], strides = [1, 1]} : vector<8x256xf32> to vector<4x256xf32>
    %182 = vector.broadcast %180 : vector<1x256xf32> to vector<4x256xf32>
    %183 = arith.mulf %181, %182 : vector<4x256xf32>
    %184 = tpu.concatenate %171, %183 in 0 : vector<4x256xf32>, vector<4x256xf32> -> vector<8x256xf32>
    %185 = arith.truncf %184 : vector<8x256xf32> to vector<8x256xbf16>
    %c0_58 = arith.constant 0 : index
    %c0_59 = arith.constant 0 : index
    %186 = vector.load %arg15[%c0_58, %c0_59] : memref<8x256xbf16, #tpu.memory_space<vmem>>, vector<8x256xbf16>
    tpu.vector_store %arg15[%c0_58, %c0_59], %185 {strides = array<i32>} : memref<8x256xbf16, #tpu.memory_space<vmem>>, vector<8x256xbf16>,
    return
  }
}

module attributes {stable_mosaic.version = 11 : i64} {
  func.func @_stage1_kernel(%arg0: memref<32x16xbf16, #tpu.memory_space<vmem>>, %arg1: memref<16x512xbf16, #tpu.memory_space<vmem>>, %arg2: memref<16x512xbf16, #tpu.memory_space<vmem>>, %arg3: memref<16x512xbf16, #tpu.memory_space<vmem>>, %arg4: memref<1x512xf32, #tpu.memory_space<vmem>>, %arg5: memref<16x32xbf16, #tpu.memory_space<vmem>>, %arg6: memref<16x32xbf16, #tpu.memory_space<vmem>>, %arg7: memref<512x256xbf16, #tpu.memory_space<vmem>>, %arg8: memref<512x256xbf16, #tpu.memory_space<vmem>>, %arg9: memref<16x256xbf16, #tpu.memory_space<vmem>>) attributes {dimension_semantics = [], scalar_prefetch = 0 : i64, scratch_operands = 0 : i64, tpu.core_type = #tpu.core_type<tc>} {
    %c0 = arith.constant 0 : index
    %c0_0 = arith.constant 0 : index
    %0 = vector.load %arg0[%c0, %c0_0] : memref<32x16xbf16, #tpu.memory_space<vmem>>, vector<32x16xbf16>
    %cst = arith.constant 0.000000e+00 : f32
    %1 = vector.broadcast %cst : f32 to vector<32x512xf32>
    %cst_1 = arith.constant 0.000000e+00 : bf16
    %2 = vector.broadcast %cst_1 : bf16 to vector<1x16xbf16>
    %3 = vector.extract_strided_slice %0 {offsets = [0, 0], sizes = [15, 16], strides = [1, 1]} : vector<32x16xbf16> to vector<15x16xbf16>
    %4 = tpu.concatenate %2, %3 in 0 : vector<1x16xbf16>, vector<15x16xbf16> -> vector<16x16xbf16>
    %cst_2 = arith.constant 0.000000e+00 : bf16
    %5 = vector.broadcast %cst_2 : bf16 to vector<1x16xbf16>
    %6 = vector.extract_strided_slice %0 {offsets = [16, 0], sizes = [15, 16], strides = [1, 1]} : vector<32x16xbf16> to vector<15x16xbf16>
    %7 = tpu.concatenate %5, %6 in 0 : vector<1x16xbf16>, vector<15x16xbf16> -> vector<16x16xbf16>
    %8 = tpu.concatenate %4, %7 in 0 : vector<16x16xbf16>, vector<16x16xbf16> -> vector<32x16xbf16>
    %c0_3 = arith.constant 0 : index
    %c0_4 = arith.constant 0 : index
    %9 = vector.load %arg1[%c0_3, %c0_4] : memref<16x512xbf16, #tpu.memory_space<vmem>>, vector<16x512xbf16>
    %cst_5 = arith.constant dense<0.000000e+00> : vector<32x512xf32>
    %10 = tpu.matmul %8, %9, %cst_5 {dimension_numbers = #tpu.dot_dimension_numbers<[1], [0], [0], [1], [0, 0, 1, 1], [], []>} : vector<32x16xbf16>, vector<16x512xbf16>, vector<32x512xf32> -> vector<32x512xf32>
    %11 = arith.addf %1, %10 : vector<32x512xf32>
    %12 = vector.extract_strided_slice %0 {offsets = [0, 0], sizes = [16, 16], strides = [1, 1]} : vector<32x16xbf16> to vector<16x16xbf16>
    %13 = vector.extract_strided_slice %0 {offsets = [16, 0], sizes = [16, 16], strides = [1, 1]} : vector<32x16xbf16> to vector<16x16xbf16>
    %14 = tpu.concatenate %12, %13 in 0 : vector<16x16xbf16>, vector<16x16xbf16> -> vector<32x16xbf16>
    %c0_6 = arith.constant 0 : index
    %c0_7 = arith.constant 0 : index
    %15 = vector.load %arg2[%c0_6, %c0_7] : memref<16x512xbf16, #tpu.memory_space<vmem>>, vector<16x512xbf16>
    %cst_8 = arith.constant dense<0.000000e+00> : vector<32x512xf32>
    %16 = tpu.matmul %14, %15, %cst_8 {dimension_numbers = #tpu.dot_dimension_numbers<[1], [0], [0], [1], [0, 0, 1, 1], [], []>} : vector<32x16xbf16>, vector<16x512xbf16>, vector<32x512xf32> -> vector<32x512xf32>
    %17 = arith.addf %11, %16 : vector<32x512xf32>
    %18 = vector.extract_strided_slice %0 {offsets = [1, 0], sizes = [15, 16], strides = [1, 1]} : vector<32x16xbf16> to vector<15x16xbf16>
    %cst_9 = arith.constant 0.000000e+00 : bf16
    %19 = vector.broadcast %cst_9 : bf16 to vector<1x16xbf16>
    %20 = tpu.concatenate %18, %19 in 0 : vector<15x16xbf16>, vector<1x16xbf16> -> vector<16x16xbf16>
    %21 = vector.extract_strided_slice %0 {offsets = [17, 0], sizes = [15, 16], strides = [1, 1]} : vector<32x16xbf16> to vector<15x16xbf16>
    %cst_10 = arith.constant 0.000000e+00 : bf16
    %22 = vector.broadcast %cst_10 : bf16 to vector<1x16xbf16>
    %23 = tpu.concatenate %21, %22 in 0 : vector<15x16xbf16>, vector<1x16xbf16> -> vector<16x16xbf16>
    %24 = tpu.concatenate %20, %23 in 0 : vector<16x16xbf16>, vector<16x16xbf16> -> vector<32x16xbf16>
    %c0_11 = arith.constant 0 : index
    %c0_12 = arith.constant 0 : index
    %25 = vector.load %arg3[%c0_11, %c0_12] : memref<16x512xbf16, #tpu.memory_space<vmem>>, vector<16x512xbf16>
    %cst_13 = arith.constant dense<0.000000e+00> : vector<32x512xf32>
    %26 = tpu.matmul %24, %25, %cst_13 {dimension_numbers = #tpu.dot_dimension_numbers<[1], [0], [0], [1], [0, 0, 1, 1], [], []>} : vector<32x16xbf16>, vector<16x512xbf16>, vector<32x512xf32> -> vector<32x512xf32>
    %27 = arith.addf %17, %26 : vector<32x512xf32>
    %c0_14 = arith.constant 0 : index
    %c0_15 = arith.constant 0 : index
    %28 = vector.load %arg4[%c0_14, %c0_15] : memref<1x512xf32, #tpu.memory_space<vmem>>, vector<1x512xf32>
    %29 = vector.broadcast %28 : vector<1x512xf32> to vector<32x512xf32>
    %30 = arith.addf %27, %29 : vector<32x512xf32>
    %cst_16 = arith.constant 0.000000e+00 : f32
    %31 = vector.broadcast %cst_16 : f32 to vector<32x512xf32>
    %32 = arith.maximumf %30, %31 : vector<32x512xf32>
    %33 = arith.truncf %32 : vector<32x512xf32> to vector<32x512xbf16>
    %c0_17 = arith.constant 0 : index
    %c0_18 = arith.constant 0 : index
    %34 = vector.load %arg5[%c0_17, %c0_18] : memref<16x32xbf16, #tpu.memory_space<vmem>>, vector<16x32xbf16>
    %cst_19 = arith.constant dense<0.000000e+00> : vector<16x512xf32>
    %35 = tpu.matmul %34, %33, %cst_19 {dimension_numbers = #tpu.dot_dimension_numbers<[1], [0], [0], [1], [0, 0, 1, 1], [], []>} : vector<16x32xbf16>, vector<32x512xbf16>, vector<16x512xf32> -> vector<16x512xf32>
    %36 = arith.truncf %35 : vector<16x512xf32> to vector<16x512xbf16>
    %c0_20 = arith.constant 0 : index
    %c0_21 = arith.constant 0 : index
    %37 = vector.load %arg6[%c0_20, %c0_21] : memref<16x32xbf16, #tpu.memory_space<vmem>>, vector<16x32xbf16>
    %cst_22 = arith.constant dense<0.000000e+00> : vector<16x512xf32>
    %38 = tpu.matmul %37, %33, %cst_22 {dimension_numbers = #tpu.dot_dimension_numbers<[1], [0], [0], [1], [0, 0, 1, 1], [], []>} : vector<16x32xbf16>, vector<32x512xbf16>, vector<16x512xf32> -> vector<16x512xf32>
    %39 = arith.truncf %38 : vector<16x512xf32> to vector<16x512xbf16>
    %c0_23 = arith.constant 0 : index
    %c0_24 = arith.constant 0 : index
    %40 = vector.load %arg7[%c0_23, %c0_24] : memref<512x256xbf16, #tpu.memory_space<vmem>>, vector<512x256xbf16>
    %c0_25 = arith.constant 0 : index
    %c0_26 = arith.constant 0 : index
    %41 = vector.load %arg8[%c0_25, %c0_26] : memref<512x256xbf16, #tpu.memory_space<vmem>>, vector<512x256xbf16>
    %cst_27 = arith.constant dense<0.000000e+00> : vector<16x256xf32>
    %42 = tpu.matmul %36, %40, %cst_27 {dimension_numbers = #tpu.dot_dimension_numbers<[1], [0], [0], [1], [0, 0, 1, 1], [], []>} : vector<16x512xbf16>, vector<512x256xbf16>, vector<16x256xf32> -> vector<16x256xf32>
    %cst_28 = arith.constant dense<0.000000e+00> : vector<16x256xf32>
    %43 = tpu.matmul %36, %41, %cst_28 {dimension_numbers = #tpu.dot_dimension_numbers<[1], [0], [0], [1], [0, 0, 1, 1], [], []>} : vector<16x512xbf16>, vector<512x256xbf16>, vector<16x256xf32> -> vector<16x256xf32>
    %44 = arith.maximumf %42, %43 : vector<16x256xf32>
    %cst_29 = arith.constant dense<0.000000e+00> : vector<16x256xf32>
    %45 = tpu.matmul %39, %40, %cst_29 {dimension_numbers = #tpu.dot_dimension_numbers<[1], [0], [0], [1], [0, 0, 1, 1], [], []>} : vector<16x512xbf16>, vector<512x256xbf16>, vector<16x256xf32> -> vector<16x256xf32>
    %cst_30 = arith.constant dense<0.000000e+00> : vector<16x256xf32>
    %46 = tpu.matmul %39, %41, %cst_30 {dimension_numbers = #tpu.dot_dimension_numbers<[1], [0], [0], [1], [0, 0, 1, 1], [], []>} : vector<16x512xbf16>, vector<512x256xbf16>, vector<16x256xf32> -> vector<16x256xf32>
    %47 = arith.maximumf %45, %46 : vector<16x256xf32>
    %48 = arith.maximumf %44, %47 : vector<16x256xf32>
    %49 = arith.truncf %48 : vector<16x256xf32> to vector<16x256xbf16>
    %c0_31 = arith.constant 0 : index
    %c0_32 = arith.constant 0 : index
    %50 = vector.load %arg9[%c0_31, %c0_32] : memref<16x256xbf16, #tpu.memory_space<vmem>>, vector<16x256xbf16>
    tpu.vector_store %arg9[%c0_31, %c0_32], %49 {strides = array<i32>} : memref<16x256xbf16, #tpu.memory_space<vmem>>, vector<16x256xbf16>,
    return
  }
}

module attributes {stable_mosaic.version = 11 : i64} {
  func.func @_block_kernel(%arg0: memref<8x256xbf16, #tpu.memory_space<vmem>>, %arg1: memref<256x256xbf16, #tpu.memory_space<vmem>>, %arg2: memref<256x256xbf16, #tpu.memory_space<vmem>>, %arg3: memref<256x256xbf16, #tpu.memory_space<vmem>>, %arg4: memref<1x256xf32, #tpu.memory_space<vmem>>, %arg5: memref<256x256xbf16, #tpu.memory_space<vmem>>, %arg6: memref<256x256xbf16, #tpu.memory_space<vmem>>, %arg7: memref<256x256xbf16, #tpu.memory_space<vmem>>, %arg8: memref<1x256xf32, #tpu.memory_space<vmem>>, %arg9: memref<256x256xbf16, #tpu.memory_space<vmem>>, %arg10: memref<1x256xf32, #tpu.memory_space<vmem>>, %arg11: memref<128x8xbf16, #tpu.memory_space<vmem>>, %arg12: memref<1x8xf32, #tpu.memory_space<vmem>>, %arg13: memref<8x128xbf16, #tpu.memory_space<vmem>>, %arg14: memref<1x128xf32, #tpu.memory_space<vmem>>, %arg15: memref<4x256xbf16, #tpu.memory_space<vmem>>) attributes {dimension_semantics = [], scalar_prefetch = 0 : i64, scratch_operands = 0 : i64, tpu.core_type = #tpu.core_type<tc>} {
    %c0 = arith.constant 0 : index
    %c0_0 = arith.constant 0 : index
    %0 = vector.load %arg0[%c0, %c0_0] : memref<8x256xbf16, #tpu.memory_space<vmem>>, vector<8x256xbf16>
    %cst = arith.constant 0.000000e+00 : f32
    %1 = vector.broadcast %cst : f32 to vector<4x256xf32>
    %cst_1 = arith.constant 0.000000e+00 : bf16
    %2 = vector.broadcast %cst_1 : bf16 to vector<1x256xbf16>
    %3 = vector.extract_strided_slice %0 {offsets = [1, 0], sizes = [1, 256], strides = [1, 1]} : vector<8x256xbf16> to vector<1x256xbf16>
    %4 = tpu.concatenate %2, %3 in 0 : vector<1x256xbf16>, vector<1x256xbf16> -> vector<2x256xbf16>
    %cst_2 = arith.constant 0.000000e+00 : bf16
    %5 = vector.broadcast %cst_2 : bf16 to vector<1x256xbf16>
    %6 = vector.extract_strided_slice %0 {offsets = [5, 0], sizes = [1, 256], strides = [1, 1]} : vector<8x256xbf16> to vector<1x256xbf16>
    %7 = tpu.concatenate %5, %6 in 0 : vector<1x256xbf16>, vector<1x256xbf16> -> vector<2x256xbf16>
    %8 = tpu.concatenate %4, %7 in 0 : vector<2x256xbf16>, vector<2x256xbf16> -> vector<4x256xbf16>
    %c0_3 = arith.constant 0 : index
    %c0_4 = arith.constant 0 : index
    %9 = vector.load %arg1[%c0_3, %c0_4] : memref<256x256xbf16, #tpu.memory_space<vmem>>, vector<256x256xbf16>
    %cst_5 = arith.constant dense<0.000000e+00> : vector<4x256xf32>
    %10 = tpu.matmul %8, %9, %cst_5 {dimension_numbers = #tpu.dot_dimension_numbers<[1], [0], [0], [1], [0, 0, 1, 1], [], []>} : vector<4x256xbf16>, vector<256x256xbf16>, vector<4x256xf32> -> vector<4x256xf32>
    %11 = arith.addf %1, %10 : vector<4x256xf32>
    %12 = vector.extract_strided_slice %0 {offsets = [0, 0], sizes = [1, 256], strides = [1, 1]} : vector<8x256xbf16> to vector<1x256xbf16>
    %13 = vector.extract_strided_slice %0 {offsets = [2, 0], sizes = [1, 256], strides = [1, 1]} : vector<8x256xbf16> to vector<1x256xbf16>
    %14 = tpu.concatenate %12, %13 in 0 : vector<1x256xbf16>, vector<1x256xbf16> -> vector<2x256xbf16>
    %15 = vector.extract_strided_slice %0 {offsets = [4, 0], sizes = [1, 256], strides = [1, 1]} : vector<8x256xbf16> to vector<1x256xbf16>
    %16 = vector.extract_strided_slice %0 {offsets = [6, 0], sizes = [1, 256], strides = [1, 1]} : vector<8x256xbf16> to vector<1x256xbf16>
    %17 = tpu.concatenate %15, %16 in 0 : vector<1x256xbf16>, vector<1x256xbf16> -> vector<2x256xbf16>
    %18 = tpu.concatenate %14, %17 in 0 : vector<2x256xbf16>, vector<2x256xbf16> -> vector<4x256xbf16>
    %c0_6 = arith.constant 0 : index
    %c0_7 = arith.constant 0 : index
    %19 = vector.load %arg2[%c0_6, %c0_7] : memref<256x256xbf16, #tpu.memory_space<vmem>>, vector<256x256xbf16>
    %cst_8 = arith.constant dense<0.000000e+00> : vector<4x256xf32>
    %20 = tpu.matmul %18, %19, %cst_8 {dimension_numbers = #tpu.dot_dimension_numbers<[1], [0], [0], [1], [0, 0, 1, 1], [], []>} : vector<4x256xbf16>, vector<256x256xbf16>, vector<4x256xf32> -> vector<4x256xf32>
    %21 = arith.addf %11, %20 : vector<4x256xf32>
    %22 = vector.extract_strided_slice %0 {offsets = [1, 0], sizes = [1, 256], strides = [1, 1]} : vector<8x256xbf16> to vector<1x256xbf16>
    %23 = vector.extract_strided_slice %0 {offsets = [3, 0], sizes = [1, 256], strides = [1, 1]} : vector<8x256xbf16> to vector<1x256xbf16>
    %24 = tpu.concatenate %22, %23 in 0 : vector<1x256xbf16>, vector<1x256xbf16> -> vector<2x256xbf16>
    %25 = vector.extract_strided_slice %0 {offsets = [5, 0], sizes = [1, 256], strides = [1, 1]} : vector<8x256xbf16> to vector<1x256xbf16>
    %26 = vector.extract_strided_slice %0 {offsets = [7, 0], sizes = [1, 256], strides = [1, 1]} : vector<8x256xbf16> to vector<1x256xbf16>
    %27 = tpu.concatenate %25, %26 in 0 : vector<1x256xbf16>, vector<1x256xbf16> -> vector<2x256xbf16>
    %28 = tpu.concatenate %24, %27 in 0 : vector<2x256xbf16>, vector<2x256xbf16> -> vector<4x256xbf16>
    %c0_9 = arith.constant 0 : index
    %c0_10 = arith.constant 0 : index
    %29 = vector.load %arg3[%c0_9, %c0_10] : memref<256x256xbf16, #tpu.memory_space<vmem>>, vector<256x256xbf16>
    %cst_11 = arith.constant dense<0.000000e+00> : vector<4x256xf32>
    %30 = tpu.matmul %28, %29, %cst_11 {dimension_numbers = #tpu.dot_dimension_numbers<[1], [0], [0], [1], [0, 0, 1, 1], [], []>} : vector<4x256xbf16>, vector<256x256xbf16>, vector<4x256xf32> -> vector<4x256xf32>
    %31 = arith.addf %21, %30 : vector<4x256xf32>
    %c0_12 = arith.constant 0 : index
    %c0_13 = arith.constant 0 : index
    %32 = vector.load %arg4[%c0_12, %c0_13] : memref<1x256xf32, #tpu.memory_space<vmem>>, vector<1x256xf32>
    %33 = vector.broadcast %32 : vector<1x256xf32> to vector<4x256xf32>
    %34 = arith.addf %31, %33 : vector<4x256xf32>
    %cst_14 = arith.constant 0.000000e+00 : f32
    %35 = vector.broadcast %cst_14 : f32 to vector<4x256xf32>
    %36 = arith.maximumf %34, %35 : vector<4x256xf32>
    %37 = arith.truncf %36 : vector<4x256xf32> to vector<4x256xbf16>
    %cst_15 = arith.constant 0.000000e+00 : f32
    %38 = vector.broadcast %cst_15 : f32 to vector<4x256xf32>
    %cst_16 = arith.constant 0.000000e+00 : bf16
    %39 = vector.broadcast %cst_16 : bf16 to vector<1x256xbf16>
    %40 = vector.extract_strided_slice %37 {offsets = [0, 0], sizes = [1, 256], strides = [1, 1]} : vector<4x256xbf16> to vector<1x256xbf16>
    %41 = tpu.concatenate %39, %40 in 0 : vector<1x256xbf16>, vector<1x256xbf16> -> vector<2x256xbf16>
    %cst_17 = arith.constant 0.000000e+00 : bf16
    %42 = vector.broadcast %cst_17 : bf16 to vector<1x256xbf16>
    %43 = vector.extract_strided_slice %37 {offsets = [2, 0], sizes = [1, 256], strides = [1, 1]} : vector<4x256xbf16> to vector<1x256xbf16>
    %44 = tpu.concatenate %42, %43 in 0 : vector<1x256xbf16>, vector<1x256xbf16> -> vector<2x256xbf16>
    %45 = tpu.concatenate %41, %44 in 0 : vector<2x256xbf16>, vector<2x256xbf16> -> vector<4x256xbf16>
    %c0_18 = arith.constant 0 : index
    %c0_19 = arith.constant 0 : index
    %46 = vector.load %arg5[%c0_18, %c0_19] : memref<256x256xbf16, #tpu.memory_space<vmem>>, vector<256x256xbf16>
    %cst_20 = arith.constant dense<0.000000e+00> : vector<4x256xf32>
    %47 = tpu.matmul %45, %46, %cst_20 {dimension_numbers = #tpu.dot_dimension_numbers<[1], [0], [0], [1], [0, 0, 1, 1], [], []>} : vector<4x256xbf16>, vector<256x256xbf16>, vector<4x256xf32> -> vector<4x256xf32>
    %48 = arith.addf %38, %47 : vector<4x256xf32>
    %49 = vector.extract_strided_slice %37 {offsets = [0, 0], sizes = [2, 256], strides = [1, 1]} : vector<4x256xbf16> to vector<2x256xbf16>
    %50 = vector.extract_strided_slice %37 {offsets = [2, 0], sizes = [2, 256], strides = [1, 1]} : vector<4x256xbf16> to vector<2x256xbf16>
    %51 = tpu.concatenate %49, %50 in 0 : vector<2x256xbf16>, vector<2x256xbf16> -> vector<4x256xbf16>
    %c0_21 = arith.constant 0 : index
    %c0_22 = arith.constant 0 : index
    %52 = vector.load %arg6[%c0_21, %c0_22] : memref<256x256xbf16, #tpu.memory_space<vmem>>, vector<256x256xbf16>
    %cst_23 = arith.constant dense<0.000000e+00> : vector<4x256xf32>
    %53 = tpu.matmul %51, %52, %cst_23 {dimension_numbers = #tpu.dot_dimension_numbers<[1], [0], [0], [1], [0, 0, 1, 1], [], []>} : vector<4x256xbf16>, vector<256x256xbf16>, vector<4x256xf32> -> vector<4x256xf32>
    %54 = arith.addf %48, %53 : vector<4x256xf32>
    %55 = vector.extract_strided_slice %37 {offsets = [1, 0], sizes = [1, 256], strides = [1, 1]} : vector<4x256xbf16> to vector<1x256xbf16>
    %cst_24 = arith.constant 0.000000e+00 : bf16
    %56 = vector.broadcast %cst_24 : bf16 to vector<1x256xbf16>
    %57 = tpu.concatenate %55, %56 in 0 : vector<1x256xbf16>, vector<1x256xbf16> -> vector<2x256xbf16>
    %58 = vector.extract_strided_slice %37 {offsets = [3, 0], sizes = [1, 256], strides = [1, 1]} : vector<4x256xbf16> to vector<1x256xbf16>
    %cst_25 = arith.constant 0.000000e+00 : bf16
    %59 = vector.broadcast %cst_25 : bf16 to vector<1x256xbf16>
    %60 = tpu.concatenate %58, %59 in 0 : vector<1x256xbf16>, vector<1x256xbf16> -> vector<2x256xbf16>
    %61 = tpu.concatenate %57, %60 in 0 : vector<2x256xbf16>, vector<2x256xbf16> -> vector<4x256xbf16>
    %c0_26 = arith.constant 0 : index
    %c0_27 = arith.constant 0 : index
    %62 = vector.load %arg7[%c0_26, %c0_27] : memref<256x256xbf16, #tpu.memory_space<vmem>>, vector<256x256xbf16>
    %cst_28 = arith.constant dense<0.000000e+00> : vector<4x256xf32>
    %63 = tpu.matmul %61, %62, %cst_28 {dimension_numbers = #tpu.dot_dimension_numbers<[1], [0], [0], [1], [0, 0, 1, 1], [], []>} : vector<4x256xbf16>, vector<256x256xbf16>, vector<4x256xf32> -> vector<4x256xf32>
    %64 = arith.addf %54, %63 : vector<4x256xf32>
    %c0_29 = arith.constant 0 : index
    %c0_30 = arith.constant 0 : index
    %65 = vector.load %arg8[%c0_29, %c0_30] : memref<1x256xf32, #tpu.memory_space<vmem>>, vector<1x256xf32>
    %66 = vector.broadcast %65 : vector<1x256xf32> to vector<4x256xf32>
    %67 = arith.addf %64, %66 : vector<4x256xf32>
    %68 = vector.extract_strided_slice %0 {offsets = [0, 0], sizes = [1, 256], strides = [1, 1]} : vector<8x256xbf16> to vector<1x256xbf16>
    %69 = vector.extract_strided_slice %0 {offsets = [2, 0], sizes = [1, 256], strides = [1, 1]} : vector<8x256xbf16> to vector<1x256xbf16>
    %70 = tpu.concatenate %68, %69 in 0 : vector<1x256xbf16>, vector<1x256xbf16> -> vector<2x256xbf16>
    %71 = vector.extract_strided_slice %0 {offsets = [4, 0], sizes = [1, 256], strides = [1, 1]} : vector<8x256xbf16> to vector<1x256xbf16>
    %72 = vector.extract_strided_slice %0 {offsets = [6, 0], sizes = [1, 256], strides = [1, 1]} : vector<8x256xbf16> to vector<1x256xbf16>
    %73 = tpu.concatenate %71, %72 in 0 : vector<1x256xbf16>, vector<1x256xbf16> -> vector<2x256xbf16>
    %74 = tpu.concatenate %70, %73 in 0 : vector<2x256xbf16>, vector<2x256xbf16> -> vector<4x256xbf16>
    %c0_31 = arith.constant 0 : index
    %c0_32 = arith.constant 0 : index
    %75 = vector.load %arg9[%c0_31, %c0_32] : memref<256x256xbf16, #tpu.memory_space<vmem>>, vector<256x256xbf16>
    %cst_33 = arith.constant dense<0.000000e+00> : vector<4x256xf32>
    %76 = tpu.matmul %74, %75, %cst_33 {dimension_numbers = #tpu.dot_dimension_numbers<[1], [0], [0], [1], [0, 0, 1, 1], [], []>} : vector<4x256xbf16>, vector<256x256xbf16>, vector<4x256xf32> -> vector<4x256xf32>
    %c0_34 = arith.constant 0 : index
    %c0_35 = arith.constant 0 : index
    %77 = vector.load %arg10[%c0_34, %c0_35] : memref<1x256xf32, #tpu.memory_space<vmem>>, vector<1x256xf32>
    %78 = vector.broadcast %77 : vector<1x256xf32> to vector<4x256xf32>
    %79 = arith.addf %76, %78 : vector<4x256xf32>
    %80 = arith.addf %67, %79 : vector<4x256xf32>
    %cst_36 = arith.constant 0.000000e+00 : f32
    %81 = vector.broadcast %cst_36 : f32 to vector<4x256xf32>
    %82 = arith.maximumf %80, %81 : vector<4x256xf32>
    %83 = vector.extract_strided_slice %82 {offsets = [0, 0], sizes = [2, 256], strides = [1, 1]} : vector<4x256xf32> to vector<2x256xf32>
    %cst_37 = arith.constant dense<0.000000e+00> : vector<256xf32>
    %84 = vector.multi_reduction <add>, %83, %cst_37 [0] : vector<2x256xf32> to vector<256xf32>
    %85 = vector.shape_cast %84 : vector<256xf32> to vector<1x256xf32>
    %cst_38 = arith.constant 2.000000e+00 : f32
    %86 = vector.broadcast %cst_38 : f32 to vector<1x256xf32>
    %87 = arith.divf %85, %86 : vector<1x256xf32>
    %cst_39 = arith.constant dense<0xFF800000> : vector<256xf32>
    %88 = vector.multi_reduction <maximumf>, %83, %cst_39 [0] : vector<2x256xf32> to vector<256xf32>
    %89 = vector.shape_cast %88 : vector<256xf32> to vector<1x256xf32>
    %90 = vector.extract_strided_slice %87 {offsets = [0, 0], sizes = [1, 128], strides = [1, 1]} : vector<1x256xf32> to vector<1x128xf32>
    %91 = vector.extract_strided_slice %89 {offsets = [0, 0], sizes = [1, 128], strides = [1, 1]} : vector<1x256xf32> to vector<1x128xf32>
    %92 = vector.extract_strided_slice %87 {offsets = [0, 128], sizes = [1, 128], strides = [1, 1]} : vector<1x256xf32> to vector<1x128xf32>
    %93 = arith.addf %90, %92 : vector<1x128xf32>
    %94 = vector.extract_strided_slice %89 {offsets = [0, 128], sizes = [1, 128], strides = [1, 1]} : vector<1x256xf32> to vector<1x128xf32>
    %95 = arith.maximumf %91, %94 : vector<1x128xf32>
    %cst_40 = arith.constant 5.000000e-01 : f32
    %96 = vector.broadcast %cst_40 : f32 to vector<1x128xf32>
    %97 = arith.mulf %93, %96 : vector<1x128xf32>
    %98 = vector.extract_strided_slice %82 {offsets = [2, 0], sizes = [2, 256], strides = [1, 1]} : vector<4x256xf32> to vector<2x256xf32>
    %cst_41 = arith.constant dense<0.000000e+00> : vector<256xf32>
    %99 = vector.multi_reduction <add>, %98, %cst_41 [0] : vector<2x256xf32> to vector<256xf32>
    %100 = vector.shape_cast %99 : vector<256xf32> to vector<1x256xf32>
    %cst_42 = arith.constant 2.000000e+00 : f32
    %101 = vector.broadcast %cst_42 : f32 to vector<1x256xf32>
    %102 = arith.divf %100, %101 : vector<1x256xf32>
    %cst_43 = arith.constant dense<0xFF800000> : vector<256xf32>
    %103 = vector.multi_reduction <maximumf>, %98, %cst_43 [0] : vector<2x256xf32> to vector<256xf32>
    %104 = vector.shape_cast %103 : vector<256xf32> to vector<1x256xf32>
    %105 = vector.extract_strided_slice %102 {offsets = [0, 0], sizes = [1, 128], strides = [1, 1]} : vector<1x256xf32> to vector<1x128xf32>
    %106 = vector.extract_strided_slice %104 {offsets = [0, 0], sizes = [1, 128], strides = [1, 1]} : vector<1x256xf32> to vector<1x128xf32>
    %107 = vector.extract_strided_slice %102 {offsets = [0, 128], sizes = [1, 128], strides = [1, 1]} : vector<1x256xf32> to vector<1x128xf32>
    %108 = arith.addf %105, %107 : vector<1x128xf32>
    %109 = vector.extract_strided_slice %104 {offsets = [0, 128], sizes = [1, 128], strides = [1, 1]} : vector<1x256xf32> to vector<1x128xf32>
    %110 = arith.maximumf %106, %109 : vector<1x128xf32>
    %cst_44 = arith.constant 5.000000e-01 : f32
    %111 = vector.broadcast %cst_44 : f32 to vector<1x128xf32>
    %112 = arith.mulf %108, %111 : vector<1x128xf32>
    %113 = tpu.concatenate %97, %95, %112, %110 in 0 : vector<1x128xf32>, vector<1x128xf32>, vector<1x128xf32>, vector<1x128xf32> -> vector<4x128xf32>
    %114 = arith.truncf %113 : vector<4x128xf32> to vector<4x128xbf16>
    %c0_45 = arith.constant 0 : index
    %c0_46 = arith.constant 0 : index
    %115 = vector.load %arg11[%c0_45, %c0_46] : memref<128x8xbf16, #tpu.memory_space<vmem>>, vector<128x8xbf16>
    %cst_47 = arith.constant dense<0.000000e+00> : vector<4x8xf32>
    %116 = tpu.matmul %114, %115, %cst_47 {dimension_numbers = #tpu.dot_dimension_numbers<[1], [0], [0], [1], [0, 0, 1, 1], [], []>} : vector<4x128xbf16>, vector<128x8xbf16>, vector<4x8xf32> -> vector<4x8xf32>
    %c0_48 = arith.constant 0 : index
    %c0_49 = arith.constant 0 : index
    %117 = vector.load %arg12[%c0_48, %c0_49] : memref<1x8xf32, #tpu.memory_space<vmem>>, vector<1x8xf32>
    %118 = vector.broadcast %117 : vector<1x8xf32> to vector<4x8xf32>
    %119 = arith.addf %116, %118 : vector<4x8xf32>
    %cst_50 = arith.constant 0.000000e+00 : f32
    %120 = vector.broadcast %cst_50 : f32 to vector<4x8xf32>
    %121 = arith.maximumf %119, %120 : vector<4x8xf32>
    %122 = arith.truncf %121 : vector<4x8xf32> to vector<4x8xbf16>
    %c0_51 = arith.constant 0 : index
    %c0_52 = arith.constant 0 : index
    %123 = vector.load %arg13[%c0_51, %c0_52] : memref<8x128xbf16, #tpu.memory_space<vmem>>, vector<8x128xbf16>
    %cst_53 = arith.constant dense<0.000000e+00> : vector<4x128xf32>
    %124 = tpu.matmul %122, %123, %cst_53 {dimension_numbers = #tpu.dot_dimension_numbers<[1], [0], [0], [1], [0, 0, 1, 1], [], []>} : vector<4x8xbf16>, vector<8x128xbf16>, vector<4x128xf32> -> vector<4x128xf32>
    %c0_54 = arith.constant 0 : index
    %c0_55 = arith.constant 0 : index
    %125 = vector.load %arg14[%c0_54, %c0_55] : memref<1x128xf32, #tpu.memory_space<vmem>>, vector<1x128xf32>
    %126 = vector.broadcast %125 : vector<1x128xf32> to vector<4x128xf32>
    %127 = arith.addf %124, %126 : vector<4x128xf32>
    %128 = vector.extract_strided_slice %127 {offsets = [0, 0], sizes = [1, 128], strides = [1, 1]} : vector<4x128xf32> to vector<1x128xf32>
    %129 = vector.extract_strided_slice %127 {offsets = [1, 0], sizes = [1, 128], strides = [1, 1]} : vector<4x128xf32> to vector<1x128xf32>
    %130 = arith.addf %128, %129 : vector<1x128xf32>
    %131 = arith.negf %130 : vector<1x128xf32>
    %132 = math.exp %131 : vector<1x128xf32>
    %cst_56 = arith.constant 1.000000e+00 : f32
    %133 = vector.broadcast %cst_56 : f32 to vector<1x128xf32>
    %134 = arith.addf %133, %132 : vector<1x128xf32>
    %135 = arith.divf %133, %134 : vector<1x128xf32>
    %136 = tpu.concatenate %135, %135 in 1 : vector<1x128xf32>, vector<1x128xf32> -> vector<1x256xf32>
    %137 = vector.extract_strided_slice %82 {offsets = [0, 0], sizes = [2, 256], strides = [1, 1]} : vector<4x256xf32> to vector<2x256xf32>
    %138 = vector.broadcast %136 : vector<1x256xf32> to vector<2x256xf32>
    %139 = arith.mulf %137, %138 : vector<2x256xf32>
    %140 = vector.extract_strided_slice %127 {offsets = [2, 0], sizes = [1, 128], strides = [1, 1]} : vector<4x128xf32> to vector<1x128xf32>
    %141 = vector.extract_strided_slice %127 {offsets = [3, 0], sizes = [1, 128], strides = [1, 1]} : vector<4x128xf32> to vector<1x128xf32>
    %142 = arith.addf %140, %141 : vector<1x128xf32>
    %143 = arith.negf %142 : vector<1x128xf32>
    %144 = math.exp %143 : vector<1x128xf32>
    %cst_57 = arith.constant 1.000000e+00 : f32
    %145 = vector.broadcast %cst_57 : f32 to vector<1x128xf32>
    %146 = arith.addf %145, %144 : vector<1x128xf32>
    %147 = arith.divf %145, %146 : vector<1x128xf32>
    %148 = tpu.concatenate %147, %147 in 1 : vector<1x128xf32>, vector<1x128xf32> -> vector<1x256xf32>
    %149 = vector.extract_strided_slice %82 {offsets = [2, 0], sizes = [2, 256], strides = [1, 1]} : vector<4x256xf32> to vector<2x256xf32>
    %150 = vector.broadcast %148 : vector<1x256xf32> to vector<2x256xf32>
    %151 = arith.mulf %149, %150 : vector<2x256xf32>
    %152 = tpu.concatenate %139, %151 in 0 : vector<2x256xf32>, vector<2x256xf32> -> vector<4x256xf32>
    %153 = arith.truncf %152 : vector<4x256xf32> to vector<4x256xbf16>
    %c0_58 = arith.constant 0 : index
    %c0_59 = arith.constant 0 : index
    %154 = vector.load %arg15[%c0_58, %c0_59] : memref<4x256xbf16, #tpu.memory_space<vmem>>, vector<4x256xbf16>
    tpu.vector_store %arg15[%c0_58, %c0_59], %153 {strides = array<i32>} : memref<4x256xbf16, #tpu.memory_space<vmem>>, vector<4x256xbf16>,
    return
  }
}

module attributes {stable_mosaic.version = 11 : i64} {
  func.func @_block_kernel(%arg0: memref<4x256xbf16, #tpu.memory_space<vmem>>, %arg1: memref<256x256xbf16, #tpu.memory_space<vmem>>, %arg2: memref<256x256xbf16, #tpu.memory_space<vmem>>, %arg3: memref<256x256xbf16, #tpu.memory_space<vmem>>, %arg4: memref<1x256xf32, #tpu.memory_space<vmem>>, %arg5: memref<256x256xbf16, #tpu.memory_space<vmem>>, %arg6: memref<256x256xbf16, #tpu.memory_space<vmem>>, %arg7: memref<256x256xbf16, #tpu.memory_space<vmem>>, %arg8: memref<1x256xf32, #tpu.memory_space<vmem>>, %arg9: memref<256x256xbf16, #tpu.memory_space<vmem>>, %arg10: memref<1x256xf32, #tpu.memory_space<vmem>>, %arg11: memref<256x16xbf16, #tpu.memory_space<vmem>>, %arg12: memref<1x16xf32, #tpu.memory_space<vmem>>, %arg13: memref<16x256xbf16, #tpu.memory_space<vmem>>, %arg14: memref<1x256xf32, #tpu.memory_space<vmem>>, %arg15: memref<256x512xbf16, #tpu.memory_space<vmem>>, %arg16: memref<1x512xf32, #tpu.memory_space<vmem>>, %arg17: memref<512x128xbf16, #tpu.memory_space<vmem>>, %arg18: memref<1x128xf32, #tpu.memory_space<vmem>>, %arg19: memref<2x128xf32, #tpu.memory_space<vmem>>) attributes {dimension_semantics = [], scalar_prefetch = 0 : i64, scratch_operands = 0 : i64, tpu.core_type = #tpu.core_type<tc>} {
    %c0 = arith.constant 0 : index
    %c0_0 = arith.constant 0 : index
    %0 = vector.load %arg0[%c0, %c0_0] : memref<4x256xbf16, #tpu.memory_space<vmem>>, vector<4x256xbf16>
    %cst = arith.constant 0.000000e+00 : f32
    %1 = vector.broadcast %cst : f32 to vector<2x256xf32>
    %cst_1 = arith.constant 0.000000e+00 : bf16
    %2 = vector.broadcast %cst_1 : bf16 to vector<1x256xbf16>
    %cst_2 = arith.constant 0.000000e+00 : bf16
    %3 = vector.broadcast %cst_2 : bf16 to vector<1x256xbf16>
    %4 = tpu.concatenate %2, %3 in 0 : vector<1x256xbf16>, vector<1x256xbf16> -> vector<2x256xbf16>
    %c0_3 = arith.constant 0 : index
    %c0_4 = arith.constant 0 : index
    %5 = vector.load %arg1[%c0_3, %c0_4] : memref<256x256xbf16, #tpu.memory_space<vmem>>, vector<256x256xbf16>
    %cst_5 = arith.constant dense<0.000000e+00> : vector<2x256xf32>
    %6 = tpu.matmul %4, %5, %cst_5 {dimension_numbers = #tpu.dot_dimension_numbers<[1], [0], [0], [1], [0, 0, 1, 1], [], []>} : vector<2x256xbf16>, vector<256x256xbf16>, vector<2x256xf32> -> vector<2x256xf32>
    %7 = arith.addf %1, %6 : vector<2x256xf32>
    %8 = vector.extract_strided_slice %0 {offsets = [0, 0], sizes = [1, 256], strides = [1, 1]} : vector<4x256xbf16> to vector<1x256xbf16>
    %9 = vector.extract_strided_slice %0 {offsets = [2, 0], sizes = [1, 256], strides = [1, 1]} : vector<4x256xbf16> to vector<1x256xbf16>
    %10 = tpu.concatenate %8, %9 in 0 : vector<1x256xbf16>, vector<1x256xbf16> -> vector<2x256xbf16>
    %c0_6 = arith.constant 0 : index
    %c0_7 = arith.constant 0 : index
    %11 = vector.load %arg2[%c0_6, %c0_7] : memref<256x256xbf16, #tpu.memory_space<vmem>>, vector<256x256xbf16>
    %cst_8 = arith.constant dense<0.000000e+00> : vector<2x256xf32>
    %12 = tpu.matmul %10, %11, %cst_8 {dimension_numbers = #tpu.dot_dimension_numbers<[1], [0], [0], [1], [0, 0, 1, 1], [], []>} : vector<2x256xbf16>, vector<256x256xbf16>, vector<2x256xf32> -> vector<2x256xf32>
    %13 = arith.addf %7, %12 : vector<2x256xf32>
    %14 = vector.extract_strided_slice %0 {offsets = [1, 0], sizes = [1, 256], strides = [1, 1]} : vector<4x256xbf16> to vector<1x256xbf16>
    %15 = vector.extract_strided_slice %0 {offsets = [3, 0], sizes = [1, 256], strides = [1, 1]} : vector<4x256xbf16> to vector<1x256xbf16>
    %16 = tpu.concatenate %14, %15 in 0 : vector<1x256xbf16>, vector<1x256xbf16> -> vector<2x256xbf16>
    %c0_9 = arith.constant 0 : index
    %c0_10 = arith.constant 0 : index
    %17 = vector.load %arg3[%c0_9, %c0_10] : memref<256x256xbf16, #tpu.memory_space<vmem>>, vector<256x256xbf16>
    %cst_11 = arith.constant dense<0.000000e+00> : vector<2x256xf32>
    %18 = tpu.matmul %16, %17, %cst_11 {dimension_numbers = #tpu.dot_dimension_numbers<[1], [0], [0], [1], [0, 0, 1, 1], [], []>} : vector<2x256xbf16>, vector<256x256xbf16>, vector<2x256xf32> -> vector<2x256xf32>
    %19 = arith.addf %13, %18 : vector<2x256xf32>
    %c0_12 = arith.constant 0 : index
    %c0_13 = arith.constant 0 : index
    %20 = vector.load %arg4[%c0_12, %c0_13] : memref<1x256xf32, #tpu.memory_space<vmem>>, vector<1x256xf32>
    %21 = vector.broadcast %20 : vector<1x256xf32> to vector<2x256xf32>
    %22 = arith.addf %19, %21 : vector<2x256xf32>
    %cst_14 = arith.constant 0.000000e+00 : f32
    %23 = vector.broadcast %cst_14 : f32 to vector<2x256xf32>
    %24 = arith.maximumf %22, %23 : vector<2x256xf32>
    %25 = arith.truncf %24 : vector<2x256xf32> to vector<2x256xbf16>
    %cst_15 = arith.constant 0.000000e+00 : f32
    %26 = vector.broadcast %cst_15 : f32 to vector<2x256xf32>
    %cst_16 = arith.constant 0.000000e+00 : bf16
    %27 = vector.broadcast %cst_16 : bf16 to vector<1x256xbf16>
    %cst_17 = arith.constant 0.000000e+00 : bf16
    %28 = vector.broadcast %cst_17 : bf16 to vector<1x256xbf16>
    %29 = tpu.concatenate %27, %28 in 0 : vector<1x256xbf16>, vector<1x256xbf16> -> vector<2x256xbf16>
    %c0_18 = arith.constant 0 : index
    %c0_19 = arith.constant 0 : index
    %30 = vector.load %arg5[%c0_18, %c0_19] : memref<256x256xbf16, #tpu.memory_space<vmem>>, vector<256x256xbf16>
    %cst_20 = arith.constant dense<0.000000e+00> : vector<2x256xf32>
    %31 = tpu.matmul %29, %30, %cst_20 {dimension_numbers = #tpu.dot_dimension_numbers<[1], [0], [0], [1], [0, 0, 1, 1], [], []>} : vector<2x256xbf16>, vector<256x256xbf16>, vector<2x256xf32> -> vector<2x256xf32>
    %32 = arith.addf %26, %31 : vector<2x256xf32>
    %33 = vector.extract_strided_slice %25 {offsets = [0, 0], sizes = [1, 256], strides = [1, 1]} : vector<2x256xbf16> to vector<1x256xbf16>
    %34 = vector.extract_strided_slice %25 {offsets = [1, 0], sizes = [1, 256], strides = [1, 1]} : vector<2x256xbf16> to vector<1x256xbf16>
    %35 = tpu.concatenate %33, %34 in 0 : vector<1x256xbf16>, vector<1x256xbf16> -> vector<2x256xbf16>
    %c0_21 = arith.constant 0 : index
    %c0_22 = arith.constant 0 : index
    %36 = vector.load %arg6[%c0_21, %c0_22] : memref<256x256xbf16, #tpu.memory_space<vmem>>, vector<256x256xbf16>
    %cst_23 = arith.constant dense<0.000000e+00> : vector<2x256xf32>
    %37 = tpu.matmul %35, %36, %cst_23 {dimension_numbers = #tpu.dot_dimension_numbers<[1], [0], [0], [1], [0, 0, 1, 1], [], []>} : vector<2x256xbf16>, vector<256x256xbf16>, vector<2x256xf32> -> vector<2x256xf32>
    %38 = arith.addf %32, %37 : vector<2x256xf32>
    %cst_24 = arith.constant 0.000000e+00 : bf16
    %39 = vector.broadcast %cst_24 : bf16 to vector<1x256xbf16>
    %cst_25 = arith.constant 0.000000e+00 : bf16
    %40 = vector.broadcast %cst_25 : bf16 to vector<1x256xbf16>
    %41 = tpu.concatenate %39, %40 in 0 : vector<1x256xbf16>, vector<1x256xbf16> -> vector<2x256xbf16>
    %c0_26 = arith.constant 0 : index
    %c0_27 = arith.constant 0 : index
    %42 = vector.load %arg7[%c0_26, %c0_27] : memref<256x256xbf16, #tpu.memory_space<vmem>>, vector<256x256xbf16>
    %cst_28 = arith.constant dense<0.000000e+00> : vector<2x256xf32>
    %43 = tpu.matmul %41, %42, %cst_28 {dimension_numbers = #tpu.dot_dimension_numbers<[1], [0], [0], [1], [0, 0, 1, 1], [], []>} : vector<2x256xbf16>, vector<256x256xbf16>, vector<2x256xf32> -> vector<2x256xf32>
    %44 = arith.addf %38, %43 : vector<2x256xf32>
    %c0_29 = arith.constant 0 : index
    %c0_30 = arith.constant 0 : index
    %45 = vector.load %arg8[%c0_29, %c0_30] : memref<1x256xf32, #tpu.memory_space<vmem>>, vector<1x256xf32>
    %46 = vector.broadcast %45 : vector<1x256xf32> to vector<2x256xf32>
    %47 = arith.addf %44, %46 : vector<2x256xf32>
    %48 = vector.extract_strided_slice %0 {offsets = [0, 0], sizes = [1, 256], strides = [1, 1]} : vector<4x256xbf16> to vector<1x256xbf16>
    %49 = vector.extract_strided_slice %0 {offsets = [2, 0], sizes = [1, 256], strides = [1, 1]} : vector<4x256xbf16> to vector<1x256xbf16>
    %50 = tpu.concatenate %48, %49 in 0 : vector<1x256xbf16>, vector<1x256xbf16> -> vector<2x256xbf16>
    %c0_31 = arith.constant 0 : index
    %c0_32 = arith.constant 0 : index
    %51 = vector.load %arg9[%c0_31, %c0_32] : memref<256x256xbf16, #tpu.memory_space<vmem>>, vector<256x256xbf16>
    %cst_33 = arith.constant dense<0.000000e+00> : vector<2x256xf32>
    %52 = tpu.matmul %50, %51, %cst_33 {dimension_numbers = #tpu.dot_dimension_numbers<[1], [0], [0], [1], [0, 0, 1, 1], [], []>} : vector<2x256xbf16>, vector<256x256xbf16>, vector<2x256xf32> -> vector<2x256xf32>
    %c0_34 = arith.constant 0 : index
    %c0_35 = arith.constant 0 : index
    %53 = vector.load %arg10[%c0_34, %c0_35] : memref<1x256xf32, #tpu.memory_space<vmem>>, vector<1x256xf32>
    %54 = vector.broadcast %53 : vector<1x256xf32> to vector<2x256xf32>
    %55 = arith.addf %52, %54 : vector<2x256xf32>
    %56 = arith.addf %47, %55 : vector<2x256xf32>
    %cst_36 = arith.constant 0.000000e+00 : f32
    %57 = vector.broadcast %cst_36 : f32 to vector<2x256xf32>
    %58 = arith.maximumf %56, %57 : vector<2x256xf32>
    %59 = vector.extract_strided_slice %58 {offsets = [0, 0], sizes = [1, 256], strides = [1, 1]} : vector<2x256xf32> to vector<1x256xf32>
    %cst_37 = arith.constant dense<0.000000e+00> : vector<256xf32>
    %60 = vector.multi_reduction <add>, %59, %cst_37 [0] : vector<1x256xf32> to vector<256xf32>
    %61 = vector.shape_cast %60 : vector<256xf32> to vector<1x256xf32>
    %cst_38 = arith.constant 1.000000e+00 : f32
    %62 = vector.broadcast %cst_38 : f32 to vector<1x256xf32>
    %63 = arith.divf %61, %62 : vector<1x256xf32>
    %cst_39 = arith.constant dense<0xFF800000> : vector<256xf32>
    %64 = vector.multi_reduction <maximumf>, %59, %cst_39 [0] : vector<1x256xf32> to vector<256xf32>
    %65 = vector.shape_cast %64 : vector<256xf32> to vector<1x256xf32>
    %cst_40 = arith.constant 1.000000e+00 : f32
    %66 = vector.broadcast %cst_40 : f32 to vector<1x256xf32>
    %67 = arith.mulf %63, %66 : vector<1x256xf32>
    %68 = vector.extract_strided_slice %58 {offsets = [1, 0], sizes = [1, 256], strides = [1, 1]} : vector<2x256xf32> to vector<1x256xf32>
    %cst_41 = arith.constant dense<0.000000e+00> : vector<256xf32>
    %69 = vector.multi_reduction <add>, %68, %cst_41 [0] : vector<1x256xf32> to vector<256xf32>
    %70 = vector.shape_cast %69 : vector<256xf32> to vector<1x256xf32>
    %cst_42 = arith.constant 1.000000e+00 : f32
    %71 = vector.broadcast %cst_42 : f32 to vector<1x256xf32>
    %72 = arith.divf %70, %71 : vector<1x256xf32>
    %cst_43 = arith.constant dense<0xFF800000> : vector<256xf32>
    %73 = vector.multi_reduction <maximumf>, %68, %cst_43 [0] : vector<1x256xf32> to vector<256xf32>
    %74 = vector.shape_cast %73 : vector<256xf32> to vector<1x256xf32>
    %cst_44 = arith.constant 1.000000e+00 : f32
    %75 = vector.broadcast %cst_44 : f32 to vector<1x256xf32>
    %76 = arith.mulf %72, %75 : vector<1x256xf32>
    %77 = tpu.concatenate %67, %65, %76, %74 in 0 : vector<1x256xf32>, vector<1x256xf32>, vector<1x256xf32>, vector<1x256xf32> -> vector<4x256xf32>
    %78 = arith.truncf %77 : vector<4x256xf32> to vector<4x256xbf16>
    %c0_45 = arith.constant 0 : index
    %c0_46 = arith.constant 0 : index
    %79 = vector.load %arg11[%c0_45, %c0_46] : memref<256x16xbf16, #tpu.memory_space<vmem>>, vector<256x16xbf16>
    %cst_47 = arith.constant dense<0.000000e+00> : vector<4x16xf32>
    %80 = tpu.matmul %78, %79, %cst_47 {dimension_numbers = #tpu.dot_dimension_numbers<[1], [0], [0], [1], [0, 0, 1, 1], [], []>} : vector<4x256xbf16>, vector<256x16xbf16>, vector<4x16xf32> -> vector<4x16xf32>
    %c0_48 = arith.constant 0 : index
    %c0_49 = arith.constant 0 : index
    %81 = vector.load %arg12[%c0_48, %c0_49] : memref<1x16xf32, #tpu.memory_space<vmem>>, vector<1x16xf32>
    %82 = vector.broadcast %81 : vector<1x16xf32> to vector<4x16xf32>
    %83 = arith.addf %80, %82 : vector<4x16xf32>
    %cst_50 = arith.constant 0.000000e+00 : f32
    %84 = vector.broadcast %cst_50 : f32 to vector<4x16xf32>
    %85 = arith.maximumf %83, %84 : vector<4x16xf32>
    %86 = arith.truncf %85 : vector<4x16xf32> to vector<4x16xbf16>
    %c0_51 = arith.constant 0 : index
    %c0_52 = arith.constant 0 : index
    %87 = vector.load %arg13[%c0_51, %c0_52] : memref<16x256xbf16, #tpu.memory_space<vmem>>, vector<16x256xbf16>
    %cst_53 = arith.constant dense<0.000000e+00> : vector<4x256xf32>
    %88 = tpu.matmul %86, %87, %cst_53 {dimension_numbers = #tpu.dot_dimension_numbers<[1], [0], [0], [1], [0, 0, 1, 1], [], []>} : vector<4x16xbf16>, vector<16x256xbf16>, vector<4x256xf32> -> vector<4x256xf32>
    %c0_54 = arith.constant 0 : index
    %c0_55 = arith.constant 0 : index
    %89 = vector.load %arg14[%c0_54, %c0_55] : memref<1x256xf32, #tpu.memory_space<vmem>>, vector<1x256xf32>
    %90 = vector.broadcast %89 : vector<1x256xf32> to vector<4x256xf32>
    %91 = arith.addf %88, %90 : vector<4x256xf32>
    %92 = vector.extract_strided_slice %91 {offsets = [0, 0], sizes = [1, 256], strides = [1, 1]} : vector<4x256xf32> to vector<1x256xf32>
    %93 = vector.extract_strided_slice %91 {offsets = [1, 0], sizes = [1, 256], strides = [1, 1]} : vector<4x256xf32> to vector<1x256xf32>
    %94 = arith.addf %92, %93 : vector<1x256xf32>
    %95 = arith.negf %94 : vector<1x256xf32>
    %96 = math.exp %95 : vector<1x256xf32>
    %cst_56 = arith.constant 1.000000e+00 : f32
    %97 = vector.broadcast %cst_56 : f32 to vector<1x256xf32>
    %98 = arith.addf %97, %96 : vector<1x256xf32>
    %99 = arith.divf %97, %98 : vector<1x256xf32>
    %100 = vector.extract_strided_slice %58 {offsets = [0, 0], sizes = [1, 256], strides = [1, 1]} : vector<2x256xf32> to vector<1x256xf32>
    %101 = arith.mulf %100, %99 : vector<1x256xf32>
    %102 = vector.extract_strided_slice %91 {offsets = [2, 0], sizes = [1, 256], strides = [1, 1]} : vector<4x256xf32> to vector<1x256xf32>
    %103 = vector.extract_strided_slice %91 {offsets = [3, 0], sizes = [1, 256], strides = [1, 1]} : vector<4x256xf32> to vector<1x256xf32>
    %104 = arith.addf %102, %103 : vector<1x256xf32>
    %105 = arith.negf %104 : vector<1x256xf32>
    %106 = math.exp %105 : vector<1x256xf32>
    %cst_57 = arith.constant 1.000000e+00 : f32
    %107 = vector.broadcast %cst_57 : f32 to vector<1x256xf32>
    %108 = arith.addf %107, %106 : vector<1x256xf32>
    %109 = arith.divf %107, %108 : vector<1x256xf32>
    %110 = vector.extract_strided_slice %58 {offsets = [1, 0], sizes = [1, 256], strides = [1, 1]} : vector<2x256xf32> to vector<1x256xf32>
    %111 = arith.mulf %110, %109 : vector<1x256xf32>
    %112 = tpu.concatenate %101, %111 in 0 : vector<1x256xf32>, vector<1x256xf32> -> vector<2x256xf32>
    %113 = vector.extract_strided_slice %112 {offsets = [0, 0], sizes = [1, 256], strides = [1, 1]} : vector<2x256xf32> to vector<1x256xf32>
    %cst_58 = arith.constant dense<0.000000e+00> : vector<256xf32>
    %114 = vector.multi_reduction <add>, %113, %cst_58 [0] : vector<1x256xf32> to vector<256xf32>
    %115 = vector.shape_cast %114 : vector<256xf32> to vector<1x256xf32>
    %cst_59 = arith.constant 1.000000e+00 : f32
    %116 = vector.broadcast %cst_59 : f32 to vector<1x256xf32>
    %117 = arith.divf %115, %116 : vector<1x256xf32>
    %cst_60 = arith.constant 1.000000e+00 : f32
    %118 = vector.broadcast %cst_60 : f32 to vector<1x256xf32>
    %119 = arith.mulf %117, %118 : vector<1x256xf32>
    %120 = vector.extract_strided_slice %112 {offsets = [1, 0], sizes = [1, 256], strides = [1, 1]} : vector<2x256xf32> to vector<1x256xf32>
    %cst_61 = arith.constant dense<0.000000e+00> : vector<256xf32>
    %121 = vector.multi_reduction <add>, %120, %cst_61 [0] : vector<1x256xf32> to vector<256xf32>
    %122 = vector.shape_cast %121 : vector<256xf32> to vector<1x256xf32>
    %cst_62 = arith.constant 1.000000e+00 : f32
    %123 = vector.broadcast %cst_62 : f32 to vector<1x256xf32>
    %124 = arith.divf %122, %123 : vector<1x256xf32>
    %cst_63 = arith.constant 1.000000e+00 : f32
    %125 = vector.broadcast %cst_63 : f32 to vector<1x256xf32>
    %126 = arith.mulf %124, %125 : vector<1x256xf32>
    %127 = tpu.concatenate %119, %126 in 0 : vector<1x256xf32>, vector<1x256xf32> -> vector<2x256xf32>
    %128 = arith.truncf %127 : vector<2x256xf32> to vector<2x256xbf16>
    %c0_64 = arith.constant 0 : index
    %c0_65 = arith.constant 0 : index
    %129 = vector.load %arg15[%c0_64, %c0_65] : memref<256x512xbf16, #tpu.memory_space<vmem>>, vector<256x512xbf16>
    %cst_66 = arith.constant dense<0.000000e+00> : vector<2x512xf32>
    %130 = tpu.matmul %128, %129, %cst_66 {dimension_numbers = #tpu.dot_dimension_numbers<[1], [0], [0], [1], [0, 0, 1, 1], [], []>} : vector<2x256xbf16>, vector<256x512xbf16>, vector<2x512xf32> -> vector<2x512xf32>
    %c0_67 = arith.constant 0 : index
    %c0_68 = arith.constant 0 : index
    %131 = vector.load %arg16[%c0_67, %c0_68] : memref<1x512xf32, #tpu.memory_space<vmem>>, vector<1x512xf32>
    %132 = vector.broadcast %131 : vector<1x512xf32> to vector<2x512xf32>
    %133 = arith.addf %130, %132 : vector<2x512xf32>
    %cst_69 = arith.constant 0.000000e+00 : f32
    %134 = vector.broadcast %cst_69 : f32 to vector<2x512xf32>
    %135 = arith.maximumf %133, %134 : vector<2x512xf32>
    %136 = arith.truncf %135 : vector<2x512xf32> to vector<2x512xbf16>
    %c0_70 = arith.constant 0 : index
    %c0_71 = arith.constant 0 : index
    %137 = vector.load %arg17[%c0_70, %c0_71] : memref<512x128xbf16, #tpu.memory_space<vmem>>, vector<512x128xbf16>
    %cst_72 = arith.constant dense<0.000000e+00> : vector<2x128xf32>
    %138 = tpu.matmul %136, %137, %cst_72 {dimension_numbers = #tpu.dot_dimension_numbers<[1], [0], [0], [1], [0, 0, 1, 1], [], []>} : vector<2x512xbf16>, vector<512x128xbf16>, vector<2x128xf32> -> vector<2x128xf32>
    %c0_73 = arith.constant 0 : index
    %c0_74 = arith.constant 0 : index
    %139 = vector.load %arg18[%c0_73, %c0_74] : memref<1x128xf32, #tpu.memory_space<vmem>>, vector<1x128xf32>
    %140 = vector.broadcast %139 : vector<1x128xf32> to vector<2x128xf32>
    %141 = arith.addf %138, %140 : vector<2x128xf32>
    %c0_75 = arith.constant 0 : index
    %c0_76 = arith.constant 0 : index
    %142 = vector.load %arg19[%c0_75, %c0_76] : memref<2x128xf32, #tpu.memory_space<vmem>>, vector<2x128xf32>
    tpu.vector_store %arg19[%c0_75, %c0_76], %141 {strides = array<i32>} : memref<2x128xf32, #tpu.memory_space<vmem>>, vector<2x128xf32>,
    return
  }
}

</mosaic_0001>

<bundles_post_ra>
// kernel: forward.4
= control target key start
LH: loop header
LB: loop body
LE: loop exit
PB: predicated region body
PF: predicated region fallthrough
CT: control target
= control target key end

     0   :  { %14 = vsyncpa [#allocation3], 0  ;;  %s3132_s0 = inlined_call_operand.vmem [shape: bf16[32,16], index: 0, kind: input, shape index: {}]   ;;  %s3133_s1 = inlined_call_operand.vmem [shape: bf16[16,512], index: 1, kind: input, shape index: {}]   ;;  %s3134_s2 = inlined_call_operand.vmem [shape: bf16[16,512], index: 2, kind: input, shape index: {}]   ;;  %s3135_s3 = inlined_call_operand.vmem [shape: bf16[16,512], index: 3, kind: input, shape index: {}]   ;;  %s3136_s4 = inlined_call_operand.vmem [shape: f32[1,512], index: 4, kind: input, shape index: {}]   ;;  %s3137_s5 = inlined_call_operand.vmem [shape: bf16[16,32], index: 5, kind: input, shape index: {}]   ;;  %s3138_s6 = inlined_call_operand.vmem [shape: bf16[16,32], index: 6, kind: input, shape index: {}]   ;;  %s3139_s7 = inlined_call_operand.hbm [shape: bf16[512,256], index: 7, kind: input, shape index: {}]   ;;  %s3140_s8 = inlined_call_operand.hbm [shape: bf16[512,256], index: 8, kind: input, shape index: {}]   ;;  %s3141_s9 = inlined_call_operand.vmem [shape: bf16[16,256], index: 9, kind: output, shape index: {}]  }
   0x1   :  { %15 = vsyncpa [#allocation5], 0  ;;  %s2416_s30 = smov [#allocation2]   ;;  %s2368_s13 = scalar_lea.hbm %s3139_s7, 8192 }
   0x2   :  { %s35_s10 = sshll.u32 %s2416_s30, 4  ;;  %p2369_p0 = scmp.ne.s32.totalorder %s3139_s7, %s2368_s13  ;;  %s36_s10 = int_to_ptr.vmem [resolvable:$true] %s35_s10 }
   0x3   :  { %p2372_p1 = scmp.lt.u32.totalorder %s2368_s13, %s3139_s7 }
   0x5   :  { %p2374_p2 = pnand %p2372_p1, %p2369_p0 }
   0x7   :  { %2377 = shalt.err (!%p2374_p2)
}
   0x8   :  { %s2378_s18 = scalar_lea.vmem %s36_s10, 8192  ;;  %p2383_p4 = scmp.lt.s32.totalorder %s36_s10, %s36_s10 }
   0x9   :  { %p2379_p3 = scmp.ne.s32.totalorder %s36_s10, %s2378_s18  ;;  %p2384_p5 = scmp.lt.s32.totalorder %s2378_s18, %s2378_s18 }
   0xb   :  { %p2385_p6 = por %p2384_p5, %p2383_p4 }
   0xd   :  { %p2386_p7 = pnand %p2385_p6, %p2379_p3 }
   0xf   :  { %2389 = shalt.err (!%p2386_p7)
}
  0x10   :  { %s2417_s19 = smov 128   ;;  %s2418_s20 = smov 8  }
  0x11   :  { %41 = dma.hbm_to_vmem [thread:$0]  %s3139_s7, 8192, %s36_s10, [#allocation3], %s2417_s19, %s2417_s19, %s2418_s20  }
  0x12   :  { %s2419_s23 = smov [#allocation4]   ;;  %s2390_s27 = scalar_lea.hbm %s3140_s8, 8192 }
  0x13   :  { %s47_s24 = sshll.u32 %s2419_s23, 4  ;;  %p2391_p8 = scmp.ne.s32.totalorder %s3140_s8, %s2390_s27  ;;  %s48_s24 = int_to_ptr.vmem [resolvable:$true] %s47_s24 }
  0x14   :  { %p2394_p9 = scmp.lt.u32.totalorder %s2390_s27, %s3140_s8 }
  0x16   :  { %p2396_p10 = pnand %p2394_p9, %p2391_p8 }
  0x18   :  { %2399 = shalt.err (!%p2396_p10)
}
  0x19   :  { %s2400_s12 = scalar_lea.vmem %s48_s24, 8192  ;;  %p2405_p12 = scmp.lt.s32.totalorder %s48_s24, %s48_s24 }
  0x1a   :  { %p2401_p11 = scmp.ne.s32.totalorder %s48_s24, %s2400_s12  ;;  %p2406_p13 = scmp.lt.s32.totalorder %s2400_s12, %s2400_s12 }
  0x1c   :  { %p2407_p0 = por %p2406_p13, %p2405_p12 }
  0x1e   :  { %p2408_p1 = pnand %p2407_p0, %p2401_p11 }
  0x20   :  { %2411 = shalt.err (!%p2408_p1)
}
  0x21   :  { %53 = dma.hbm_to_vmem [thread:$0]  %s3140_s8, 8192, %s48_s24, [#allocation5], %s2417_s19, %s2417_s19, %s2418_s20  }
  0x22   :  { %2412 = dma.done.wait [#allocation3], 8192  }
  0x23   :  { %2413 = vsyncadd [#allocation3], 4294959104 }
  0x24   :  { %2414 = dma.done.wait [#allocation5], 8192  }
  0x25   :  { %2415 = vsyncadd [#allocation5], 4294959104  ;;  %v2420_v0 = vmov 0   ;;  %v2154_v1 = vld [vmem:[%s3134_s2 + $0x4] ss:$16 sps:$4 sm:$0xff]   ;;  %vm124_vm0 = vcmask 130048   ;;  %v532_v33 = vlaneseq }
  0x26   :  { %161 = vmatprep.mubr.bf16.mxu0 %v2420_v0  ;;  %214 = vmatprep.mubr.bf16.mxu1 %v2420_v0  ;;  %v2156_v2 = vld [vmem:[%s3134_s2] ss:$16 sps:$4 sm:$0xff]   ;;  %v2160_v5 = vld [vmem:[%s3133_s1 + $0x4] ss:$16 sps:$4 sm:$0xff]   ;;  %vm79_vm1 = vsmask.f32 256 }
  0x27   :  { %129 = vmatprep.subr.bf16.mxu0 %v2154_v1  ;;  %v2157_v3 = vld [vmem:[%s3132_s0] sm:$0xff]   ;;  %v2162_v6 = vld [vmem:[%s3134_s2 + $0xc] ss:$16 sps:$4 sm:$0xff]   ;;  %v2164_v7 = vld [vmem:[%s3134_s2 + $0x8] ss:$16 sps:$4 sm:$0xff]   ;;  %vm78_vm2 = vcmask 1040384  }
  0x28   :  { %130 = vmatpush1.bf16.msra.mxu0 %v2156_v2  ;;  %v2158_v4 = vld [vmem:[%s3133_s1] ss:$16 sps:$4 sm:$0xff]   ;;  %v71_v8 = vshrl.u32 %v2157_v3, 16  ;;  %v2167_v9 = vld [vmem:[%s3135_s3 + $0x4] ss:$16 sps:$4 sm:$0xff]   ;;  %v2161_v10 = vld [vmem:[%s3132_s0 + $0x8] sm:$0xff]   ;;  %182 = vmatprep.subr.bf16.mxu1 %v2162_v6 }
  0x29   :  { %261 = vmatprep.subr.bf16.mxu0 %v2160_v5  ;;  %vm2526_vm3 = vmand %vm78_vm2, %vm79_vm1  ;;  %v2170_v12 = vld [vmem:[%s3133_s1 + $0xc] ss:$16 sps:$4 sm:$0xff]   ;;  %183 = vmatpush1.bf16.msra.mxu1 %v2164_v7  ;;  %v2168_v13 = vld [vmem:[%s3133_s1 + $0x8] ss:$16 sps:$4 sm:$0xff]   ;;  %v74_v15 = vshll.u32 %v2157_v3, 16  ;;  %v88_v18 = vshrl.u32 %v2161_v10, 16 }
  0x2a   :  { %v2173_v14 = vld [vmem:[%s3135_s3 + $0xc] ss:$16 sps:$4 sm:$0xff]   ;;  %314 = vmatprep.subr.bf16.mxu1 %v2170_v12  ;;  %v73_v16 = vrot.slane %v71_v8, 7  ;;  %v2165_v19 = vld [vmem:[%s3135_s3] ss:$16 sps:$4 sm:$0xff]   ;;  %v91_v22 = vshll.u32 %v2161_v10, 16 }
  0x2b   :  { %1943 = vmatmul.mubr.msk.bf16.vlgmr.msra.gmra.mrb[0].mxu0 %vm124_vm0, %v2157_v3  ;;  %v90_v21 = vrot.slane %v88_v18, 7  ;;  %vm370_vm4 = vcmask 1047552   ;;  %vm371_vm5 = vsmask.f32 7424  ;;  %v2171_v24 = vld [vmem:[%s3135_s3 + $0x8] ss:$16 sps:$4 sm:$0xff]  }
  0x2c   :  { %262 = vmatpush1.bf16.msra.mxu0 %v2158_v4  ;;  %171 = vmatprep.mubr.bf16.mxu0 %v2420_v0  ;;  %v76_v17 = vor.u32 %v74_v15, %v73_v16  ;;  %vm2555_vm6 = vmand %vm370_vm4, %vm371_vm5  ;;  %v367_v27 = vrot.slane %v74_v15, 1  ;;  %v374_v30 = vrot.slane %v91_v22, 1  ;;  %v533_v34 = vshrl.u32 %v532_v33, 7  ;;  %v530_v36 = vld [vmem:[%s3136_s4] sm:$0xf] }
  0x2d   :  { %408 = vmatprep.subr.bf16.mxu0 %v2167_v9  ;;  %1945 = vmatmul.mubr.msk.bf16.vlgmr.msra.gmra.mrb[0].mxu1 %vm124_vm0, %v2157_v3  ;;  %v93_v23 = vor.u32 %v91_v22, %v90_v21  ;;  %vm599_vm7 = vcmask 261120  }
  0x2e   :  { %224 = vmatprep.mubr.bf16.mxu1 %v2420_v0  ;;  %315 = vmatpush1.bf16.msra.mxu1 %v2168_v13  ;;  %v81_v20 = vsel %vm2526_vm3, 0, %v76_v17  ;;  %v368_v28 = vor.u32 %v367_v27, %v71_v8  ;;  %v375_v31 = vor.u32 %v374_v30, %v88_v18  ;;  %v534_v35 = vsub.s32 0, %v533_v34 }
  0x2f   :  { %461 = vmatprep.subr.bf16.mxu1 %v2173_v14  ;;  %v95_v26 = vsel %vm2526_vm3, 0, %v93_v23  ;;  %v538_v37 = vsub.s32 1, %v533_v34  ;;  %v542_v40 = vsub.s32 2, %v533_v34  ;;  %v546_v42 = vsub.s32 3, %v533_v34 }
  0x30   :  { %v373_v29 = vsel %vm2555_vm6, %v368_v28, 0  ;;  %v377_v32 = vsel %vm2555_vm6, %v375_v31, 0  ;;  %v535_v38 = vrot.slane %v530_v36, %v534_v35  ;;  %v2174_v31 = vld [vmem:[%s3137_s5] sm:$0xff]  }
  0x31   :  { %v539_v39 = vrot.slane %v530_v36, %v538_v37  ;;  %v543_v49 = vrot.slane %v530_v36, %v542_v40  ;;  %v547_v51 = vrot.slane %v530_v36, %v546_v42  ;;  %v2592_v40 = vld [vmem:[#allocation2] ss:$8 sps:$4 sm:$0xff]   ;;  %v2600_v42 = vld [vmem:[#allocation4 + $0x4] ss:$8 sps:$4 sm:$0xff]  }
  0x33   :  { %1944 = vmatmul.mubr.msk.bf16.gmra.mrb[4].mxu0 %vm124_vm0, %v2161_v10 }
  0x34   :  { %293 = vmatprep.mubr.bf16.mxu0 %v2420_v0 }
  0x35   :  { %1946 = vmatmul.mubr.msk.bf16.gmra.mrb[4].mxu1 %vm124_vm0, %v2161_v10 }
  0x36   :  { %346 = vmatprep.mubr.bf16.mxu1 %v2420_v0 }
  0x3b   :  { %1951 = vmatmul.mubr.msk.bf16.vlgmr.msra.gmra.mrb[0].mxu0 %vm124_vm0, %v81_v20 }
  0x3c   :  { %409 = vmatpush1.bf16.msra.mxu0 %v2165_v19  ;;  %303 = vmatprep.mubr.bf16.mxu0 %v2420_v0 }
  0x3d   :  { %1953 = vmatmul.mubr.msk.bf16.vlgmr.msra.gmra.mrb[0].mxu1 %vm124_vm0, %v81_v20 }
  0x3e   :  { %356 = vmatprep.mubr.bf16.mxu1 %v2420_v0  ;;  %462 = vmatpush1.bf16.msra.mxu1 %v2171_v24 }
  0x43   :  { %1952 = vmatmul.mubr.msk.bf16.gmra.mrb[4].mxu0 %vm124_vm0, %v95_v26 }
  0x44   :  { %440 = vmatprep.mubr.bf16.mxu0 %v2420_v0 }
  0x45   :  { %1954 = vmatmul.mubr.msk.bf16.gmra.mrb[4].mxu1 %vm124_vm0, %v95_v26 }
  0x46   :  { %493 = vmatprep.mubr.bf16.mxu1 %v2420_v0 }
  0x4b   :  { %1959 = vmatmul.mubr.msk.bf16.vlgmr.msra.gmra.mrb[0].mxu0 %vm124_vm0, %v373_v29 }
  0x4c   :  { %450 = vmatprep.mubr.bf16.mxu0 %v2420_v0 }
  0x4d   :  { %1961 = vmatmul.mubr.msk.bf16.vlgmr.msra.gmra.mrb[0].mxu1 %vm124_vm0, %v373_v29 }
  0x4e   :  { %503 = vmatprep.mubr.bf16.mxu1 %v2420_v0 }
  0x53   :  { %1960 = vmatmul.mubr.msk.bf16.gmra.mrb[4].mxu0 %vm124_vm0, %v377_v32 }
  0x54   :  { %635 = vmatprep.mubr.bf16.mxu0 %v2420_v0 }
  0x55   :  { %1962 = vmatmul.mubr.msk.bf16.gmra.mrb[4].mxu1 %vm124_vm0, %v377_v32 }
  0x56   :  { %678 = vmatprep.mubr.bf16.mxu1 %v2420_v0 }
 0x11e   :  { %v442_v41 = vpop.f32.mrb[0].mxu0 }
 0x11f   :  { %v552_v43 = vadd.f32 %v535_v38, %v442_v41  ;;  %v444_v44 = vpop.f32.mrb[1].mxu0  ;;  %v2596_v41 = vld [vmem:[#allocation2 + $0x14] ss:$8 sps:$4 sm:$0xff]  }
 0x120   :  { %v553_v45 = vadd.f32 %v539_v39, %v444_v44  ;;  %v446_v46 = vpop.f32.mrb[2].mxu0  ;;  %v495_v56 = vpop.f32.mrb[0].mxu1  ;;  %v2606_v44 = vld [vmem:[#allocation2 + $0x24] ss:$8 sps:$4 sm:$0xff]  }
 0x121   :  { %v556_v47 = vadd.f32 %v535_v38, %v446_v46  ;;  %v448_v48 = vpop.f32.mrb[3].mxu0  ;;  %v568_v52 = vmax.f32 %v552_v43, 0.0  ;;  %v554_v58 = vadd.f32 %v543_v49, %v495_v56  ;;  %v497_v59 = vpop.f32.mrb[1].mxu1  ;;  %v2603_v43 = vld [vmem:[#allocation2 + $0x10] ss:$8 sps:$4 sm:$0xff]  }
 0x122   :  { %v557_v50 = vadd.f32 %v539_v39, %v448_v48  ;;  %v569_v54 = vmax.f32 %v553_v45, 0.0  ;;  %v555_v62 = vadd.f32 %v547_v51, %v497_v59  ;;  %v499_v63 = vpop.f32.mrb[2].mxu1  ;;  %v2608_v45 = vld [vmem:[#allocation4] ss:$8 sps:$4 sm:$0xff]   ;;  %v2611_v46 = vld [vmem:[#allocation4 + $0x14] ss:$8 sps:$4 sm:$0xff]  }
 0x123   :  { %v572_v53 = vmax.f32 %v556_v47, 0.0  ;;  %v570_v3 = vmax.f32 %v554_v58, 0.0  ;;  %v558_v4 = vadd.f32 %v543_v49, %v499_v63  ;;  %v501_v5 = vpop.f32.mrb[3].mxu1  ;;  %v2618_v47 = vld [vmem:[#allocation2 + $0x34] ss:$8 sps:$4 sm:$0xff]  }
 0x124   :  { %v573_v55 = vmax.f32 %v557_v50, 0.0  ;;  %v571_v8 = vmax.f32 %v555_v62, 0.0  ;;  %v559_v9 = vadd.f32 %v547_v51, %v501_v5  ;;  %v2621_v48 = vld [vmem:[#allocation4 + $0x10] ss:$8 sps:$4 sm:$0xff]   ;;  %v2654_v59 = vld [vmem:[#allocation2 + $0x64] ss:$8 sps:$4 sm:$0xff]  }
 0x125   :  { %v584_v57 = vpack.c.bf16 %v572_v53, %v568_v52  ;;  %v574_v12 = vmax.f32 %v558_v4, 0.0  ;;  %v2627_v50 = vld [vmem:[#allocation2 + $0x30] ss:$8 sps:$4 sm:$0xff]   ;;  %v2633_v52 = vld [vmem:[#allocation4 + $0x20] ss:$8 sps:$4 sm:$0xff]  }
 0x126   :  { %v585_v60 = vpack.c.bf16 %v573_v55, %v569_v54  ;;  %v452_v61 = vpop.f32.mrb[4].mxu0  ;;  %v575_v14 = vmax.f32 %v559_v9, 0.0  ;;  %v2636_v53 = vld [vmem:[#allocation4 + $0x34] ss:$8 sps:$4 sm:$0xff]   ;;  %v2639_v54 = vld [vmem:[#allocation2 + $0x40] ss:$8 sps:$4 sm:$0xff]  }
 0x127   :  { %v560_v1 = vadd.f32 %v535_v38, %v452_v61  ;;  %v454_v2 = vpop.f32.mrb[5].mxu0  ;;  %v586_v17 = vpack.c.bf16 %v574_v12, %v570_v3  ;;  %v2642_v55 = vld [vmem:[#allocation2 + $0x54] ss:$8 sps:$4 sm:$0xff]   ;;  %v2645_v56 = vld [vmem:[#allocation4 + $0x30] ss:$8 sps:$4 sm:$0xff]  }
 0x128   :  { %v561_v6 = vadd.f32 %v539_v39, %v454_v2  ;;  %v456_v7 = vpop.f32.mrb[6].mxu0  ;;  %603 = vmatprep.subr.bf16.mxu0 %v585_v60  ;;  %v587_v20 = vpack.c.bf16 %v575_v14, %v571_v8  ;;  %v505_v21 = vpop.f32.mrb[4].mxu1  ;;  %v2651_v58 = vld [vmem:[#allocation2 + $0x50] ss:$8 sps:$4 sm:$0xff]   ;;  %v2660_v61 = vld [vmem:[#allocation4 + $0x54] ss:$8 sps:$4 sm:$0xff]  }
 0x129   :  { %v564_v10 = vadd.f32 %v535_v38, %v456_v7  ;;  %v458_v11 = vpop.f32.mrb[7].mxu0  ;;  %604 = vmatpush1.bf16.msra.mxu0 %v584_v57  ;;  %v576_v15 = vmax.f32 %v560_v1, 0.0  ;;  %v562_v23 = vadd.f32 %v543_v49, %v505_v21  ;;  %v507_v24 = vpop.f32.mrb[5].mxu1  ;;  %v2587_v38 = vld [vmem:[#allocation2 + $0x4] ss:$8 sps:$4 sm:$0xff]  }
 0x12a   :  { %v565_v13 = vadd.f32 %v539_v39, %v458_v11  ;;  %v577_v18 = vmax.f32 %v561_v6, 0.0  ;;  %v563_v26 = vadd.f32 %v547_v51, %v507_v24  ;;  %v509_v27 = vpop.f32.mrb[6].mxu1  ;;  %646 = vmatprep.subr.bf16.mxu1 %v587_v20  ;;  %v2175_v39 = vld [vmem:[%s3138_s6] sm:$0xff]   ;;  %v2666_v63 = vld [vmem:[#allocation2 + $0x74] ss:$8 sps:$4 sm:$0xff]  }
 0x12b   :  { %v580_v16 = vmax.f32 %v564_v10, 0.0  ;;  %v578_v28 = vmax.f32 %v562_v23, 0.0  ;;  %v566_v29 = vadd.f32 %v543_v49, %v509_v27  ;;  %v511_v30 = vpop.f32.mrb[7].mxu1  ;;  %647 = vmatpush1.bf16.msra.mxu1 %v586_v17  ;;  %v2624_v49 = vld [vmem:[#allocation4 + $0x24] ss:$8 sps:$4 sm:$0xff]  }
 0x12c   :  { %v581_v19 = vmax.f32 %v565_v13, 0.0  ;;  %v579_v32 = vmax.f32 %v563_v26, 0.0  ;;  %v567_v33 = vadd.f32 %v547_v51, %v511_v30  ;;  %v2630_v51 = vld [vmem:[#allocation2 + $0x44] ss:$8 sps:$4 sm:$0xff]   ;;  %v2663_v62 = vld [vmem:[#allocation2 + $0x60] ss:$8 sps:$4 sm:$0xff]  }
 0x12d   :  { %v588_v22 = vpack.c.bf16 %v580_v16, %v576_v15  ;;  %v582_v34 = vmax.f32 %v566_v29, 0.0  ;;  %v2669_v1 = vld [vmem:[#allocation4 + $0x50] ss:$8 sps:$4 sm:$0xff]   ;;  %v2672_v2 = vld [vmem:[#allocation4 + $0x64] ss:$8 sps:$4 sm:$0xff]  }
 0x12e   :  { %v589_v25 = vpack.c.bf16 %v581_v19, %v577_v18  ;;  %v583_v35 = vmax.f32 %v567_v33, 0.0  ;;  %v2675_v3 = vld [vmem:[#allocation2 + $0x70] ss:$8 sps:$4 sm:$0xff]   ;;  %v2678_v4 = vld [vmem:[#allocation2 + $0x84] ss:$8 sps:$4 sm:$0xff]  }
 0x12f   :  { %v590_v36 = vpack.c.bf16 %v582_v34, %v578_v28  ;;  %v2681_v5 = vld [vmem:[#allocation4 + $0x60] ss:$8 sps:$4 sm:$0xff]   ;;  %v2684_v6 = vld [vmem:[#allocation4 + $0x74] ss:$8 sps:$4 sm:$0xff]   ;;  %v2693_v9 = vld [vmem:[#allocation4 + $0x70] ss:$8 sps:$4 sm:$0xff]  }
 0x130   :  { %605 = vmatprep.subr.bf16.mxu0 %v589_v25  ;;  %v591_v37 = vpack.c.bf16 %v583_v35, %v579_v32  ;;  %v2687_v7 = vld [vmem:[#allocation2 + $0x80] ss:$8 sps:$4 sm:$0xff]   ;;  %v2690_v8 = vld [vmem:[#allocation2 + $0x94] ss:$8 sps:$4 sm:$0xff]   ;;  %v2696_v10 = vld [vmem:[#allocation4 + $0x84] ss:$8 sps:$4 sm:$0xff]  }
 0x131   :  { %606 = vmatpush1.bf16.msra.mxu0 %v588_v22  ;;  %v2699_v11 = vld [vmem:[#allocation2 + $0x90] ss:$8 sps:$4 sm:$0xff]   ;;  %v2702_v12 = vld [vmem:[#allocation2 + $0xa4] ss:$8 sps:$4 sm:$0xff]   ;;  %v2705_v13 = vld [vmem:[#allocation4 + $0x80] ss:$8 sps:$4 sm:$0xff]  }
 0x132   :  { %703 = vmatprep.subr.bf16.mxu0 %v585_v60  ;;  %648 = vmatprep.subr.bf16.mxu1 %v591_v37  ;;  %v2657_v60 = vld [vmem:[#allocation4 + $0x40] ss:$8 sps:$4 sm:$0xff]   ;;  %v2708_v14 = vld [vmem:[#allocation4 + $0x94] ss:$8 sps:$4 sm:$0xff]   ;;  %v2720_v18 = vld [vmem:[#allocation4 + $0xa4] ss:$8 sps:$4 sm:$0xff]  }
 0x133   :  { %649 = vmatpush1.bf16.msra.mxu1 %v590_v36  ;;  %v2711_v15 = vld [vmem:[#allocation2 + $0xa0] ss:$8 sps:$4 sm:$0xff]   ;;  %v2714_v16 = vld [vmem:[#allocation2 + $0xb4] ss:$8 sps:$4 sm:$0xff]   ;;  %v2723_v19 = vld [vmem:[#allocation2 + $0xb0] ss:$8 sps:$4 sm:$0xff]  }
 0x134   :  { %1964 = vmatmul.mubr.msk.bf16.vlgmr.msra.gmra.mrb[8].mxu0 %vm599_vm7, %v2174_v31  ;;  %746 = vmatprep.subr.bf16.mxu1 %v587_v20  ;;  %3215 = vst [vmem:[#allocation8_spill] sm:$0xff] %v2723_v19  ;;  %v2726_v20 = vld [vmem:[#allocation2 + $0xc4] ss:$8 sps:$4 sm:$0xff]   ;;  %v2729_v21 = vld [vmem:[#allocation4 + $0xa0] ss:$8 sps:$4 sm:$0xff]  }
 0x135   :  { %704 = vmatpush1.bf16.msra.mxu0 %v584_v57  ;;  %735 = vmatprep.mubr.bf16.mxu0 %v2420_v0  ;;  %v2648_v57 = vld [vmem:[#allocation4 + $0x44] ss:$8 sps:$4 sm:$0xff]   ;;  %3216 = vst [vmem:[#allocation9_spill] sm:$0xff] %v2726_v20  ;;  %v2735_v23 = vld [vmem:[#allocation2 + $0xc0] ss:$8 sps:$4 sm:$0xff]  }
 0x136   :  { %705 = vmatprep.subr.bf16.mxu0 %v589_v25  ;;  %1965 = vmatmul.mubr.msk.bf16.vlgmr.msra.gmra.mrb[8].mxu1 %vm599_vm7, %v2174_v31  ;;  %3217 = vst [vmem:[#allocation10_spill] sm:$0xff] %v2735_v23  ;;  %v2738_v24 = vld [vmem:[#allocation2 + $0xd4] ss:$8 sps:$4 sm:$0xff]   ;;  %v2741_v25 = vld [vmem:[#allocation4 + $0xb0] ss:$8 sps:$4 sm:$0xff]  }
 0x137   :  { %747 = vmatpush1.bf16.msra.mxu1 %v586_v17  ;;  %778 = vmatprep.mubr.bf16.mxu1 %v2420_v0  ;;  %v2614_v0 = vld [vmem:[#allocation2 + $0x20] ss:$8 sps:$4 sm:$0xff]   ;;  %v2717_v17 = vld [vmem:[#allocation4 + $0x90] ss:$8 sps:$4 sm:$0xff]   ;;  %3218 = vst [vmem:[#allocation11_spill] sm:$0xff] %v2738_v24  ;;  %3219 = vst [vmem:[#allocation12_spill] sm:$0xff] %v2741_v25 }
 0x138   :  { %748 = vmatprep.subr.bf16.mxu1 %v591_v37  ;;  %v2744_v26 = vld [vmem:[#allocation4 + $0xc4] ss:$8 sps:$4 sm:$0xff]   ;;  %v2747_v27 = vld [vmem:[#allocation2 + $0xd0] ss:$8 sps:$4 sm:$0xff]   ;;  %v2753_v29 = vld [vmem:[#allocation4 + $0xc0] ss:$8 sps:$4 sm:$0xff]  }
 0x139   :  { %706 = vmatpush1.bf16.msra.mxu0 %v588_v22  ;;  %v2732_v22 = vld [vmem:[#allocation4 + $0xb4] ss:$8 sps:$4 sm:$0xff]   ;;  %3220 = vst [vmem:[#allocation13_spill] sm:$0xff] %v2744_v26  ;;  %3221 = vst [vmem:[#allocation14_spill] sm:$0xff] %v2747_v27  ;;  %v2750_v28 = vld [vmem:[#allocation2 + $0xe4] ss:$8 sps:$4 sm:$0xff]  }
 0x13a   :  { %1241 = vmatprep.subr.bf16.mxu0 %v2587_v38  ;;  %3222 = vst [vmem:[#allocation15_spill] sm:$0xff] %v2750_v28  ;;  %3223 = vst [vmem:[#allocation16_spill] sm:$0xff] %v2753_v29  ;;  %v2756_v30 = vld [vmem:[#allocation4 + $0xd4] ss:$8 sps:$4 sm:$0xff]   ;;  %v2759_v31 = vld [vmem:[#allocation2 + $0xe0] ss:$8 sps:$4 sm:$0xff]  }
 0x13b   :  { %749 = vmatpush1.bf16.msra.mxu1 %v590_v36  ;;  %3224 = vst [vmem:[#allocation17_spill] sm:$0xff] %v2756_v30  ;;  %3225 = vst [vmem:[#allocation18_spill] sm:$0xff] %v2759_v31  ;;  %v2763_v32 = vld [vmem:[#allocation4 + $0xd0] ss:$8 sps:$4 sm:$0xff]   ;;  %v2766_v33 = vld [vmem:[#allocation4 + $0xe4] ss:$8 sps:$4 sm:$0xff]  }
 0x13c   :  { %1967 = vmatmul.mubr.msk.bf16.vlgmr.msra.gmra.mrb[12].mxu0 %vm599_vm7, %v2175_v39  ;;  %1647 = vmatprep.subr.bf16.mxu1 %v2600_v42  ;;  %3226 = vst [vmem:[#allocation19_spill] sm:$0xff] %v2763_v32  ;;  %3227 = vst [vmem:[#allocation20_spill] sm:$0xff] %v2766_v33  ;;  %v2770_v34 = vld [vmem:[#allocation4 + $0xe0] ss:$8 sps:$4 sm:$0xff]   ;;  %v2774_v35 = vld [vmem:[#allocation2 + $0xf4] ss:$8 sps:$4 sm:$0xff]  }
 0x13d   :  { %1242 = vmatpush1.bf16.msra.mxu0 %v2592_v40  ;;  %3228 = vst [vmem:[#allocation21_spill] sm:$0xff] %v2770_v34  ;;  %3229 = vst [vmem:[#allocation22_spill] sm:$0xff] %v2774_v35  ;;  %v2776_v36 = vld [vmem:[#allocation4 + $0xf4] ss:$8 sps:$4 sm:$0xff]   ;;  %v2778_v37 = vld [vmem:[#allocation2 + $0xf0] ss:$8 sps:$4 sm:$0xff]  }
 0x13e   :  { %1243 = vmatprep.subr.bf16.mxu0 %v2596_v41  ;;  %1968 = vmatmul.mubr.msk.bf16.vlgmr.msra.gmra.mrb[12].mxu1 %vm599_vm7, %v2175_v39  ;;  %3230 = vst [vmem:[#allocation23_spill] sm:$0xff] %v2776_v36  ;;  %3231 = vst [vmem:[#allocation24_spill] sm:$0xff] %v2778_v37  ;;  %v2780_v39 = vld [vmem:[#allocation4 + $0xf0] ss:$8 sps:$4 sm:$0xff]  }
 0x13f   :  { %1648 = vmatpush1.bf16.msra.mxu1 %v2608_v45  ;;  %3232 = vst [vmem:[#allocation25_spill] sm:$0xff] %v2780_v39 }
 0x140   :  { %1649 = vmatprep.subr.bf16.mxu1 %v2611_v46 }
 0x141   :  { %1244 = vmatpush1.bf16.msra.mxu0 %v2603_v43 }
 0x142   :  { %1245 = vmatprep.subr.bf16.mxu0 %v2606_v44 }
 0x143   :  { %1650 = vmatpush1.bf16.msra.mxu1 %v2621_v48 }
 0x144   :  { %1651 = vmatprep.subr.bf16.mxu1 %v2624_v49 }
 0x145   :  { %1246 = vmatpush1.bf16.msra.mxu0 %v2614_v0 }
 0x146   :  { %1247 = vmatprep.subr.bf16.mxu0 %v2618_v47 }
 0x147   :  { %1652 = vmatpush1.bf16.msra.mxu1 %v2633_v52 }
 0x148   :  { %1653 = vmatprep.subr.bf16.mxu1 %v2636_v53 }
 0x149   :  { %1248 = vmatpush1.bf16.msra.mxu0 %v2627_v50 }
 0x14a   :  { %1249 = vmatprep.subr.bf16.mxu0 %v2630_v51 }
 0x14b   :  { %1654 = vmatpush1.bf16.msra.mxu1 %v2645_v56 }
 0x14c   :  { %1655 = vmatprep.subr.bf16.mxu1 %v2648_v57 }
 0x14d   :  { %1250 = vmatpush1.bf16.msra.mxu0 %v2639_v54 }
 0x14e   :  { %1251 = vmatprep.subr.bf16.mxu0 %v2642_v55 }
 0x14f   :  { %1656 = vmatpush1.bf16.msra.mxu1 %v2657_v60 }
 0x150   :  { %1657 = vmatprep.subr.bf16.mxu1 %v2660_v61 }
 0x151   :  { %1252 = vmatpush1.bf16.msra.mxu0 %v2651_v58 }
 0x152   :  { %1253 = vmatprep.subr.bf16.mxu0 %v2654_v59 }
 0x153   :  { %1658 = vmatpush1.bf16.msra.mxu1 %v2669_v1 }
 0x154   :  { %1659 = vmatprep.subr.bf16.mxu1 %v2672_v2 }
 0x155   :  { %1254 = vmatpush1.bf16.msra.mxu0 %v2663_v62 }
 0x156   :  { %1255 = vmatprep.subr.bf16.mxu0 %v2666_v63 }
 0x157   :  { %1660 = vmatpush1.bf16.msra.mxu1 %v2681_v5 }
 0x158   :  { %1661 = vmatprep.subr.bf16.mxu1 %v2684_v6 }
 0x159   :  { %1256 = vmatpush1.bf16.msra.mxu0 %v2675_v3 }
 0x15a   :  { %1257 = vmatprep.subr.bf16.mxu0 %v2678_v4 }
 0x15b   :  { %1662 = vmatpush1.bf16.msra.mxu1 %v2693_v9 }
 0x15c   :  { %1663 = vmatprep.subr.bf16.mxu1 %v2696_v10 }
 0x15d   :  { %1258 = vmatpush1.bf16.msra.mxu0 %v2687_v7 }
 0x15e   :  { %1259 = vmatprep.subr.bf16.mxu0 %v2690_v8 }
 0x15f   :  { %1664 = vmatpush1.bf16.msra.mxu1 %v2705_v13 }
 0x160   :  { %1665 = vmatprep.subr.bf16.mxu1 %v2708_v14 }
 0x161   :  { %1260 = vmatpush1.bf16.msra.mxu0 %v2699_v11 }
 0x162   :  { %1261 = vmatprep.subr.bf16.mxu0 %v2702_v12 }
 0x163   :  { %1666 = vmatpush1.bf16.msra.mxu1 %v2717_v17 }
 0x164   :  { %1667 = vmatprep.subr.bf16.mxu1 %v2720_v18 }
 0x165   :  { %1262 = vmatpush1.bf16.msra.mxu0 %v2711_v15 }
 0x166   :  { %1263 = vmatprep.subr.bf16.mxu0 %v2714_v16 }
 0x167   :  { %1668 = vmatpush1.bf16.msra.mxu1 %v2729_v21 }
 0x168   :  { %1669 = vmatprep.subr.bf16.mxu1 %v2732_v22 }
 0x169   :  { %1264 = vmatpush1.bf16.msra.mxu0 %v2723_v19 }
 0x16a   :  { %1265 = vmatprep.subr.bf16.mxu0 %v2726_v20 }
 0x16b   :  { %1670 = vmatpush1.bf16.msra.mxu1 %v2741_v25 }
 0x16c   :  { %1671 = vmatprep.subr.bf16.mxu1 %v2744_v26 }
 0x16d   :  { %1266 = vmatpush1.bf16.msra.mxu0 %v2735_v23 }
 0x16e   :  { %1267 = vmatprep.subr.bf16.mxu0 %v2738_v24  ;;  %v2792_v24 = vld [vmem:[#allocation2 + $0x100] ss:$8 sps:$4 sm:$0xff]  }
 0x16f   :  { %1672 = vmatpush1.bf16.msra.mxu1 %v2753_v29  ;;  %3235 = vst [vmem:[#allocation28_spill] sm:$0xff] %v2792_v24 }
 0x170   :  { %1673 = vmatprep.subr.bf16.mxu1 %v2756_v30 }
 0x171   :  { %1268 = vmatpush1.bf16.msra.mxu0 %v2747_v27 }
 0x172   :  { %1269 = vmatprep.subr.bf16.mxu0 %v2750_v28 }
 0x173   :  { %1674 = vmatpush1.bf16.msra.mxu1 %v2763_v32 }
 0x174   :  { %1675 = vmatprep.subr.bf16.mxu1 %v2766_v33  ;;  %v2788_v33 = vld [vmem:[#allocation4 + $0x104] ss:$8 sps:$4 sm:$0xff]  }
 0x175   :  { %1270 = vmatpush1.bf16.msra.mxu0 %v2759_v31  ;;  %v2786_v31 = vld [vmem:[#allocation2 + $0x104] ss:$8 sps:$4 sm:$0xff]   ;;  %3234 = vst [vmem:[#allocation27_spill] sm:$0xff] %v2788_v33 }
 0x176   :  { %1271 = vmatprep.subr.bf16.mxu0 %v2774_v35  ;;  %3233 = vst [vmem:[#allocation26_spill] sm:$0xff] %v2786_v31 }
 0x177   :  { %1676 = vmatpush1.bf16.msra.mxu1 %v2770_v34 }
 0x178   :  { %1677 = vmatprep.subr.bf16.mxu1 %v2776_v36  ;;  %v2794_v36 = vld [vmem:[#allocation4 + $0x100] ss:$8 sps:$4 sm:$0xff]  }
 0x179   :  { %1272 = vmatpush1.bf16.msra.mxu0 %v2778_v37  ;;  %3236 = vst [vmem:[#allocation29_spill] sm:$0xff] %v2794_v36  ;;  %v2796_v37 = vld [vmem:[#allocation2 + $0x114] ss:$8 sps:$4 sm:$0xff]  }
 0x17a   :  { %1284 = vmatprep.subr.bf16.mxu0 %v2786_v31  ;;  %3237 = vst [vmem:[#allocation30_spill] sm:$0xff] %v2796_v37  ;;  %v2808_v31 = vld [vmem:[#allocation2 + $0x124] ss:$8 sps:$4 sm:$0xff]  }
 0x17b   :  { %1678 = vmatpush1.bf16.msra.mxu1 %v2780_v39  ;;  %v2798_v39 = vld [vmem:[#allocation4 + $0x114] ss:$8 sps:$4 sm:$0xff]   ;;  %3240 = vst [vmem:[#allocation33_spill] sm:$0xff] %v2808_v31 }
 0x17c   :  { %1690 = vmatprep.subr.bf16.mxu1 %v2788_v33  ;;  %3238 = vst [vmem:[#allocation31_spill] sm:$0xff] %v2798_v39 }
 0x207   :  { %v637_v34 = vpop.f32.mrb[8].mxu0 }
 0x208   :  { %v639_v28 = vpop.f32.mrb[9].mxu0 }
 0x209   :  { %v641_v32 = vpop.f32.mrb[10].mxu0  ;;  %v680_v29 = vpop.f32.mrb[8].mxu1 }
 0x20a   :  { %v689_v27 = vpack.c.bf16 %v641_v32, %v637_v34  ;;  %v643_v30 = vpop.f32.mrb[11].mxu0  ;;  %v682_v33 = vpop.f32.mrb[9].mxu1  ;;  %v2802_v32 = vld [vmem:[#allocation2 + $0x110] ss:$8 sps:$4 sm:$0xff]  }
 0x20b   :  { %v690_v35 = vpack.c.bf16 %v643_v30, %v639_v28  ;;  %v2804_v28 = vld [vmem:[#allocation4 + $0x110] ss:$8 sps:$4 sm:$0xff]   ;;  %v684_v30 = vpop.f32.mrb[10].mxu1 }
 0x20c   :  { %3239 = vst [vmem:[#allocation32_spill] sm:$0xff] %v2804_v28  ;;  %v686_v23 = vpop.f32.mrb[11].mxu1 }
 0x20d   :  { %1273 = vmatprep.mubr.bf16.mxu0 %v690_v35  ;;  %1679 = vmatprep.mubr.bf16.mxu1 %v690_v35  ;;  %v2810_v35 = vld [vmem:[#allocation4 + $0x124] ss:$8 sps:$4 sm:$0xff]   ;;  %v692_v26 = vpack.c.bf16 %v686_v23, %v682_v33  ;;  %v2828_v23 = vld [vmem:[#allocation4 + $0x134] ss:$8 sps:$4 sm:$0xff]   ;;  %v2832_v33 = vld [vmem:[#allocation2 + $0x130] ss:$8 sps:$4 sm:$0xff]  }
 0x20e   :  { %1274 = vmatmul.mubr.bf16.vlgmr.msra.gmra.mrb[16].mxu0 %v689_v27  ;;  %1680 = vmatmul.mubr.bf16.vlgmr.msra.gmra.mrb[16].mxu1 %v689_v27  ;;  %3241 = vst [vmem:[#allocation34_spill] sm:$0xff] %v2810_v35  ;;  %v2812_v27 = vpack.c.bf16 %v684_v30, %v680_v29  ;;  %v2826_v29 = vld [vmem:[#allocation2 + $0x134] ss:$8 sps:$4 sm:$0xff]   ;;  %3245 = vst [vmem:[#allocation38_spill] sm:$0xff] %v2828_v23  ;;  %v2846_v30 = vld [vmem:[#allocation4 + $0x140] ss:$8 sps:$4 sm:$0xff]  }
 0x20f   :  { %1285 = vmatpush1.bf16.msra.mxu0 %v2792_v24  ;;  %1691 = vmatpush1.bf16.msra.mxu1 %v2794_v36  ;;  %v737_v34 = vpop.f32.mrb[12].mxu0  ;;  %3244 = vst [vmem:[#allocation37_spill] sm:$0xff] %v2826_v29  ;;  %3246 = vst [vmem:[#allocation39_spill] sm:$0xff] %v2832_v33 }
 0x210   :  { %1286 = vmatprep.subr.bf16.mxu0 %v2796_v37  ;;  %1692 = vmatprep.subr.bf16.mxu1 %v2798_v39  ;;  %v739_v24 = vpop.f32.mrb[13].mxu0  ;;  %v2818_v37 = vld [vmem:[#allocation2 + $0x120] ss:$8 sps:$4 sm:$0xff]   ;;  %3251 = vst [vmem:[#allocation44_spill] sm:$0xff] %v2846_v30 }
 0x211   :  { %v741_v36 = vpop.f32.mrb[14].mxu0  ;;  %3242 = vst [vmem:[#allocation35_spill] sm:$0xff] %v2818_v37  ;;  %v2820_v39 = vld [vmem:[#allocation4 + $0x120] ss:$8 sps:$4 sm:$0xff]   ;;  %1316 = vmatprep.mubr.bf16.mxu0 %v692_v26  ;;  %1722 = vmatprep.mubr.bf16.mxu1 %v692_v26 }
 0x212   :  { %v2814_v20 = vpack.c.bf16 %v741_v36, %v737_v34  ;;  %v743_v25 = vpop.f32.mrb[15].mxu0  ;;  %3243 = vst [vmem:[#allocation36_spill] sm:$0xff] %v2820_v39  ;;  %v2834_v36 = vld [vmem:[#allocation4 + $0x130] ss:$8 sps:$4 sm:$0xff]   ;;  %v2844_v26 = vld [vmem:[#allocation2 + $0x140] ss:$8 sps:$4 sm:$0xff]  }
 0x213   :  { %1287 = vmatpush1.bf16.msra.mxu0 %v2802_v32  ;;  %1693 = vmatpush1.bf16.msra.mxu1 %v2804_v28  ;;  %v2822_v19 = vpack.c.bf16 %v743_v25, %v739_v24  ;;  %3247 = vst [vmem:[#allocation40_spill] sm:$0xff] %v2834_v36  ;;  %v2838_v24 = vld [vmem:[#allocation2 + $0x144] ss:$8 sps:$4 sm:$0xff]   ;;  %3250 = vst [vmem:[#allocation43_spill] sm:$0xff] %v2844_v26  ;;  %v2850_v34 = vld [vmem:[#allocation2 + $0x154] ss:$8 sps:$4 sm:$0xff]  }
 0x214   :  { %1288 = vmatprep.subr.bf16.mxu0 %v2808_v31  ;;  %1694 = vmatprep.subr.bf16.mxu1 %v2810_v35  ;;  %3248 = vst [vmem:[#allocation41_spill] sm:$0xff] %v2838_v24  ;;  %v2840_v25 = vld [vmem:[#allocation4 + $0x144] ss:$8 sps:$4 sm:$0xff]   ;;  %3252 = vst [vmem:[#allocation45_spill] sm:$0xff] %v2850_v34  ;;  %v2880_v28 = vld [vmem:[#allocation4 + $0x174] ss:$8 sps:$4 sm:$0xff]  }
 0x215   :  { %3249 = vst [vmem:[#allocation42_spill] sm:$0xff] %v2840_v25  ;;  %3258 = vst [vmem:[#allocation51_spill] sm:$0xff] %v2880_v28 }
 0x217   :  { %1289 = vmatpush1.bf16.msra.mxu0 %v2818_v37  ;;  %1695 = vmatpush1.bf16.msra.mxu1 %v2820_v39 }
 0x218   :  { %1290 = vmatprep.subr.bf16.mxu0 %v2826_v29  ;;  %1696 = vmatprep.subr.bf16.mxu1 %v2828_v23  ;;  %v2852_v29 = vld [vmem:[#allocation4 + $0x154] ss:$8 sps:$4 sm:$0xff]   ;;  %v2856_v23 = vld [vmem:[#allocation2 + $0x150] ss:$8 sps:$4 sm:$0xff]  }
 0x219   :  { %3253 = vst [vmem:[#allocation46_spill] sm:$0xff] %v2852_v29  ;;  %3254 = vst [vmem:[#allocation47_spill] sm:$0xff] %v2856_v23 }
 0x21b   :  { %1291 = vmatpush1.bf16.msra.mxu0 %v2832_v33  ;;  %1697 = vmatpush1.bf16.msra.mxu1 %v2834_v36  ;;  %v2858_v33 = vld [vmem:[#allocation4 + $0x150] ss:$8 sps:$4 sm:$0xff]   ;;  %v780_v36 = vpop.f32.mrb[12].mxu1 }
 0x21c   :  { %1292 = vmatprep.subr.bf16.mxu0 %v2838_v24  ;;  %1698 = vmatprep.subr.bf16.mxu1 %v2840_v25  ;;  %3255 = vst [vmem:[#allocation48_spill] sm:$0xff] %v2858_v33  ;;  %v2862_v24 = vld [vmem:[#allocation2 + $0x164] ss:$8 sps:$4 sm:$0xff]   ;;  %v782_v39 = vpop.f32.mrb[13].mxu1 }
 0x21d   :  { %v2864_v25 = vld [vmem:[#allocation4 + $0x164] ss:$8 sps:$4 sm:$0xff]   ;;  %v784_v37 = vpop.f32.mrb[14].mxu1 }
 0x21e   :  { %v786_v35 = vpop.f32.mrb[15].mxu1  ;;  %v2872_v31 = vpack.c.bf16 %v784_v37, %v780_v36  ;;  %v2890_v37 = vld [vmem:[#allocation2 + $0x184] ss:$8 sps:$4 sm:$0xff]   ;;  %v2898_v36 = vld [vmem:[#allocation4 + $0x180] ss:$8 sps:$4 sm:$0xff]  }
 0x21f   :  { %1293 = vmatpush1.bf16.msra.mxu0 %v2844_v26  ;;  %1699 = vmatpush1.bf16.msra.mxu1 %v2846_v30  ;;  %v2868_v30 = vld [vmem:[#allocation2 + $0x160] ss:$8 sps:$4 sm:$0xff]   ;;  %3261 = vst [vmem:[#allocation54_spill] sm:$0xff] %v2890_v37  ;;  %3264 = vst [vmem:[#allocation57_spill] sm:$0xff] %v2898_v36 }
 0x220   :  { %1294 = vmatprep.subr.bf16.mxu0 %v2850_v34  ;;  %1700 = vmatprep.subr.bf16.mxu1 %v2852_v29  ;;  %v2870_v26 = vld [vmem:[#allocation4 + $0x160] ss:$8 sps:$4 sm:$0xff]   ;;  %3256 = vst [vmem:[#allocation49_spill] sm:$0xff] %v2872_v31  ;;  %v2874_v34 = vpack.c.bf16 %v786_v35, %v782_v39  ;;  %v2878_v29 = vld [vmem:[#allocation2 + $0x174] ss:$8 sps:$4 sm:$0xff]  }
 0x221   :  { %3257 = vst [vmem:[#allocation50_spill] sm:$0xff] %v2878_v29  ;;  %v2892_v39 = vld [vmem:[#allocation4 + $0x184] ss:$8 sps:$4 sm:$0xff]   ;;  %v2896_v35 = vld [vmem:[#allocation2 + $0x180] ss:$8 sps:$4 sm:$0xff]  }
 0x222   :  { %3262 = vst [vmem:[#allocation55_spill] sm:$0xff] %v2892_v39  ;;  %3263 = vst [vmem:[#allocation56_spill] sm:$0xff] %v2896_v35  ;;  %v2902_v31 = vld [vmem:[#allocation2 + $0x194] ss:$8 sps:$4 sm:$0xff]  }
 0x223   :  { %1295 = vmatpush1.bf16.msra.mxu0 %v2856_v23  ;;  %1701 = vmatpush1.bf16.msra.mxu1 %v2858_v33  ;;  %v2884_v33 = vld [vmem:[#allocation2 + $0x170] ss:$8 sps:$4 sm:$0xff]   ;;  %3265 = vst [vmem:[#allocation58_spill] sm:$0xff] %v2902_v31 }
 0x224   :  { %1296 = vmatprep.subr.bf16.mxu0 %v2862_v24  ;;  %1702 = vmatprep.subr.bf16.mxu1 %v2864_v25  ;;  %3259 = vst [vmem:[#allocation52_spill] sm:$0xff] %v2884_v33  ;;  %v2886_v23 = vld [vmem:[#allocation4 + $0x170] ss:$8 sps:$4 sm:$0xff]  }
 0x225   :  { %3260 = vst [vmem:[#allocation53_spill] sm:$0xff] %v2886_v23 }
 0x227   :  { %1297 = vmatpush1.bf16.msra.mxu0 %v2868_v30  ;;  %1703 = vmatpush1.bf16.msra.mxu1 %v2870_v26 }
 0x228   :  { %1298 = vmatprep.subr.bf16.mxu0 %v2878_v29  ;;  %1704 = vmatprep.subr.bf16.mxu1 %v2880_v28  ;;  %v2904_v29 = vld [vmem:[#allocation4 + $0x194] ss:$8 sps:$4 sm:$0xff]   ;;  %v2908_v28 = vld [vmem:[#allocation2 + $0x190] ss:$8 sps:$4 sm:$0xff]  }
 0x229   :  { %3266 = vst [vmem:[#allocation59_spill] sm:$0xff] %v2904_v29  ;;  %3267 = vst [vmem:[#allocation60_spill] sm:$0xff] %v2908_v28 }
 0x22b   :  { %1299 = vmatpush1.bf16.msra.mxu0 %v2884_v33  ;;  %1705 = vmatpush1.bf16.msra.mxu1 %v2886_v23  ;;  %v2910_v33 = vld [vmem:[#allocation4 + $0x190] ss:$8 sps:$4 sm:$0xff]   ;;  %v2914_v23 = vld [vmem:[#allocation2 + $0x1a4] ss:$8 sps:$4 sm:$0xff]  }
 0x22c   :  { %1300 = vmatprep.subr.bf16.mxu0 %v2890_v37  ;;  %1706 = vmatprep.subr.bf16.mxu1 %v2892_v39  ;;  %3268 = vst [vmem:[#allocation61_spill] sm:$0xff] %v2910_v33  ;;  %3269 = vst [vmem:[#allocation62_spill] sm:$0xff] %v2914_v23  ;;  %v2916_v37 = vld [vmem:[#allocation4 + $0x1a4] ss:$8 sps:$4 sm:$0xff]   ;;  %v2920_v39 = vld [vmem:[#allocation2 + $0x1a0] ss:$8 sps:$4 sm:$0xff]  }
 0x22d   :  { %3270 = vst [vmem:[#allocation63_spill] sm:$0xff] %v2916_v37  ;;  %3271 = vst [vmem:[#allocation64_spill] sm:$0xff] %v2920_v39 }
 0x22f   :  { %1301 = vmatpush1.bf16.msra.mxu0 %v2896_v35  ;;  %1707 = vmatpush1.bf16.msra.mxu1 %v2898_v36  ;;  %v2922_v35 = vld [vmem:[#allocation4 + $0x1a0] ss:$8 sps:$4 sm:$0xff]   ;;  %v2926_v36 = vld [vmem:[#allocation2 + $0x1b4] ss:$8 sps:$4 sm:$0xff]  }
 0x230   :  { %1302 = vmatprep.subr.bf16.mxu0 %v2902_v31  ;;  %1708 = vmatprep.subr.bf16.mxu1 %v2904_v29  ;;  %3272 = vst [vmem:[#allocation65_spill] sm:$0xff] %v2922_v35  ;;  %3273 = vst [vmem:[#allocation66_spill] sm:$0xff] %v2926_v36  ;;  %v2928_v31 = vld [vmem:[#allocation4 + $0x1b4] ss:$8 sps:$4 sm:$0xff]   ;;  %v2932_v29 = vld [vmem:[#allocation2 + $0x1b0] ss:$8 sps:$4 sm:$0xff]  }
 0x231   :  { %3274 = vst [vmem:[#allocation67_spill] sm:$0xff] %v2928_v31  ;;  %3275 = vst [vmem:[#allocation68_spill] sm:$0xff] %v2932_v29 }
 0x233   :  { %1303 = vmatpush1.bf16.msra.mxu0 %v2908_v28  ;;  %1709 = vmatpush1.bf16.msra.mxu1 %v2910_v33  ;;  %v2934_v28 = vld [vmem:[#allocation4 + $0x1b0] ss:$8 sps:$4 sm:$0xff]   ;;  %v2938_v33 = vld [vmem:[#allocation2 + $0x1c4] ss:$8 sps:$4 sm:$0xff]  }
 0x234   :  { %1304 = vmatprep.subr.bf16.mxu0 %v2914_v23  ;;  %1710 = vmatprep.subr.bf16.mxu1 %v2916_v37  ;;  %3276 = vst [vmem:[#allocation69_spill] sm:$0xff] %v2934_v28  ;;  %3277 = vst [vmem:[#allocation70_spill] sm:$0xff] %v2938_v33  ;;  %v2940_v23 = vld [vmem:[#allocation4 + $0x1c4] ss:$8 sps:$4 sm:$0xff]   ;;  %v2944_v37 = vld [vmem:[#allocation2 + $0x1c0] ss:$8 sps:$4 sm:$0xff]  }
 0x235   :  { %3278 = vst [vmem:[#allocation71_spill] sm:$0xff] %v2940_v23  ;;  %3279 = vst [vmem:[#allocation72_spill] sm:$0xff] %v2944_v37 }
 0x237   :  { %1305 = vmatpush1.bf16.msra.mxu0 %v2920_v39  ;;  %1711 = vmatpush1.bf16.msra.mxu1 %v2922_v35  ;;  %v2946_v39 = vld [vmem:[#allocation4 + $0x1c0] ss:$8 sps:$4 sm:$0xff]   ;;  %v2950_v35 = vld [vmem:[#allocation2 + $0x1d4] ss:$8 sps:$4 sm:$0xff]  }
 0x238   :  { %1306 = vmatprep.subr.bf16.mxu0 %v2926_v36  ;;  %1712 = vmatprep.subr.bf16.mxu1 %v2928_v31  ;;  %3280 = vst [vmem:[#allocation73_spill] sm:$0xff] %v2946_v39  ;;  %3281 = vst [vmem:[#allocation74_spill] sm:$0xff] %v2950_v35  ;;  %v2952_v36 = vld [vmem:[#allocation4 + $0x1d4] ss:$8 sps:$4 sm:$0xff]   ;;  %v2956_v31 = vld [vmem:[#allocation2 + $0x1d0] ss:$8 sps:$4 sm:$0xff]  }
 0x239   :  { %3282 = vst [vmem:[#allocation75_spill] sm:$0xff] %v2952_v36  ;;  %3283 = vst [vmem:[#allocation76_spill] sm:$0xff] %v2956_v31 }
 0x23b   :  { %1307 = vmatpush1.bf16.msra.mxu0 %v2932_v29  ;;  %1713 = vmatpush1.bf16.msra.mxu1 %v2934_v28  ;;  %v2958_v29 = vld [vmem:[#allocation4 + $0x1d0] ss:$8 sps:$4 sm:$0xff]   ;;  %v2962_v28 = vld [vmem:[#allocation2 + $0x1e4] ss:$8 sps:$4 sm:$0xff]  }
 0x23c   :  { %1308 = vmatprep.subr.bf16.mxu0 %v2938_v33  ;;  %1714 = vmatprep.subr.bf16.mxu1 %v2940_v23  ;;  %v2964_v33 = vld [vmem:[#allocation4 + $0x1e4] ss:$8 sps:$4 sm:$0xff]   ;;  %v2968_v23 = vld [vmem:[#allocation2 + $0x1e0] ss:$8 sps:$4 sm:$0xff]  }
 0x23f   :  { %1309 = vmatpush1.bf16.msra.mxu0 %v2944_v37  ;;  %1715 = vmatpush1.bf16.msra.mxu1 %v2946_v39  ;;  %v2970_v37 = vld [vmem:[#allocation4 + $0x1e0] ss:$8 sps:$4 sm:$0xff]   ;;  %v2974_v39 = vld [vmem:[#allocation2 + $0x1f4] ss:$8 sps:$4 sm:$0xff]  }
 0x240   :  { %1310 = vmatprep.subr.bf16.mxu0 %v2950_v35  ;;  %1716 = vmatprep.subr.bf16.mxu1 %v2952_v36  ;;  %v2976_v35 = vld [vmem:[#allocation4 + $0x1f4] ss:$8 sps:$4 sm:$0xff]   ;;  %v2980_v36 = vld [vmem:[#allocation2 + $0x1f0] ss:$8 sps:$4 sm:$0xff]  }
 0x243   :  { %1311 = vmatpush1.bf16.msra.mxu0 %v2956_v31  ;;  %1717 = vmatpush1.bf16.msra.mxu1 %v2958_v29  ;;  %v2982_v31 = vld [vmem:[#allocation4 + $0x1f0] ss:$8 sps:$4 sm:$0xff]  }
 0x244   :  { %1312 = vmatprep.subr.bf16.mxu0 %v2962_v28  ;;  %1718 = vmatprep.subr.bf16.mxu1 %v2964_v33 }
 0x247   :  { %1313 = vmatpush1.bf16.msra.mxu0 %v2968_v23  ;;  %1719 = vmatpush1.bf16.msra.mxu1 %v2970_v37 }
 0x248   :  { %1314 = vmatprep.subr.bf16.mxu0 %v2974_v39  ;;  %1720 = vmatprep.subr.bf16.mxu1 %v2976_v35 }
 0x24b   :  { %1315 = vmatpush1.bf16.msra.mxu0 %v2980_v36  ;;  %1721 = vmatpush1.bf16.msra.mxu1 %v2982_v31 }
 0x24c   :  { %1737 = vmatprep.subr.bf16.mxu0 %v2587_v38  ;;  %1823 = vmatprep.subr.bf16.mxu1 %v2600_v42  ;;  %v3284_v38 = vld [vmem:[#allocation8_spill] sm:$0xff]  ;;  %v3287_v42 = vld [vmem:[#allocation13_spill] sm:$0xff] }
 0x24e   :  { %1317 = vmatmul.mubr.bf16.vlgmr.msra.gmra.mrb[16].mxu0 %v2812_v27  ;;  %1723 = vmatmul.mubr.bf16.vlgmr.msra.gmra.mrb[16].mxu1 %v2812_v27  ;;  %v3333_v27 = vld [vmem:[#allocation58_spill] sm:$0xff] }
 0x24f   :  { %1738 = vmatpush1.bf16.msra.mxu0 %v2592_v40  ;;  %1824 = vmatpush1.bf16.msra.mxu1 %v2608_v45  ;;  %v3285_v40 = vld [vmem:[#allocation12_spill] sm:$0xff]  ;;  %v3290_v45 = vld [vmem:[#allocation11_spill] sm:$0xff] }
 0x250   :  { %1739 = vmatprep.subr.bf16.mxu0 %v2596_v41  ;;  %1825 = vmatprep.subr.bf16.mxu1 %v2611_v46  ;;  %v3286_v41 = vld [vmem:[#allocation9_spill] sm:$0xff] }
 0x251   :  { %1769 = vmatprep.mubr.bf16.mxu0 %v2822_v19  ;;  %1855 = vmatprep.mubr.bf16.mxu1 %v2822_v19  ;;  %v3291_v46 = vld [vmem:[#allocation17_spill] sm:$0xff] }
 0x252   :  { %v3328_v19 = vld [vmem:[#allocation53_spill] sm:$0xff] }
 0x253   :  { %1740 = vmatpush1.bf16.msra.mxu0 %v2603_v43  ;;  %1826 = vmatpush1.bf16.msra.mxu1 %v2621_v48  ;;  %v3288_v43 = vld [vmem:[#allocation10_spill] sm:$0xff]  ;;  %v3294_v48 = vld [vmem:[#allocation15_spill] sm:$0xff] }
 0x254   :  { %1741 = vmatprep.subr.bf16.mxu0 %v2606_v44  ;;  %1827 = vmatprep.subr.bf16.mxu1 %v2624_v49  ;;  %v3289_v44 = vld [vmem:[#allocation16_spill] sm:$0xff] }
 0x255   :  { %v3295_v49 = vld [vmem:[#allocation20_spill] sm:$0xff] }
 0x257   :  { %1742 = vmatpush1.bf16.msra.mxu0 %v2614_v0  ;;  %1828 = vmatpush1.bf16.msra.mxu1 %v2633_v52  ;;  %v3292_v0 = vld [vmem:[#allocation14_spill] sm:$0xff] }
 0x258   :  { %1743 = vmatprep.subr.bf16.mxu0 %v2618_v47  ;;  %1829 = vmatprep.subr.bf16.mxu1 %v2636_v53  ;;  %v3293_v47 = vld [vmem:[#allocation19_spill] sm:$0xff]  ;;  %v3298_v52 = vld [vmem:[#allocation22_spill] sm:$0xff] }
 0x259   :  { %v3299_v53 = vld [vmem:[#allocation23_spill] sm:$0xff] }
 0x25b   :  { %1744 = vmatpush1.bf16.msra.mxu0 %v2627_v50  ;;  %1830 = vmatpush1.bf16.msra.mxu1 %v2645_v56  ;;  %v3296_v50 = vld [vmem:[#allocation18_spill] sm:$0xff] }
 0x25c   :  { %1745 = vmatprep.subr.bf16.mxu0 %v2630_v51  ;;  %1831 = vmatprep.subr.bf16.mxu1 %v2648_v57  ;;  %v3297_v51 = vld [vmem:[#allocation21_spill] sm:$0xff]  ;;  %v3302_v56 = vld [vmem:[#allocation26_spill] sm:$0xff]  ;;  %v3303_v57 = vld [vmem:[#allocation27_spill] sm:$0xff] }
 0x25f   :  { %1746 = vmatpush1.bf16.msra.mxu0 %v2639_v54  ;;  %1832 = vmatpush1.bf16.msra.mxu1 %v2657_v60  ;;  %v3300_v54 = vld [vmem:[#allocation24_spill] sm:$0xff]  ;;  %v3306_v60 = vld [vmem:[#allocation30_spill] sm:$0xff] }
 0x260   :  { %1747 = vmatprep.subr.bf16.mxu0 %v2642_v55  ;;  %1833 = vmatprep.subr.bf16.mxu1 %v2660_v61  ;;  %v3301_v55 = vld [vmem:[#allocation25_spill] sm:$0xff]  ;;  %v3307_v61 = vld [vmem:[#allocation31_spill] sm:$0xff] }
 0x263   :  { %1748 = vmatpush1.bf16.msra.mxu0 %v2651_v58  ;;  %1834 = vmatpush1.bf16.msra.mxu1 %v2669_v1  ;;  %v3304_v58 = vld [vmem:[#allocation28_spill] sm:$0xff]  ;;  %v3310_v1 = vld [vmem:[#allocation34_spill] sm:$0xff] }
 0x264   :  { %1749 = vmatprep.subr.bf16.mxu0 %v2654_v59  ;;  %1835 = vmatprep.subr.bf16.mxu1 %v2672_v2  ;;  %v3305_v59 = vld [vmem:[#allocation29_spill] sm:$0xff]  ;;  %v3311_v2 = vld [vmem:[#allocation35_spill] sm:$0xff] }
 0x267   :  { %1750 = vmatpush1.bf16.msra.mxu0 %v2663_v62  ;;  %1836 = vmatpush1.bf16.msra.mxu1 %v2681_v5  ;;  %v3308_v62 = vld [vmem:[#allocation32_spill] sm:$0xff]  ;;  %v3314_v5 = vld [vmem:[#allocation38_spill] sm:$0xff] }
 0x268   :  { %1751 = vmatprep.subr.bf16.mxu0 %v2666_v63  ;;  %1837 = vmatprep.subr.bf16.mxu1 %v2684_v6  ;;  %v3309_v63 = vld [vmem:[#allocation33_spill] sm:$0xff]  ;;  %v3315_v6 = vld [vmem:[#allocation39_spill] sm:$0xff] }
 0x26b   :  { %1752 = vmatpush1.bf16.msra.mxu0 %v2675_v3  ;;  %1838 = vmatpush1.bf16.msra.mxu1 %v2693_v9  ;;  %v3312_v3 = vld [vmem:[#allocation36_spill] sm:$0xff]  ;;  %v3318_v9 = vld [vmem:[#allocation42_spill] sm:$0xff] }
 0x26c   :  { %1753 = vmatprep.subr.bf16.mxu0 %v2678_v4  ;;  %1839 = vmatprep.subr.bf16.mxu1 %v2696_v10  ;;  %v3313_v4 = vld [vmem:[#allocation37_spill] sm:$0xff]  ;;  %v3319_v10 = vld [vmem:[#allocation43_spill] sm:$0xff] }
 0x26f   :  { %1754 = vmatpush1.bf16.msra.mxu0 %v2687_v7  ;;  %1840 = vmatpush1.bf16.msra.mxu1 %v2705_v13  ;;  %v3316_v7 = vld [vmem:[#allocation40_spill] sm:$0xff]  ;;  %v3322_v13 = vld [vmem:[#allocation46_spill] sm:$0xff] }
 0x270   :  { %1755 = vmatprep.subr.bf16.mxu0 %v2690_v8  ;;  %1841 = vmatprep.subr.bf16.mxu1 %v2708_v14  ;;  %v3317_v8 = vld [vmem:[#allocation41_spill] sm:$0xff]  ;;  %v3323_v14 = vld [vmem:[#allocation47_spill] sm:$0xff] }
 0x273   :  { %1756 = vmatpush1.bf16.msra.mxu0 %v2699_v11  ;;  %1842 = vmatpush1.bf16.msra.mxu1 %v2717_v17  ;;  %v3320_v11 = vld [vmem:[#allocation44_spill] sm:$0xff]  ;;  %v3326_v17 = vld [vmem:[#allocation51_spill] sm:$0xff] }
 0x274   :  { %1757 = vmatprep.subr.bf16.mxu0 %v2702_v12  ;;  %1843 = vmatprep.subr.bf16.mxu1 %v2720_v18  ;;  %v3321_v12 = vld [vmem:[#allocation45_spill] sm:$0xff]  ;;  %v3327_v18 = vld [vmem:[#allocation52_spill] sm:$0xff] }
 0x277   :  { %1758 = vmatpush1.bf16.msra.mxu0 %v2711_v15  ;;  %1844 = vmatpush1.bf16.msra.mxu1 %v2729_v21  ;;  %v3324_v15 = vld [vmem:[#allocation48_spill] sm:$0xff]  ;;  %v3330_v21 = vld [vmem:[#allocation55_spill] sm:$0xff] }
 0x278   :  { %1759 = vmatprep.subr.bf16.mxu0 %v2714_v16  ;;  %1845 = vmatprep.subr.bf16.mxu1 %v2732_v22  ;;  %v3325_v16 = vld [vmem:[#allocation50_spill] sm:$0xff]  ;;  %v3331_v22 = vld [vmem:[#allocation56_spill] sm:$0xff] }
 0x27b   :  { %1760 = vmatpush1.bf16.msra.mxu0 %v3284_v38  ;;  %1846 = vmatpush1.bf16.msra.mxu1 %v3285_v40  ;;  %v3339_v38 = vld [vmem:[#allocation64_spill] sm:$0xff]  ;;  %v3340_v40 = vld [vmem:[#allocation65_spill] sm:$0xff] }
 0x27c   :  { %1761 = vmatprep.subr.bf16.mxu0 %v3286_v41  ;;  %1847 = vmatprep.subr.bf16.mxu1 %v3287_v42  ;;  %v3341_v41 = vld [vmem:[#allocation66_spill] sm:$0xff]  ;;  %v3342_v42 = vld [vmem:[#allocation67_spill] sm:$0xff] }
 0x27f   :  { %1762 = vmatpush1.bf16.msra.mxu0 %v3288_v43  ;;  %1848 = vmatpush1.bf16.msra.mxu1 %v3289_v44  ;;  %v3343_v43 = vld [vmem:[#allocation68_spill] sm:$0xff]  ;;  %v3344_v44 = vld [vmem:[#allocation69_spill] sm:$0xff] }
 0x280   :  { %1763 = vmatprep.subr.bf16.mxu0 %v3290_v45  ;;  %1849 = vmatprep.subr.bf16.mxu1 %v3291_v46  ;;  %v3345_v45 = vld [vmem:[#allocation70_spill] sm:$0xff]  ;;  %v3346_v46 = vld [vmem:[#allocation71_spill] sm:$0xff] }
 0x283   :  { %1764 = vmatpush1.bf16.msra.mxu0 %v3292_v0  ;;  %1850 = vmatpush1.bf16.msra.mxu1 %v3293_v47  ;;  %v3347_v0 = vld [vmem:[#allocation72_spill] sm:$0xff]  ;;  %v3348_v47 = vld [vmem:[#allocation73_spill] sm:$0xff] }
 0x284   :  { %1765 = vmatprep.subr.bf16.mxu0 %v3294_v48  ;;  %1851 = vmatprep.subr.bf16.mxu1 %v3295_v49  ;;  %v3349_v48 = vld [vmem:[#allocation74_spill] sm:$0xff]  ;;  %v3350_v49 = vld [vmem:[#allocation75_spill] sm:$0xff] }
 0x287   :  { %1766 = vmatpush1.bf16.msra.mxu0 %v3296_v50  ;;  %1852 = vmatpush1.bf16.msra.mxu1 %v3297_v51  ;;  %v3351_v50 = vld [vmem:[#allocation76_spill] sm:$0xff]  ;;  %v3352_v51 = vld [vmem:[#allocation49_spill] sm:$0xff] }
 0x288   :  { %1767 = vmatprep.subr.bf16.mxu0 %v3298_v52  ;;  %1853 = vmatprep.subr.bf16.mxu1 %v3299_v53 }
 0x28b   :  { %1768 = vmatpush1.bf16.msra.mxu0 %v3300_v54  ;;  %1854 = vmatpush1.bf16.msra.mxu1 %v3301_v55 }
 0x28c   :  { %1780 = vmatprep.subr.bf16.mxu0 %v3302_v56  ;;  %1866 = vmatprep.subr.bf16.mxu1 %v3303_v57 }
 0x28e   :  { %1770 = vmatmul.mubr.bf16.vlgmr.msra.gmra.mrb[20].mxu0 %v2814_v20  ;;  %1856 = vmatmul.mubr.bf16.vlgmr.msra.gmra.mrb[20].mxu1 %v2814_v20  ;;  %v3329_v20 = vld [vmem:[#allocation54_spill] sm:$0xff] }
 0x28f   :  { %1781 = vmatpush1.bf16.msra.mxu0 %v3304_v58  ;;  %1867 = vmatpush1.bf16.msra.mxu1 %v3305_v59 }
 0x290   :  { %1782 = vmatprep.subr.bf16.mxu0 %v3306_v60  ;;  %1868 = vmatprep.subr.bf16.mxu1 %v3307_v61 }
 0x291   :  { %1812 = vmatprep.mubr.bf16.mxu0 %v2874_v34  ;;  %1898 = vmatprep.mubr.bf16.mxu1 %v2874_v34  ;;  %v3338_v34 = vld [vmem:[#allocation63_spill] sm:$0xff] }
 0x293   :  { %1783 = vmatpush1.bf16.msra.mxu0 %v2802_v32  ;;  %1869 = vmatpush1.bf16.msra.mxu1 %v3308_v62  ;;  %v3332_v32 = vld [vmem:[#allocation57_spill] sm:$0xff] }
 0x294   :  { %1784 = vmatprep.subr.bf16.mxu0 %v3309_v63  ;;  %1870 = vmatprep.subr.bf16.mxu1 %v3310_v1 }
 0x297   :  { %1785 = vmatpush1.bf16.msra.mxu0 %v3311_v2  ;;  %1871 = vmatpush1.bf16.msra.mxu1 %v3312_v3 }
 0x298   :  { %1786 = vmatprep.subr.bf16.mxu0 %v3313_v4  ;;  %1872 = vmatprep.subr.bf16.mxu1 %v3314_v5 }
 0x29b   :  { %1787 = vmatpush1.bf16.msra.mxu0 %v3315_v6  ;;  %1873 = vmatpush1.bf16.msra.mxu1 %v3316_v7 }
 0x29c   :  { %1788 = vmatprep.subr.bf16.mxu0 %v3317_v8  ;;  %1874 = vmatprep.subr.bf16.mxu1 %v3318_v9 }
 0x29f   :  { %1789 = vmatpush1.bf16.msra.mxu0 %v3319_v10  ;;  %1875 = vmatpush1.bf16.msra.mxu1 %v3320_v11 }
 0x2a0   :  { %1790 = vmatprep.subr.bf16.mxu0 %v3321_v12  ;;  %1876 = vmatprep.subr.bf16.mxu1 %v3322_v13 }
 0x2a3   :  { %1791 = vmatpush1.bf16.msra.mxu0 %v3323_v14  ;;  %1877 = vmatpush1.bf16.msra.mxu1 %v3324_v15 }
 0x2a4   :  { %1792 = vmatprep.subr.bf16.mxu0 %v2862_v24  ;;  %1878 = vmatprep.subr.bf16.mxu1 %v2864_v25  ;;  %v3334_v24 = vld [vmem:[#allocation59_spill] sm:$0xff]  ;;  %v3335_v25 = vld [vmem:[#allocation60_spill] sm:$0xff] }
 0x2a7   :  { %1793 = vmatpush1.bf16.msra.mxu0 %v2868_v30  ;;  %1879 = vmatpush1.bf16.msra.mxu1 %v2870_v26  ;;  %v3336_v26 = vld [vmem:[#allocation61_spill] sm:$0xff]  ;;  %v3337_v30 = vld [vmem:[#allocation62_spill] sm:$0xff] }
 0x2a8   :  { %1794 = vmatprep.subr.bf16.mxu0 %v3325_v16  ;;  %1880 = vmatprep.subr.bf16.mxu1 %v3326_v17 }
 0x2ab   :  { %1795 = vmatpush1.bf16.msra.mxu0 %v3327_v18  ;;  %1881 = vmatpush1.bf16.msra.mxu1 %v3328_v19 }
 0x2ac   :  { %1796 = vmatprep.subr.bf16.mxu0 %v3329_v20  ;;  %1882 = vmatprep.subr.bf16.mxu1 %v3330_v21 }
 0x2af   :  { %1797 = vmatpush1.bf16.msra.mxu0 %v3331_v22  ;;  %1883 = vmatpush1.bf16.msra.mxu1 %v3332_v32 }
 0x2b0   :  { %1798 = vmatprep.subr.bf16.mxu0 %v3333_v27  ;;  %1884 = vmatprep.subr.bf16.mxu1 %v3334_v24 }
 0x2b3   :  { %1799 = vmatpush1.bf16.msra.mxu0 %v3335_v25  ;;  %1885 = vmatpush1.bf16.msra.mxu1 %v3336_v26 }
 0x2b4   :  { %1800 = vmatprep.subr.bf16.mxu0 %v3337_v30  ;;  %1886 = vmatprep.subr.bf16.mxu1 %v3338_v34 }
 0x2b7   :  { %1801 = vmatpush1.bf16.msra.mxu0 %v3339_v38  ;;  %1887 = vmatpush1.bf16.msra.mxu1 %v3340_v40 }
 0x2b8   :  { %1802 = vmatprep.subr.bf16.mxu0 %v3341_v41  ;;  %1888 = vmatprep.subr.bf16.mxu1 %v3342_v42 }
 0x2bb   :  { %1803 = vmatpush1.bf16.msra.mxu0 %v3343_v43  ;;  %1889 = vmatpush1.bf16.msra.mxu1 %v3344_v44 }
 0x2bc   :  { %1804 = vmatprep.subr.bf16.mxu0 %v3345_v45  ;;  %1890 = vmatprep.subr.bf16.mxu1 %v3346_v46 }
 0x2bf   :  { %1805 = vmatpush1.bf16.msra.mxu0 %v3347_v0  ;;  %1891 = vmatpush1.bf16.msra.mxu1 %v3348_v47 }
 0x2c0   :  { %1806 = vmatprep.subr.bf16.mxu0 %v3349_v48  ;;  %1892 = vmatprep.subr.bf16.mxu1 %v3350_v49 }
 0x2c3   :  { %1807 = vmatpush1.bf16.msra.mxu0 %v3351_v50  ;;  %1893 = vmatpush1.bf16.msra.mxu1 %v2958_v29 }
 0x2c4   :  { %1808 = vmatprep.subr.bf16.mxu0 %v2962_v28  ;;  %1894 = vmatprep.subr.bf16.mxu1 %v2964_v33 }
 0x2c7   :  { %1809 = vmatpush1.bf16.msra.mxu0 %v2968_v23  ;;  %1895 = vmatpush1.bf16.msra.mxu1 %v2970_v37 }
 0x2c8   :  { %1810 = vmatprep.subr.bf16.mxu0 %v2974_v39  ;;  %1896 = vmatprep.subr.bf16.mxu1 %v2976_v35 }
 0x2cb   :  { %1811 = vmatpush1.bf16.msra.mxu0 %v2980_v36  ;;  %1897 = vmatpush1.bf16.msra.mxu1 %v2982_v31 }
 0x2ce   :  { %1813 = vmatmul.mubr.bf16.vlgmr.msra.gmra.mrb[20].mxu0 %v3352_v51  ;;  %1899 = vmatmul.mubr.bf16.vlgmr.msra.gmra.mrb[20].mxu1 %v3352_v51 }
 0x321   :  { %v1318_v29 = vpop.f32.mrb[16].mxu0  ;;  %v1724_v28 = vpop.f32.mrb[16].mxu1 }
 0x322   :  { %v1733_v52 = vmax.f32 %v1318_v29, %v1724_v28  ;;  %v1320_v33 = vpop.f32.mrb[17].mxu0  ;;  %v1726_v53 = vpop.f32.mrb[17].mxu1 }
 0x323   :  { %v1734_v23 = vmax.f32 %v1320_v33, %v1726_v53  ;;  %v1322_v54 = vpop.f32.mrb[18].mxu0  ;;  %v1728_v37 = vpop.f32.mrb[18].mxu1 }
 0x324   :  { %v1735_v55 = vmax.f32 %v1322_v54, %v1728_v37  ;;  %v1324_v39 = vpop.f32.mrb[19].mxu0  ;;  %v1730_v56 = vpop.f32.mrb[19].mxu1 }
 0x325   :  { %v1736_v35 = vmax.f32 %v1324_v39, %v1730_v56 }
 0x3a1   :  { %v1814_v57 = vpop.f32.mrb[20].mxu0  ;;  %v1900_v36 = vpop.f32.mrb[20].mxu1 }
 0x3a2   :  { %v1909_v58 = vmax.f32 %v1814_v57, %v1900_v36  ;;  %v1816_v31 = vpop.f32.mrb[21].mxu0  ;;  %v1902_v59 = vpop.f32.mrb[21].mxu1 }
 0x3a3   :  { %v1910_v60 = vmax.f32 %v1816_v31, %v1902_v59  ;;  %v1818_v61 = vpop.f32.mrb[22].mxu0  ;;  %v1904_v62 = vpop.f32.mrb[22].mxu1 }
 0x3a4   :  { %v1913_v63 = vmax.f32 %v1733_v52, %v1909_v58  ;;  %v1911_v1 = vmax.f32 %v1818_v61, %v1904_v62  ;;  %v1820_v2 = vpop.f32.mrb[23].mxu0  ;;  %v1906_v3 = vpop.f32.mrb[23].mxu1 }
 0x3a5   :  { %v1914_v4 = vmax.f32 %v1734_v23, %v1910_v60  ;;  %v1912_v5 = vmax.f32 %v1820_v2, %v1906_v3 }
 0x3a6   :  { %v1915_v6 = vmax.f32 %v1735_v55, %v1911_v1 }
 0x3a7   :  { %v2099_v7 = vpack.c.bf16 %v1914_v4, %v1913_v63  ;;  %v1916_v8 = vmax.f32 %v1736_v35, %v1912_v5 }
 0x3a9   :  { %1929 = vst [vmem:[%s3141_s9] sm:$0xff] %v2099_v7  ;;  %v2100_v9 = vpack.c.bf16 %v1916_v8, %v1915_v6 }
 0x3ab   :  { %1930 = vst [vmem:[%s3141_s9 + $0x8] sm:$0xff] %v2100_v9 }
 0x3ac   :  { %1935 = vsyncpa [#allocation3], 1 }
 0x3ad   :  { %1936 = vsyncpa [#allocation5], 1 }

// kernel: forward.5
= control target key start
LH: loop header
LB: loop body
LE: loop exit
PB: predicated region body
PF: predicated region fallthrough
CT: control target
= control target key end

     0   :  { %s4197_s0 = inlined_call_operand.vmem [shape: bf16[16,256], index: 0, kind: input, shape index: {}]   ;;  %s4198_s1 = inlined_call_operand.vmem [shape: bf16[256,256], index: 1, kind: input, shape index: {}]   ;;  %s4199_s2 = inlined_call_operand.vmem [shape: bf16[256,256], index: 2, kind: input, shape index: {}]   ;;  %s4200_s3 = inlined_call_operand.vmem [shape: bf16[256,256], index: 3, kind: input, shape index: {}]   ;;  %s4201_s4 = inlined_call_operand.hbm [shape: f32[1,256], index: 4, kind: input, shape index: {}]   ;;  %s4202_s5 = inlined_call_operand.vmem [shape: bf16[256,256], index: 5, kind: input, shape index: {}]   ;;  %s4203_s6 = inlined_call_operand.vmem [shape: bf16[256,256], index: 6, kind: input, shape index: {}]   ;;  %s4204_s7 = inlined_call_operand.hbm [shape: bf16[256,256], index: 7, kind: input, shape index: {}]   ;;  %s4205_s8 = inlined_call_operand.hbm [shape: f32[1,256], index: 8, kind: input, shape index: {}]   ;;  %s4206_s9 = inlined_call_operand.hbm [shape: bf16[256,256], index: 9, kind: input, shape index: {}]   ;;  %s4207_s10 = inlined_call_operand.hbm [shape: f32[1,256], index: 10, kind: input, shape index: {}]   ;;  %s4208_s11 = inlined_call_operand.vmem [shape: bf16[64,4], index: 11, kind: input, shape index: {}]   ;;  %s4209_s12 = inlined_call_operand.hbm [shape: f32[1,4], index: 12, kind: input, shape index: {}]   ;;  %s4210_s13 = inlined_call_operand.hbm [shape: bf16[4,64], index: 13, kind: input, shape index: {}]   ;;  %s4211_s14 = inlined_call_operand.hbm [shape: f32[1,64], index: 14, kind: input, shape index: {}]   ;;  %s4212_s15 = inlined_call_operand.vmem [shape: bf16[8,256], index: 15, kind: output, shape index: {}]  }
   0x1   :  { %4213 = sst [smem:[#allocation20_spill]] %s4212_s15 }
   0x2   :  { %20 = vsyncpa [#allocation3], 0 }
   0x3   :  { %21 = vsyncpa [#allocation5], 0 }
   0x4   :  { %22 = vsyncpa [#allocation8], 0 }
   0x5   :  { %23 = vsyncpa [#allocation11], 0 }
   0x6   :  { %24 = vsyncpa [#allocation14], 0  ;;  %s3243_s18 = smov [#allocation4]   ;;  %s3057_s22 = scalar_lea.hbm %s4204_s7, 4096 }
   0x7   :  { %s52_s19 = sshll.u32 %s3243_s18, 4  ;;  %p3058_p0 = scmp.ne.s32.totalorder %s4204_s7, %s3057_s22  ;;  %s53_s19 = int_to_ptr.vmem [resolvable:$true] %s52_s19 }
   0x8   :  { %p3061_p1 = scmp.lt.u32.totalorder %s3057_s22, %s4204_s7 }
   0xa   :  { %p3063_p2 = pnand %p3061_p1, %p3058_p0 }
   0xc   :  { %3066 = shalt.err (!%p3063_p2)
}
   0xd   :  { %s3067_s27 = scalar_lea.vmem %s53_s19, 4096  ;;  %p3072_p4 = scmp.lt.s32.totalorder %s53_s19, %s53_s19 }
   0xe   :  { %p3068_p3 = scmp.ne.s32.totalorder %s53_s19, %s3067_s27  ;;  %p3073_p5 = scmp.lt.s32.totalorder %s3067_s27, %s3067_s27 }
  0x10   :  { %p3074_p6 = por %p3073_p5, %p3072_p4 }
  0x12   :  { %p3075_p7 = pnand %p3074_p6, %p3068_p3 }
  0x14   :  { %3078 = shalt.err (!%p3075_p7)
}
  0x15   :  { %s3244_s28 = smov 128   ;;  %s3245_s29 = smov 8  }
  0x16   :  { %58 = dma.hbm_to_vmem [thread:$0]  %s4204_s7, 4096, %s53_s19, [#allocation5], %s3244_s28, %s3244_s28, %s3245_s29  }
  0x17   :  { %s3246_s17 = smov [#allocation7]   ;;  %s3247_s20 = smov [#allocation10]  }
  0x18   :  { %s74_s18 = sshll.u32 %s3246_s17, 4  ;;  %s99_s21 = sshll.u32 %s3247_s20, 4  ;;  %s75_s18 = int_to_ptr.vmem [resolvable:$true] %s74_s18  ;;  %s100_s21 = int_to_ptr.vmem [resolvable:$true] %s99_s21 }
  0x19   :  { %s3079_s24 = scalar_lea.hbm %s4206_s9, 4096 }
  0x1a   :  { %p3080_p8 = scmp.ne.s32.totalorder %s4206_s9, %s3079_s24  ;;  %p3083_p9 = scmp.lt.u32.totalorder %s3079_s24, %s4206_s9 }
  0x1c   :  { %p3085_p10 = pnand %p3083_p9, %p3080_p8 }
  0x1e   :  { %3088 = shalt.err (!%p3085_p10)
}
  0x1f   :  { %s3089_s7 = scalar_lea.vmem %s75_s18, 4096  ;;  %p3094_p12 = scmp.lt.s32.totalorder %s75_s18, %s75_s18 }
  0x20   :  { %p3090_p11 = scmp.ne.s32.totalorder %s75_s18, %s3089_s7  ;;  %p3095_p13 = scmp.lt.s32.totalorder %s3089_s7, %s3089_s7 }
  0x22   :  { %p3096_p0 = por %p3095_p13, %p3094_p12 }
  0x24   :  { %p3097_p1 = pnand %p3096_p0, %p3090_p11 }
  0x26   :  { %3100 = shalt.err (!%p3097_p1)
}
  0x27   :  { %80 = dma.hbm_to_vmem [thread:$0]  %s4206_s9, 4096, %s75_s18, [#allocation8], %s3244_s28, %s3244_s28, %s3245_s29  }
  0x28   :  { %s3101_s20 = scalar_lea.hbm %s4209_s12, 16 }
  0x29   :  { %p3102_p2 = scmp.ne.s32.totalorder %s4209_s12, %s3101_s20  ;;  %p3105_p3 = scmp.lt.u32.totalorder %s3101_s20, %s4209_s12 }
  0x2b   :  { %p3107_p4 = pnand %p3105_p3, %p3102_p2 }
  0x2d   :  { %3110 = shalt.err (!%p3107_p4)
}
  0x2e   :  { %s3111_s25 = scalar_lea.vmem %s100_s21, 16  ;;  %s3115_s26 = scalar_lea.vmem %s100_s21, 32 }
  0x2f   :  { %p3112_p5 = scmp.ne.s32.totalorder %s100_s21, %s3111_s25  ;;  %p3116_p6 = scmp.lt.s32.totalorder %s100_s21, %s100_s21 }
  0x30   :  { %p3117_p7 = scmp.lt.s32.totalorder %s3115_s26, %s3111_s25 }
  0x32   :  { %p3118_p8 = por %p3117_p7, %p3116_p6 }
  0x34   :  { %p3119_p9 = pnand %p3118_p8, %p3112_p5 }
  0x36   :  { %3122 = shalt.err (!%p3119_p9)
}
  0x37   :  { %102 = dma.hbm_to_vmem [thread:$0]  %s4209_s12, 16, %s100_s21, [#allocation11]  }
  0x38   :  { %s3248_s29 = smov [#allocation2]   ;;  %s3249_s27 = smov [#allocation6]  }
  0x39   :  { %s39_s18 = sshll.u32 %s3248_s29, 4  ;;  %s65_s7 = sshll.u32 %s3249_s27, 4  ;;  %s40_s18 = int_to_ptr.vmem [resolvable:$true] %s39_s18  ;;  %s66_s7 = int_to_ptr.vmem [resolvable:$true] %s65_s7 }
  0x3a   :  { %s3123_s16 = scalar_lea.hbm %s4201_s4, 32 }
  0x3b   :  { %p3124_p10 = scmp.ne.s32.totalorder %s4201_s4, %s3123_s16  ;;  %p3127_p11 = scmp.lt.u32.totalorder %s3123_s16, %s4201_s4 }
  0x3d   :  { %p3129_p12 = pnand %p3127_p11, %p3124_p10 }
  0x3f   :  { %3132 = shalt.err (!%p3129_p12)
}
  0x40   :  { %s3133_s12 = scalar_lea.vmem %s40_s18, 32  ;;  %p3138_p0 = scmp.lt.s32.totalorder %s40_s18, %s40_s18 }
  0x41   :  { %p3134_p13 = scmp.ne.s32.totalorder %s40_s18, %s3133_s12  ;;  %p3139_p1 = scmp.lt.s32.totalorder %s3133_s12, %s3133_s12 }
  0x43   :  { %p3140_p2 = por %p3139_p1, %p3138_p0 }
  0x45   :  { %p3141_p3 = pnand %p3140_p2, %p3134_p13 }
  0x47   :  { %3144 = shalt.err (!%p3141_p3)
}
  0x48   :  { %42 = dma.hbm_to_vmem [thread:$0]  %s4201_s4, 32, %s40_s18, [#allocation3]  }
  0x49   :  { %s3145_s26 = scalar_lea.hbm %s4205_s8, 32 }
  0x4a   :  { %p3146_p4 = scmp.ne.s32.totalorder %s4205_s8, %s3145_s26  ;;  %p3149_p5 = scmp.lt.u32.totalorder %s3145_s26, %s4205_s8 }
  0x4c   :  { %p3151_p6 = pnand %p3149_p5, %p3146_p4 }
  0x4e   :  { %3154 = shalt.err (!%p3151_p6)
}
  0x4f   :  { %s3155_s19 = scalar_lea.vmem %s66_s7, 32  ;;  %p3160_p8 = scmp.lt.s32.totalorder %s66_s7, %s66_s7 }
  0x50   :  { %p3156_p7 = scmp.ne.s32.totalorder %s66_s7, %s3155_s19  ;;  %p3161_p9 = scmp.lt.s32.totalorder %s3155_s19, %s3155_s19 }
  0x52   :  { %p3162_p10 = por %p3161_p9, %p3160_p8 }
  0x54   :  { %p3163_p11 = pnand %p3162_p10, %p3156_p7 }
  0x56   :  { %3166 = shalt.err (!%p3163_p11)
}
  0x57   :  { %68 = dma.hbm_to_vmem [thread:$0]  %s4205_s8, 32, %s66_s7, [#allocation5]  }
  0x58   :  { %s3250_s30 = smov [#allocation9]   ;;  %s3251_s17 = smov [#allocation12]  }
  0x59   :  { %s87_s16 = sshll.u32 %s3250_s30, 4  ;;  %s109_s20 = sshll.u32 %s3251_s17, 4  ;;  %s88_s16 = int_to_ptr.vmem [resolvable:$true] %s87_s16  ;;  %s110_s20 = int_to_ptr.vmem [resolvable:$true] %s109_s20 }
  0x5a   :  { %s3167_s12 = scalar_lea.hbm %s4207_s10, 32 }
  0x5b   :  { %p3168_p12 = scmp.ne.s32.totalorder %s4207_s10, %s3167_s12  ;;  %p3171_p13 = scmp.lt.u32.totalorder %s3167_s12, %s4207_s10 }
  0x5d   :  { %p3173_p0 = pnand %p3171_p13, %p3168_p12 }
  0x5f   :  { %3176 = shalt.err (!%p3173_p0)
}
  0x60   :  { %s3177_s8 = scalar_lea.vmem %s88_s16, 32  ;;  %p3182_p2 = scmp.lt.s32.totalorder %s88_s16, %s88_s16 }
  0x61   :  { %p3178_p1 = scmp.ne.s32.totalorder %s88_s16, %s3177_s8  ;;  %p3183_p3 = scmp.lt.s32.totalorder %s3177_s8, %s3177_s8 }
  0x63   :  { %p3184_p4 = por %p3183_p3, %p3182_p2 }
  0x65   :  { %p3185_p5 = pnand %p3184_p4, %p3178_p1 }
  0x67   :  { %3188 = shalt.err (!%p3185_p5)
}
  0x68   :  { %90 = dma.hbm_to_vmem [thread:$0]  %s4207_s10, 32, %s88_s16, [#allocation8]  }
  0x69   :  { %s3189_s29 = scalar_lea.hbm %s4210_s13, 32 }
  0x6a   :  { %p3190_p6 = scmp.ne.s32.totalorder %s4210_s13, %s3189_s29  ;;  %p3193_p7 = scmp.lt.u32.totalorder %s3189_s29, %s4210_s13 }
  0x6c   :  { %p3195_p8 = pnand %p3193_p7, %p3190_p6 }
  0x6e   :  { %3198 = shalt.err (!%p3195_p8)
}
  0x6f   :  { %s3199_s30 = scalar_lea.vmem %s110_s20, 32  ;;  %p3204_p10 = scmp.lt.s32.totalorder %s110_s20, %s110_s20 }
  0x70   :  { %p3200_p9 = scmp.ne.s32.totalorder %s110_s20, %s3199_s30  ;;  %p3205_p11 = scmp.lt.s32.totalorder %s3199_s30, %s3199_s30 }
  0x72   :  { %p3206_p12 = por %p3205_p11, %p3204_p10 }
  0x74   :  { %p3207_p13 = pnand %p3206_p12, %p3200_p9 }
  0x76   :  { %3210 = shalt.err (!%p3207_p13)
}
  0x77   :  { %112 = dma.hbm_to_vmem [thread:$0]  %s4210_s13, 32, %s110_s20, [#allocation11]  }
  0x78   :  { %s3252_s17 = smov [#allocation13]   ;;  %s3211_s21 = scalar_lea.hbm %s4211_s14, 16 }
  0x79   :  { %s119_s15 = sshll.u32 %s3252_s17, 4  ;;  %p3212_p0 = scmp.ne.s32.totalorder %s4211_s14, %s3211_s21  ;;  %s120_s15 = int_to_ptr.vmem [resolvable:$true] %s119_s15 }
  0x7a   :  { %p3215_p1 = scmp.lt.u32.totalorder %s3211_s21, %s4211_s14 }
  0x7c   :  { %p3217_p2 = pnand %p3215_p1, %p3212_p0 }
  0x7e   :  { %3220 = shalt.err (!%p3217_p2)
}
  0x7f   :  { %s3221_s7 = scalar_lea.vmem %s120_s15, 16  ;;  %s3225_s13 = scalar_lea.vmem %s120_s15, 32 }
  0x80   :  { %p3222_p3 = scmp.ne.s32.totalorder %s120_s15, %s3221_s7  ;;  %p3226_p4 = scmp.lt.s32.totalorder %s120_s15, %s120_s15 }
  0x81   :  { %p3227_p5 = scmp.lt.s32.totalorder %s3225_s13, %s3221_s7 }
  0x83   :  { %p3228_p6 = por %p3227_p5, %p3226_p4 }
  0x85   :  { %p3229_p7 = pnand %p3228_p6, %p3222_p3 }
  0x87   :  { %3232 = shalt.err (!%p3229_p7)
}
  0x88   :  { %122 = dma.hbm_to_vmem [thread:$0]  %s4211_s14, 16, %s120_s15, [#allocation14]  }
  0x89   :  { %3233 = dma.done.wait [#allocation3], 32  }
  0x8a   :  { %3234 = vsyncadd [#allocation3], 4294967264 }
  0x8b   :  { %3235 = dma.done.wait [#allocation5], 4128  }
  0x8c   :  { %3236 = vsyncadd [#allocation5], 4294963168 }
  0x8d   :  { %3237 = dma.done.wait [#allocation8], 4128  }
  0x8e   :  { %3238 = vsyncadd [#allocation8], 4294963168 }
  0x8f   :  { %3239 = dma.done.wait [#allocation11], 48  }
  0x90   :  { %3240 = vsyncadd [#allocation11], 4294967248 }
  0x91   :  { %3241 = dma.done.wait [#allocation14], 16  }
  0x92   :  { %3242 = vsyncadd [#allocation14], 4294967280  ;;  %v2709_v0 = vld [vmem:[%s4199_s2 + $0x4] ss:$8 sps:$4 sm:$0xff]   ;;  %v2711_v1 = vld [vmem:[%s4199_s2] ss:$8 sps:$4 sm:$0xff]  }
  0x93   :  { %512 = vmatprep.subr.bf16.mxu0 %v2709_v0  ;;  %v2712_v2 = vld [vmem:[%s4199_s2 + $0x14] ss:$8 sps:$4 sm:$0xff]   ;;  %v2714_v3 = vld [vmem:[%s4199_s2 + $0x10] ss:$8 sps:$4 sm:$0xff]   ;;  %v2715_v4 = vld [vmem:[%s4199_s2 + $0x24] ss:$8 sps:$4 sm:$0xff]  }
  0x94   :  { %513 = vmatpush1.bf16.msra.mxu0 %v2711_v1  ;;  %v2717_v5 = vld [vmem:[%s4199_s2 + $0x20] ss:$8 sps:$4 sm:$0xff]   ;;  %v2718_v6 = vld [vmem:[%s4199_s2 + $0x34] ss:$8 sps:$4 sm:$0xff]   ;;  %v2720_v7 = vld [vmem:[%s4199_s2 + $0x30] ss:$8 sps:$4 sm:$0xff]  }
  0x95   :  { %514 = vmatprep.subr.bf16.mxu0 %v2712_v2  ;;  %v2721_v8 = vld [vmem:[%s4199_s2 + $0x44] ss:$8 sps:$4 sm:$0xff]   ;;  %v2723_v9 = vld [vmem:[%s4199_s2 + $0x40] ss:$8 sps:$4 sm:$0xff]   ;;  %v2724_v10 = vld [vmem:[%s4199_s2 + $0x54] ss:$8 sps:$4 sm:$0xff]  }
  0x96   :  { %v2726_v11 = vld [vmem:[%s4199_s2 + $0x50] ss:$8 sps:$4 sm:$0xff]   ;;  %v2727_v12 = vld [vmem:[%s4199_s2 + $0x64] ss:$8 sps:$4 sm:$0xff]   ;;  %vm167_vm0 = vcmask 1040384   ;;  %vm181_vm2 = vcmask 1041408  }
  0x97   :  { %v148_v13 = vld [vmem:[%s4197_s0] sm:$0xff]  ;;  %v149_v14 = vld [vmem:[%s4197_s0 + $0x8] sm:$0xff]  ;;  %vm168_vm1 = vsmask.f32 256  ;;  %v2730_v18 = vld [vmem:[%s4199_s2 + $0x74] ss:$8 sps:$4 sm:$0xff]  }
  0x98   :  { %515 = vmatpush1.bf16.msra.mxu0 %v2714_v3  ;;  %v3477_v15 = vcombine.high %v148_v13, %v148_v13  ;;  %v3479_v16 = vcombine.high %v149_v14, %v149_v14  ;;  %v2729_v17 = vld [vmem:[%s4199_s2 + $0x60] ss:$8 sps:$4 sm:$0xff]   ;;  %vm182_vm3 = vsmask.f32 1280  ;;  %vm3493_vm4 = vmand %vm167_vm0, %vm168_vm1  ;;  %v2732_v28 = vld [vmem:[%s4199_s2 + $0x70] ss:$8 sps:$4 sm:$0xff]   ;;  %v3531_v40 = vcombine.low %v148_v13, %v148_v13 }
  0x99   :  { %516 = vmatprep.subr.bf16.mxu0 %v2715_v4  ;;  %vm3504_vm5 = vmand %vm181_vm2, %vm182_vm3  ;;  %v2733_v30 = vld [vmem:[%s4199_s2 + $0x84] ss:$8 sps:$4 sm:$0xff]   ;;  %v2735_v37 = vld [vmem:[%s4199_s2 + $0x80] ss:$8 sps:$4 sm:$0xff]   ;;  %v3536_v42 = vcombine.low %v149_v14, %v149_v14  ;;  %vm2095_vm6 = vcmask 1043456   ;;  %vm2172_vm7 = vcmask 1047556  }
  0x9a   :  { %v263_v19 = vshll.u32 %v3477_v15, 16  ;;  %v287_v20 = vshll.u32 %v3479_v16, 16  ;;  %v3490_v21 = vrot.slane %v3477_v15, 1  ;;  %v3498_v23 = vrot.slane %v3479_v16, 1  ;;  %v2736_v39 = vld [vmem:[%s4199_s2 + $0x94] ss:$8 sps:$4 sm:$0xff]  }
  0x9b   :  { %v2738_v43 = vld [vmem:[%s4199_s2 + $0x90] ss:$8 sps:$4 sm:$0xff]   ;;  %v3543_v44 = vshrl.u32 %v3531_v40, 16  ;;  %v3546_v45 = vrot.slane %v3531_v40, 1  ;;  %v170_v46 = vsel %vm3493_vm4, 0, %v3531_v40  ;;  %v3552_v47 = vshrl.u32 %v3536_v42, 16 }
  0x9c   :  { %517 = vmatpush1.bf16.msra.mxu0 %v2717_v5  ;;  %v265_v24 = vrot.slane %v263_v19, 1  ;;  %v269_v25 = vrot.slane %v263_v19, 2  ;;  %v289_v26 = vrot.slane %v287_v20, 1  ;;  %v293_v27 = vrot.slane %v287_v20, 2  ;;  %v2739_v48 = vld [vmem:[%s4199_s2 + $0xa4] ss:$8 sps:$4 sm:$0xff]  }
  0x9d   :  { %518 = vmatprep.subr.bf16.mxu0 %v2718_v6  ;;  %v3558_v49 = vrot.slane %v3536_v42, 1  ;;  %v175_v50 = vsel %vm167_vm0, %v170_v46, %v3543_v44  ;;  %v203_v51 = vsel %vm3493_vm4, 0, %v3536_v42  ;;  %v2741_v55 = vld [vmem:[%s4199_s2 + $0xa0] ss:$8 sps:$4 sm:$0xff]   ;;  %v2742_v57 = vld [vmem:[%s4199_s2 + $0xb4] ss:$8 sps:$4 sm:$0xff]  }
  0x9e   :  { %v273_v31 = vsel %vm3493_vm4, %v3477_v15, %v265_v24  ;;  %v297_v32 = vsel %vm3493_vm4, %v3479_v16, %v289_v26  ;;  %v184_v52 = vsel %vm3504_vm5, %v175_v50, %v3546_v45  ;;  %v207_v53 = vsel %vm167_vm0, %v203_v51, %v3552_v47  ;;  %v2744_v60 = vld [vmem:[%s4199_s2 + $0xb0] ss:$8 sps:$4 sm:$0xff]   ;;  %v2745_v61 = vld [vmem:[%s4199_s2 + $0xc4] ss:$8 sps:$4 sm:$0xff]   ;;  %v2747_v0 = vld [vmem:[%s4199_s2 + $0xc0] ss:$8 sps:$4 sm:$0xff]  }
  0x9f   :  { %v280_v33 = vsel %vm167_vm0, %v273_v31, %v3490_v21  ;;  %v304_v34 = vsel %vm167_vm0, %v297_v32, %v3498_v23  ;;  %v213_v54 = vsel %vm3504_vm5, %v207_v53, %v3558_v49  ;;  %v284_v58 = vshll.u32 %v3536_v42, 16  ;;  %v2748_v1 = vld [vmem:[%s4199_s2 + $0xd4] ss:$8 sps:$4 sm:$0xff]   ;;  %v2750_v6 = vld [vmem:[%s4199_s2 + $0xd0] ss:$8 sps:$4 sm:$0xff]   ;;  %s3254_s28 = smov 64  }
  0xa0   :  { %519 = vmatpush1.bf16.msra.mxu0 %v2720_v7  ;;  %v283_v35 = vsel %vm3504_vm5, %v280_v33, %v269_v25  ;;  %v307_v36 = vsel %vm3504_vm5, %v304_v34, %v293_v27  ;;  %v217_v56 = vrot.slane %v213_v54, 6  ;;  %v260_v62 = vshll.u32 %v3531_v40, 16  ;;  %v2754_v24 = vld [vmem:[%s4199_s2 + $0xf4] ss:$8 sps:$4 sm:$0xff]   ;;  %v2756_v26 = vld [vmem:[%s4199_s2 + $0xf0] ss:$8 sps:$4 sm:$0xff]  }
  0xa1   :  { %520 = vmatprep.subr.bf16.mxu0 %v2721_v8  ;;  %v311_v38 = vrot.slane %v307_v36, 6  ;;  %v286_v63 = vrot.slane %v284_v58, 1  ;;  %v197_v4 = vshrl.u32 %v3479_v16, 16  ;;  %v204_v5 = vsel %vm3493_vm4, 0, %v3479_v16  ;;  %v2763_v36 = vld [vmem:[%s4198_s1 + $0x4] ss:$8 sps:$4 sm:$0xff]  }
  0xa2   :  { %v3581_v59 = vsel %vm181_vm2, %v184_v52, %v217_v56  ;;  %v262_v2 = vrot.slane %v260_v62, 1  ;;  %v292_v7 = vrot.slane %v284_v58, 2  ;;  %v161_v8 = vshrl.u32 %v3477_v15, 16  ;;  %v2964_v22 = vld [vmem:[#allocation4 + $0x34] ss:$8 sps:$4 sm:$0xff]   ;;  %s4218_s10 = sld [smem:[#allocation20_spill]] }
  0xa3   :  { %v3534_v41 = vsel %vm181_vm2, %v283_v35, %v311_v38  ;;  %v296_v3 = vsel %vm3493_vm4, %v3536_v42, %v286_v63  ;;  %v211_v13 = vsel %vm167_vm0, %v204_v5, %v197_v4  ;;  %v268_v14 = vrot.slane %v260_v62, 2  ;;  %v2772_v62 = vld [vmem:[%s4198_s1 + $0x34] ss:$8 sps:$4 sm:$0xff]   ;;  %v2770_v63 = vld [vmem:[%s4198_s1 + $0x30] ss:$8 sps:$4 sm:$0xff]  }
  0xa4   :  { %521 = vmatpush1.bf16.msra.mxu0 %v2723_v9  ;;  %544 = vmatprep.mubr.bf16.mxu0 %v3534_v41  ;;  %v2751_v9 = vld [vmem:[%s4199_s2 + $0xe4] ss:$8 sps:$4 sm:$0xff]   ;;  %v214_v25 = vsel %vm3504_vm5, %v211_v13, %v3498_v23  ;;  %v777_v31 = vrot.slane %v197_v4, 1  ;;  %v779_v33 = vrot.slane %v3479_v16, 2  ;;  %v783_v34 = vsel %vm3493_vm4, %v197_v4, %v3498_v23  ;;  %v2779_v5 = vld [vmem:[%s4198_s1 + $0x60] ss:$8 sps:$4 sm:$0xff]  }
  0xa5   :  { %522 = vmatprep.subr.bf16.mxu0 %v2724_v10  ;;  %v272_v10 = vsel %vm3493_vm4, %v3531_v40, %v262_v2  ;;  %v218_v32 = vrot.slane %v214_v25, 6  ;;  %v776_v35 = vrot.slane %v3552_v47, 1  ;;  %v782_v16 = vsel %vm3493_vm4, %v3552_v47, %v3558_v49  ;;  %v2778_v2 = vld [vmem:[%s4198_s1 + $0x54] ss:$8 sps:$4 sm:$0xff]   ;;  %v2781_v4 = vld [vmem:[%s4198_s1 + $0x64] ss:$8 sps:$4 sm:$0xff]  }
  0xa6   :  { %v790_v38 = vsel %vm167_vm0, %v783_v34, %v777_v31  ;;  %v763_v23 = vsel %vm3493_vm4, %v161_v8, %v3490_v21  ;;  %v756_v52 = vrot.slane %v3543_v44, 1  ;;  %v758_v53 = vrot.slane %v3531_v40, 2  ;;  %v2769_v40 = vld [vmem:[%s4198_s1 + $0x24] ss:$8 sps:$4 sm:$0xff]   ;;  %v2791_v13 = vld [vmem:[%s4198_s1 + $0xa0] ss:$8 sps:$4 sm:$0xff]  }
  0xa7   :  { %v793_v46 = vsel %vm3504_vm5, %v790_v38, %v779_v33  ;;  %v2805_v25 = vld [vmem:[%s4198_s1 + $0xe4] ss:$8 sps:$4 sm:$0xff]   ;;  %v2809_v31 = vld [vmem:[%s4200_s3] ss:$8 sps:$4 sm:$0xff]   ;;  %v2812_v33 = vld [vmem:[%s4200_s3 + $0x10] ss:$8 sps:$4 sm:$0xff]  }
  0xa8   :  { %523 = vmatpush1.bf16.msra.mxu0 %v2726_v11  ;;  %v300_v11 = vsel %vm167_vm0, %v296_v3, %v3558_v49  ;;  %v797_v51 = vrot.slane %v793_v46, 6  ;;  %v2776_v3 = vld [vmem:[%s4198_s1 + $0x50] ss:$8 sps:$4 sm:$0xff]   ;;  %v2817_v34 = vld [vmem:[%s4200_s3 + $0x24] ss:$8 sps:$4 sm:$0xff]   ;;  %vm3255_vm8 = vmmov 0  }
  0xa9   :  { %524 = vmatprep.subr.bf16.mxu0 %v2727_v12  ;;  %v171_v12 = vsel %vm3493_vm4, 0, %v3477_v15  ;;  %v306_v19 = vsel %vm3504_vm5, %v300_v11, %v292_v7  ;;  %v2782_v7 = vld [vmem:[%s4198_s1 + $0x70] ss:$8 sps:$4 sm:$0xff]   ;;  %v2821_v38 = vld [vmem:[%s4200_s3 + $0x40] ss:$8 sps:$4 sm:$0xff]   ;;  %vm2221_vm9 = vcmask 1042432  }
  0xaa   :  { %v179_v20 = vsel %vm167_vm0, %v171_v12, %v161_v8  ;;  %v2788_v11 = vld [vmem:[%s4198_s1 + $0x90] ss:$8 sps:$4 sm:$0xff]   ;;  %v2793_v12 = vld [vmem:[%s4198_s1 + $0xa4] ss:$8 sps:$4 sm:$0xff]   ;;  %v2832_v46 = vld [vmem:[%s4200_s3 + $0x74] ss:$8 sps:$4 sm:$0xff]  }
  0xab   :  { %v2970_v29 = vld [vmem:[#allocation4 + $0x54] ss:$8 sps:$4 sm:$0xff]   ;;  %vm2263_vm10 = vcmask 523264   ;;  %vm2317_vm11 = vcmask 31744  }
  0xac   :  { %525 = vmatpush1.bf16.msra.mxu0 %v2729_v17  ;;  %v2753_v17 = vld [vmem:[%s4199_s2 + $0xe0] ss:$8 sps:$4 sm:$0xff]  }
  0xad   :  { %526 = vmatprep.subr.bf16.mxu0 %v2730_v18  ;;  %v276_v18 = vsel %vm167_vm0, %v272_v10, %v3546_v45  ;;  %v2790_v10 = vld [vmem:[%s4198_s1 + $0x94] ss:$8 sps:$4 sm:$0xff]  }
  0xae   :  { %v282_v27 = vsel %vm3504_vm5, %v276_v18, %v268_v14  ;;  %v2796_v14 = vld [vmem:[%s4198_s1 + $0xb4] ss:$8 sps:$4 sm:$0xff]   ;;  %v2799_v18 = vld [vmem:[%s4198_s1 + $0xc4] ss:$8 sps:$4 sm:$0xff]  }
  0xb0   :  { %527 = vmatpush1.bf16.msra.mxu0 %v2732_v28  ;;  %v310_v28 = vrot.slane %v306_v19, 6  ;;  %v2797_v19 = vld [vmem:[%s4198_s1 + $0xc0] ss:$8 sps:$4 sm:$0xff]  }
  0xb1   :  { %528 = vmatprep.subr.bf16.mxu0 %v2733_v30  ;;  %v185_v30 = vsel %vm3504_vm5, %v179_v20, %v3490_v21  ;;  %v2761_v21 = vld [vmem:[%s4198_s1] ss:$8 sps:$4 sm:$0xff]   ;;  %v2802_v20 = vld [vmem:[%s4198_s1 + $0xd4] ss:$8 sps:$4 sm:$0xff]  }
  0xb2   :  { %v3670_v47 = vsel %vm181_vm2, %v282_v27, %v310_v28  ;;  %v226_v54 = vsel %vm181_vm2, %v185_v30, %v218_v32  ;;  %v2808_v27 = vld [vmem:[%s4198_s1 + $0xf4] ss:$8 sps:$4 sm:$0xff]   ;;  %v2806_v28 = vld [vmem:[%s4198_s1 + $0xf0] ss:$8 sps:$4 sm:$0xff]   ;;  %v2811_v30 = vld [vmem:[%s4200_s3 + $0x4] ss:$8 sps:$4 sm:$0xff]  }
  0xb3   :  { %v2814_v32 = vld [vmem:[%s4200_s3 + $0x14] ss:$8 sps:$4 sm:$0xff]  }
  0xb4   :  { %529 = vmatpush1.bf16.msra.mxu0 %v2735_v37  ;;  %v757_v37 = vrot.slane %v161_v8, 1  ;;  %v2787_v8 = vld [vmem:[%s4198_s1 + $0x84] ss:$8 sps:$4 sm:$0xff]  }
  0xb5   :  { %530 = vmatprep.subr.bf16.mxu0 %v2736_v39  ;;  %v778_v39 = vrot.slane %v3536_v42, 2  ;;  %v762_v42 = vsel %vm3493_vm4, %v3543_v44, %v3546_v45  ;;  %v2766_v45 = vld [vmem:[%s4198_s1 + $0x14] ss:$8 sps:$4 sm:$0xff]   ;;  %v2764_v44 = vld [vmem:[%s4198_s1 + $0x10] ss:$8 sps:$4 sm:$0xff]  }
  0xb6   :  { %v770_v50 = vsel %vm167_vm0, %v763_v23, %v757_v37  ;;  %v2823_v37 = vld [vmem:[%s4200_s3 + $0x44] ss:$8 sps:$4 sm:$0xff]   ;;  %v2827_v23 = vld [vmem:[%s4200_s3 + $0x60] ss:$8 sps:$4 sm:$0xff]  }
  0xb8   :  { %531 = vmatpush1.bf16.msra.mxu0 %v2738_v43  ;;  %v759_v43 = vrot.slane %v3477_v15, 2 }
  0xb9   :  { %532 = vmatprep.subr.bf16.mxu0 %v2739_v48  ;;  %v786_v48 = vsel %vm167_vm0, %v782_v16, %v776_v35  ;;  %v2815_v35 = vld [vmem:[%s4200_s3 + $0x20] ss:$8 sps:$4 sm:$0xff]   ;;  %v2824_v16 = vld [vmem:[%s4200_s3 + $0x50] ss:$8 sps:$4 sm:$0xff]  }
  0xba   :  { %v792_v15 = vsel %vm3504_vm5, %v786_v48, %v778_v39  ;;  %v773_v49 = vsel %vm3504_vm5, %v770_v50, %v759_v43  ;;  %v2826_v39 = vld [vmem:[%s4200_s3 + $0x54] ss:$8 sps:$4 sm:$0xff]   ;;  %v2829_v43 = vld [vmem:[%s4200_s3 + $0x64] ss:$8 sps:$4 sm:$0xff]   ;;  %v2830_v48 = vld [vmem:[%s4200_s3 + $0x70] ss:$8 sps:$4 sm:$0xff]  }
  0xbb   :  { %v796_v56 = vrot.slane %v792_v15, 6  ;;  %v2835_v50 = vld [vmem:[%s4200_s3 + $0x84] ss:$8 sps:$4 sm:$0xff]   ;;  %v2836_v15 = vld [vmem:[%s4200_s3 + $0x90] ss:$8 sps:$4 sm:$0xff]  }
  0xbc   :  { %533 = vmatpush1.bf16.msra.mxu0 %v2741_v55  ;;  %v3684_v55 = vsel %vm181_vm2, %v773_v49, %v797_v51  ;;  %v2833_v51 = vld [vmem:[%s4200_s3 + $0x80] ss:$8 sps:$4 sm:$0xff]  }
  0xbd   :  { %534 = vmatprep.subr.bf16.mxu0 %v2742_v57  ;;  %v766_v57 = vsel %vm167_vm0, %v762_v42, %v756_v52  ;;  %v2838_v42 = vld [vmem:[%s4200_s3 + $0x94] ss:$8 sps:$4 sm:$0xff]   ;;  %v2839_v49 = vld [vmem:[%s4200_s3 + $0xa0] ss:$8 sps:$4 sm:$0xff]  }
  0xbe   :  { %v772_v58 = vsel %vm3504_vm5, %v766_v57, %v758_v53  ;;  %v2844_v52 = vld [vmem:[%s4200_s3 + $0xb4] ss:$8 sps:$4 sm:$0xff]   ;;  %v2842_v53 = vld [vmem:[%s4200_s3 + $0xb0] ss:$8 sps:$4 sm:$0xff]   ;;  %v2853_v57 = vld [vmem:[%s4200_s3 + $0xe4] ss:$8 sps:$4 sm:$0xff]  }
  0xc0   :  { %535 = vmatpush1.bf16.msra.mxu0 %v2744_v60  ;;  %v3697_v60 = vsel %vm181_vm2, %v772_v58, %v796_v56  ;;  %v2848_v56 = vld [vmem:[%s4200_s3 + $0xd0] ss:$8 sps:$4 sm:$0xff]  }
  0xc1   :  { %536 = vmatprep.subr.bf16.mxu0 %v2745_v61  ;;  %v2767_v61 = vld [vmem:[%s4198_s1 + $0x20] ss:$8 sps:$4 sm:$0xff]   ;;  %v2854_v58 = vld [vmem:[%s4200_s3 + $0xf0] ss:$8 sps:$4 sm:$0xff]  }
  0xc4   :  { %537 = vmatpush1.bf16.msra.mxu0 %v2747_v0  ;;  %v2775_v0 = vld [vmem:[%s4198_s1 + $0x44] ss:$8 sps:$4 sm:$0xff]  }
  0xc5   :  { %538 = vmatprep.subr.bf16.mxu0 %v2748_v1  ;;  %v2773_v1 = vld [vmem:[%s4198_s1 + $0x40] ss:$8 sps:$4 sm:$0xff]  }
  0xc8   :  { %539 = vmatpush1.bf16.msra.mxu0 %v2750_v6  ;;  %v2784_v6 = vld [vmem:[%s4198_s1 + $0x74] ss:$8 sps:$4 sm:$0xff]  }
  0xc9   :  { %540 = vmatprep.subr.bf16.mxu0 %v2751_v9  ;;  %v2785_v9 = vld [vmem:[%s4198_s1 + $0x80] ss:$8 sps:$4 sm:$0xff]  }
  0xcc   :  { %541 = vmatpush1.bf16.msra.mxu0 %v2753_v17  ;;  %v2794_v17 = vld [vmem:[%s4198_s1 + $0xb0] ss:$8 sps:$4 sm:$0xff]  }
  0xcd   :  { %542 = vmatprep.subr.bf16.mxu0 %v2754_v24  ;;  %v2800_v24 = vld [vmem:[%s4198_s1 + $0xd0] ss:$8 sps:$4 sm:$0xff]  }
  0xd0   :  { %543 = vmatpush1.bf16.msra.mxu0 %v2756_v26  ;;  %v2803_v26 = vld [vmem:[%s4198_s1 + $0xe0] ss:$8 sps:$4 sm:$0xff]  }
  0xd1   :  { %713 = vmatprep.subr.bf16.mxu0 %v2763_v36  ;;  %v2818_v36 = vld [vmem:[%s4200_s3 + $0x30] ss:$8 sps:$4 sm:$0xff]  }
  0xd3   :  { %545 = vmatmul.mubr.bf16.vlgmr.msra.gmra.mrb[0].mxu0 %v3670_v47 }
  0xd4   :  { %714 = vmatpush1.bf16.msra.mxu0 %v2761_v21  ;;  %745 = vmatprep.mubr.bf16.mxu0 %v226_v54  ;;  %v2841_v21 = vld [vmem:[%s4200_s3 + $0xa4] ss:$8 sps:$4 sm:$0xff]   ;;  %v2845_v54 = vld [vmem:[%s4200_s3 + $0xc0] ss:$8 sps:$4 sm:$0xff]  }
  0xd5   :  { %715 = vmatprep.subr.bf16.mxu0 %v2766_v45  ;;  %v2847_v45 = vld [vmem:[%s4200_s3 + $0xc4] ss:$8 sps:$4 sm:$0xff]  }
  0xd8   :  { %716 = vmatpush1.bf16.msra.mxu0 %v2764_v44  ;;  %v2851_v44 = vld [vmem:[%s4200_s3 + $0xe0] ss:$8 sps:$4 sm:$0xff]  }
  0xd9   :  { %717 = vmatprep.subr.bf16.mxu0 %v2769_v40  ;;  %v2856_v40 = vld [vmem:[%s4200_s3 + $0xf4] ss:$8 sps:$4 sm:$0xff]  }
  0xdc   :  { %718 = vmatpush1.bf16.msra.mxu0 %v2767_v61  ;;  %v2857_v61 = vld [vmem:[%s4203_s6 + $0x4] ss:$8 sps:$4 sm:$0xff]  }
  0xdd   :  { %719 = vmatprep.subr.bf16.mxu0 %v2772_v62  ;;  %v2859_v62 = vld [vmem:[%s4203_s6] ss:$8 sps:$4 sm:$0xff]   ;;  %1325 = vmatprep.subr.bf16.mxu1 %v2857_v61 }
  0xde   :  { %1326 = vmatpush1.bf16.msra.mxu1 %v2859_v62 }
  0xe0   :  { %720 = vmatpush1.bf16.msra.mxu0 %v2770_v63  ;;  %v2860_v63 = vld [vmem:[%s4203_s6 + $0x14] ss:$8 sps:$4 sm:$0xff]  }
  0xe1   :  { %721 = vmatprep.subr.bf16.mxu0 %v2775_v0  ;;  %v2862_v0 = vld [vmem:[%s4203_s6 + $0x10] ss:$8 sps:$4 sm:$0xff]   ;;  %1327 = vmatprep.subr.bf16.mxu1 %v2860_v63  ;;  %v2905_v63 = vld [vmem:[%s4202_s5] ss:$8 sps:$4 sm:$0xff]  }
  0xe2   :  { %1328 = vmatpush1.bf16.msra.mxu1 %v2862_v0 }
  0xe4   :  { %722 = vmatpush1.bf16.msra.mxu0 %v2773_v1  ;;  %v2865_v1 = vld [vmem:[%s4203_s6 + $0x20] ss:$8 sps:$4 sm:$0xff]  }
  0xe5   :  { %723 = vmatprep.subr.bf16.mxu0 %v2778_v2  ;;  %v2866_v2 = vld [vmem:[%s4203_s6 + $0x34] ss:$8 sps:$4 sm:$0xff]  }
  0xe8   :  { %724 = vmatpush1.bf16.msra.mxu0 %v2776_v3  ;;  %v2868_v3 = vld [vmem:[%s4203_s6 + $0x30] ss:$8 sps:$4 sm:$0xff]  }
  0xe9   :  { %725 = vmatprep.subr.bf16.mxu0 %v2781_v4  ;;  %v2869_v4 = vld [vmem:[%s4203_s6 + $0x44] ss:$8 sps:$4 sm:$0xff]  }
  0xec   :  { %726 = vmatpush1.bf16.msra.mxu0 %v2779_v5  ;;  %v2871_v5 = vld [vmem:[%s4203_s6 + $0x40] ss:$8 sps:$4 sm:$0xff]  }
  0xed   :  { %727 = vmatprep.subr.bf16.mxu0 %v2784_v6  ;;  %v2872_v6 = vld [vmem:[%s4203_s6 + $0x54] ss:$8 sps:$4 sm:$0xff]  }
  0xf0   :  { %728 = vmatpush1.bf16.msra.mxu0 %v2782_v7  ;;  %v2874_v7 = vld [vmem:[%s4203_s6 + $0x50] ss:$8 sps:$4 sm:$0xff]  }
  0xf1   :  { %729 = vmatprep.subr.bf16.mxu0 %v2787_v8  ;;  %v2875_v8 = vld [vmem:[%s4203_s6 + $0x64] ss:$8 sps:$4 sm:$0xff]  }
  0xf4   :  { %730 = vmatpush1.bf16.msra.mxu0 %v2785_v9  ;;  %v2877_v9 = vld [vmem:[%s4203_s6 + $0x60] ss:$8 sps:$4 sm:$0xff]  }
  0xf5   :  { %731 = vmatprep.subr.bf16.mxu0 %v2790_v10  ;;  %v2878_v10 = vld [vmem:[%s4203_s6 + $0x74] ss:$8 sps:$4 sm:$0xff]  }
  0xf8   :  { %732 = vmatpush1.bf16.msra.mxu0 %v2788_v11  ;;  %v2880_v11 = vld [vmem:[%s4203_s6 + $0x70] ss:$8 sps:$4 sm:$0xff]  }
  0xf9   :  { %733 = vmatprep.subr.bf16.mxu0 %v2793_v12  ;;  %v2881_v12 = vld [vmem:[%s4203_s6 + $0x84] ss:$8 sps:$4 sm:$0xff]  }
  0xfc   :  { %734 = vmatpush1.bf16.msra.mxu0 %v2791_v13  ;;  %v2883_v13 = vld [vmem:[%s4203_s6 + $0x80] ss:$8 sps:$4 sm:$0xff]  }
  0xfd   :  { %735 = vmatprep.subr.bf16.mxu0 %v2796_v14  ;;  %v2884_v14 = vld [vmem:[%s4203_s6 + $0x94] ss:$8 sps:$4 sm:$0xff]  }
 0x100   :  { %736 = vmatpush1.bf16.msra.mxu0 %v2794_v17  ;;  %v2886_v17 = vld [vmem:[%s4203_s6 + $0x90] ss:$8 sps:$4 sm:$0xff]  }
 0x101   :  { %737 = vmatprep.subr.bf16.mxu0 %v2799_v18  ;;  %v2887_v18 = vld [vmem:[%s4203_s6 + $0xa4] ss:$8 sps:$4 sm:$0xff]  }
 0x104   :  { %738 = vmatpush1.bf16.msra.mxu0 %v2797_v19  ;;  %v2889_v19 = vld [vmem:[%s4203_s6 + $0xa0] ss:$8 sps:$4 sm:$0xff]  }
 0x105   :  { %739 = vmatprep.subr.bf16.mxu0 %v2802_v20  ;;  %v2890_v20 = vld [vmem:[%s4203_s6 + $0xb4] ss:$8 sps:$4 sm:$0xff]  }
 0x108   :  { %740 = vmatpush1.bf16.msra.mxu0 %v2800_v24  ;;  %v2892_v24 = vld [vmem:[%s4203_s6 + $0xb0] ss:$8 sps:$4 sm:$0xff]  }
 0x109   :  { %741 = vmatprep.subr.bf16.mxu0 %v2805_v25  ;;  %v2893_v25 = vld [vmem:[%s4203_s6 + $0xc4] ss:$8 sps:$4 sm:$0xff]  }
 0x10c   :  { %742 = vmatpush1.bf16.msra.mxu0 %v2803_v26  ;;  %v2895_v26 = vld [vmem:[%s4203_s6 + $0xc0] ss:$8 sps:$4 sm:$0xff]  }
 0x10d   :  { %743 = vmatprep.subr.bf16.mxu0 %v2808_v27  ;;  %v2896_v27 = vld [vmem:[%s4203_s6 + $0xd4] ss:$8 sps:$4 sm:$0xff]  }
 0x110   :  { %744 = vmatpush1.bf16.msra.mxu0 %v2806_v28  ;;  %v2898_v28 = vld [vmem:[%s4203_s6 + $0xd0] ss:$8 sps:$4 sm:$0xff]  }
 0x111   :  { %998 = vmatprep.subr.bf16.mxu0 %v2811_v30 }
 0x113   :  { %746 = vmatmul.mubr.bf16.vlgmr.msra.gmra.mrb[4].mxu0 %v3581_v59  ;;  %v2820_v59 = vld [vmem:[%s4200_s3 + $0x34] ss:$8 sps:$4 sm:$0xff]  }
 0x114   :  { %999 = vmatpush1.bf16.msra.mxu0 %v2809_v31  ;;  %1030 = vmatprep.mubr.bf16.mxu0 %v3684_v55  ;;  %v2850_v55 = vld [vmem:[%s4200_s3 + $0xd4] ss:$8 sps:$4 sm:$0xff]   ;;  %v2899_v31 = vld [vmem:[%s4203_s6 + $0xe4] ss:$8 sps:$4 sm:$0xff]  }
 0x115   :  { %1000 = vmatprep.subr.bf16.mxu0 %v2814_v32 }
 0x118   :  { %1001 = vmatpush1.bf16.msra.mxu0 %v2812_v33  ;;  %v2901_v33 = vld [vmem:[%s4203_s6 + $0xe0] ss:$8 sps:$4 sm:$0xff]  }
 0x119   :  { %1002 = vmatprep.subr.bf16.mxu0 %v2817_v34 }
 0x11c   :  { %1003 = vmatpush1.bf16.msra.mxu0 %v2815_v35 }
 0x11d   :  { %1004 = vmatprep.subr.bf16.mxu0 %v2820_v59  ;;  %v2902_v59 = vld [vmem:[%s4203_s6 + $0xf4] ss:$8 sps:$4 sm:$0xff]  }
 0x120   :  { %1005 = vmatpush1.bf16.msra.mxu0 %v2818_v36  ;;  %v2904_v36 = vld [vmem:[%s4203_s6 + $0xf0] ss:$8 sps:$4 sm:$0xff]  }
 0x121   :  { %1006 = vmatprep.subr.bf16.mxu0 %v2823_v37  ;;  %v2907_v37 = vld [vmem:[%s4202_s5 + $0x4] ss:$8 sps:$4 sm:$0xff]  }
 0x124   :  { %1007 = vmatpush1.bf16.msra.mxu0 %v2821_v38 }
 0x125   :  { %1008 = vmatprep.subr.bf16.mxu0 %v2826_v39 }
 0x128   :  { %1009 = vmatpush1.bf16.msra.mxu0 %v2824_v16 }
 0x129   :  { %1010 = vmatprep.subr.bf16.mxu0 %v2829_v43 }
 0x12c   :  { %1011 = vmatpush1.bf16.msra.mxu0 %v2827_v23 }
 0x12d   :  { %1012 = vmatprep.subr.bf16.mxu0 %v2832_v46 }
 0x130   :  { %1013 = vmatpush1.bf16.msra.mxu0 %v2830_v48  ;;  %v1043_v48 = vlaneseq }
 0x131   :  { %1014 = vmatprep.subr.bf16.mxu0 %v2835_v50 }
 0x132   :  { %v3978_v50 = vshrl.u32 %v1043_v48, 7  ;;  %v2937_v48 = vld [vmem:[%s4202_s5 + $0xa4] ss:$8 sps:$4 sm:$0xff]  }
 0x134   :  { %1015 = vmatpush1.bf16.msra.mxu0 %v2833_v51  ;;  %v3981_v51 = vsub.s32 0, %v3978_v50 }
 0x135   :  { %1016 = vmatprep.subr.bf16.mxu0 %v2838_v42  ;;  %v1041_v42 = vld [vmem:[#allocation2] sm:$0x3] }
 0x138   :  { %1017 = vmatpush1.bf16.msra.mxu0 %v2836_v15  ;;  %v3984_v15 = vsub.s32 1, %v3978_v50 }
 0x139   :  { %1018 = vmatprep.subr.bf16.mxu0 %v2841_v21  ;;  %v1046_v21 = vrot.slane %v1041_v42, %v3981_v51 }
 0x13c   :  { %1019 = vmatpush1.bf16.msra.mxu0 %v2839_v49 }
 0x13d   :  { %1020 = vmatprep.subr.bf16.mxu0 %v2844_v52  ;;  %v1050_v52 = vrot.slane %v1041_v42, %v3984_v15  ;;  %v2935_v42 = vld [vmem:[%s4202_s5 + $0xa0] ss:$8 sps:$4 sm:$0xff]  }
 0x140   :  { %1021 = vmatpush1.bf16.msra.mxu0 %v2842_v53 }
 0x141   :  { %1022 = vmatprep.subr.bf16.mxu0 %v2847_v45 }
 0x144   :  { %1023 = vmatpush1.bf16.msra.mxu0 %v2845_v54 }
 0x145   :  { %1024 = vmatprep.subr.bf16.mxu0 %v2850_v55 }
 0x148   :  { %1025 = vmatpush1.bf16.msra.mxu0 %v2848_v56 }
 0x149   :  { %1026 = vmatprep.subr.bf16.mxu0 %v2853_v57 }
 0x14c   :  { %1027 = vmatpush1.bf16.msra.mxu0 %v2851_v44 }
 0x14d   :  { %1028 = vmatprep.subr.bf16.mxu0 %v2856_v40 }
 0x150   :  { %1029 = vmatpush1.bf16.msra.mxu0 %v2854_v58 }
 0x153   :  { %1031 = vmatmul.mubr.bf16.vlgmr.msra.gmra.mrb[8].mxu0 %v3697_v60  ;;  %v2863_v60 = vld [vmem:[%s4203_s6 + $0x24] ss:$8 sps:$4 sm:$0xff]  }
 0x154   :  { %1329 = vmatprep.subr.bf16.mxu1 %v2863_v60  ;;  %v2910_v60 = vld [vmem:[%s4202_s5 + $0x14] ss:$8 sps:$4 sm:$0xff]  }
 0x155   :  { %1330 = vmatpush1.bf16.msra.mxu1 %v2865_v1 }
 0x156   :  { %1331 = vmatprep.subr.bf16.mxu1 %v2866_v2 }
 0x159   :  { %1332 = vmatpush1.bf16.msra.mxu1 %v2868_v3 }
 0x15a   :  { %1333 = vmatprep.subr.bf16.mxu1 %v2869_v4 }
 0x15d   :  { %1334 = vmatpush1.bf16.msra.mxu1 %v2871_v5  ;;  %v2908_v5 = vld [vmem:[%s4202_s5 + $0x10] ss:$8 sps:$4 sm:$0xff]  }
 0x15e   :  { %1335 = vmatprep.subr.bf16.mxu1 %v2872_v6 }
 0x161   :  { %1336 = vmatpush1.bf16.msra.mxu1 %v2874_v7 }
 0x162   :  { %1337 = vmatprep.subr.bf16.mxu1 %v2875_v8 }
 0x165   :  { %1338 = vmatpush1.bf16.msra.mxu1 %v2877_v9  ;;  %v2913_v9 = vld [vmem:[%s4202_s5 + $0x24] ss:$8 sps:$4 sm:$0xff]  }
 0x166   :  { %1339 = vmatprep.subr.bf16.mxu1 %v2878_v10 }
 0x169   :  { %1340 = vmatpush1.bf16.msra.mxu1 %v2880_v11 }
 0x16a   :  { %1341 = vmatprep.subr.bf16.mxu1 %v2881_v12 }
 0x16d   :  { %1342 = vmatpush1.bf16.msra.mxu1 %v2883_v13 }
 0x16e   :  { %1343 = vmatprep.subr.bf16.mxu1 %v2884_v14  ;;  %v2911_v14 = vld [vmem:[%s4202_s5 + $0x20] ss:$8 sps:$4 sm:$0xff]  }
 0x171   :  { %1344 = vmatpush1.bf16.msra.mxu1 %v2886_v17 }
 0x172   :  { %1345 = vmatprep.subr.bf16.mxu1 %v2887_v18 }
 0x175   :  { %1346 = vmatpush1.bf16.msra.mxu1 %v2889_v19  ;;  %v2916_v19 = vld [vmem:[%s4202_s5 + $0x34] ss:$8 sps:$4 sm:$0xff]  }
 0x176   :  { %1347 = vmatprep.subr.bf16.mxu1 %v2890_v20 }
 0x179   :  { %1348 = vmatpush1.bf16.msra.mxu1 %v2892_v24 }
 0x17a   :  { %1349 = vmatprep.subr.bf16.mxu1 %v2893_v25 }
 0x17d   :  { %1350 = vmatpush1.bf16.msra.mxu1 %v2895_v26 }
 0x17e   :  { %1351 = vmatprep.subr.bf16.mxu1 %v2896_v27  ;;  %v2914_v27 = vld [vmem:[%s4202_s5 + $0x30] ss:$8 sps:$4 sm:$0xff]  }
 0x181   :  { %1352 = vmatpush1.bf16.msra.mxu1 %v2898_v28  ;;  %v2919_v28 = vld [vmem:[%s4202_s5 + $0x44] ss:$8 sps:$4 sm:$0xff]  }
 0x182   :  { %1353 = vmatprep.subr.bf16.mxu1 %v2899_v31 }
 0x185   :  { %1354 = vmatpush1.bf16.msra.mxu1 %v2901_v33  ;;  %v2917_v33 = vld [vmem:[%s4202_s5 + $0x40] ss:$8 sps:$4 sm:$0xff]  }
 0x186   :  { %1355 = vmatprep.subr.bf16.mxu1 %v2902_v59  ;;  %v2920_v59 = vld [vmem:[%s4202_s5 + $0x50] ss:$8 sps:$4 sm:$0xff]  }
 0x189   :  { %1356 = vmatpush1.bf16.msra.mxu1 %v2904_v36  ;;  %v2925_v36 = vld [vmem:[%s4202_s5 + $0x64] ss:$8 sps:$4 sm:$0xff]  }
 0x18a   :  { %1526 = vmatprep.subr.bf16.mxu1 %v2907_v37  ;;  %v2923_v37 = vld [vmem:[%s4202_s5 + $0x60] ss:$8 sps:$4 sm:$0xff]  }
 0x1a6   :  { %v546_v30 = vpop.f32.mrb[0].mxu0 }
 0x1a7   :  { %v548_v32 = vpop.f32.mrb[1].mxu0 }
 0x1a8   :  { %v550_v34 = vpop.f32.mrb[2].mxu0 }
 0x1a9   :  { %v551_v35 = vpop.f32.mrb[3].mxu0 }
 0x1aa   :  { %v2922_v35 = vld [vmem:[%s4202_s5 + $0x54] ss:$8 sps:$4 sm:$0xff]  }
 0x1e6   :  { %v747_v38 = vpop.f32.mrb[4].mxu0 }
 0x1e7   :  { %v748_v39 = vadd.f32 %v747_v38, %v546_v30  ;;  %v749_v16 = vpop.f32.mrb[5].mxu0  ;;  %v2928_v38 = vld [vmem:[%s4202_s5 + $0x74] ss:$8 sps:$4 sm:$0xff]  }
 0x1e8   :  { %v750_v43 = vadd.f32 %v749_v16, %v548_v32  ;;  %v751_v23 = vpop.f32.mrb[6].mxu0  ;;  %v2931_v16 = vld [vmem:[%s4202_s5 + $0x84] ss:$8 sps:$4 sm:$0xff]  }
 0x1e9   :  { %v752_v46 = vpop.f32.mrb[7].mxu0  ;;  %v2934_v23 = vld [vmem:[%s4202_s5 + $0x94] ss:$8 sps:$4 sm:$0xff]  }
 0x1ea   :  { %v2932_v46 = vld [vmem:[%s4202_s5 + $0x90] ss:$8 sps:$4 sm:$0xff]  }
 0x226   :  { %v1032_v49 = vpop.f32.mrb[8].mxu0 }
 0x227   :  { %v1039_v53 = vadd.f32 %v1032_v49, %v748_v39  ;;  %v1034_v45 = vpop.f32.mrb[9].mxu0  ;;  %v2926_v39 = vld [vmem:[%s4202_s5 + $0x70] ss:$8 sps:$4 sm:$0xff]  }
 0x228   :  { %v1040_v54 = vadd.f32 %v1034_v45, %v750_v43  ;;  %v1036_v55 = vpop.f32.mrb[10].mxu0  ;;  %v2929_v43 = vld [vmem:[%s4202_s5 + $0x80] ss:$8 sps:$4 sm:$0xff]   ;;  %v2938_v49 = vld [vmem:[%s4202_s5 + $0xb0] ss:$8 sps:$4 sm:$0xff]  }
 0x229   :  { %v1053_v56 = vadd.f32 %v1046_v21, %v1039_v53  ;;  %v1037_v57 = vpop.f32.mrb[11].mxu0  ;;  %v2940_v21 = vld [vmem:[%s4202_s5 + $0xb4] ss:$8 sps:$4 sm:$0xff]   ;;  %v2941_v53 = vld [vmem:[%s4202_s5 + $0xc0] ss:$8 sps:$4 sm:$0xff]  }
 0x22a   :  { %v1054_v44 = vadd.f32 %v1050_v52, %v1040_v54  ;;  %v2943_v52 = vld [vmem:[%s4202_s5 + $0xc4] ss:$8 sps:$4 sm:$0xff]   ;;  %v2946_v45 = vld [vmem:[%s4202_s5 + $0xd4] ss:$8 sps:$4 sm:$0xff]  }
 0x22b   :  { %v1055_v40 = vmax.f32 %v1053_v56, 0.0  ;;  %v2944_v56 = vld [vmem:[%s4202_s5 + $0xd0] ss:$8 sps:$4 sm:$0xff]  }
 0x22c   :  { %v1056_v58 = vmax.f32 %v1054_v44, 0.0 }
 0x22d   :  { %v1057_v61 = vpack.c.bf16 %v1055_v40, %v1055_v40  ;;  %v2949_v40 = vld [vmem:[%s4202_s5 + $0xe4] ss:$8 sps:$4 sm:$0xff]  }
 0x22e   :  { %v1058_v62 = vpack.c.bf16 %v1056_v58, %v1056_v58 }
 0x22f   :  { %v3991_v0 = vshll.u32 %v1057_v61, 16  ;;  %v4000_v3 = vshrl.u32 %v1057_v61, 16 }
 0x230   :  { %v3996_v1 = vshrl.u32 %v1058_v62, 16  ;;  %v3998_v2 = vshll.u32 %v1058_v62, 16  ;;  %1357 = vmatprep.mubr.bf16.mxu1 %v1058_v62 }
 0x231   :  { %1358 = vmatmul.mubr.bf16.vlgmr.msra.gmra.mrb[0].mxu1 %v1057_v61  ;;  %v1567_v4 = vrot.slane %v3991_v0, 1  ;;  %v1575_v13 = vrot.slane %v4000_v3, 2  ;;  %v1576_v20 = vrot.slane %v3991_v0, 3  ;;  %v1077_v54 = vrot.slane %v4000_v3, 1  ;;  %v2947_v61 = vld [vmem:[%s4202_s5 + $0xe0] ss:$8 sps:$4 sm:$0xff]  }
 0x232   :  { %1527 = vmatpush1.bf16.msra.mxu1 %v2905_v63  ;;  %v1069_v6 = vrot.slane %v3996_v1, 7  ;;  %v1080_v7 = vrot.slane %v3996_v1, 1  ;;  %v1081_v8 = vrot.slane %v3998_v2, 2  ;;  %v1078_v55 = vrot.slane %v3991_v0, 2  ;;  %v2952_v63 = vld [vmem:[%s4202_s5 + $0xf4] ss:$8 sps:$4 sm:$0xff]  }
 0x233   :  { %1528 = vmatprep.subr.bf16.mxu1 %v2910_v60  ;;  %v1568_v12 = vor.u32 %v1567_v4, %v4000_v3  ;;  %v1577_v26 = vor.u32 %v1576_v20, %v1575_v13  ;;  %v1578_v57 = vrot.slane %v3996_v1, 2  ;;  %v1579_v44 = vrot.slane %v3998_v2, 3  ;;  %v2958_v13 = vld [vmem:[#allocation4 + $0x14] ss:$8 sps:$4 sm:$0xff]   ;;  %v2962_v20 = vld [vmem:[#allocation4 + $0x30] ss:$8 sps:$4 sm:$0xff]  }
 0x234   :  { %v1072_v10 = vor.u32 %v3998_v2, %v1069_v6  ;;  %v1082_v11 = vor.u32 %v1081_v8, %v1080_v7  ;;  %v1079_v58 = vor.u32 %v1078_v55, %v1077_v54  ;;  %v1062_v60 = vrot.slane %v4000_v3, 7  ;;  %v2950_v6 = vld [vmem:[%s4202_s5 + $0xf0] ss:$8 sps:$4 sm:$0xff]   ;;  %v3004_v54 = vld [vmem:[#allocation7 + $0x10] ss:$8 sps:$4 sm:$0xff]  }
 0x235   :  { %v1583_v30 = vsel %vm3504_vm5, %v1577_v26, 0  ;;  %v1573_v32 = vsel %vm3504_vm5, %v1568_v12, 0  ;;  %v1580_v62 = vor.u32 %v1579_v44, %v1578_v57  ;;  %v1569_v4 = vrot.slane %v3998_v2, 1  ;;  %v2953_v2 = vld [vmem:[#allocation4] ss:$8 sps:$4 sm:$0xff]  }
 0x236   :  { %1529 = vmatpush1.bf16.msra.mxu1 %v2908_v5  ;;  %v1086_v17 = vsel %vm3493_vm4, 0, %v1082_v11  ;;  %v1076_v24 = vsel %vm3493_vm4, 0, %v1072_v10  ;;  %v1587_v31 = vrot.slane %v1583_v30, 6  ;;  %v1085_v5 = vsel %vm3493_vm4, 0, %v1079_v58  ;;  %v2968_v26 = vld [vmem:[#allocation4 + $0x50] ss:$8 sps:$4 sm:$0xff]  }
 0x237   :  { %1530 = vmatprep.subr.bf16.mxu1 %v2913_v9  ;;  %v1090_v18 = vrot.slane %v1086_v17, 6  ;;  %v1584_v7 = vsel %vm3504_vm5, %v1580_v62, 0  ;;  %v1065_v8 = vor.u32 %v3991_v0, %v1062_v60  ;;  %v2955_v9 = vld [vmem:[#allocation4 + $0x4] ss:$8 sps:$4 sm:$0xff]   ;;  %v1089_v10 = vrot.slane %v1085_v5, 6 }
 0x238   :  { %v4041_v34 = vsel %vm181_vm2, %v1573_v32, %v1587_v31  ;;  %v1570_v3 = vor.u32 %v1569_v4, %v3996_v1  ;;  %v1588_v11 = vrot.slane %v1584_v7, 6  ;;  %v2961_v1 = vld [vmem:[#allocation4 + $0x24] ss:$8 sps:$4 sm:$0xff]   ;;  %v2976_v30 = vld [vmem:[#allocation4 + $0x74] ss:$8 sps:$4 sm:$0xff]  }
 0x239   :  { %v1097_v25 = vsel %vm181_vm2, %v1076_v24, %v1090_v18  ;;  %v1075_v12 = vsel %vm3493_vm4, 0, %v1065_v8  ;;  %v2956_v18 = vld [vmem:[#allocation4 + $0x10] ss:$8 sps:$4 sm:$0xff]   ;;  %v2967_v24 = vld [vmem:[#allocation4 + $0x44] ss:$8 sps:$4 sm:$0xff]  }
 0x23a   :  { %1531 = vmatpush1.bf16.msra.mxu1 %v2911_v14  ;;  %1558 = vmatprep.mubr.bf16.mxu1 %v1097_v25  ;;  %v1093_v14 = vsel %vm181_vm2, %v1075_v12, %v1089_v10  ;;  %v1574_v17 = vsel %vm3504_vm5, %v1570_v3, 0  ;;  %v2965_v25 = vld [vmem:[#allocation4 + $0x40] ss:$8 sps:$4 sm:$0xff]   ;;  %v2974_v31 = vld [vmem:[#allocation4 + $0x70] ss:$8 sps:$4 sm:$0xff]  }
 0x23b   :  { %1532 = vmatprep.subr.bf16.mxu1 %v2916_v19  ;;  %v1595_v0 = vsel %vm181_vm2, %v1574_v17, %v1588_v11  ;;  %v2959_v19 = vld [vmem:[#allocation4 + $0x20] ss:$8 sps:$4 sm:$0xff]   ;;  %v2979_v32 = vld [vmem:[#allocation4 + $0x84] ss:$8 sps:$4 sm:$0xff]   ;;  %v3010_v44 = vld [vmem:[#allocation7 + $0x30] ss:$8 sps:$4 sm:$0xff]  }
 0x23c   :  { %v3009_v55 = vld [vmem:[#allocation7 + $0x24] ss:$8 sps:$4 sm:$0xff]   ;;  %v3012_v57 = vld [vmem:[#allocation7 + $0x34] ss:$8 sps:$4 sm:$0xff]   ;;  %v3013_v58 = vld [vmem:[#allocation7 + $0x40] ss:$8 sps:$4 sm:$0xff]  }
 0x23d   :  { %v3021_v62 = vld [vmem:[#allocation7 + $0x64] ss:$8 sps:$4 sm:$0xff]   ;;  %v3022_v60 = vld [vmem:[#allocation7 + $0x70] ss:$8 sps:$4 sm:$0xff]   ;;  %v3025_v5 = vld [vmem:[#allocation7 + $0x80] ss:$8 sps:$4 sm:$0xff]  }
 0x23e   :  { %1533 = vmatpush1.bf16.msra.mxu1 %v2914_v27  ;;  %v2973_v27 = vld [vmem:[#allocation4 + $0x64] ss:$8 sps:$4 sm:$0xff]   ;;  %v3028_v7 = vld [vmem:[#allocation7 + $0x90] ss:$8 sps:$4 sm:$0xff]   ;;  %v3036_v10 = vld [vmem:[#allocation7 + $0xb4] ss:$8 sps:$4 sm:$0xff]  }
 0x23f   :  { %1534 = vmatprep.subr.bf16.mxu1 %v2919_v28  ;;  %v2971_v28 = vld [vmem:[#allocation4 + $0x60] ss:$8 sps:$4 sm:$0xff]   ;;  %v3034_v3 = vld [vmem:[#allocation7 + $0xb0] ss:$8 sps:$4 sm:$0xff]  }
 0x240   :  { %v3027_v4 = vld [vmem:[#allocation7 + $0x84] ss:$8 sps:$4 sm:$0xff]   ;;  %v3042_v12 = vld [vmem:[#allocation7 + $0xd4] ss:$8 sps:$4 sm:$0xff]   ;;  %v3043_v17 = vld [vmem:[#allocation7 + $0xe0] ss:$8 sps:$4 sm:$0xff]  }
 0x241   :  { %v3033_v8 = vld [vmem:[#allocation7 + $0xa4] ss:$8 sps:$4 sm:$0xff]  }
 0x242   :  { %1535 = vmatpush1.bf16.msra.mxu1 %v2917_v33  ;;  %v2977_v33 = vld [vmem:[#allocation4 + $0x80] ss:$8 sps:$4 sm:$0xff]  }
 0x243   :  { %1536 = vmatprep.subr.bf16.mxu1 %v2922_v35  ;;  %v2982_v35 = vld [vmem:[#allocation4 + $0x94] ss:$8 sps:$4 sm:$0xff]   ;;  %v3039_v11 = vld [vmem:[#allocation7 + $0xc4] ss:$8 sps:$4 sm:$0xff]  }
 0x246   :  { %1537 = vmatpush1.bf16.msra.mxu1 %v2920_v59  ;;  %v2980_v59 = vld [vmem:[#allocation4 + $0x90] ss:$8 sps:$4 sm:$0xff]  }
 0x247   :  { %1538 = vmatprep.subr.bf16.mxu1 %v2925_v36  ;;  %v2985_v36 = vld [vmem:[#allocation4 + $0xa4] ss:$8 sps:$4 sm:$0xff]  }
 0x24a   :  { %1539 = vmatpush1.bf16.msra.mxu1 %v2923_v37  ;;  %v2983_v37 = vld [vmem:[#allocation4 + $0xa0] ss:$8 sps:$4 sm:$0xff]  }
 0x24b   :  { %1540 = vmatprep.subr.bf16.mxu1 %v2928_v38  ;;  %v2988_v38 = vld [vmem:[#allocation4 + $0xb4] ss:$8 sps:$4 sm:$0xff]  }
 0x24e   :  { %1541 = vmatpush1.bf16.msra.mxu1 %v2926_v39  ;;  %v2986_v39 = vld [vmem:[#allocation4 + $0xb0] ss:$8 sps:$4 sm:$0xff]  }
 0x24f   :  { %1542 = vmatprep.subr.bf16.mxu1 %v2931_v16  ;;  %v2991_v16 = vld [vmem:[#allocation4 + $0xc4] ss:$8 sps:$4 sm:$0xff]  }
 0x252   :  { %1543 = vmatpush1.bf16.msra.mxu1 %v2929_v43  ;;  %v2989_v43 = vld [vmem:[#allocation4 + $0xc0] ss:$8 sps:$4 sm:$0xff]  }
 0x253   :  { %1544 = vmatprep.subr.bf16.mxu1 %v2934_v23  ;;  %v2994_v23 = vld [vmem:[#allocation4 + $0xd4] ss:$8 sps:$4 sm:$0xff]  }
 0x256   :  { %1545 = vmatpush1.bf16.msra.mxu1 %v2932_v46  ;;  %v2992_v46 = vld [vmem:[#allocation4 + $0xd0] ss:$8 sps:$4 sm:$0xff]  }
 0x257   :  { %1546 = vmatprep.subr.bf16.mxu1 %v2937_v48  ;;  %v2997_v48 = vld [vmem:[#allocation4 + $0xe4] ss:$8 sps:$4 sm:$0xff]  }
 0x25a   :  { %1547 = vmatpush1.bf16.msra.mxu1 %v2935_v42  ;;  %v2995_v42 = vld [vmem:[#allocation4 + $0xe0] ss:$8 sps:$4 sm:$0xff]  }
 0x25b   :  { %1548 = vmatprep.subr.bf16.mxu1 %v2940_v21  ;;  %v3000_v21 = vld [vmem:[#allocation4 + $0xf4] ss:$8 sps:$4 sm:$0xff]  }
 0x25e   :  { %1549 = vmatpush1.bf16.msra.mxu1 %v2938_v49  ;;  %v2998_v49 = vld [vmem:[#allocation4 + $0xf0] ss:$8 sps:$4 sm:$0xff]  }
 0x25f   :  { %1550 = vmatprep.subr.bf16.mxu1 %v2943_v52  ;;  %v3003_v52 = vld [vmem:[#allocation7 + $0x4] ss:$8 sps:$4 sm:$0xff]  }
 0x262   :  { %1551 = vmatpush1.bf16.msra.mxu1 %v2941_v53  ;;  %v3001_v53 = vld [vmem:[#allocation7] ss:$8 sps:$4 sm:$0xff]  }
 0x263   :  { %1552 = vmatprep.subr.bf16.mxu1 %v2946_v45  ;;  %v3006_v45 = vld [vmem:[#allocation7 + $0x14] ss:$8 sps:$4 sm:$0xff]  }
 0x266   :  { %1553 = vmatpush1.bf16.msra.mxu1 %v2944_v56  ;;  %v3007_v56 = vld [vmem:[#allocation7 + $0x20] ss:$8 sps:$4 sm:$0xff]  }
 0x267   :  { %1554 = vmatprep.subr.bf16.mxu1 %v2949_v40  ;;  %v3015_v40 = vld [vmem:[#allocation7 + $0x44] ss:$8 sps:$4 sm:$0xff]  }
 0x26a   :  { %1555 = vmatpush1.bf16.msra.mxu1 %v2947_v61  ;;  %v3018_v61 = vld [vmem:[#allocation7 + $0x54] ss:$8 sps:$4 sm:$0xff]  }
 0x26b   :  { %1556 = vmatprep.subr.bf16.mxu1 %v2952_v63  ;;  %v3024_v63 = vld [vmem:[#allocation7 + $0x74] ss:$8 sps:$4 sm:$0xff]  }
 0x26e   :  { %1557 = vmatpush1.bf16.msra.mxu1 %v2950_v6  ;;  %v3030_v6 = vld [vmem:[#allocation7 + $0x94] ss:$8 sps:$4 sm:$0xff]  }
 0x26f   :  { %1789 = vmatprep.subr.bf16.mxu1 %v2955_v9  ;;  %v3031_v9 = vld [vmem:[#allocation7 + $0xa0] ss:$8 sps:$4 sm:$0xff]  }
 0x271   :  { %1559 = vmatmul.mubr.bf16.vlgmr.msra.gmra.mrb[0].mxu1 %v1093_v14  ;;  %v3045_v14 = vld [vmem:[#allocation7 + $0xe4] ss:$8 sps:$4 sm:$0xff]  }
 0x272   :  { %1790 = vmatpush1.bf16.msra.mxu1 %v2953_v2  ;;  %1821 = vmatprep.mubr.bf16.mxu1 %v1595_v0  ;;  %v3037_v2 = vld [vmem:[#allocation7 + $0xc0] ss:$8 sps:$4 sm:$0xff]   ;;  %v3048_v0 = vld [vmem:[#allocation7 + $0xf4] ss:$8 sps:$4 sm:$0xff]  }
 0x273   :  { %1791 = vmatprep.subr.bf16.mxu1 %v2958_v13  ;;  %v3040_v13 = vld [vmem:[#allocation7 + $0xd0] ss:$8 sps:$4 sm:$0xff]  }
 0x276   :  { %1792 = vmatpush1.bf16.msra.mxu1 %v2956_v18  ;;  %v3046_v18 = vld [vmem:[#allocation7 + $0xf0] ss:$8 sps:$4 sm:$0xff]  }
 0x277   :  { %1793 = vmatprep.subr.bf16.mxu1 %v2961_v1  ;;  %v1832_v1 = vld [vmem:[#allocation6] sm:$0x3] }
 0x27a   :  { %1794 = vmatpush1.bf16.msra.mxu1 %v2959_v19  ;;  %v1878_v19 = vld [vmem:[#allocation9] sm:$0x3] }
 0x27b   :  { %1795 = vmatprep.subr.bf16.mxu1 %v2964_v22  ;;  %v1837_v22 = vrot.slane %v1832_v1, %v3981_v51 }
 0x27e   :  { %1796 = vmatpush1.bf16.msra.mxu1 %v2962_v20  ;;  %v1883_v20 = vrot.slane %v1878_v19, %v3981_v51 }
 0x27f   :  { %1797 = vmatprep.subr.bf16.mxu1 %v2967_v24  ;;  %v1841_v24 = vrot.slane %v1832_v1, %v3984_v15 }
 0x282   :  { %1798 = vmatpush1.bf16.msra.mxu1 %v2965_v25  ;;  %v1887_v25 = vrot.slane %v1878_v19, %v3984_v15 }
 0x283   :  { %1799 = vmatprep.subr.bf16.mxu1 %v2970_v29  ;;  %v2675_v29 = vadd.f32 %v1883_v20, %v1837_v22  ;;  %v3049_v22 = vld [vmem:[%s4208_s11] sm:$0xff]  }
 0x286   :  { %1800 = vmatpush1.bf16.msra.mxu1 %v2968_v26  ;;  %v2677_v26 = vadd.f32 %v1887_v25, %v1841_v24 }
 0x287   :  { %1801 = vmatprep.subr.bf16.mxu1 %v2973_v27 }
 0x28a   :  { %1802 = vmatpush1.bf16.msra.mxu1 %v2971_v28 }
 0x28b   :  { %1803 = vmatprep.subr.bf16.mxu1 %v2976_v30 }
 0x28e   :  { %1804 = vmatpush1.bf16.msra.mxu1 %v2974_v31 }
 0x28f   :  { %1805 = vmatprep.subr.bf16.mxu1 %v2979_v32 }
 0x292   :  { %1806 = vmatpush1.bf16.msra.mxu1 %v2977_v33 }
 0x293   :  { %1807 = vmatprep.subr.bf16.mxu1 %v2982_v35 }
 0x296   :  { %1808 = vmatpush1.bf16.msra.mxu1 %v2980_v59 }
 0x297   :  { %1809 = vmatprep.subr.bf16.mxu1 %v2985_v36 }
 0x29a   :  { %1810 = vmatpush1.bf16.msra.mxu1 %v2983_v37 }
 0x29b   :  { %1811 = vmatprep.subr.bf16.mxu1 %v2988_v38 }
 0x29e   :  { %1812 = vmatpush1.bf16.msra.mxu1 %v2986_v39 }
 0x29f   :  { %1813 = vmatprep.subr.bf16.mxu1 %v2991_v16 }
 0x2a2   :  { %1814 = vmatpush1.bf16.msra.mxu1 %v2989_v43 }
 0x2a3   :  { %1815 = vmatprep.subr.bf16.mxu1 %v2994_v23 }
 0x2a6   :  { %1816 = vmatpush1.bf16.msra.mxu1 %v2992_v46 }
 0x2a7   :  { %1817 = vmatprep.subr.bf16.mxu1 %v2997_v48 }
 0x2aa   :  { %1818 = vmatpush1.bf16.msra.mxu1 %v2995_v42 }
 0x2ab   :  { %1819 = vmatprep.subr.bf16.mxu1 %v3000_v21 }
 0x2ae   :  { %1820 = vmatpush1.bf16.msra.mxu1 %v2998_v49 }
 0x2af   :  { %2050 = vmatprep.subr.bf16.mxu1 %v3003_v52 }
 0x2b1   :  { %1822 = vmatmul.mubr.bf16.vlgmr.msra.gmra.mrb[0].mxu1 %v4041_v34  ;;  %v3016_v34 = vld [vmem:[#allocation7 + $0x50] ss:$8 sps:$4 sm:$0xff]  }
 0x2b2   :  { %2051 = vmatpush1.bf16.msra.mxu1 %v3001_v53  ;;  %2082 = vmatprep.mubr.bf16.mxu1 %v3534_v41  ;;  %v3019_v41 = vld [vmem:[#allocation7 + $0x60] ss:$8 sps:$4 sm:$0xff]  }
 0x2b3   :  { %2052 = vmatprep.subr.bf16.mxu1 %v3006_v45 }
 0x2b6   :  { %2053 = vmatpush1.bf16.msra.mxu1 %v3004_v54 }
 0x2b7   :  { %2054 = vmatprep.subr.bf16.mxu1 %v3009_v55 }
 0x2ba   :  { %2055 = vmatpush1.bf16.msra.mxu1 %v3007_v56 }
 0x2bb   :  { %2056 = vmatprep.subr.bf16.mxu1 %v3012_v57 }
 0x2be   :  { %2057 = vmatpush1.bf16.msra.mxu1 %v3010_v44 }
 0x2bf   :  { %2058 = vmatprep.subr.bf16.mxu1 %v3015_v40 }
 0x2c2   :  { %2059 = vmatpush1.bf16.msra.mxu1 %v3013_v58 }
 0x2c3   :  { %2060 = vmatprep.subr.bf16.mxu1 %v3018_v61 }
 0x2c6   :  { %2061 = vmatpush1.bf16.msra.mxu1 %v3016_v34 }
 0x2c7   :  { %2062 = vmatprep.subr.bf16.mxu1 %v3021_v62 }
 0x2ca   :  { %2063 = vmatpush1.bf16.msra.mxu1 %v3019_v41 }
 0x2cb   :  { %2064 = vmatprep.subr.bf16.mxu1 %v3024_v63 }
 0x2ce   :  { %2065 = vmatpush1.bf16.msra.mxu1 %v3022_v60 }
 0x2cf   :  { %2066 = vmatprep.subr.bf16.mxu1 %v3027_v4 }
 0x2d2   :  { %2067 = vmatpush1.bf16.msra.mxu1 %v3025_v5 }
 0x2d3   :  { %2068 = vmatprep.subr.bf16.mxu1 %v3030_v6 }
 0x2d6   :  { %2069 = vmatpush1.bf16.msra.mxu1 %v3028_v7 }
 0x2d7   :  { %2070 = vmatprep.subr.bf16.mxu1 %v3033_v8 }
 0x2da   :  { %2071 = vmatpush1.bf16.msra.mxu1 %v3031_v9 }
 0x2db   :  { %2072 = vmatprep.subr.bf16.mxu1 %v3036_v10 }
 0x2de   :  { %2073 = vmatpush1.bf16.msra.mxu1 %v3034_v3 }
 0x2df   :  { %2074 = vmatprep.subr.bf16.mxu1 %v3039_v11 }
 0x2e2   :  { %2075 = vmatpush1.bf16.msra.mxu1 %v3037_v2 }
 0x2e3   :  { %2076 = vmatprep.subr.bf16.mxu1 %v3042_v12 }
 0x2e6   :  { %2077 = vmatpush1.bf16.msra.mxu1 %v3040_v13 }
 0x2e7   :  { %2078 = vmatprep.subr.bf16.mxu1 %v3045_v14 }
 0x2ea   :  { %2079 = vmatpush1.bf16.msra.mxu1 %v3043_v17 }
 0x2eb   :  { %2080 = vmatprep.subr.bf16.mxu1 %v3048_v0 }
 0x2ee   :  { %2081 = vmatpush1.bf16.msra.mxu1 %v3046_v18 }
 0x2f1   :  { %2083 = vmatmul.mubr.bf16.vlgmr.msra.gmra.mrb[0].mxu1 %v3670_v47 }
 0x3c4   :  { %v2084_v27 = vpop.f32.mrb[0].mxu1 }
 0x3c5   :  { %v2676_v28 = vadd.f32 %v2675_v29, %v2084_v27  ;;  %v2086_v30 = vpop.f32.mrb[1].mxu1  ;;  %v3253_v27 = vmov 0.0  }
 0x3c6   :  { %v2678_v31 = vadd.f32 %v2677_v26, %v2086_v30  ;;  %v2088_v32 = vpop.f32.mrb[2].mxu1  ;;  %2657 = vmatprep.subr.bf16.mxu0 %v3253_v27  ;;  %v3050_v30 = vld [vmem:[%s4208_s11 + $0x8] sm:$0xff]   ;;  %2665 = vmatprep.mubr.msk.bf16.mxu0 %vm3255_vm8, %v3253_v27 }
 0x3c7   :  { %v4134_v47 = vmax.f32 %v2676_v28, 0.0  ;;  %v2089_v33 = vpop.f32.mrb[3].mxu1  ;;  %2658 = vmatpush3.bf16.msra.mxu0 %v3049_v22  ;;  %v2645_v22 = vld [vmem:[#allocation13] ss:$0 sm:$0xff] }
 0x3c8   :  { %v4136_v35 = vmax.f32 %v2678_v31, 0.0  ;;  %2659 = vmatprep.subr.bf16.mxu0 %v3253_v27 }
 0x3c9   :  { %v2113_v59 = vsel %vm2095_vm6, %v4134_v47, -inf  ;;  %v2173_v36 = vsel %vm2172_vm7, %v4134_v47, -inf  ;;  %v2096_v15 = vsel %vm2095_vm6, %v4134_v47, 0.0  ;;  %v2152_v37 = vrot.slane %v4134_v47, 4 }
 0x3ca   :  { %v2114_v38 = vrot.slane %v2113_v59, 4  ;;  %v2174_v39 = vrot.slane %v2173_v36, 4  ;;  %v2097_v16 = vrot.slane %v2096_v15, 4  ;;  %v2153_v43 = vrot.slane %v4136_v35, 4 }
 0x3cb   :  { %v2156_v23 = vsel %vm2095_vm6, %v2152_v37, 0.0  ;;  %v2120_v46 = vsel %vm2095_vm6, %v4136_v35, -inf  ;;  %v2103_v48 = vsel %vm2095_vm6, %v4136_v35, 0.0  ;;  %v2180_v42 = vsel %vm2172_vm7, %v4136_v35, -inf  ;;  %2660 = vmatpush3.bf16.msra.mxu0 %v3050_v30 }
 0x3cc   :  { %v2115_v21 = vmax.f32 %v2113_v59, %v2114_v38  ;;  %v2175_v49 = vmax.f32 %v2173_v36, %v2174_v39  ;;  %v2098_v52 = vadd.f32 %v2097_v16, %v2096_v15  ;;  %v2157_v53 = vrot.slane %v2156_v23, 4  ;;  %v3051_v15 = vld [vmem:[%s4208_s11 + $0x10] sm:$0xff]   ;;  %2661 = vmatprep.subr.bf16.mxu0 %v3253_v27  ;;  %v3052_v16 = vld [vmem:[%s4208_s11 + $0x18] sm:$0xff]  }
 0x3cd   :  { %v2163_v45 = vsel %vm2095_vm6, %v2153_v43, 0.0  ;;  %v2121_v54 = vrot.slane %v2120_v46, 4  ;;  %v2104_v55 = vrot.slane %v2103_v48, 4  ;;  %v2181_v56 = vrot.slane %v2180_v42, 4 }
 0x3ce   :  { %v2116_v57 = vrot.slane %v2115_v21, 2  ;;  %v2176_v44 = vrot.slane %v2175_v49, 2  ;;  %v2099_v40 = vrot.slane %v2098_v52, 2  ;;  %v2158_v58 = vadd.f32 %v2157_v53, %v2156_v23 }
 0x3cf   :  { %v2164_v61 = vrot.slane %v2163_v45, 4  ;;  %v2122_v34 = vmax.f32 %v2120_v46, %v2121_v54  ;;  %v2105_v62 = vadd.f32 %v2104_v55, %v2103_v48  ;;  %v2182_v7 = vmax.f32 %v2180_v42, %v2181_v56  ;;  %2662 = vmatpush3.bf16.msra.mxu0 %v3051_v15 }
 0x3d0   :  { %v2117_v41 = vmax.f32 %v2115_v21, %v2116_v57  ;;  %v2177_v63 = vmax.f32 %v2175_v49, %v2176_v44  ;;  %v2100_v60 = vadd.f32 %v2099_v40, %v2098_v52  ;;  %v2159_v4 = vrot.slane %v2158_v58, 2  ;;  %2663 = vmatprep.subr.bf16.mxu0 %v3253_v27 }
 0x3d1   :  { %v2165_v5 = vadd.f32 %v2164_v61, %v2163_v45  ;;  %v2106_v6 = vrot.slane %v2105_v62, 2  ;;  %v2123_v2 = vrot.slane %v2122_v34, 2  ;;  %v2183_v19 = vrot.slane %v2182_v7, 2 }
 0x3d2   :  { %v2118_v8 = vrot.slane %v2117_v41, 1  ;;  %v2178_v9 = vrot.slane %v2177_v63, 1  ;;  %v2101_v10 = vrot.slane %v2100_v60, 1  ;;  %v2160_v3 = vadd.f32 %v2159_v4, %v2158_v58 }
 0x3d3   :  { %v2166_v11 = vrot.slane %v2165_v5, 2  ;;  %v2107_v12 = vadd.f32 %v2106_v6, %v2105_v62  ;;  %v2124_v26 = vmax.f32 %v2122_v34, %v2123_v2  ;;  %v2184_v33 = vmax.f32 %v2182_v7, %v2183_v19  ;;  %2664 = vmatpush3.bf16.msra.mxu0 %v3052_v16 }
 0x3d4   :  { %v2119_v13 = vmax.f32 %v2117_v41, %v2118_v8  ;;  %v2179_v14 = vmax.f32 %v2177_v63, %v2178_v9  ;;  %v2102_v17 = vadd.f32 %v2101_v10, %v2100_v60  ;;  %v2161_v0 = vrot.slane %v2160_v3, 1  ;;  %2669 = vmatprep.subr.bf16.mxu0 %v3253_v27  ;;  %v2309_v10 = vld [vmem:[#allocation12] sm:$0x3] }
 0x3d5   :  { %v2167_v18 = vadd.f32 %v2166_v11, %v2165_v5  ;;  %v2108_v1 = vrot.slane %v2107_v12, 1  ;;  %v2125_v36 = vrot.slane %v2124_v26, 1  ;;  %v2185_v38 = vrot.slane %v2184_v33, 1 }
 0x3d6   :  { %v2704_v20 = vpack.i.bf16 %v2179_v14, %v2119_v13  ;;  %v2111_v24 = vmul.f32 0.25, %v2102_v17  ;;  %v2162_v25 = vadd.f32 %v2161_v0, %v2160_v3  ;;  %v2322_v2 = vsel %vm181_vm2, %v2309_v10, 0 }
 0x3d7   :  { %v2168_v29 = vrot.slane %v2167_v18, 1  ;;  %v2109_v32 = vadd.f32 %v2108_v1, %v2107_v12  ;;  %v2126_v39 = vmax.f32 %v2124_v26, %v2125_v36  ;;  %v2186_v43 = vmax.f32 %v2184_v33, %v2185_v38  ;;  %v2639_v12 = vld [vmem:[#allocation10] ss:$0 sm:$0xff] }
 0x3d8   :  { %2705 = vrot.lane.b32.xlu1 %v2704_v20, %s3254_s28  ;;  %2128 = vrot.lane.b32.xlu0 %v2111_v24, %s3254_s28  ;;  %v2170_v31 = vmul.f32 0.25, %v2162_v25 }
 0x3d9   :  { %v2169_v28 = vadd.f32 %v2168_v29, %v2167_v18  ;;  %v2112_v37 = vmul.f32 0.25, %v2109_v32 }
 0x3db   :  { %v2171_v59 = vmul.f32 0.25, %v2169_v28 }
 0x3dc   :  { %2188 = vrot.lane.b32.xlu0 %v2170_v31, %s3254_s28 }
 0x3dd   :  { %2200 = vrot.lane.b32.xlu1 %v2171_v59, %s3254_s28 }
 0x3e0   :  { %2140 = vrot.lane.b32.xlu0 %v2112_v37, %s3254_s28 }
 0x3e1   :  { %2145 = vrot.lane.b32.xlu1 %v2126_v39, %s3254_s28 }
 0x3e4   :  { %2205 = vrot.lane.b32.xlu0 %v2186_v43, %s3254_s28 }
 0x44a   :  { %v2706_v23 = vpop.permute.xlu1 %2705  ;;  %v2129_v46 = vpop.permute.xlu0 %2128 }
 0x44b   :  { %v2707_v48 = vunpack.i.l.bf16 %v2706_v23  ;;  %v2708_v42 = vunpack.i.h.bf16 %v2706_v23  ;;  %v2131_v21 = vadd.f32 %v2129_v46, %v2111_v24 }
 0x44d   :  { %v2136_v49 = vmax.f32 %v2119_v13, %v2707_v48  ;;  %v2196_v54 = vmax.f32 %v2179_v14, %v2708_v42  ;;  %v2137_v56 = vadd.f32 %v2131_v21, %v2112_v37 }
 0x44e   :  { %v2189_v52 = vpop.permute.xlu0 %2188 }
 0x44f   :  { %v2191_v53 = vadd.f32 %v2189_v52, %v2170_v31  ;;  %v2201_v45 = vpop.permute.xlu1 %2200  ;;  %v2138_v57 = vmax.f32 %v2136_v49, %v2126_v39  ;;  %v2198_v63 = vmax.f32 %v2196_v54, %v2186_v43 }
 0x451   :  { %v2197_v55 = vadd.f32 %v2191_v53, %v2171_v59  ;;  %v2387_v59 = vsub.s32 2, %v3978_v50 }
 0x452   :  { %v2141_v44 = vpop.permute.xlu0 %2140 }
 0x453   :  { %v2203_v40 = vadd.f32 %v2201_v45, %v2197_v55  ;;  %v2146_v58 = vpop.permute.xlu1 %2145  ;;  %v2143_v61 = vadd.f32 %v2141_v44, %v2137_v56 }
 0x454   :  { %v2148_v34 = vmax.f32 %v2138_v57, %v2146_v58 }
 0x455   :  { %v2209_v62 = vmul.f32 0.25, %v2203_v40  ;;  %v2149_v41 = vmul.f32 0.25, %v2143_v61 }
 0x456   :  { %v2211_v60 = vrot.slane %v2148_v34, 7  ;;  %v2206_v4 = vpop.permute.xlu0 %2205 }
 0x457   :  { %v2214_v5 = vrot.slane %v2209_v62, 6  ;;  %v2208_v6 = vmax.f32 %v2198_v63, %v2206_v4 }
 0x458   :  { %v2219_v7 = vsel %vm167_vm0, %v2149_v41, %v2211_v60 }
 0x459   :  { %v2217_v8 = vrot.slane %v2208_v6, 5  ;;  %v2220_v9 = vsel %vm181_vm2, %v2219_v7, %v2214_v5 }
 0x45b   :  { %v2222_v3 = vsel %vm2221_vm9, %v2220_v9, %v2217_v8 }
 0x45c   :  { %v2223_v11 = vpack.c.bf16 %v2222_v3, %v2222_v3 }
 0x45e   :  { %2666 = vmatmul.mubr.msk.bf16.vlgmr.msra.gmra.mrb[12].mxu0 %vm2263_vm10, %v2223_v11 }
 0x45f   :  { %2670 = vmatpush3.bf16.msra.mxu0 %v2322_v2  ;;  %2671 = vmatprep.mubr.msk.bf16.mxu0 %vm3255_vm8, %v3253_v27 }
 0x531   :  { %v2301_v13 = vpop.f32.mrb[12].mxu0 }
 0x532   :  { %v2302_v14 = vadd.f32 %v2639_v12, %v2301_v13  ;;  %v2667_v17 = vpop.f32.mrb[13].mxu0 }
 0x533   :  { %v2304_v0 = vpop.f32.mrb[14].mxu0 }
 0x534   :  { %v2307_v18 = vmax.f32 %v2302_v14, 0.0  ;;  %v2668_v1 = vpop.f32.mrb[15].mxu0 }
 0x536   :  { %v2308_v19 = vpack.c.bf16 %v2307_v18, %v2307_v18 }
 0x538   :  { %2672 = vmatmul.mubr.msk.bf16.vlgmr.msra.gmra.mrb[16].mxu0 %vm2317_vm11, %v2308_v19 }
 0x60b   :  { %v2358_v20 = vpop.f32.mrb[16].mxu0 }
 0x60c   :  { %v2359_v24 = vadd.f32 %v2645_v22, %v2358_v20  ;;  %v2673_v25 = vpop.f32.mrb[17].mxu0 }
 0x60d   :  { %v2361_v29 = vpop.f32.mrb[18].mxu0 }
 0x60e   :  { %v2365_v26 = vrot.slane %v2359_v24, 1  ;;  %v2674_v28 = vpop.f32.mrb[19].mxu0 }
 0x610   :  { %v2367_v30 = vadd.f32 %v2365_v26, %v2359_v24 }
 0x612   :  { %v2647_v31 = vmul.f32 -1.442695, %v2367_v30 }
 0x614   :  { %3053 = vpow2.f32 %v2647_v31 }
 0x61e   :  { %v3054_v27 = vpop.eup %3053 }
 0x61f   :  { %v2371_v32 = vadd.f32 1.0, %v3054_v27 }
 0x621   :  { %3055 = vrcp.f32 %v2371_v32 }
 0x62b   :  { %v3056_v33 = vpop.eup %3055 }
 0x62c   :  { %2375 = vrot.lane.b32.xlu1 %v3056_v33, %s3254_s28 }
 0x69e   :  { %v2376_v36 = vpop.permute.xlu1 %2375 }
 0x69f   :  { %v2378_v15 = vsel %vm2263_vm10, %v3056_v33, %v2376_v36 }
 0x6a0   :  { %v2382_v37 = vrot.slane %v2378_v15, %v3981_v51  ;;  %v2388_v38 = vrot.slane %v2378_v15, %v2387_v59 }
 0x6a2   :  { %v2383_v39 = vmul.f32 %v2382_v37, %v4134_v47  ;;  %v2384_v16 = vmul.f32 %v2382_v37, %v4136_v35  ;;  %v2389_v43 = vmul.f32 %v2388_v38, %v4134_v47  ;;  %v2390_v23 = vmul.f32 %v2388_v38, %v4136_v35 }
 0x6a4   :  { %v2391_v46 = vsel %vm2095_vm6, %v2383_v39, %v2389_v43  ;;  %v2392_v48 = vsel %vm2095_vm6, %v2384_v16, %v2390_v23 }
 0x6a5   :  { %v2649_v42 = vpack.c.bf16 %v2392_v48, %v2391_v46 }
 0x6a7   :  { %2401 = vst [vmem:[%s4218_s10] sm:$0xff] %v2649_v42 }
 0x6a8   :  { %2406 = vsyncpa [#allocation3], 1 }
 0x6a9   :  { %2407 = vsyncpa [#allocation5], 1 }
 0x6aa   :  { %2408 = vsyncpa [#allocation8], 1 }
 0x6ab   :  { %2409 = vsyncpa [#allocation11], 1 }
 0x6ac   :  { %2410 = vsyncpa [#allocation14], 1 }

// kernel: forward.6
= control target key start
LH: loop header
LB: loop body
LE: loop exit
PB: predicated region body
PF: predicated region fallthrough
CT: control target
= control target key end

     0   :  { %vm59_vm0 = vcmask 1040384   ;;  %vm60_vm1 = vsmask.f32 256  ;;  %vm2823_vm3 = vmmov 0   ;;  %vm1886_vm4 = vcmask 1041408   ;;  %s3775_s2 = inlined_call_operand.vmem [shape: bf16[256,256], index: 2, kind: input, shape index: {}]   ;;  %s3776_s0 = inlined_call_operand.vmem [shape: bf16[8,256], index: 0, kind: input, shape index: {}]   ;;  %s3777_s1 = inlined_call_operand.vmem [shape: bf16[256,256], index: 1, kind: input, shape index: {}]   ;;  %s3778_s3 = inlined_call_operand.vmem [shape: bf16[256,256], index: 3, kind: input, shape index: {}]   ;;  %s3779_s6 = inlined_call_operand.vmem [shape: bf16[256,256], index: 6, kind: input, shape index: {}]   ;;  %s3780_s5 = inlined_call_operand.vmem [shape: bf16[256,256], index: 5, kind: input, shape index: {}]   ;;  %s3781_s7 = inlined_call_operand.vmem [shape: bf16[256,256], index: 7, kind: input, shape index: {}]   ;;  %s3782_s4 = inlined_call_operand.vmem [shape: f32[1,256], index: 4, kind: input, shape index: {}]   ;;  %s3783_s9 = inlined_call_operand.vmem [shape: bf16[256,256], index: 9, kind: input, shape index: {}]   ;;  %s3784_s11 = inlined_call_operand.vmem [shape: bf16[128,8], index: 11, kind: input, shape index: {}]   ;;  %s3785_s8 = inlined_call_operand.vmem [shape: f32[1,256], index: 8, kind: input, shape index: {}]   ;;  %s3786_s10 = inlined_call_operand.vmem [shape: f32[1,256], index: 10, kind: input, shape index: {}]   ;;  %s3787_s13 = inlined_call_operand.vmem [shape: bf16[8,128], index: 13, kind: input, shape index: {}]   ;;  %s3788_s12 = inlined_call_operand.vmem [shape: f32[1,8], index: 12, kind: input, shape index: {}]   ;;  %s3789_s14 = inlined_call_operand.vmem [shape: f32[1,128], index: 14, kind: input, shape index: {}]   ;;  %s3790_s15 = inlined_call_operand.vmem [shape: bf16[4,256], index: 15, kind: output, shape index: {}]  }
   0x1   :  { %v2472_v0 = vld [vmem:[%s3775_s2 + $0x4] ss:$8 sps:$4 sm:$0xff]   ;;  %v2474_v1 = vld [vmem:[%s3775_s2] ss:$8 sps:$4 sm:$0xff]   ;;  %v2475_v2 = vld [vmem:[%s3775_s2 + $0x14] ss:$8 sps:$4 sm:$0xff]  }
   0x2   :  { %337 = vmatprep.subr.bf16.mxu0 %v2472_v0  ;;  %v2477_v3 = vld [vmem:[%s3775_s2 + $0x10] ss:$8 sps:$4 sm:$0xff]   ;;  %v2478_v4 = vld [vmem:[%s3775_s2 + $0x24] ss:$8 sps:$4 sm:$0xff]   ;;  %v2480_v5 = vld [vmem:[%s3775_s2 + $0x20] ss:$8 sps:$4 sm:$0xff]  }
   0x3   :  { %338 = vmatpush1.bf16.msra.mxu0 %v2474_v1  ;;  %v2481_v6 = vld [vmem:[%s3775_s2 + $0x34] ss:$8 sps:$4 sm:$0xff]   ;;  %v2483_v7 = vld [vmem:[%s3775_s2 + $0x30] ss:$8 sps:$4 sm:$0xff]   ;;  %v2484_v8 = vld [vmem:[%s3775_s2 + $0x44] ss:$8 sps:$4 sm:$0xff]  }
   0x4   :  { %339 = vmatprep.subr.bf16.mxu0 %v2475_v2  ;;  %v2486_v9 = vld [vmem:[%s3775_s2 + $0x40] ss:$8 sps:$4 sm:$0xff]   ;;  %v2487_v10 = vld [vmem:[%s3775_s2 + $0x54] ss:$8 sps:$4 sm:$0xff]   ;;  %v2489_v11 = vld [vmem:[%s3775_s2 + $0x50] ss:$8 sps:$4 sm:$0xff]  }
   0x5   :  { %v2490_v12 = vld [vmem:[%s3775_s2 + $0x64] ss:$8 sps:$4 sm:$0xff]   ;;  %v2492_v15 = vld [vmem:[%s3775_s2 + $0x60] ss:$8 sps:$4 sm:$0xff]   ;;  %v2493_v16 = vld [vmem:[%s3775_s2 + $0x74] ss:$8 sps:$4 sm:$0xff]  }
   0x6   :  { %v51_v13 = vld [vmem:[%s3776_s0] sm:$0xff]  ;;  %vm2959_vm2 = vmand %vm59_vm0, %vm60_vm1  ;;  %v2495_v24 = vld [vmem:[%s3775_s2 + $0x70] ss:$8 sps:$4 sm:$0xff]   ;;  %vm1943_vm5 = vcmask 1043458   ;;  %vm1963_vm6 = vcmask 1042432   ;;  %vm2091_vm7 = vcmask 1043456  }
   0x7   :  { %340 = vmatpush1.bf16.msra.mxu0 %v2477_v3  ;;  %v2946_v14 = vcombine.high %v51_v13, %v51_v13  ;;  %v2956_v19 = vcombine.low %v51_v13, %v51_v13  ;;  %v2496_v25 = vld [vmem:[%s3775_s2 + $0x84] ss:$8 sps:$4 sm:$0xff]   ;;  %v2498_v31 = vld [vmem:[%s3775_s2 + $0x80] ss:$8 sps:$4 sm:$0xff]   ;;  %v2499_v34 = vld [vmem:[%s3775_s2 + $0x94] ss:$8 sps:$4 sm:$0xff]  }
   0x8   :  { %341 = vmatprep.subr.bf16.mxu0 %v2478_v4  ;;  %v2501_v36 = vld [vmem:[%s3775_s2 + $0x90] ss:$8 sps:$4 sm:$0xff]   ;;  %v2502_v37 = vld [vmem:[%s3775_s2 + $0xa4] ss:$8 sps:$4 sm:$0xff]   ;;  %v2504_v38 = vld [vmem:[%s3775_s2 + $0xa0] ss:$8 sps:$4 sm:$0xff]  }
   0x9   :  { %v65_v17 = vrot.slane %v2946_v14, 2  ;;  %v120_v18 = vshll.u32 %v2946_v14, 16  ;;  %v64_v23 = vrot.slane %v2956_v19, 2  ;;  %v62_v30 = vsel %vm2959_vm2, 0, %v2956_v19  ;;  %v2505_v39 = vld [vmem:[%s3775_s2 + $0xb4] ss:$8 sps:$4 sm:$0xff]  }
   0xa   :  { %v2507_v40 = vld [vmem:[%s3775_s2 + $0xb0] ss:$8 sps:$4 sm:$0xff]   ;;  %v2508_v41 = vld [vmem:[%s3775_s2 + $0xc4] ss:$8 sps:$4 sm:$0xff]   ;;  %v2510_v42 = vld [vmem:[%s3775_s2 + $0xc0] ss:$8 sps:$4 sm:$0xff]  }
   0xb   :  { %342 = vmatpush1.bf16.msra.mxu0 %v2480_v5  ;;  %v122_v21 = vrot.slane %v120_v18, 1  ;;  %v128_v22 = vrot.slane %v120_v18, 3  ;;  %v68_v28 = vsel %vm2959_vm2, 0, %v64_v23  ;;  %v2511_v43 = vld [vmem:[%s3775_s2 + $0xd4] ss:$8 sps:$4 sm:$0xff]   ;;  %v116_v44 = vshll.u32 %v2956_v19, 16 }
   0xc   :  { %343 = vmatprep.subr.bf16.mxu0 %v2481_v6  ;;  %v72_v33 = vrot.slane %v68_v28, 7  ;;  %v2513_v45 = vld [vmem:[%s3775_s2 + $0xd0] ss:$8 sps:$4 sm:$0xff]   ;;  %v2514_v46 = vld [vmem:[%s3775_s2 + $0xe4] ss:$8 sps:$4 sm:$0xff]   ;;  %v69_v52 = vsel %vm2959_vm2, 0, %v65_v17 }
   0xd   :  { %v126_v26 = vsel %vm2959_vm2, %v2946_v14, %v122_v21  ;;  %v132_v27 = vsel %vm2959_vm2, %v65_v17, %v128_v22  ;;  %v127_v47 = vrot.slane %v116_v44, 3  ;;  %v2516_v48 = vld [vmem:[%s3775_s2 + $0xe0] ss:$8 sps:$4 sm:$0xff]   ;;  %v2517_v49 = vld [vmem:[%s3775_s2 + $0xf4] ss:$8 sps:$4 sm:$0xff]   ;;  %v118_v50 = vrot.slane %v116_v44, 1 }
   0xe   :  { %v136_v29 = vrot.slane %v132_v27, 7  ;;  %v2991_v35 = vsel %vm59_vm0, %v62_v30, %v72_v33  ;;  %v2519_v53 = vld [vmem:[%s3775_s2 + $0xf0] ss:$8 sps:$4 sm:$0xff]   ;;  %v2524_v56 = vld [vmem:[%s3777_s1 + $0x4] ss:$8 sps:$4 sm:$0xff]   ;;  %v73_v57 = vrot.slane %v69_v52, 7 }
   0xf   :  { %344 = vmatpush1.bf16.msra.mxu0 %v2483_v7  ;;  %v131_v51 = vsel %vm2959_vm2, %v64_v23, %v127_v47  ;;  %v125_v55 = vsel %vm2959_vm2, %v2956_v19, %v118_v50  ;;  %v63_v58 = vsel %vm2959_vm2, 0, %v2946_v14  ;;  %v2522_v60 = vld [vmem:[%s3777_s1] ss:$8 sps:$4 sm:$0xff]   ;;  %v2527_v61 = vld [vmem:[%s3777_s1 + $0x14] ss:$8 sps:$4 sm:$0xff]   ;;  %v596_v30 = vrot.slane %v2946_v14, 3 }
  0x10   :  { %345 = vmatprep.subr.bf16.mxu0 %v2484_v8  ;;  %v2984_v32 = vsel %vm59_vm0, %v126_v26, %v136_v29  ;;  %v135_v54 = vrot.slane %v131_v51, 7  ;;  %v81_v62 = vsel %vm59_vm0, %v63_v58, %v73_v57  ;;  %v2525_v63 = vld [vmem:[%s3777_s1 + $0x10] ss:$8 sps:$4 sm:$0xff]   ;;  %v2530_v0 = vld [vmem:[%s3777_s1 + $0x24] ss:$8 sps:$4 sm:$0xff]   ;;  %v581_v26 = vshrl.u32 %v2946_v14, 16 }
  0x11   :  { %369 = vmatprep.mubr.bf16.mxu0 %v2984_v32  ;;  %v2528_v1 = vld [vmem:[%s3777_s1 + $0x20] ss:$8 sps:$4 sm:$0xff]   ;;  %v2533_v2 = vld [vmem:[%s3777_s1 + $0x34] ss:$8 sps:$4 sm:$0xff]   ;;  %v2531_v3 = vld [vmem:[%s3777_s1 + $0x30] ss:$8 sps:$4 sm:$0xff]  }
  0x12   :  { %v3047_v59 = vsel %vm59_vm0, %v125_v55, %v135_v54  ;;  %v2536_v4 = vld [vmem:[%s3777_s1 + $0x44] ss:$8 sps:$4 sm:$0xff]   ;;  %v2534_v5 = vld [vmem:[%s3777_s1 + $0x40] ss:$8 sps:$4 sm:$0xff]   ;;  %v2539_v6 = vld [vmem:[%s3777_s1 + $0x54] ss:$8 sps:$4 sm:$0xff]  }
  0x13   :  { %346 = vmatpush1.bf16.msra.mxu0 %v2486_v9  ;;  %v2537_v7 = vld [vmem:[%s3777_s1 + $0x50] ss:$8 sps:$4 sm:$0xff]   ;;  %v2542_v8 = vld [vmem:[%s3777_s1 + $0x64] ss:$8 sps:$4 sm:$0xff]   ;;  %v2540_v9 = vld [vmem:[%s3777_s1 + $0x60] ss:$8 sps:$4 sm:$0xff]  }
  0x14   :  { %347 = vmatprep.subr.bf16.mxu0 %v2487_v10  ;;  %v2545_v10 = vld [vmem:[%s3777_s1 + $0x74] ss:$8 sps:$4 sm:$0xff]   ;;  %v2546_v13 = vld [vmem:[%s3777_s1 + $0x80] ss:$8 sps:$4 sm:$0xff]   ;;  %v2554_v17 = vld [vmem:[%s3777_s1 + $0xa4] ss:$8 sps:$4 sm:$0xff]  }
  0x15   :  { %v2552_v18 = vld [vmem:[%s3777_s1 + $0xa0] ss:$8 sps:$4 sm:$0xff]   ;;  %v2557_v21 = vld [vmem:[%s3777_s1 + $0xb4] ss:$8 sps:$4 sm:$0xff]   ;;  %v2555_v22 = vld [vmem:[%s3777_s1 + $0xb0] ss:$8 sps:$4 sm:$0xff]  }
  0x16   :  { %v2560_v23 = vld [vmem:[%s3777_s1 + $0xc4] ss:$8 sps:$4 sm:$0xff]   ;;  %v2561_v27 = vld [vmem:[%s3777_s1 + $0xd0] ss:$8 sps:$4 sm:$0xff]   ;;  %v592_v29 = vrot.slane %v581_v26, 2  ;;  %vm2087_vm8 = vcmask 64512  }
  0x17   :  { %348 = vmatpush1.bf16.msra.mxu0 %v2489_v11  ;;  %v2543_v11 = vld [vmem:[%s3777_s1 + $0x70] ss:$8 sps:$4 sm:$0xff]   ;;  %v2566_v28 = vld [vmem:[%s3777_s1 + $0xe4] ss:$8 sps:$4 sm:$0xff]   ;;  %v2569_v33 = vld [vmem:[%s3777_s1 + $0xf4] ss:$8 sps:$4 sm:$0xff]  }
  0x18   :  { %349 = vmatprep.subr.bf16.mxu0 %v2490_v12  ;;  %v2548_v12 = vld [vmem:[%s3777_s1 + $0x84] ss:$8 sps:$4 sm:$0xff]   ;;  %v2585_v50 = vld [vmem:[%s3778_s3 + $0x50] ss:$8 sps:$4 sm:$0xff]   ;;  %v2588_v52 = vld [vmem:[%s3778_s3 + $0x60] ss:$8 sps:$4 sm:$0xff]  }
  0x19   :  { %v2578_v44 = vld [vmem:[%s3778_s3 + $0x24] ss:$8 sps:$4 sm:$0xff]   ;;  %v2591_v54 = vld [vmem:[%s3778_s3 + $0x70] ss:$8 sps:$4 sm:$0xff]   ;;  %v2599_v57 = vld [vmem:[%s3778_s3 + $0x94] ss:$8 sps:$4 sm:$0xff]  }
  0x1a   :  { %v2584_v47 = vld [vmem:[%s3778_s3 + $0x44] ss:$8 sps:$4 sm:$0xff]   ;;  %v2597_v58 = vld [vmem:[%s3778_s3 + $0x90] ss:$8 sps:$4 sm:$0xff]  }
  0x1b   :  { %350 = vmatpush1.bf16.msra.mxu0 %v2492_v15  ;;  %v2551_v15 = vld [vmem:[%s3777_s1 + $0x94] ss:$8 sps:$4 sm:$0xff]   ;;  %v2590_v51 = vld [vmem:[%s3778_s3 + $0x64] ss:$8 sps:$4 sm:$0xff]  }
  0x1c   :  { %351 = vmatprep.subr.bf16.mxu0 %v2493_v16  ;;  %v2549_v16 = vld [vmem:[%s3777_s1 + $0x90] ss:$8 sps:$4 sm:$0xff]   ;;  %v2596_v55 = vld [vmem:[%s3778_s3 + $0x84] ss:$8 sps:$4 sm:$0xff]  }
  0x1d   :  { %v2770_v20 = vld [vmem:[%s3783_s9 + $0x24] ss:$8 sps:$4 sm:$0xff]  }
  0x1f   :  { %352 = vmatpush1.bf16.msra.mxu0 %v2495_v24  ;;  %v2558_v24 = vld [vmem:[%s3777_s1 + $0xc0] ss:$8 sps:$4 sm:$0xff]  }
  0x20   :  { %353 = vmatprep.subr.bf16.mxu0 %v2496_v25  ;;  %v2563_v25 = vld [vmem:[%s3777_s1 + $0xd4] ss:$8 sps:$4 sm:$0xff]  }
  0x23   :  { %354 = vmatpush1.bf16.msra.mxu0 %v2498_v31  ;;  %v2564_v31 = vld [vmem:[%s3777_s1 + $0xe0] ss:$8 sps:$4 sm:$0xff]  }
  0x24   :  { %355 = vmatprep.subr.bf16.mxu0 %v2499_v34  ;;  %v586_v34 = vrot.slane %v2946_v14, 1  ;;  %v2570_v14 = vld [vmem:[%s3778_s3] ss:$8 sps:$4 sm:$0xff]  }
  0x27   :  { %356 = vmatpush1.bf16.msra.mxu0 %v2501_v36  ;;  %v600_v36 = vsel %vm2959_vm2, %v592_v29, %v596_v30  ;;  %v2635_v29 = vld [vmem:[%s3779_s6 + $0x50] ss:$8 sps:$4 sm:$0xff]   ;;  %v2636_v30 = vld [vmem:[%s3779_s6 + $0x64] ss:$8 sps:$4 sm:$0xff]  }
  0x28   :  { %357 = vmatprep.subr.bf16.mxu0 %v2502_v37  ;;  %v2567_v37 = vld [vmem:[%s3777_s1 + $0xf0] ss:$8 sps:$4 sm:$0xff]  }
  0x2b   :  { %358 = vmatpush1.bf16.msra.mxu0 %v2504_v38  ;;  %v2572_v38 = vld [vmem:[%s3778_s3 + $0x4] ss:$8 sps:$4 sm:$0xff]  }
  0x2c   :  { %359 = vmatprep.subr.bf16.mxu0 %v2505_v39  ;;  %v604_v39 = vrot.slane %v600_v36, 7  ;;  %v2642_v36 = vld [vmem:[%s3779_s6 + $0x84] ss:$8 sps:$4 sm:$0xff]  }
  0x2f   :  { %360 = vmatpush1.bf16.msra.mxu0 %v2507_v40  ;;  %v590_v40 = vsel %vm2959_vm2, %v581_v26, %v586_v34  ;;  %v2630_v26 = vld [vmem:[%s3779_s6 + $0x44] ss:$8 sps:$4 sm:$0xff]   ;;  %v2641_v34 = vld [vmem:[%s3779_s6 + $0x70] ss:$8 sps:$4 sm:$0xff]  }
  0x30   :  { %361 = vmatprep.subr.bf16.mxu0 %v2508_v41  ;;  %v2575_v41 = vld [vmem:[%s3778_s3 + $0x14] ss:$8 sps:$4 sm:$0xff]  }
  0x33   :  { %362 = vmatpush1.bf16.msra.mxu0 %v2510_v42  ;;  %v611_v42 = vsel %vm59_vm0, %v590_v40, %v604_v39  ;;  %v2647_v39 = vld [vmem:[%s3779_s6 + $0x90] ss:$8 sps:$4 sm:$0xff]   ;;  %v2648_v40 = vld [vmem:[%s3779_s6 + $0xa4] ss:$8 sps:$4 sm:$0xff]  }
  0x34   :  { %363 = vmatprep.subr.bf16.mxu0 %v2511_v43  ;;  %v2573_v43 = vld [vmem:[%s3778_s3 + $0x10] ss:$8 sps:$4 sm:$0xff]  }
  0x37   :  { %364 = vmatpush1.bf16.msra.mxu0 %v2513_v45  ;;  %v2576_v45 = vld [vmem:[%s3778_s3 + $0x20] ss:$8 sps:$4 sm:$0xff]  }
  0x38   :  { %365 = vmatprep.subr.bf16.mxu0 %v2514_v46  ;;  %v2579_v46 = vld [vmem:[%s3778_s3 + $0x30] ss:$8 sps:$4 sm:$0xff]  }
  0x3b   :  { %366 = vmatpush1.bf16.msra.mxu0 %v2516_v48  ;;  %v2582_v48 = vld [vmem:[%s3778_s3 + $0x40] ss:$8 sps:$4 sm:$0xff]  }
  0x3c   :  { %367 = vmatprep.subr.bf16.mxu0 %v2517_v49  ;;  %v2587_v49 = vld [vmem:[%s3778_s3 + $0x54] ss:$8 sps:$4 sm:$0xff]  }
  0x3f   :  { %368 = vmatpush1.bf16.msra.mxu0 %v2519_v53  ;;  %v2593_v53 = vld [vmem:[%s3778_s3 + $0x74] ss:$8 sps:$4 sm:$0xff]  }
  0x40   :  { %538 = vmatprep.subr.bf16.mxu0 %v2524_v56  ;;  %v2594_v56 = vld [vmem:[%s3778_s3 + $0x80] ss:$8 sps:$4 sm:$0xff]  }
  0x42   :  { %370 = vmatmul.mubr.bf16.vlgmr.msra.gmra.mrb[0].mxu0 %v3047_v59 }
  0x43   :  { %539 = vmatpush1.bf16.msra.mxu0 %v2522_v60  ;;  %570 = vmatprep.mubr.bf16.mxu0 %v81_v62  ;;  %v2602_v60 = vld [vmem:[%s3778_s3 + $0xa4] ss:$8 sps:$4 sm:$0xff]   ;;  %v2605_v62 = vld [vmem:[%s3778_s3 + $0xb4] ss:$8 sps:$4 sm:$0xff]  }
  0x44   :  { %540 = vmatprep.subr.bf16.mxu0 %v2527_v61  ;;  %v2600_v61 = vld [vmem:[%s3778_s3 + $0xa0] ss:$8 sps:$4 sm:$0xff]  }
  0x47   :  { %541 = vmatpush1.bf16.msra.mxu0 %v2525_v63  ;;  %v2603_v63 = vld [vmem:[%s3778_s3 + $0xb0] ss:$8 sps:$4 sm:$0xff]  }
  0x48   :  { %542 = vmatprep.subr.bf16.mxu0 %v2530_v0  ;;  %v2608_v0 = vld [vmem:[%s3778_s3 + $0xc4] ss:$8 sps:$4 sm:$0xff]  }
  0x4b   :  { %543 = vmatpush1.bf16.msra.mxu0 %v2528_v1  ;;  %v2606_v1 = vld [vmem:[%s3778_s3 + $0xc0] ss:$8 sps:$4 sm:$0xff]  }
  0x4c   :  { %544 = vmatprep.subr.bf16.mxu0 %v2533_v2  ;;  %v2611_v2 = vld [vmem:[%s3778_s3 + $0xd4] ss:$8 sps:$4 sm:$0xff]  }
  0x4f   :  { %545 = vmatpush1.bf16.msra.mxu0 %v2531_v3  ;;  %v579_v3 = vshrl.u32 %v2956_v19, 16 }
  0x50   :  { %546 = vmatprep.subr.bf16.mxu0 %v2536_v4  ;;  %v2609_v4 = vld [vmem:[%s3778_s3 + $0xd0] ss:$8 sps:$4 sm:$0xff]  }
  0x53   :  { %547 = vmatpush1.bf16.msra.mxu0 %v2534_v5  ;;  %v2614_v5 = vld [vmem:[%s3778_s3 + $0xe4] ss:$8 sps:$4 sm:$0xff]  }
  0x54   :  { %548 = vmatprep.subr.bf16.mxu0 %v2539_v6  ;;  %v591_v6 = vrot.slane %v579_v3, 2 }
  0x57   :  { %549 = vmatpush1.bf16.msra.mxu0 %v2537_v7  ;;  %v595_v7 = vrot.slane %v2956_v19, 3 }
  0x58   :  { %550 = vmatprep.subr.bf16.mxu0 %v2542_v8  ;;  %v2612_v8 = vld [vmem:[%s3778_s3 + $0xe0] ss:$8 sps:$4 sm:$0xff]  }
  0x5b   :  { %551 = vmatpush1.bf16.msra.mxu0 %v2540_v9  ;;  %v2617_v9 = vld [vmem:[%s3778_s3 + $0xf4] ss:$8 sps:$4 sm:$0xff]  }
  0x5c   :  { %552 = vmatprep.subr.bf16.mxu0 %v2545_v10  ;;  %v585_v10 = vrot.slane %v2956_v19, 1  ;;  %v2618_v19 = vld [vmem:[%s3779_s6 + $0x4] ss:$8 sps:$4 sm:$0xff]  }
  0x5d   :  { %1120 = vmatprep.subr.bf16.mxu1 %v2618_v19  ;;  %v2666_v19 = vld [vmem:[%s3780_s5] ss:$8 sps:$4 sm:$0xff]  }
  0x5f   :  { %553 = vmatpush1.bf16.msra.mxu0 %v2543_v11  ;;  %v599_v11 = vsel %vm2959_vm2, %v591_v6, %v595_v7 }
  0x60   :  { %554 = vmatprep.subr.bf16.mxu0 %v2548_v12  ;;  %v2615_v12 = vld [vmem:[%s3778_s3 + $0xf0] ss:$8 sps:$4 sm:$0xff]  }
  0x63   :  { %555 = vmatpush1.bf16.msra.mxu0 %v2546_v13  ;;  %v603_v13 = vrot.slane %v599_v11, 7 }
  0x64   :  { %556 = vmatprep.subr.bf16.mxu0 %v2551_v15  ;;  %v589_v15 = vsel %vm2959_vm2, %v579_v3, %v585_v10 }
  0x67   :  { %557 = vmatpush1.bf16.msra.mxu0 %v2549_v16  ;;  %v607_v16 = vsel %vm59_vm0, %v589_v15, %v603_v13 }
  0x68   :  { %558 = vmatprep.subr.bf16.mxu0 %v2554_v17  ;;  %v2620_v17 = vld [vmem:[%s3779_s6] ss:$8 sps:$4 sm:$0xff]  }
  0x69   :  { %1121 = vmatpush1.bf16.msra.mxu1 %v2620_v17 }
  0x6b   :  { %559 = vmatpush1.bf16.msra.mxu0 %v2552_v18  ;;  %v2621_v18 = vld [vmem:[%s3779_s6 + $0x14] ss:$8 sps:$4 sm:$0xff]  }
  0x6c   :  { %560 = vmatprep.subr.bf16.mxu0 %v2557_v21  ;;  %v2623_v21 = vld [vmem:[%s3779_s6 + $0x10] ss:$8 sps:$4 sm:$0xff]   ;;  %1122 = vmatprep.subr.bf16.mxu1 %v2621_v18  ;;  %v2671_v18 = vld [vmem:[%s3780_s5 + $0x14] ss:$8 sps:$4 sm:$0xff]  }
  0x6d   :  { %1123 = vmatpush1.bf16.msra.mxu1 %v2623_v21 }
  0x6f   :  { %561 = vmatpush1.bf16.msra.mxu0 %v2555_v22  ;;  %v2624_v22 = vld [vmem:[%s3779_s6 + $0x24] ss:$8 sps:$4 sm:$0xff]  }
  0x70   :  { %562 = vmatprep.subr.bf16.mxu0 %v2560_v23  ;;  %v2626_v23 = vld [vmem:[%s3779_s6 + $0x20] ss:$8 sps:$4 sm:$0xff]   ;;  %1124 = vmatprep.subr.bf16.mxu1 %v2624_v22  ;;  %v2669_v22 = vld [vmem:[%s3780_s5 + $0x10] ss:$8 sps:$4 sm:$0xff]  }
  0x71   :  { %1125 = vmatpush1.bf16.msra.mxu1 %v2626_v23 }
  0x73   :  { %563 = vmatpush1.bf16.msra.mxu0 %v2558_v24  ;;  %v2627_v24 = vld [vmem:[%s3779_s6 + $0x34] ss:$8 sps:$4 sm:$0xff]  }
  0x74   :  { %564 = vmatprep.subr.bf16.mxu0 %v2563_v25  ;;  %v2629_v25 = vld [vmem:[%s3779_s6 + $0x30] ss:$8 sps:$4 sm:$0xff]   ;;  %1126 = vmatprep.subr.bf16.mxu1 %v2627_v24  ;;  %v2674_v24 = vld [vmem:[%s3780_s5 + $0x24] ss:$8 sps:$4 sm:$0xff]  }
  0x75   :  { %1127 = vmatpush1.bf16.msra.mxu1 %v2629_v25 }
  0x76   :  { %1128 = vmatprep.subr.bf16.mxu1 %v2630_v26 }
  0x77   :  { %565 = vmatpush1.bf16.msra.mxu0 %v2561_v27  ;;  %v2632_v27 = vld [vmem:[%s3779_s6 + $0x40] ss:$8 sps:$4 sm:$0xff]  }
  0x78   :  { %566 = vmatprep.subr.bf16.mxu0 %v2566_v28  ;;  %v2633_v28 = vld [vmem:[%s3779_s6 + $0x54] ss:$8 sps:$4 sm:$0xff]  }
  0x79   :  { %1129 = vmatpush1.bf16.msra.mxu1 %v2632_v27  ;;  %v2672_v27 = vld [vmem:[%s3780_s5 + $0x20] ss:$8 sps:$4 sm:$0xff]  }
  0x7a   :  { %1130 = vmatprep.subr.bf16.mxu1 %v2633_v28 }
  0x7b   :  { %567 = vmatpush1.bf16.msra.mxu0 %v2564_v31  ;;  %v2638_v31 = vld [vmem:[%s3779_s6 + $0x60] ss:$8 sps:$4 sm:$0xff]  }
  0x7c   :  { %568 = vmatprep.subr.bf16.mxu0 %v2569_v33  ;;  %v2639_v33 = vld [vmem:[%s3779_s6 + $0x74] ss:$8 sps:$4 sm:$0xff]  }
  0x7d   :  { %1131 = vmatpush1.bf16.msra.mxu1 %v2635_v29  ;;  %v2677_v29 = vld [vmem:[%s3780_s5 + $0x34] ss:$8 sps:$4 sm:$0xff]  }
  0x7e   :  { %1132 = vmatprep.subr.bf16.mxu1 %v2636_v30 }
  0x7f   :  { %569 = vmatpush1.bf16.msra.mxu0 %v2567_v37  ;;  %v2644_v37 = vld [vmem:[%s3779_s6 + $0x80] ss:$8 sps:$4 sm:$0xff]  }
  0x80   :  { %805 = vmatprep.subr.bf16.mxu0 %v2572_v38  ;;  %v2645_v38 = vld [vmem:[%s3779_s6 + $0x94] ss:$8 sps:$4 sm:$0xff]  }
  0x81   :  { %1133 = vmatpush1.bf16.msra.mxu1 %v2638_v31  ;;  %v2675_v31 = vld [vmem:[%s3780_s5 + $0x30] ss:$8 sps:$4 sm:$0xff]  }
  0x82   :  { %571 = vmatmul.mubr.bf16.vlgmr.msra.gmra.mrb[4].mxu0 %v2991_v35  ;;  %v2581_v35 = vld [vmem:[%s3778_s3 + $0x34] ss:$8 sps:$4 sm:$0xff]   ;;  %1134 = vmatprep.subr.bf16.mxu1 %v2639_v33  ;;  %v2680_v33 = vld [vmem:[%s3780_s5 + $0x44] ss:$8 sps:$4 sm:$0xff]  }
  0x83   :  { %806 = vmatpush1.bf16.msra.mxu0 %v2570_v14  ;;  %837 = vmatprep.mubr.bf16.mxu0 %v611_v42  ;;  %v2650_v14 = vld [vmem:[%s3779_s6 + $0xa0] ss:$8 sps:$4 sm:$0xff]   ;;  %v2653_v42 = vld [vmem:[%s3779_s6 + $0xb0] ss:$8 sps:$4 sm:$0xff]  }
  0x84   :  { %807 = vmatprep.subr.bf16.mxu0 %v2575_v41  ;;  %v2651_v41 = vld [vmem:[%s3779_s6 + $0xb4] ss:$8 sps:$4 sm:$0xff]  }
  0x85   :  { %1135 = vmatpush1.bf16.msra.mxu1 %v2641_v34  ;;  %v2678_v34 = vld [vmem:[%s3780_s5 + $0x40] ss:$8 sps:$4 sm:$0xff]  }
  0x86   :  { %1136 = vmatprep.subr.bf16.mxu1 %v2642_v36  ;;  %v2683_v36 = vld [vmem:[%s3780_s5 + $0x54] ss:$8 sps:$4 sm:$0xff]  }
  0x87   :  { %808 = vmatpush1.bf16.msra.mxu0 %v2573_v43  ;;  %v2654_v43 = vld [vmem:[%s3779_s6 + $0xc4] ss:$8 sps:$4 sm:$0xff]  }
  0x88   :  { %809 = vmatprep.subr.bf16.mxu0 %v2578_v44  ;;  %v2656_v44 = vld [vmem:[%s3779_s6 + $0xc0] ss:$8 sps:$4 sm:$0xff]  }
  0x89   :  { %1137 = vmatpush1.bf16.msra.mxu1 %v2644_v37  ;;  %v2681_v37 = vld [vmem:[%s3780_s5 + $0x50] ss:$8 sps:$4 sm:$0xff]  }
  0x8a   :  { %1138 = vmatprep.subr.bf16.mxu1 %v2645_v38  ;;  %v2686_v38 = vld [vmem:[%s3780_s5 + $0x64] ss:$8 sps:$4 sm:$0xff]  }
  0x8b   :  { %810 = vmatpush1.bf16.msra.mxu0 %v2576_v45  ;;  %v2657_v45 = vld [vmem:[%s3779_s6 + $0xd4] ss:$8 sps:$4 sm:$0xff]  }
  0x8c   :  { %811 = vmatprep.subr.bf16.mxu0 %v2581_v35  ;;  %v2659_v35 = vld [vmem:[%s3779_s6 + $0xd0] ss:$8 sps:$4 sm:$0xff]  }
  0x8d   :  { %1139 = vmatpush1.bf16.msra.mxu1 %v2647_v39  ;;  %v2684_v39 = vld [vmem:[%s3780_s5 + $0x60] ss:$8 sps:$4 sm:$0xff]  }
  0x8e   :  { %1140 = vmatprep.subr.bf16.mxu1 %v2648_v40  ;;  %v2689_v40 = vld [vmem:[%s3780_s5 + $0x74] ss:$8 sps:$4 sm:$0xff]  }
  0x8f   :  { %812 = vmatpush1.bf16.msra.mxu0 %v2579_v46 }
  0x90   :  { %813 = vmatprep.subr.bf16.mxu0 %v2584_v47  ;;  %v2660_v47 = vld [vmem:[%s3779_s6 + $0xe4] ss:$8 sps:$4 sm:$0xff]  }
  0x91   :  { %1141 = vmatpush1.bf16.msra.mxu1 %v2650_v14  ;;  %v2687_v14 = vld [vmem:[%s3780_s5 + $0x70] ss:$8 sps:$4 sm:$0xff]  }
  0x92   :  { %1142 = vmatprep.subr.bf16.mxu1 %v2651_v41  ;;  %v2692_v41 = vld [vmem:[%s3780_s5 + $0x84] ss:$8 sps:$4 sm:$0xff]  }
  0x93   :  { %814 = vmatpush1.bf16.msra.mxu0 %v2582_v48 }
  0x94   :  { %815 = vmatprep.subr.bf16.mxu0 %v2587_v49  ;;  %v2662_v49 = vld [vmem:[%s3779_s6 + $0xe0] ss:$8 sps:$4 sm:$0xff]  }
  0x95   :  { %1143 = vmatpush1.bf16.msra.mxu1 %v2653_v42  ;;  %v2690_v42 = vld [vmem:[%s3780_s5 + $0x80] ss:$8 sps:$4 sm:$0xff]  }
  0x96   :  { %1144 = vmatprep.subr.bf16.mxu1 %v2654_v43  ;;  %v2695_v43 = vld [vmem:[%s3780_s5 + $0x94] ss:$8 sps:$4 sm:$0xff]  }
  0x97   :  { %816 = vmatpush1.bf16.msra.mxu0 %v2585_v50 }
  0x98   :  { %817 = vmatprep.subr.bf16.mxu0 %v2590_v51 }
  0x99   :  { %1145 = vmatpush1.bf16.msra.mxu1 %v2656_v44  ;;  %v2693_v44 = vld [vmem:[%s3780_s5 + $0x90] ss:$8 sps:$4 sm:$0xff]  }
  0x9a   :  { %1146 = vmatprep.subr.bf16.mxu1 %v2657_v45  ;;  %v2698_v45 = vld [vmem:[%s3780_s5 + $0xa4] ss:$8 sps:$4 sm:$0xff]  }
  0x9b   :  { %818 = vmatpush1.bf16.msra.mxu0 %v2588_v52  ;;  %v2663_v52 = vld [vmem:[%s3779_s6 + $0xf4] ss:$8 sps:$4 sm:$0xff]  }
  0x9c   :  { %819 = vmatprep.subr.bf16.mxu0 %v2593_v53  ;;  %v2665_v53 = vld [vmem:[%s3779_s6 + $0xf0] ss:$8 sps:$4 sm:$0xff]  }
  0x9d   :  { %1147 = vmatpush1.bf16.msra.mxu1 %v2659_v35  ;;  %v2696_v35 = vld [vmem:[%s3780_s5 + $0xa0] ss:$8 sps:$4 sm:$0xff]  }
  0x9e   :  { %1148 = vmatprep.subr.bf16.mxu1 %v2660_v47  ;;  %v2699_v47 = vld [vmem:[%s3780_s5 + $0xb0] ss:$8 sps:$4 sm:$0xff]  }
  0x9f   :  { %820 = vmatpush1.bf16.msra.mxu0 %v2591_v54  ;;  %v2668_v54 = vld [vmem:[%s3780_s5 + $0x4] ss:$8 sps:$4 sm:$0xff]  }
  0xa0   :  { %821 = vmatprep.subr.bf16.mxu0 %v2596_v55 }
  0xa1   :  { %1149 = vmatpush1.bf16.msra.mxu1 %v2662_v49  ;;  %v2702_v49 = vld [vmem:[%s3780_s5 + $0xc0] ss:$8 sps:$4 sm:$0xff]  }
  0xa2   :  { %1150 = vmatprep.subr.bf16.mxu1 %v2663_v52  ;;  %v2705_v52 = vld [vmem:[%s3780_s5 + $0xd0] ss:$8 sps:$4 sm:$0xff]  }
  0xa3   :  { %822 = vmatpush1.bf16.msra.mxu0 %v2594_v56 }
  0xa4   :  { %823 = vmatprep.subr.bf16.mxu0 %v2599_v57 }
  0xa5   :  { %1151 = vmatpush1.bf16.msra.mxu1 %v2665_v53 }
  0xa6   :  { %1321 = vmatprep.subr.bf16.mxu1 %v2668_v54  ;;  %v2710_v54 = vld [vmem:[%s3780_s5 + $0xe4] ss:$8 sps:$4 sm:$0xff]  }
  0xa7   :  { %824 = vmatpush1.bf16.msra.mxu0 %v2597_v58 }
  0xa8   :  { %825 = vmatprep.subr.bf16.mxu0 %v2602_v60 }
  0xab   :  { %826 = vmatpush1.bf16.msra.mxu0 %v2600_v61 }
  0xac   :  { %827 = vmatprep.subr.bf16.mxu0 %v2605_v62  ;;  %v850_v62 = vlaneseq }
  0xaf   :  { %828 = vmatpush1.bf16.msra.mxu0 %v2603_v63  ;;  %v3356_v63 = vshrl.u32 %v850_v62, 7 }
  0xb0   :  { %829 = vmatprep.subr.bf16.mxu0 %v2608_v0 }
  0xb1   :  { %v3359_v0 = vsub.s32 0, %v3356_v63 }
  0xb3   :  { %830 = vmatpush1.bf16.msra.mxu0 %v2606_v1  ;;  %v848_v1 = vld [vmem:[%s3782_s4] sm:$0x3] }
  0xb4   :  { %831 = vmatprep.subr.bf16.mxu0 %v2611_v2  ;;  %v3365_v2 = vsub.s32 1, %v3356_v63  ;;  %v853_v3 = vrot.slane %v848_v1, %v3359_v0 }
  0xb7   :  { %832 = vmatpush1.bf16.msra.mxu0 %v2609_v4 }
  0xb8   :  { %833 = vmatprep.subr.bf16.mxu0 %v2614_v5  ;;  %v857_v5 = vrot.slane %v848_v1, %v3365_v2  ;;  %v2716_v1 = vld [vmem:[%s3781_s7 + $0x4] ss:$8 sps:$4 sm:$0xff]  }
  0xbb   :  { %834 = vmatpush1.bf16.msra.mxu0 %v2612_v8 }
  0xbc   :  { %835 = vmatprep.subr.bf16.mxu0 %v2617_v9 }
  0xbf   :  { %836 = vmatpush1.bf16.msra.mxu0 %v2615_v12 }
  0xc2   :  { %838 = vmatmul.mubr.bf16.vlgmr.msra.gmra.mrb[8].mxu0 %v607_v16 }
 0x115   :  { %v371_v46 = vpop.f32.mrb[0].mxu0 }
 0x116   :  { %v373_v48 = vpop.f32.mrb[1].mxu0 }
 0x117   :  { %v375_v50 = vpop.f32.mrb[2].mxu0 }
 0x118   :  { %v376_v51 = vpop.f32.mrb[3].mxu0  ;;  %v2707_v50 = vld [vmem:[%s3780_s5 + $0xd4] ss:$8 sps:$4 sm:$0xff]  }
 0x155   :  { %v572_v55 = vpop.f32.mrb[4].mxu0 }
 0x156   :  { %v573_v56 = vadd.f32 %v572_v55, %v371_v46  ;;  %v574_v57 = vpop.f32.mrb[5].mxu0  ;;  %v2701_v46 = vld [vmem:[%s3780_s5 + $0xb4] ss:$8 sps:$4 sm:$0xff]  }
 0x157   :  { %v575_v58 = vadd.f32 %v574_v57, %v373_v48  ;;  %v576_v60 = vpop.f32.mrb[6].mxu0  ;;  %v2704_v48 = vld [vmem:[%s3780_s5 + $0xc4] ss:$8 sps:$4 sm:$0xff]  }
 0x158   :  { %v577_v61 = vpop.f32.mrb[7].mxu0 }
 0x159   :  { %v2711_v61 = vld [vmem:[%s3780_s5 + $0xf0] ss:$8 sps:$4 sm:$0xff]  }
 0x195   :  { %v839_v4 = vpop.f32.mrb[8].mxu0 }
 0x196   :  { %v846_v6 = vadd.f32 %v839_v4, %v573_v56  ;;  %v841_v7 = vpop.f32.mrb[9].mxu0  ;;  %v2708_v56 = vld [vmem:[%s3780_s5 + $0xe0] ss:$8 sps:$4 sm:$0xff]  }
 0x197   :  { %v847_v8 = vadd.f32 %v841_v7, %v575_v58  ;;  %v843_v9 = vpop.f32.mrb[10].mxu0  ;;  %v2713_v58 = vld [vmem:[%s3780_s5 + $0xf4] ss:$8 sps:$4 sm:$0xff]  }
 0x198   :  { %v860_v10 = vadd.f32 %v853_v3, %v846_v6  ;;  %v844_v11 = vpop.f32.mrb[11].mxu0  ;;  %v2719_v7 = vld [vmem:[%s3781_s7 + $0x14] ss:$8 sps:$4 sm:$0xff]  }
 0x199   :  { %v861_v12 = vadd.f32 %v857_v5, %v847_v8  ;;  %v2714_v5 = vld [vmem:[%s3781_s7] ss:$8 sps:$4 sm:$0xff]   ;;  %v2717_v11 = vld [vmem:[%s3781_s7 + $0x10] ss:$8 sps:$4 sm:$0xff]  }
 0x19a   :  { %v862_v13 = vmax.f32 %v860_v10, 0.0 }
 0x19b   :  { %v863_v15 = vmax.f32 %v861_v12, 0.0  ;;  %v2722_v12 = vld [vmem:[%s3781_s7 + $0x24] ss:$8 sps:$4 sm:$0xff]  }
 0x19c   :  { %v3374_v17 = vpack.c.bf16 %v862_v13, %v862_v13  ;;  %v2822_v13 = vmov 0.0  }
 0x19d   :  { %v3369_v16 = vpack.c.bf16 %v863_v15, %v863_v15  ;;  %2428 = vmatprep.subr.bf16.mxu0 %v2822_v13  ;;  %v2720_v15 = vld [vmem:[%s3781_s7 + $0x20] ss:$8 sps:$4 sm:$0xff]   ;;  %2444 = vmatprep.mubr.msk.bf16.mxu0 %vm2823_vm3, %v2822_v13 }
 0x19e   :  { %v867_v51 = vshll.u32 %v3374_v17, 16 }
 0x19f   :  { %1152 = vmatprep.mubr.bf16.mxu1 %v3369_v16  ;;  %v870_v21 = vshll.u32 %v3369_v16, 16  ;;  %v1364_v53 = vshrl.u32 %v3369_v16, 16  ;;  %v2725_v16 = vld [vmem:[%s3781_s7 + $0x34] ss:$8 sps:$4 sm:$0xff]  }
 0x1a0   :  { %1153 = vmatmul.mubr.bf16.vlgmr.msra.gmra.mrb[0].mxu1 %v3374_v17  ;;  %v876_v55 = vrot.slane %v867_v51, 1  ;;  %v874_v6 = vsel %vm2959_vm2, 0, %v867_v51 }
 0x1a1   :  { %1322 = vmatpush1.bf16.msra.mxu1 %v2666_v19  ;;  %v877_v23 = vrot.slane %v870_v21, 1  ;;  %v875_v28 = vsel %vm2959_vm2, 0, %v870_v21  ;;  %v1371_v57 = vrot.slane %v1364_v53, 1  ;;  %v1369_v9 = vsel %vm2959_vm2, %v1364_v53, 0  ;;  %v2723_v19 = vld [vmem:[%s3781_s7 + $0x30] ss:$8 sps:$4 sm:$0xff]  }
 0x1a2   :  { %1323 = vmatprep.subr.bf16.mxu1 %v2671_v18  ;;  %v880_v60 = vsel %vm2959_vm2, 0, %v876_v55  ;;  %v2728_v18 = vld [vmem:[%s3781_s7 + $0x44] ss:$8 sps:$4 sm:$0xff]   ;;  %v2726_v21 = vld [vmem:[%s3781_s7 + $0x40] ss:$8 sps:$4 sm:$0xff]  }
 0x1a3   :  { %v881_v25 = vsel %vm2959_vm2, 0, %v877_v23  ;;  %v1375_v62 = vsel %vm2959_vm2, %v1371_v57, 0  ;;  %v884_v3 = vrot.slane %v880_v60, 7  ;;  %v2729_v23 = vld [vmem:[%s3781_s7 + $0x50] ss:$8 sps:$4 sm:$0xff]  }
 0x1a4   :  { %v885_v26 = vrot.slane %v881_v25, 7  ;;  %v1379_v4 = vrot.slane %v1375_v62, 7  ;;  %v2732_v25 = vld [vmem:[%s3781_s7 + $0x60] ss:$8 sps:$4 sm:$0xff]   ;;  %v2776_v55 = vld [vmem:[%s3783_s9 + $0x44] ss:$8 sps:$4 sm:$0xff]  }
 0x1a5   :  { %1324 = vmatpush1.bf16.msra.mxu1 %v2669_v22  ;;  %v888_v8 = vsel %vm59_vm0, %v874_v6, %v884_v3  ;;  %v2731_v22 = vld [vmem:[%s3781_s7 + $0x54] ss:$8 sps:$4 sm:$0xff]   ;;  %v2768_v53 = vld [vmem:[%s3783_s9 + $0x20] ss:$8 sps:$4 sm:$0xff]   ;;  %v2782_v60 = vld [vmem:[%s3783_s9 + $0x64] ss:$8 sps:$4 sm:$0xff]  }
 0x1a6   :  { %1325 = vmatprep.subr.bf16.mxu1 %v2674_v24  ;;  %v892_v30 = vsel %vm59_vm0, %v875_v28, %v885_v26  ;;  %v1386_v10 = vsel %vm59_vm0, %v1369_v9, %v1379_v4  ;;  %v2734_v24 = vld [vmem:[%s3781_s7 + $0x64] ss:$8 sps:$4 sm:$0xff]   ;;  %v2737_v26 = vld [vmem:[%s3781_s7 + $0x74] ss:$8 sps:$4 sm:$0xff]   ;;  %v2786_v4 = vld [vmem:[%s3783_s9 + $0x80] ss:$8 sps:$4 sm:$0xff]  }
 0x1a7   :  { %1353 = vmatprep.mubr.bf16.mxu1 %v892_v30  ;;  %v2740_v28 = vld [vmem:[%s3781_s7 + $0x84] ss:$8 sps:$4 sm:$0xff]   ;;  %v2743_v30 = vld [vmem:[%s3781_s7 + $0x94] ss:$8 sps:$4 sm:$0xff]   ;;  %v2789_v6 = vld [vmem:[%s3783_s9 + $0x90] ss:$8 sps:$4 sm:$0xff]  }
 0x1a8   :  { %v2779_v57 = vld [vmem:[%s3783_s9 + $0x54] ss:$8 sps:$4 sm:$0xff]   ;;  %v2788_v3 = vld [vmem:[%s3783_s9 + $0x84] ss:$8 sps:$4 sm:$0xff]  }
 0x1a9   :  { %1326 = vmatpush1.bf16.msra.mxu1 %v2672_v27  ;;  %v2735_v27 = vld [vmem:[%s3781_s7 + $0x70] ss:$8 sps:$4 sm:$0xff]   ;;  %v2785_v62 = vld [vmem:[%s3783_s9 + $0x74] ss:$8 sps:$4 sm:$0xff]  }
 0x1aa   :  { %1327 = vmatprep.subr.bf16.mxu1 %v2677_v29  ;;  %v2738_v29 = vld [vmem:[%s3781_s7 + $0x80] ss:$8 sps:$4 sm:$0xff]   ;;  %v2797_v9 = vld [vmem:[%s3783_s9 + $0xb4] ss:$8 sps:$4 sm:$0xff]  }
 0x1ad   :  { %1328 = vmatpush1.bf16.msra.mxu1 %v2675_v31  ;;  %v2741_v31 = vld [vmem:[%s3781_s7 + $0x90] ss:$8 sps:$4 sm:$0xff]  }
 0x1ae   :  { %1329 = vmatprep.subr.bf16.mxu1 %v2680_v33  ;;  %v2746_v33 = vld [vmem:[%s3781_s7 + $0xa4] ss:$8 sps:$4 sm:$0xff]  }
 0x1b1   :  { %1330 = vmatpush1.bf16.msra.mxu1 %v2678_v34  ;;  %v2744_v34 = vld [vmem:[%s3781_s7 + $0xa0] ss:$8 sps:$4 sm:$0xff]  }
 0x1b2   :  { %1331 = vmatprep.subr.bf16.mxu1 %v2683_v36  ;;  %v2749_v36 = vld [vmem:[%s3781_s7 + $0xb4] ss:$8 sps:$4 sm:$0xff]  }
 0x1b5   :  { %1332 = vmatpush1.bf16.msra.mxu1 %v2681_v37  ;;  %v2747_v37 = vld [vmem:[%s3781_s7 + $0xb0] ss:$8 sps:$4 sm:$0xff]  }
 0x1b6   :  { %1333 = vmatprep.subr.bf16.mxu1 %v2686_v38  ;;  %v2752_v38 = vld [vmem:[%s3781_s7 + $0xc4] ss:$8 sps:$4 sm:$0xff]  }
 0x1b9   :  { %1334 = vmatpush1.bf16.msra.mxu1 %v2684_v39  ;;  %v2750_v39 = vld [vmem:[%s3781_s7 + $0xc0] ss:$8 sps:$4 sm:$0xff]  }
 0x1ba   :  { %1335 = vmatprep.subr.bf16.mxu1 %v2689_v40  ;;  %v2755_v40 = vld [vmem:[%s3781_s7 + $0xd4] ss:$8 sps:$4 sm:$0xff]  }
 0x1bd   :  { %1336 = vmatpush1.bf16.msra.mxu1 %v2687_v14  ;;  %v1362_v14 = vshrl.u32 %v3374_v17, 16  ;;  %v2761_v17 = vld [vmem:[%s3781_s7 + $0xf4] ss:$8 sps:$4 sm:$0xff]  }
 0x1be   :  { %1337 = vmatprep.subr.bf16.mxu1 %v2692_v41  ;;  %v2753_v41 = vld [vmem:[%s3781_s7 + $0xd0] ss:$8 sps:$4 sm:$0xff]  }
 0x1c1   :  { %1338 = vmatpush1.bf16.msra.mxu1 %v2690_v42  ;;  %v2758_v42 = vld [vmem:[%s3781_s7 + $0xe4] ss:$8 sps:$4 sm:$0xff]  }
 0x1c2   :  { %1339 = vmatprep.subr.bf16.mxu1 %v2695_v43  ;;  %v1370_v43 = vrot.slane %v1362_v14, 1 }
 0x1c5   :  { %1340 = vmatpush1.bf16.msra.mxu1 %v2693_v44  ;;  %v2756_v44 = vld [vmem:[%s3781_s7 + $0xe0] ss:$8 sps:$4 sm:$0xff]  }
 0x1c6   :  { %1341 = vmatprep.subr.bf16.mxu1 %v2698_v45  ;;  %v1374_v45 = vsel %vm2959_vm2, %v1370_v43, 0 }
 0x1c9   :  { %1342 = vmatpush1.bf16.msra.mxu1 %v2696_v35  ;;  %v2759_v35 = vld [vmem:[%s3781_s7 + $0xf0] ss:$8 sps:$4 sm:$0xff]  }
 0x1ca   :  { %1343 = vmatprep.subr.bf16.mxu1 %v2701_v46  ;;  %v2764_v46 = vld [vmem:[%s3783_s9 + $0x4] ss:$8 sps:$4 sm:$0xff]  }
 0x1cd   :  { %1344 = vmatpush1.bf16.msra.mxu1 %v2699_v47  ;;  %v1378_v47 = vrot.slane %v1374_v45, 7 }
 0x1ce   :  { %1345 = vmatprep.subr.bf16.mxu1 %v2704_v48  ;;  %v2762_v48 = vld [vmem:[%s3783_s9] ss:$8 sps:$4 sm:$0xff]  }
 0x1d1   :  { %1346 = vmatpush1.bf16.msra.mxu1 %v2702_v49  ;;  %v1368_v49 = vsel %vm2959_vm2, %v1362_v14, 0 }
 0x1d2   :  { %1347 = vmatprep.subr.bf16.mxu1 %v2707_v50  ;;  %v2767_v50 = vld [vmem:[%s3783_s9 + $0x14] ss:$8 sps:$4 sm:$0xff]   ;;  %v1382_v51 = vsel %vm59_vm0, %v1368_v49, %v1378_v47 }
 0x1d5   :  { %1348 = vmatpush1.bf16.msra.mxu1 %v2705_v52  ;;  %v2765_v52 = vld [vmem:[%s3783_s9 + $0x10] ss:$8 sps:$4 sm:$0xff]  }
 0x1d6   :  { %1349 = vmatprep.subr.bf16.mxu1 %v2710_v54  ;;  %v2773_v54 = vld [vmem:[%s3783_s9 + $0x34] ss:$8 sps:$4 sm:$0xff]  }
 0x1d9   :  { %1350 = vmatpush1.bf16.msra.mxu1 %v2708_v56  ;;  %v2774_v56 = vld [vmem:[%s3783_s9 + $0x40] ss:$8 sps:$4 sm:$0xff]  }
 0x1da   :  { %1351 = vmatprep.subr.bf16.mxu1 %v2713_v58  ;;  %v2777_v58 = vld [vmem:[%s3783_s9 + $0x50] ss:$8 sps:$4 sm:$0xff]  }
 0x1dd   :  { %1352 = vmatpush1.bf16.msra.mxu1 %v2711_v61  ;;  %v2780_v61 = vld [vmem:[%s3783_s9 + $0x60] ss:$8 sps:$4 sm:$0xff]  }
 0x1de   :  { %1580 = vmatprep.subr.bf16.mxu1 %v2716_v1  ;;  %v2783_v1 = vld [vmem:[%s3783_s9 + $0x70] ss:$8 sps:$4 sm:$0xff]  }
 0x1e0   :  { %1354 = vmatmul.mubr.bf16.vlgmr.msra.gmra.mrb[0].mxu1 %v888_v8  ;;  %v2792_v8 = vld [vmem:[%s3783_s9 + $0xa0] ss:$8 sps:$4 sm:$0xff]  }
 0x1e1   :  { %1581 = vmatpush1.bf16.msra.mxu1 %v2714_v5  ;;  %1612 = vmatprep.mubr.bf16.mxu1 %v1386_v10  ;;  %v2791_v5 = vld [vmem:[%s3783_s9 + $0x94] ss:$8 sps:$4 sm:$0xff]   ;;  %v2795_v10 = vld [vmem:[%s3783_s9 + $0xb0] ss:$8 sps:$4 sm:$0xff]  }
 0x1e2   :  { %1582 = vmatprep.subr.bf16.mxu1 %v2719_v7  ;;  %v2794_v7 = vld [vmem:[%s3783_s9 + $0xa4] ss:$8 sps:$4 sm:$0xff]  }
 0x1e5   :  { %1583 = vmatpush1.bf16.msra.mxu1 %v2717_v11  ;;  %v2800_v11 = vld [vmem:[%s3783_s9 + $0xc4] ss:$8 sps:$4 sm:$0xff]  }
 0x1e6   :  { %1584 = vmatprep.subr.bf16.mxu1 %v2722_v12  ;;  %v2798_v12 = vld [vmem:[%s3783_s9 + $0xc0] ss:$8 sps:$4 sm:$0xff]  }
 0x1e9   :  { %1585 = vmatpush1.bf16.msra.mxu1 %v2720_v15  ;;  %v2803_v15 = vld [vmem:[%s3783_s9 + $0xd4] ss:$8 sps:$4 sm:$0xff]  }
 0x1ea   :  { %1586 = vmatprep.subr.bf16.mxu1 %v2725_v16  ;;  %v2801_v16 = vld [vmem:[%s3783_s9 + $0xd0] ss:$8 sps:$4 sm:$0xff]  }
 0x1ed   :  { %1587 = vmatpush1.bf16.msra.mxu1 %v2723_v19  ;;  %v2806_v19 = vld [vmem:[%s3783_s9 + $0xe4] ss:$8 sps:$4 sm:$0xff]  }
 0x1ee   :  { %1588 = vmatprep.subr.bf16.mxu1 %v2728_v18  ;;  %v2804_v18 = vld [vmem:[%s3783_s9 + $0xe0] ss:$8 sps:$4 sm:$0xff]  }
 0x1f1   :  { %1589 = vmatpush1.bf16.msra.mxu1 %v2726_v21  ;;  %v2809_v21 = vld [vmem:[%s3783_s9 + $0xf4] ss:$8 sps:$4 sm:$0xff]  }
 0x1f2   :  { %1590 = vmatprep.subr.bf16.mxu1 %v2731_v22  ;;  %v2807_v22 = vld [vmem:[%s3783_s9 + $0xf0] ss:$8 sps:$4 sm:$0xff]  }
 0x1f5   :  { %1591 = vmatpush1.bf16.msra.mxu1 %v2729_v23  ;;  %v2810_v23 = vld [vmem:[%s3784_s11] sm:$0xff]  }
 0x1f6   :  { %1592 = vmatprep.subr.bf16.mxu1 %v2734_v24  ;;  %2429 = vmatpush3.bf16.msra.mxu0 %v2810_v23  ;;  %v2811_v24 = vld [vmem:[%s3784_s11 + $0x8] sm:$0xff]  }
 0x1f7   :  { %2430 = vmatprep.subr.bf16.mxu0 %v2822_v13 }
 0x1f9   :  { %1593 = vmatpush1.bf16.msra.mxu1 %v2732_v25  ;;  %v2812_v25 = vld [vmem:[%s3784_s11 + $0x10] sm:$0xff]  }
 0x1fa   :  { %1594 = vmatprep.subr.bf16.mxu1 %v2737_v26  ;;  %2431 = vmatpush3.bf16.msra.mxu0 %v2811_v24  ;;  %v2814_v26 = vld [vmem:[%s3784_s11 + $0x20] sm:$0xff]  }
 0x1fb   :  { %2432 = vmatprep.subr.bf16.mxu0 %v2822_v13 }
 0x1fd   :  { %1595 = vmatpush1.bf16.msra.mxu1 %v2735_v27  ;;  %v2815_v27 = vld [vmem:[%s3784_s11 + $0x28] sm:$0xff]  }
 0x1fe   :  { %1596 = vmatprep.subr.bf16.mxu1 %v2740_v28  ;;  %2433 = vmatpush3.bf16.msra.mxu0 %v2812_v25  ;;  %v2816_v28 = vld [vmem:[%s3784_s11 + $0x30] sm:$0xff]  }
 0x1ff   :  { %2434 = vmatprep.subr.bf16.mxu0 %v2822_v13 }
 0x201   :  { %1597 = vmatpush1.bf16.msra.mxu1 %v2738_v29  ;;  %v2817_v29 = vld [vmem:[%s3784_s11 + $0x38] sm:$0xff]  }
 0x202   :  { %1598 = vmatprep.subr.bf16.mxu1 %v2743_v30  ;;  %v1623_v30 = vld [vmem:[%s3785_s8] sm:$0x3] }
 0x205   :  { %1599 = vmatpush1.bf16.msra.mxu1 %v2741_v31  ;;  %v1669_v31 = vld [vmem:[%s3786_s10] sm:$0x3] }
 0x206   :  { %1600 = vmatprep.subr.bf16.mxu1 %v2746_v33  ;;  %v1628_v33 = vrot.slane %v1623_v30, %v3359_v0 }
 0x209   :  { %1601 = vmatpush1.bf16.msra.mxu1 %v2744_v34  ;;  %v1674_v34 = vrot.slane %v1669_v31, %v3359_v0 }
 0x20a   :  { %1602 = vmatprep.subr.bf16.mxu1 %v2749_v36  ;;  %v1632_v36 = vrot.slane %v1623_v30, %v3365_v2 }
 0x20d   :  { %1603 = vmatpush1.bf16.msra.mxu1 %v2747_v37  ;;  %v1678_v37 = vrot.slane %v1669_v31, %v3365_v2 }
 0x20e   :  { %1604 = vmatprep.subr.bf16.mxu1 %v2752_v38  ;;  %v2454_v38 = vadd.f32 %v1674_v34, %v1628_v33 }
 0x211   :  { %1605 = vmatpush1.bf16.msra.mxu1 %v2750_v39  ;;  %v2456_v39 = vadd.f32 %v1678_v37, %v1632_v36 }
 0x212   :  { %1606 = vmatprep.subr.bf16.mxu1 %v2755_v40 }
 0x215   :  { %1607 = vmatpush1.bf16.msra.mxu1 %v2753_v41 }
 0x216   :  { %1608 = vmatprep.subr.bf16.mxu1 %v2758_v42 }
 0x219   :  { %1609 = vmatpush1.bf16.msra.mxu1 %v2756_v44 }
 0x21a   :  { %1610 = vmatprep.subr.bf16.mxu1 %v2761_v17 }
 0x21d   :  { %1611 = vmatpush1.bf16.msra.mxu1 %v2759_v35 }
 0x21e   :  { %1841 = vmatprep.subr.bf16.mxu1 %v2764_v46 }
 0x220   :  { %1613 = vmatmul.mubr.bf16.vlgmr.msra.gmra.mrb[0].mxu1 %v1382_v51 }
 0x221   :  { %1842 = vmatpush1.bf16.msra.mxu1 %v2762_v48  ;;  %1873 = vmatprep.mubr.bf16.mxu1 %v2984_v32  ;;  %v2771_v32 = vld [vmem:[%s3783_s9 + $0x30] ss:$8 sps:$4 sm:$0xff]  }
 0x222   :  { %1843 = vmatprep.subr.bf16.mxu1 %v2767_v50 }
 0x225   :  { %1844 = vmatpush1.bf16.msra.mxu1 %v2765_v52 }
 0x226   :  { %1845 = vmatprep.subr.bf16.mxu1 %v2770_v20 }
 0x229   :  { %1846 = vmatpush1.bf16.msra.mxu1 %v2768_v53 }
 0x22a   :  { %1847 = vmatprep.subr.bf16.mxu1 %v2773_v54 }
 0x22d   :  { %1848 = vmatpush1.bf16.msra.mxu1 %v2771_v32 }
 0x22e   :  { %1849 = vmatprep.subr.bf16.mxu1 %v2776_v55 }
 0x231   :  { %1850 = vmatpush1.bf16.msra.mxu1 %v2774_v56 }
 0x232   :  { %1851 = vmatprep.subr.bf16.mxu1 %v2779_v57 }
 0x235   :  { %1852 = vmatpush1.bf16.msra.mxu1 %v2777_v58 }
 0x236   :  { %1853 = vmatprep.subr.bf16.mxu1 %v2782_v60 }
 0x239   :  { %1854 = vmatpush1.bf16.msra.mxu1 %v2780_v61 }
 0x23a   :  { %1855 = vmatprep.subr.bf16.mxu1 %v2785_v62 }
 0x23d   :  { %1856 = vmatpush1.bf16.msra.mxu1 %v2783_v1 }
 0x23e   :  { %1857 = vmatprep.subr.bf16.mxu1 %v2788_v3 }
 0x241   :  { %1858 = vmatpush1.bf16.msra.mxu1 %v2786_v4 }
 0x242   :  { %1859 = vmatprep.subr.bf16.mxu1 %v2791_v5 }
 0x245   :  { %1860 = vmatpush1.bf16.msra.mxu1 %v2789_v6 }
 0x246   :  { %1861 = vmatprep.subr.bf16.mxu1 %v2794_v7 }
 0x249   :  { %1862 = vmatpush1.bf16.msra.mxu1 %v2792_v8 }
 0x24a   :  { %1863 = vmatprep.subr.bf16.mxu1 %v2797_v9 }
 0x24d   :  { %1864 = vmatpush1.bf16.msra.mxu1 %v2795_v10 }
 0x24e   :  { %1865 = vmatprep.subr.bf16.mxu1 %v2800_v11 }
 0x251   :  { %1866 = vmatpush1.bf16.msra.mxu1 %v2798_v12 }
 0x252   :  { %1867 = vmatprep.subr.bf16.mxu1 %v2803_v15 }
 0x255   :  { %1868 = vmatpush1.bf16.msra.mxu1 %v2801_v16 }
 0x256   :  { %1869 = vmatprep.subr.bf16.mxu1 %v2806_v19 }
 0x259   :  { %1870 = vmatpush1.bf16.msra.mxu1 %v2804_v18 }
 0x25a   :  { %1871 = vmatprep.subr.bf16.mxu1 %v2809_v21 }
 0x25d   :  { %1872 = vmatpush1.bf16.msra.mxu1 %v2807_v22 }
 0x260   :  { %1874 = vmatmul.mubr.bf16.vlgmr.msra.gmra.mrb[0].mxu1 %v3047_v59  ;;  %v2813_v59 = vld [vmem:[%s3784_s11 + $0x18] sm:$0xff]  }
 0x261   :  { %2435 = vmatpush3.bf16.msra.mxu0 %v2813_v59 }
 0x262   :  { %2436 = vmatprep.subr.bf16.mxu0 %v2822_v13 }
 0x265   :  { %2437 = vmatpush3.bf16.msra.mxu0 %v2814_v26 }
 0x266   :  { %2438 = vmatprep.subr.bf16.mxu0 %v2822_v13 }
 0x269   :  { %2439 = vmatpush3.bf16.msra.mxu0 %v2815_v27 }
 0x26a   :  { %2440 = vmatprep.subr.bf16.mxu0 %v2822_v13 }
 0x26d   :  { %2441 = vmatpush3.bf16.msra.mxu0 %v2816_v28 }
 0x26e   :  { %2442 = vmatprep.subr.bf16.mxu0 %v2822_v13 }
 0x271   :  { %2443 = vmatpush3.bf16.msra.mxu0 %v2817_v29 }
 0x272   :  { %2448 = vmatprep.subr.bf16.mxu0 %v2822_v13 }
 0x333   :  { %v1875_v40 = vpop.f32.mrb[0].mxu1 }
 0x334   :  { %v2455_v14 = vadd.f32 %v2454_v38, %v1875_v40  ;;  %v1877_v41 = vpop.f32.mrb[1].mxu1 }
 0x335   :  { %v2457_v42 = vadd.f32 %v2456_v39, %v1877_v41  ;;  %v1879_v43 = vpop.f32.mrb[2].mxu1 }
 0x336   :  { %v3731_v44 = vmax.f32 %v2455_v14, 0.0  ;;  %v1880_v17 = vpop.f32.mrb[3].mxu1 }
 0x337   :  { %v3733_v45 = vmax.f32 %v2457_v42, 0.0 }
 0x338   :  { %v1887_v35 = vsel %vm1886_vm4, %v3731_v44, 0.0  ;;  %v1904_v2 = vsel %vm1886_vm4, %v3731_v44, -inf  ;;  %v1923_v46 = vrot.slane %v3731_v44, 2  ;;  %v1944_v47 = vsel %vm1943_vm5, %v3731_v44, -inf }
 0x339   :  { %v1888_v48 = vrot.slane %v1887_v35, 4  ;;  %v1905_v49 = vrot.slane %v1904_v2, 4  ;;  %v1945_v50 = vrot.slane %v1944_v47, 4  ;;  %v1894_v51 = vsel %vm1886_vm4, %v3733_v45, 0.0 }
 0x33a   :  { %v1927_v52 = vsel %vm1886_vm4, %v1923_v46, 0.0  ;;  %v1895_v20 = vrot.slane %v1894_v51, 4  ;;  %v1911_v53 = vsel %vm1886_vm4, %v3733_v45, -inf  ;;  %v1924_v54 = vrot.slane %v3733_v45, 2 }
 0x33b   :  { %v1889_v32 = vadd.f32 %v1888_v48, %v1887_v35  ;;  %v1906_v55 = vmax.f32 %v1904_v2, %v1905_v49  ;;  %v1928_v56 = vrot.slane %v1927_v52, 4  ;;  %v1912_v57 = vrot.slane %v1911_v53, 4 }
 0x33c   :  { %v1896_v58 = vadd.f32 %v1895_v20, %v1894_v51  ;;  %v1934_v60 = vsel %vm1886_vm4, %v1924_v54, 0.0  ;;  %v1951_v61 = vsel %vm1943_vm5, %v3733_v45, -inf  ;;  %v1946_v62 = vmax.f32 %v1944_v47, %v1945_v50 }
 0x33d   :  { %v1890_v1 = vrot.slane %v1889_v32, 2  ;;  %v1907_v3 = vrot.slane %v1906_v55, 2  ;;  %v1913_v4 = vmax.f32 %v1911_v53, %v1912_v57  ;;  %v1935_v5 = vrot.slane %v1934_v60, 4  ;;  %v2079_v53 = vld [vmem:[%s3787_s13] sm:$0xf] }
 0x33e   :  { %v1897_v6 = vrot.slane %v1896_v58, 2  ;;  %v1952_v7 = vrot.slane %v1951_v61, 4  ;;  %v1929_v8 = vadd.f32 %v1928_v56, %v1927_v52  ;;  %v1947_v9 = vrot.slane %v1946_v62, 2  ;;  %v2403_v57 = vld [vmem:[%s3788_s12] ss:$0 sm:$0xff] }
 0x33f   :  { %v1914_v10 = vrot.slane %v1913_v4, 2  ;;  %v1891_v11 = vadd.f32 %v1890_v1, %v1889_v32  ;;  %v1908_v12 = vmax.f32 %v1906_v55, %v1907_v3  ;;  %v1936_v15 = vadd.f32 %v1935_v5, %v1934_v60  ;;  %v2412_v5 = vld [vmem:[%s3789_s14] ss:$0 sm:$0xff] }
 0x340   :  { %v1898_v16 = vadd.f32 %v1897_v6, %v1896_v58  ;;  %v1930_v19 = vrot.slane %v1929_v8, 2  ;;  %v1948_v18 = vmax.f32 %v1946_v62, %v1947_v9  ;;  %v1953_v21 = vmax.f32 %v1951_v61, %v1952_v7 }
 0x341   :  { %v1892_v22 = vrot.slane %v1891_v11, 1  ;;  %v1909_v23 = vrot.slane %v1908_v12, 1  ;;  %v1915_v24 = vmax.f32 %v1913_v4, %v1914_v10  ;;  %v1937_v25 = vrot.slane %v1936_v15, 2 }
 0x342   :  { %v1899_v59 = vrot.slane %v1898_v16, 1  ;;  %v1931_v26 = vadd.f32 %v1930_v19, %v1929_v8  ;;  %v1954_v27 = vrot.slane %v1953_v21, 2  ;;  %v1949_v39 = vrot.slane %v1948_v18, 1 }
 0x343   :  { %v1893_v28 = vadd.f32 %v1892_v22, %v1891_v11  ;;  %v1916_v29 = vrot.slane %v1915_v24, 1  ;;  %v1938_v30 = vadd.f32 %v1937_v25, %v1936_v15  ;;  %v1910_v37 = vmax.f32 %v1908_v12, %v1909_v23 }
 0x344   :  { %v1900_v31 = vadd.f32 %v1899_v59, %v1898_v16  ;;  %v1932_v33 = vrot.slane %v1931_v26, 1  ;;  %v1955_v34 = vmax.f32 %v1953_v21, %v1954_v27  ;;  %v1950_v48 = vmax.f32 %v1948_v18, %v1949_v39 }
 0x345   :  { %v1902_v36 = vmul.f32 0.5, %v1893_v28  ;;  %v1939_v38 = vrot.slane %v1938_v30, 1  ;;  %v1917_v14 = vmax.f32 %v1915_v24, %v1916_v29  ;;  %v2093_v56 = vsel %vm2091_vm7, %v2079_v53, 0 }
 0x346   :  { %v1903_v40 = vmul.f32 0.5, %v1900_v31  ;;  %v1933_v41 = vadd.f32 %v1932_v33, %v1931_v26  ;;  %v1956_v42 = vrot.slane %v1955_v34, 1  ;;  %v2153_v19 = vsub.s32 2, %v3356_v63 }
 0x347   :  { %v1940_v43 = vadd.f32 %v1939_v38, %v1938_v30  ;;  %v1919_v46 = vmax.f32 %v1910_v37, %v1917_v14 }
 0x348   :  { %v1918_v17 = vadd.f32 %v1903_v40, %v1902_v36  ;;  %v1941_v35 = vmul.f32 0.5, %v1933_v41  ;;  %v1957_v49 = vmax.f32 %v1955_v34, %v1956_v42 }
 0x349   :  { %v1942_v2 = vmul.f32 0.5, %v1940_v43 }
 0x34a   :  { %v1920_v47 = vmul.f32 0.5, %v1918_v17  ;;  %v1959_v20 = vmax.f32 %v1950_v48, %v1957_v49 }
 0x34b   :  { %v1958_v50 = vadd.f32 %v1942_v2, %v1941_v35 }
 0x34c   :  { %v1961_v51 = vsel %vm59_vm0, %v1920_v47, %v1919_v46 }
 0x34d   :  { %v1960_v52 = vmul.f32 0.5, %v1958_v50 }
 0x34f   :  { %v1962_v54 = vsel %vm1886_vm4, %v1961_v51, %v1960_v52 }
 0x350   :  { %v1964_v32 = vsel %vm1963_vm6, %v1962_v54, %v1959_v20 }
 0x351   :  { %v1965_v55 = vpack.c.bf16 %v1964_v32, %v1964_v32 }
 0x353   :  { %2445 = vmatmul.mubr.bf16.vlgmr.msra.gmra.mrb[12].mxu0 %v1965_v55 }
 0x354   :  { %2449 = vmatpush3.bf16.msra.mxu0 %v2093_v56  ;;  %2450 = vmatprep.mubr.msk.bf16.mxu0 %vm2823_vm3, %v2822_v13 }
 0x426   :  { %v2071_v58 = vpop.f32.mrb[12].mxu0 }
 0x427   :  { %v2072_v60 = vadd.f32 %v2403_v57, %v2071_v58  ;;  %v2446_v61 = vpop.f32.mrb[13].mxu0 }
 0x428   :  { %v2074_v62 = vpop.f32.mrb[14].mxu0 }
 0x429   :  { %v2077_v1 = vmax.f32 %v2072_v60, 0.0  ;;  %v2447_v3 = vpop.f32.mrb[15].mxu0 }
 0x42b   :  { %v2078_v4 = vpack.c.bf16 %v2077_v1, %v2077_v1 }
 0x42d   :  { %2451 = vmatmul.mubr.msk.bf16.vlgmr.msra.gmra.mrb[16].mxu0 %vm2087_vm8, %v2078_v4 }
 0x500   :  { %v2129_v6 = vpop.f32.mrb[16].mxu0 }
 0x501   :  { %v2130_v7 = vadd.f32 %v2412_v5, %v2129_v6  ;;  %v2452_v13 = vpop.f32.mrb[17].mxu0 }
 0x502   :  { %v2132_v8 = vpop.f32.mrb[18].mxu0 }
 0x503   :  { %v2136_v9 = vrot.slane %v2130_v7, 1  ;;  %v2453_v10 = vpop.f32.mrb[19].mxu0 }
 0x505   :  { %v2138_v11 = vadd.f32 %v2136_v9, %v2130_v7 }
 0x507   :  { %v2414_v12 = vmul.f32 -1.442695, %v2138_v11 }
 0x509   :  { %2818 = vpow2.f32 %v2414_v12 }
 0x513   :  { %v2819_v15 = vpop.eup %2818 }
 0x514   :  { %v2142_v16 = vadd.f32 1.0, %v2819_v15 }
 0x516   :  { %2820 = vrcp.f32 %v2142_v16 }
 0x520   :  { %v2821_v18 = vpop.eup %2820 }
 0x521   :  { %v2148_v21 = vrot.slane %v2821_v18, %v3359_v0  ;;  %v2154_v22 = vrot.slane %v2821_v18, %v2153_v19 }
 0x523   :  { %v2149_v23 = vmul.f32 %v2148_v21, %v3731_v44  ;;  %v2150_v24 = vmul.f32 %v2148_v21, %v3733_v45  ;;  %v2155_v25 = vmul.f32 %v2154_v22, %v3731_v44  ;;  %v2156_v59 = vmul.f32 %v2154_v22, %v3733_v45 }
 0x525   :  { %v2157_v26 = vsel %vm1886_vm4, %v2149_v23, %v2155_v25  ;;  %v2158_v27 = vsel %vm1886_vm4, %v2150_v24, %v2156_v59 }
 0x526   :  { %v2415_v28 = vpack.c.bf16 %v2158_v27, %v2157_v26 }
 0x528   :  { %2416 = vst.sshfl [vmem:[%s3790_s15] sm:$0x33 pattern:$0x76325410] %v2415_v28 }

// kernel: forward.7
= control target key start
LH: loop header
LB: loop body
LE: loop exit
PB: predicated region body
PF: predicated region fallthrough
CT: control target
= control target key end

     0   :  { %s5041_s0 = inlined_call_operand.vmem [shape: bf16[4,256], index: 0, kind: input, shape index: {}]   ;;  %s5042_s1 = inlined_call_operand.vmem [shape: bf16[256,256], index: 1, kind: input, shape index: {}]   ;;  %s5043_s2 = inlined_call_operand.vmem [shape: bf16[256,256], index: 2, kind: input, shape index: {}]   ;;  %s5044_s3 = inlined_call_operand.vmem [shape: bf16[256,256], index: 3, kind: input, shape index: {}]   ;;  %s5045_s4 = inlined_call_operand.vmem [shape: f32[1,256], index: 4, kind: input, shape index: {}]   ;;  %s5046_s5 = inlined_call_operand.vmem [shape: bf16[256,256], index: 5, kind: input, shape index: {}]   ;;  %s5047_s6 = inlined_call_operand.vmem [shape: bf16[256,256], index: 6, kind: input, shape index: {}]   ;;  %s5048_s7 = inlined_call_operand.vmem [shape: bf16[256,256], index: 7, kind: input, shape index: {}]   ;;  %s5049_s8 = inlined_call_operand.vmem [shape: f32[1,256], index: 8, kind: input, shape index: {}]   ;;  %s5050_s9 = inlined_call_operand.hbm [shape: bf16[256,256], index: 9, kind: input, shape index: {}]   ;;  %s5051_s10 = inlined_call_operand.vmem [shape: f32[1,256], index: 10, kind: input, shape index: {}]   ;;  %s5052_s11 = inlined_call_operand.vmem [shape: bf16[256,16], index: 11, kind: input, shape index: {}]   ;;  %s5053_s12 = inlined_call_operand.vmem [shape: f32[1,16], index: 12, kind: input, shape index: {}]   ;;  %s5054_s13 = inlined_call_operand.vmem [shape: bf16[16,256], index: 13, kind: input, shape index: {}]   ;;  %s5055_s14 = inlined_call_operand.vmem [shape: f32[1,256], index: 14, kind: input, shape index: {}]   ;;  %s5056_s15 = inlined_call_operand.vmem [shape: bf16[256,512], index: 15, kind: input, shape index: {}]   ;;  %s5057_s16 = inlined_call_operand.vmem [shape: f32[1,512], index: 16, kind: input, shape index: {}]   ;;  %s5058_s17 = inlined_call_operand.hbm [shape: bf16[512,128], index: 17, kind: input, shape index: {}]   ;;  %s5059_s18 = inlined_call_operand.vmem [shape: f32[1,128], index: 18, kind: input, shape index: {}]   ;;  %s5060_s19 = inlined_call_operand.hbm [shape: f32[2,128], index: 19, kind: output, shape index: {}]  }
   0x1   :  { %5064 = sst [smem:[#allocation11_spill]] %s5041_s0 }
   0x2   :  { %5065 = sst [smem:[#allocation12_spill]] %s5042_s1 }
   0x3   :  { %5066 = sst [smem:[#allocation13_spill]] %s5043_s2 }
   0x4   :  { %5067 = sst [smem:[#allocation14_spill]] %s5044_s3 }
   0x5   :  { %24 = vsyncpa [#allocation3], 0 }
   0x6   :  { %25 = vsyncpa [#allocation6], 0 }
   0x7   :  { %26 = vsyncpa [#allocation4], 0  ;;  %s3978_s0 = smov [#allocation2]   ;;  %s3906_s1 = scalar_lea.hbm %s5050_s9, 4096 }
   0x8   :  { %s50_s30 = sshll.u32 %s3978_s0, 4  ;;  %p3907_p0 = scmp.ne.s32.totalorder %s5050_s9, %s3906_s1  ;;  %s51_s30 = int_to_ptr.vmem [resolvable:$true] %s50_s30 }
   0x9   :  { %p3910_p1 = scmp.lt.u32.totalorder %s3906_s1, %s5050_s9 }
   0xb   :  { %p3912_p2 = pnand %p3910_p1, %p3907_p0 }
   0xd   :  { %3915 = shalt.err (!%p3912_p2)
}
   0xe   :  { %s3916_s25 = scalar_lea.vmem %s51_s30, 4096  ;;  %p3921_p4 = scmp.lt.s32.totalorder %s51_s30, %s51_s30 }
   0xf   :  { %p3917_p3 = scmp.ne.s32.totalorder %s51_s30, %s3916_s25  ;;  %p3922_p5 = scmp.lt.s32.totalorder %s3916_s25, %s3916_s25 }
  0x11   :  { %p3923_p6 = por %p3922_p5, %p3921_p4 }
  0x13   :  { %p3924_p7 = pnand %p3923_p6, %p3917_p3 }
  0x15   :  { %3927 = shalt.err (!%p3924_p7)
}
  0x16   :  { %s3979_s3 = smov 128   ;;  %s3980_s26 = smov 8  }
  0x17   :  { %56 = dma.hbm_to_vmem [thread:$0]  %s5050_s9, 4096, %s51_s30, [#allocation3], %s3979_s3, %s3979_s3, %s3980_s26  }
  0x18   :  { %s3981_s29 = smov [#allocation5]   ;;  %s3928_s1 = scalar_lea.hbm %s5058_s17, 4096 }
  0x19   :  { %s76_s0 = sshll.u32 %s3981_s29, 4  ;;  %p3929_p8 = scmp.ne.s32.totalorder %s5058_s17, %s3928_s1  ;;  %s77_s0 = int_to_ptr.vmem [resolvable:$true] %s76_s0 }
  0x1a   :  { %p3932_p9 = scmp.lt.u32.totalorder %s3928_s1, %s5058_s17 }
  0x1c   :  { %p3934_p10 = pnand %p3932_p9, %p3929_p8 }
  0x1e   :  { %3937 = shalt.err (!%p3934_p10)
}
  0x1f   :  { %s3938_s25 = scalar_lea.vmem %s77_s0, 4096  ;;  %p3943_p12 = scmp.lt.s32.totalorder %s77_s0, %s77_s0 }
  0x20   :  { %p3939_p11 = scmp.ne.s32.totalorder %s77_s0, %s3938_s25  ;;  %p3944_p13 = scmp.lt.s32.totalorder %s3938_s25, %s3938_s25 }
  0x22   :  { %p3945_p0 = por %p3944_p13, %p3943_p12 }
  0x24   :  { %p3946_p1 = pnand %p3945_p0, %p3939_p11 }
  0x26   :  { %3949 = shalt.err (!%p3946_p1)
}
  0x27   :  { %s3982_s9 = smov 64   ;;  %s3983_s30 = smov 4  }
  0x28   :  { %82 = dma.hbm_to_vmem [thread:$0]  %s5058_s17, 4096, %s77_s0, [#allocation6], %s3982_s9, %s3982_s9, %s3983_s30  }
  0x29   :  { %3972 = dma.done.wait [#allocation3], 4096  }
  0x2a   :  { %3973 = vsyncadd [#allocation3], 4294963200 }
  0x2b   :  { %3974 = dma.done.wait [#allocation6], 4096  }
  0x2c   :  { %3975 = vsyncadd [#allocation6], 4294963200  ;;  %v3984_v0 = vmov 0   ;;  %s5068_s29 = sld [smem:[#allocation13_spill]]  ;;  %s5069_s1 = sld [smem:[#allocation12_spill]]  ;;  %vm146_vm1 = vcmask 1040384  }
  0x2d   :  { %576 = vmatprep.mubr.bf16.mxu1 %v3984_v0  ;;  %vm147_vm0 = vsmask.f32 256  ;;  %s5070_s22 = sld [smem:[#allocation11_spill]]  ;;  %s5073_s3 = sld [smem:[#allocation14_spill]]  ;;  %v3570_v55 = vld [vmem:[%s5047_s6 + $0x34] ss:$8 sps:$4 sm:$0xff]  }
  0x2e   :  { %vm4268_vm2 = vmand %vm146_vm1, %vm147_vm0  ;;  %vm1835_vm3 = vcmask 1041408   ;;  %vm1838_vm4 = vcmask 1042432   ;;  %vm2044_vm5 = vcmask 130048  }
  0x32   :  { %v3415_v1 = vld [vmem:[%s5068_s29 + $0x4] ss:$8 sps:$4 sm:$0xff]   ;;  %v3419_v3 = vld [vmem:[%s5068_s29] ss:$8 sps:$4 sm:$0xff]   ;;  %v3421_v5 = vld [vmem:[%s5068_s29 + $0x14] ss:$8 sps:$4 sm:$0xff]  }
  0x33   :  { %v3417_v2 = vld [vmem:[%s5069_s1 + $0x4] ss:$8 sps:$4 sm:$0xff]   ;;  %343 = vmatprep.subr.bf16.mxu0 %v3415_v1  ;;  %v3420_v4 = vld [vmem:[%s5069_s1] ss:$8 sps:$4 sm:$0xff]   ;;  %v3423_v6 = vld [vmem:[%s5069_s1 + $0x14] ss:$8 sps:$4 sm:$0xff]  }
  0x34   :  { %544 = vmatprep.subr.bf16.mxu1 %v3417_v2  ;;  %344 = vmatpush1.bf16.msra.mxu0 %v3419_v3  ;;  %v3425_v7 = vld [vmem:[%s5068_s29 + $0x10] ss:$8 sps:$4 sm:$0xff]   ;;  %v3427_v9 = vld [vmem:[%s5068_s29 + $0x24] ss:$8 sps:$4 sm:$0xff]   ;;  %v3431_v11 = vld [vmem:[%s5068_s29 + $0x20] ss:$8 sps:$4 sm:$0xff]  }
  0x35   :  { %545 = vmatpush1.bf16.msra.mxu1 %v3420_v4  ;;  %345 = vmatprep.subr.bf16.mxu0 %v3421_v5  ;;  %v3426_v8 = vld [vmem:[%s5069_s1 + $0x10] ss:$8 sps:$4 sm:$0xff]   ;;  %v3429_v10 = vld [vmem:[%s5069_s1 + $0x24] ss:$8 sps:$4 sm:$0xff]   ;;  %v3432_v12 = vld [vmem:[%s5069_s1 + $0x20] ss:$8 sps:$4 sm:$0xff]  }
  0x36   :  { %546 = vmatprep.subr.bf16.mxu1 %v3423_v6  ;;  %v3433_v13 = vld [vmem:[%s5068_s29 + $0x34] ss:$8 sps:$4 sm:$0xff]   ;;  %v3437_v15 = vld [vmem:[%s5068_s29 + $0x30] ss:$8 sps:$4 sm:$0xff]   ;;  %v3439_v17 = vld [vmem:[%s5068_s29 + $0x44] ss:$8 sps:$4 sm:$0xff]  }
  0x37   :  { %v3435_v14 = vld [vmem:[%s5069_s1 + $0x34] ss:$8 sps:$4 sm:$0xff]   ;;  %v3438_v16 = vld [vmem:[%s5069_s1 + $0x30] ss:$8 sps:$4 sm:$0xff]   ;;  %v3441_v18 = vld [vmem:[%s5069_s1 + $0x44] ss:$8 sps:$4 sm:$0xff]  }
  0x38   :  { %346 = vmatpush1.bf16.msra.mxu0 %v3425_v7  ;;  %v3443_v19 = vld [vmem:[%s5068_s29 + $0x40] ss:$8 sps:$4 sm:$0xff]   ;;  %v3445_v21 = vld [vmem:[%s5068_s29 + $0x54] ss:$8 sps:$4 sm:$0xff]   ;;  %v3449_v23 = vld [vmem:[%s5068_s29 + $0x50] ss:$8 sps:$4 sm:$0xff]  }
  0x39   :  { %547 = vmatpush1.bf16.msra.mxu1 %v3426_v8  ;;  %347 = vmatprep.subr.bf16.mxu0 %v3427_v9  ;;  %v3444_v20 = vld [vmem:[%s5069_s1 + $0x40] ss:$8 sps:$4 sm:$0xff]   ;;  %v3447_v22 = vld [vmem:[%s5069_s1 + $0x54] ss:$8 sps:$4 sm:$0xff]   ;;  %v3450_v24 = vld [vmem:[%s5069_s1 + $0x50] ss:$8 sps:$4 sm:$0xff]  }
  0x3a   :  { %548 = vmatprep.subr.bf16.mxu1 %v3429_v10  ;;  %v3451_v25 = vld [vmem:[%s5068_s29 + $0x64] ss:$8 sps:$4 sm:$0xff]   ;;  %v3455_v27 = vld [vmem:[%s5068_s29 + $0x60] ss:$8 sps:$4 sm:$0xff]   ;;  %v3457_v29 = vld [vmem:[%s5068_s29 + $0x74] ss:$8 sps:$4 sm:$0xff]  }
  0x3b   :  { %v3453_v26 = vld [vmem:[%s5069_s1 + $0x64] ss:$8 sps:$4 sm:$0xff]   ;;  %v3456_v28 = vld [vmem:[%s5069_s1 + $0x60] ss:$8 sps:$4 sm:$0xff]   ;;  %v3459_v30 = vld [vmem:[%s5069_s1 + $0x74] ss:$8 sps:$4 sm:$0xff]  }
  0x3c   :  { %348 = vmatpush1.bf16.msra.mxu0 %v3431_v11  ;;  %v3461_v31 = vld [vmem:[%s5068_s29 + $0x70] ss:$8 sps:$4 sm:$0xff]   ;;  %v3463_v33 = vld [vmem:[%s5068_s29 + $0x84] ss:$8 sps:$4 sm:$0xff]   ;;  %v3467_v35 = vld [vmem:[%s5068_s29 + $0x80] ss:$8 sps:$4 sm:$0xff]  }
  0x3d   :  { %549 = vmatpush1.bf16.msra.mxu1 %v3432_v12  ;;  %349 = vmatprep.subr.bf16.mxu0 %v3433_v13  ;;  %v3462_v32 = vld [vmem:[%s5069_s1 + $0x70] ss:$8 sps:$4 sm:$0xff]   ;;  %v3465_v34 = vld [vmem:[%s5069_s1 + $0x84] ss:$8 sps:$4 sm:$0xff]   ;;  %v3468_v36 = vld [vmem:[%s5069_s1 + $0x80] ss:$8 sps:$4 sm:$0xff]  }
  0x3e   :  { %550 = vmatprep.subr.bf16.mxu1 %v3435_v14  ;;  %v3469_v37 = vld [vmem:[%s5068_s29 + $0x94] ss:$8 sps:$4 sm:$0xff]   ;;  %v3473_v39 = vld [vmem:[%s5068_s29 + $0x90] ss:$8 sps:$4 sm:$0xff]   ;;  %v3475_v41 = vld [vmem:[%s5068_s29 + $0xa4] ss:$8 sps:$4 sm:$0xff]  }
  0x3f   :  { %v3471_v38 = vld [vmem:[%s5069_s1 + $0x94] ss:$8 sps:$4 sm:$0xff]   ;;  %v3474_v40 = vld [vmem:[%s5069_s1 + $0x90] ss:$8 sps:$4 sm:$0xff]   ;;  %v3477_v42 = vld [vmem:[%s5069_s1 + $0xa4] ss:$8 sps:$4 sm:$0xff]  }
  0x40   :  { %350 = vmatpush1.bf16.msra.mxu0 %v3437_v15  ;;  %v3479_v43 = vld [vmem:[%s5068_s29 + $0xa0] ss:$8 sps:$4 sm:$0xff]   ;;  %v3481_v45 = vld [vmem:[%s5068_s29 + $0xb4] ss:$8 sps:$4 sm:$0xff]   ;;  %v3485_v48 = vld [vmem:[%s5068_s29 + $0xb0] ss:$8 sps:$4 sm:$0xff]  }
  0x41   :  { %551 = vmatpush1.bf16.msra.mxu1 %v3438_v16  ;;  %351 = vmatprep.subr.bf16.mxu0 %v3439_v17  ;;  %v3480_v44 = vld [vmem:[%s5069_s1 + $0xa0] ss:$8 sps:$4 sm:$0xff]   ;;  %v3483_v46 = vld [vmem:[%s5069_s1 + $0xb4] ss:$8 sps:$4 sm:$0xff]   ;;  %v3486_v49 = vld [vmem:[%s5069_s1 + $0xb0] ss:$8 sps:$4 sm:$0xff]  }
  0x42   :  { %552 = vmatprep.subr.bf16.mxu1 %v3441_v18  ;;  %v2981_v47 = vld.sshfl [vmem:[%s5070_s22] sm:$0x33 pattern:$0x76325410]  ;;  %v3487_v51 = vld [vmem:[%s5068_s29 + $0xc4] ss:$8 sps:$4 sm:$0xff]  }
  0x43   :  { %v133_v50 = vcombine.high %v2981_v47, %v2981_v47  ;;  %v3489_v52 = vld [vmem:[%s5069_s1 + $0xc4] ss:$8 sps:$4 sm:$0xff]   ;;  %v3491_v54 = vld [vmem:[%s5068_s29 + $0xc0] ss:$8 sps:$4 sm:$0xff]   ;;  %v585_v56 = vshrl.u32 %v2981_v47, 16  ;;  %v591_v61 = vrot.slane %v2981_v47, 1 }
  0x44   :  { %352 = vmatpush1.bf16.msra.mxu0 %v3443_v19  ;;  %v3492_v57 = vld [vmem:[%s5069_s1 + $0xc0] ss:$8 sps:$4 sm:$0xff]   ;;  %v3493_v59 = vld [vmem:[%s5068_s29 + $0xd4] ss:$8 sps:$4 sm:$0xff]   ;;  %v3497_v63 = vld [vmem:[%s5068_s29 + $0xd0] ss:$8 sps:$4 sm:$0xff]  }
  0x45   :  { %553 = vmatpush1.bf16.msra.mxu1 %v3444_v20  ;;  %353 = vmatprep.subr.bf16.mxu0 %v3445_v21  ;;  %v141_v53 = vshll.u32 %v133_v50, 16  ;;  %v3495_v60 = vld [vmem:[%s5069_s1 + $0xd4] ss:$8 sps:$4 sm:$0xff]   ;;  %v4291_v1 = vsel %vm4268_vm2, %v585_v56, %v591_v61  ;;  %v3498_v2 = vld [vmem:[%s5069_s1 + $0xd0] ss:$8 sps:$4 sm:$0xff]   ;;  %v137_v7 = vshll.u32 %v2981_v47, 16 }
  0x46   :  { %554 = vmatprep.subr.bf16.mxu1 %v3447_v22  ;;  %v3499_v3 = vld [vmem:[%s5068_s29 + $0xe4] ss:$8 sps:$4 sm:$0xff]   ;;  %v3503_v5 = vld [vmem:[%s5068_s29 + $0xe0] ss:$8 sps:$4 sm:$0xff]   ;;  %v3505_v8 = vld [vmem:[%s5068_s29 + $0xf4] ss:$8 sps:$4 sm:$0xff]  }
  0x47   :  { %v143_v58 = vrot.slane %v141_v53, 1  ;;  %v3501_v4 = vld [vmem:[%s5069_s1 + $0xe4] ss:$8 sps:$4 sm:$0xff]   ;;  %v3504_v6 = vld [vmem:[%s5069_s1 + $0xe0] ss:$8 sps:$4 sm:$0xff]   ;;  %v139_v12 = vrot.slane %v137_v7, 1 }
  0x48   :  { %354 = vmatpush1.bf16.msra.mxu0 %v3449_v23  ;;  %v3507_v9 = vld [vmem:[%s5069_s1 + $0xf4] ss:$8 sps:$4 sm:$0xff]   ;;  %v3509_v10 = vld [vmem:[%s5068_s29 + $0xf0] ss:$8 sps:$4 sm:$0xff]   ;;  %v3513_v13 = vld [vmem:[%s5073_s3 + $0x4] ss:$8 sps:$4 sm:$0xff]  }
  0x49   :  { %555 = vmatpush1.bf16.msra.mxu1 %v3450_v24  ;;  %355 = vmatprep.subr.bf16.mxu0 %v3451_v25  ;;  %v4283_v62 = vsel %vm4268_vm2, %v133_v50, %v143_v58  ;;  %v3510_v11 = vld [vmem:[%s5069_s1 + $0xf0] ss:$8 sps:$4 sm:$0xff]   ;;  %v587_v14 = vshrl.u32 %v133_v50, 16  ;;  %v592_v15 = vrot.slane %v133_v50, 1  ;;  %v3511_v16 = vld [vmem:[%s5073_s3] ss:$8 sps:$4 sm:$0xff]   ;;  %v4328_v17 = vsel %vm4268_vm2, %v2981_v47, %v139_v12 }
  0x4a   :  { %556 = vmatprep.subr.bf16.mxu1 %v3453_v26  ;;  %375 = vmatprep.mubr.bf16.mxu0 %v4283_v62  ;;  %v3516_v18 = vld [vmem:[%s5073_s3 + $0x14] ss:$8 sps:$4 sm:$0xff]   ;;  %v3514_v20 = vld [vmem:[%s5073_s3 + $0x10] ss:$8 sps:$4 sm:$0xff]   ;;  %v3519_v21 = vld [vmem:[%s5073_s3 + $0x24] ss:$8 sps:$4 sm:$0xff]  }
  0x4b   :  { %v596_v19 = vsel %vm4268_vm2, %v587_v14, %v592_v15  ;;  %v3517_v22 = vld [vmem:[%s5073_s3 + $0x20] ss:$8 sps:$4 sm:$0xff]   ;;  %v3522_v23 = vld [vmem:[%s5073_s3 + $0x34] ss:$8 sps:$4 sm:$0xff]   ;;  %v3520_v24 = vld [vmem:[%s5073_s3 + $0x30] ss:$8 sps:$4 sm:$0xff]  }
  0x4c   :  { %356 = vmatpush1.bf16.msra.mxu0 %v3455_v27  ;;  %v3525_v25 = vld [vmem:[%s5073_s3 + $0x44] ss:$8 sps:$4 sm:$0xff]   ;;  %v3523_v26 = vld [vmem:[%s5073_s3 + $0x40] ss:$8 sps:$4 sm:$0xff]   ;;  %v3528_v27 = vld [vmem:[%s5073_s3 + $0x54] ss:$8 sps:$4 sm:$0xff]  }
  0x4d   :  { %557 = vmatpush1.bf16.msra.mxu1 %v3456_v28  ;;  %357 = vmatprep.subr.bf16.mxu0 %v3457_v29  ;;  %v3526_v28 = vld [vmem:[%s5073_s3 + $0x50] ss:$8 sps:$4 sm:$0xff]   ;;  %v3531_v29 = vld [vmem:[%s5073_s3 + $0x64] ss:$8 sps:$4 sm:$0xff]   ;;  %v3558_v47 = vld [vmem:[%s5073_s3 + $0xf4] ss:$8 sps:$4 sm:$0xff]  }
  0x4e   :  { %558 = vmatprep.subr.bf16.mxu1 %v3459_v30  ;;  %v3529_v30 = vld [vmem:[%s5073_s3 + $0x60] ss:$8 sps:$4 sm:$0xff]   ;;  %v3561_v50 = vld [vmem:[%s5047_s6 + $0x4] ss:$8 sps:$4 sm:$0xff]   ;;  %v3568_v56 = vld [vmem:[%s5047_s6 + $0x30] ss:$8 sps:$4 sm:$0xff]  }
  0x4f   :  { %v3567_v53 = vld [vmem:[%s5047_s6 + $0x24] ss:$8 sps:$4 sm:$0xff]   ;;  %v3571_v58 = vld [vmem:[%s5047_s6 + $0x40] ss:$8 sps:$4 sm:$0xff]   ;;  %v3598_v14 = vld [vmem:[%s5047_s6 + $0xd0] ss:$8 sps:$4 sm:$0xff]  }
  0x50   :  { %358 = vmatpush1.bf16.msra.mxu0 %v3461_v31  ;;  %v3534_v31 = vld [vmem:[%s5073_s3 + $0x74] ss:$8 sps:$4 sm:$0xff]   ;;  %v3579_v61 = vld [vmem:[%s5047_s6 + $0x64] ss:$8 sps:$4 sm:$0xff]   ;;  %v3595_v12 = vld [vmem:[%s5047_s6 + $0xc0] ss:$8 sps:$4 sm:$0xff]  }
  0x51   :  { %559 = vmatpush1.bf16.msra.mxu1 %v3462_v32  ;;  %359 = vmatprep.subr.bf16.mxu0 %v3463_v33  ;;  %v3532_v32 = vld [vmem:[%s5073_s3 + $0x70] ss:$8 sps:$4 sm:$0xff]   ;;  %v3537_v33 = vld [vmem:[%s5073_s3 + $0x84] ss:$8 sps:$4 sm:$0xff]   ;;  %s3985_s29 = smov [#allocation7]  }
  0x52   :  { %560 = vmatprep.subr.bf16.mxu1 %v3465_v34  ;;  %v3535_v34 = vld [vmem:[%s5073_s3 + $0x80] ss:$8 sps:$4 sm:$0xff]   ;;  %v3591_v7 = vld [vmem:[%s5047_s6 + $0xa4] ss:$8 sps:$4 sm:$0xff]   ;;  %s2971_s1 = sshll.u32 %s3985_s29, 4  ;;  %s2972_s1 = int_to_ptr.vmem [resolvable:$true] %s2971_s1 }
  0x53   :  { %v3603_v15 = vld [vmem:[%s5047_s6 + $0xe4] ss:$8 sps:$4 sm:$0xff]   ;;  %p3955_p3 = scmp.lt.s32.totalorder %s2972_s1, %s2972_s1 }
  0x54   :  { %360 = vmatpush1.bf16.msra.mxu0 %v3467_v35  ;;  %v3540_v35 = vld [vmem:[%s5073_s3 + $0x94] ss:$8 sps:$4 sm:$0xff]  }
  0x55   :  { %561 = vmatpush1.bf16.msra.mxu1 %v3468_v36  ;;  %361 = vmatprep.subr.bf16.mxu0 %v3469_v37  ;;  %v3538_v36 = vld [vmem:[%s5073_s3 + $0x90] ss:$8 sps:$4 sm:$0xff]   ;;  %v3543_v37 = vld [vmem:[%s5073_s3 + $0xa4] ss:$8 sps:$4 sm:$0xff]  }
  0x56   :  { %562 = vmatprep.subr.bf16.mxu1 %v3471_v38  ;;  %v3541_v38 = vld [vmem:[%s5073_s3 + $0xa0] ss:$8 sps:$4 sm:$0xff]  }
  0x58   :  { %362 = vmatpush1.bf16.msra.mxu0 %v3473_v39  ;;  %v3546_v39 = vld [vmem:[%s5073_s3 + $0xb4] ss:$8 sps:$4 sm:$0xff]  }
  0x59   :  { %563 = vmatpush1.bf16.msra.mxu1 %v3474_v40  ;;  %363 = vmatprep.subr.bf16.mxu0 %v3475_v41  ;;  %v3544_v40 = vld [vmem:[%s5073_s3 + $0xb0] ss:$8 sps:$4 sm:$0xff]   ;;  %v3549_v41 = vld [vmem:[%s5073_s3 + $0xc4] ss:$8 sps:$4 sm:$0xff]  }
  0x5a   :  { %564 = vmatprep.subr.bf16.mxu1 %v3477_v42  ;;  %v3547_v42 = vld [vmem:[%s5073_s3 + $0xc0] ss:$8 sps:$4 sm:$0xff]  }
  0x5c   :  { %364 = vmatpush1.bf16.msra.mxu0 %v3479_v43  ;;  %v3552_v43 = vld [vmem:[%s5073_s3 + $0xd4] ss:$8 sps:$4 sm:$0xff]  }
  0x5d   :  { %565 = vmatpush1.bf16.msra.mxu1 %v3480_v44  ;;  %365 = vmatprep.subr.bf16.mxu0 %v3481_v45  ;;  %v3550_v44 = vld [vmem:[%s5073_s3 + $0xd0] ss:$8 sps:$4 sm:$0xff]   ;;  %v3555_v45 = vld [vmem:[%s5073_s3 + $0xe4] ss:$8 sps:$4 sm:$0xff]  }
  0x5e   :  { %566 = vmatprep.subr.bf16.mxu1 %v3483_v46  ;;  %v3553_v46 = vld [vmem:[%s5073_s3 + $0xe0] ss:$8 sps:$4 sm:$0xff]  }
  0x60   :  { %366 = vmatpush1.bf16.msra.mxu0 %v3485_v48  ;;  %v3556_v48 = vld [vmem:[%s5073_s3 + $0xf0] ss:$8 sps:$4 sm:$0xff]   ;;  %s3950_s3 = scalar_lea.vmem %s2972_s1, 32 }
  0x61   :  { %567 = vmatpush1.bf16.msra.mxu1 %v3486_v49  ;;  %367 = vmatprep.subr.bf16.mxu0 %v3487_v51  ;;  %v3559_v49 = vld [vmem:[%s5047_s6] ss:$8 sps:$4 sm:$0xff]   ;;  %v3564_v51 = vld [vmem:[%s5047_s6 + $0x14] ss:$8 sps:$4 sm:$0xff]   ;;  %p3951_p2 = scmp.ne.s32.totalorder %s2972_s1, %s3950_s3  ;;  %p3956_p4 = scmp.lt.s32.totalorder %s3950_s3, %s3950_s3 }
  0x62   :  { %568 = vmatprep.subr.bf16.mxu1 %v3489_v52  ;;  %v3562_v52 = vld [vmem:[%s5047_s6 + $0x10] ss:$8 sps:$4 sm:$0xff]  }
  0x63   :  { %p3957_p5 = por %p3956_p4, %p3955_p3 }
  0x64   :  { %368 = vmatpush1.bf16.msra.mxu0 %v3491_v54  ;;  %v3565_v54 = vld [vmem:[%s5047_s6 + $0x20] ss:$8 sps:$4 sm:$0xff]  }
  0x65   :  { %569 = vmatpush1.bf16.msra.mxu1 %v3492_v57  ;;  %369 = vmatprep.subr.bf16.mxu0 %v3493_v59  ;;  %v3573_v57 = vld [vmem:[%s5047_s6 + $0x44] ss:$8 sps:$4 sm:$0xff]   ;;  %v3576_v59 = vld [vmem:[%s5047_s6 + $0x54] ss:$8 sps:$4 sm:$0xff]   ;;  %p3958_p6 = pnand %p3957_p5, %p3951_p2 }
  0x66   :  { %570 = vmatprep.subr.bf16.mxu1 %v3495_v60  ;;  %v3574_v60 = vld [vmem:[%s5047_s6 + $0x50] ss:$8 sps:$4 sm:$0xff]  }
  0x68   :  { %370 = vmatpush1.bf16.msra.mxu0 %v3497_v63  ;;  %v3577_v63 = vld [vmem:[%s5047_s6 + $0x60] ss:$8 sps:$4 sm:$0xff]  }
  0x69   :  { %571 = vmatpush1.bf16.msra.mxu1 %v3498_v2  ;;  %371 = vmatprep.subr.bf16.mxu0 %v3499_v3  ;;  %v3580_v2 = vld [vmem:[%s5047_s6 + $0x70] ss:$8 sps:$4 sm:$0xff]   ;;  %v3585_v3 = vld [vmem:[%s5047_s6 + $0x84] ss:$8 sps:$4 sm:$0xff]  }
  0x6a   :  { %572 = vmatprep.subr.bf16.mxu1 %v3501_v4  ;;  %v3583_v4 = vld [vmem:[%s5047_s6 + $0x80] ss:$8 sps:$4 sm:$0xff]  }
  0x6c   :  { %372 = vmatpush1.bf16.msra.mxu0 %v3503_v5  ;;  %v3588_v5 = vld [vmem:[%s5047_s6 + $0x94] ss:$8 sps:$4 sm:$0xff]  }
  0x6d   :  { %573 = vmatpush1.bf16.msra.mxu1 %v3504_v6  ;;  %373 = vmatprep.subr.bf16.mxu0 %v3505_v8  ;;  %v3586_v6 = vld [vmem:[%s5047_s6 + $0x90] ss:$8 sps:$4 sm:$0xff]   ;;  %v3589_v8 = vld [vmem:[%s5047_s6 + $0xa0] ss:$8 sps:$4 sm:$0xff]  }
  0x6e   :  { %574 = vmatprep.subr.bf16.mxu1 %v3507_v9  ;;  %v3594_v9 = vld [vmem:[%s5047_s6 + $0xb4] ss:$8 sps:$4 sm:$0xff]  }
  0x70   :  { %374 = vmatpush1.bf16.msra.mxu0 %v3509_v10  ;;  %v3592_v10 = vld [vmem:[%s5047_s6 + $0xb0] ss:$8 sps:$4 sm:$0xff]  }
  0x71   :  { %575 = vmatpush1.bf16.msra.mxu1 %v3510_v11  ;;  %789 = vmatprep.subr.bf16.mxu0 %v3513_v13  ;;  %v3597_v11 = vld [vmem:[%s5047_s6 + $0xc4] ss:$8 sps:$4 sm:$0xff]   ;;  %v3600_v13 = vld [vmem:[%s5047_s6 + $0xd4] ss:$8 sps:$4 sm:$0xff]  }
  0x72   :  { %1074 = vmatprep.subr.bf16.mxu1 %v3561_v50 }
  0x73   :  { %376 = vmatmul.mubr.bf16.vlgmr.msra.gmra.mrb[0].mxu0 %v4328_v17 }
  0x74   :  { %577 = vmatmul.mubr.bf16.vlgmr.msra.gmra.mrb[0].mxu1 %v3984_v0  ;;  %790 = vmatpush1.bf16.msra.mxu0 %v3511_v16  ;;  %v3601_v16 = vld [vmem:[%s5047_s6 + $0xe0] ss:$8 sps:$4 sm:$0xff]  }
  0x75   :  { %821 = vmatprep.mubr.bf16.mxu0 %v596_v19  ;;  %791 = vmatprep.subr.bf16.mxu0 %v3516_v18  ;;  %v3606_v18 = vld [vmem:[%s5047_s6 + $0xf4] ss:$8 sps:$4 sm:$0xff]   ;;  %v3604_v19 = vld [vmem:[%s5047_s6 + $0xf0] ss:$8 sps:$4 sm:$0xff]  }
  0x76   :  { %1075 = vmatpush1.bf16.msra.mxu1 %v3559_v49  ;;  %v3607_v49 = vld [vmem:[%s5046_s5] ss:$8 sps:$4 sm:$0xff]  }
  0x77   :  { %1076 = vmatprep.subr.bf16.mxu1 %v3564_v51  ;;  %v3612_v51 = vld [vmem:[%s5046_s5 + $0x14] ss:$8 sps:$4 sm:$0xff]  }
  0x78   :  { %792 = vmatpush1.bf16.msra.mxu0 %v3514_v20  ;;  %v3609_v20 = vld [vmem:[%s5046_s5 + $0x4] ss:$8 sps:$4 sm:$0xff]  }
  0x79   :  { %793 = vmatprep.subr.bf16.mxu0 %v3519_v21 }
  0x7a   :  { %1077 = vmatpush1.bf16.msra.mxu1 %v3562_v52  ;;  %v3610_v52 = vld [vmem:[%s5046_s5 + $0x10] ss:$8 sps:$4 sm:$0xff]  }
  0x7b   :  { %1078 = vmatprep.subr.bf16.mxu1 %v3567_v53  ;;  %v3615_v53 = vld [vmem:[%s5046_s5 + $0x24] ss:$8 sps:$4 sm:$0xff]  }
  0x7c   :  { %794 = vmatpush1.bf16.msra.mxu0 %v3517_v22 }
  0x7d   :  { %795 = vmatprep.subr.bf16.mxu0 %v3522_v23 }
  0x7e   :  { %1079 = vmatpush1.bf16.msra.mxu1 %v3565_v54  ;;  %v3613_v54 = vld [vmem:[%s5046_s5 + $0x20] ss:$8 sps:$4 sm:$0xff]  }
  0x7f   :  { %1080 = vmatprep.subr.bf16.mxu1 %v3570_v55  ;;  %v3618_v55 = vld [vmem:[%s5046_s5 + $0x34] ss:$8 sps:$4 sm:$0xff]  }
  0x80   :  { %796 = vmatpush1.bf16.msra.mxu0 %v3520_v24 }
  0x81   :  { %797 = vmatprep.subr.bf16.mxu0 %v3525_v25 }
  0x82   :  { %1081 = vmatpush1.bf16.msra.mxu1 %v3568_v56  ;;  %v3616_v56 = vld [vmem:[%s5046_s5 + $0x30] ss:$8 sps:$4 sm:$0xff]  }
  0x83   :  { %1082 = vmatprep.subr.bf16.mxu1 %v3573_v57  ;;  %v3621_v57 = vld [vmem:[%s5046_s5 + $0x44] ss:$8 sps:$4 sm:$0xff]  }
  0x84   :  { %798 = vmatpush1.bf16.msra.mxu0 %v3523_v26 }
  0x85   :  { %799 = vmatprep.subr.bf16.mxu0 %v3528_v27 }
  0x86   :  { %1083 = vmatpush1.bf16.msra.mxu1 %v3571_v58  ;;  %v3619_v58 = vld [vmem:[%s5046_s5 + $0x40] ss:$8 sps:$4 sm:$0xff]  }
  0x87   :  { %1084 = vmatprep.subr.bf16.mxu1 %v3576_v59  ;;  %v3624_v59 = vld [vmem:[%s5046_s5 + $0x54] ss:$8 sps:$4 sm:$0xff]  }
  0x88   :  { %800 = vmatpush1.bf16.msra.mxu0 %v3526_v28 }
  0x89   :  { %801 = vmatprep.subr.bf16.mxu0 %v3531_v29 }
  0x8a   :  { %1085 = vmatpush1.bf16.msra.mxu1 %v3574_v60  ;;  %v3622_v60 = vld [vmem:[%s5046_s5 + $0x50] ss:$8 sps:$4 sm:$0xff]  }
  0x8b   :  { %1086 = vmatprep.subr.bf16.mxu1 %v3579_v61  ;;  %v3627_v61 = vld [vmem:[%s5046_s5 + $0x64] ss:$8 sps:$4 sm:$0xff]  }
  0x8c   :  { %802 = vmatpush1.bf16.msra.mxu0 %v3529_v30 }
  0x8d   :  { %803 = vmatprep.subr.bf16.mxu0 %v3534_v31  ;;  %v834_v31 = vlaneseq }
  0x8e   :  { %1087 = vmatpush1.bf16.msra.mxu1 %v3577_v63  ;;  %v3625_v63 = vld [vmem:[%s5046_s5 + $0x60] ss:$8 sps:$4 sm:$0xff]  }
  0x90   :  { %804 = vmatpush1.bf16.msra.mxu0 %v3532_v32  ;;  %v4524_v32 = vshrl.u32 %v834_v31, 7  ;;  %v3666_v31 = vld [vmem:[%s5048_s7 + $0x34] ss:$8 sps:$4 sm:$0xff]  }
  0x91   :  { %805 = vmatprep.subr.bf16.mxu0 %v3537_v33 }
  0x92   :  { %v4527_v33 = vsub.s32 0, %v4524_v32 }
  0x94   :  { %806 = vmatpush1.bf16.msra.mxu0 %v3535_v34  ;;  %v832_v34 = vld [vmem:[%s5045_s4] sm:$0x3] }
  0x95   :  { %807 = vmatprep.subr.bf16.mxu0 %v3540_v35  ;;  %v4533_v35 = vsub.s32 1, %v4524_v32 }
  0x98   :  { %808 = vmatpush1.bf16.msra.mxu0 %v3538_v36  ;;  %v837_v36 = vrot.slane %v832_v34, %v4527_v33 }
  0x99   :  { %809 = vmatprep.subr.bf16.mxu0 %v3543_v37 }
  0x9c   :  { %810 = vmatpush1.bf16.msra.mxu0 %v3541_v38  ;;  %v841_v38 = vrot.slane %v832_v34, %v4533_v35  ;;  %v3756_v34 = vld [vmem:[%s5052_s11 + $0x10] sm:$0xff]  }
  0x9d   :  { %811 = vmatprep.subr.bf16.mxu0 %v3546_v39 }
  0xa0   :  { %812 = vmatpush1.bf16.msra.mxu0 %v3544_v40 }
  0xa1   :  { %813 = vmatprep.subr.bf16.mxu0 %v3549_v41 }
  0xa4   :  { %814 = vmatpush1.bf16.msra.mxu0 %v3547_v42 }
  0xa5   :  { %815 = vmatprep.subr.bf16.mxu0 %v3552_v43 }
  0xa8   :  { %816 = vmatpush1.bf16.msra.mxu0 %v3550_v44 }
  0xa9   :  { %817 = vmatprep.subr.bf16.mxu0 %v3555_v45 }
  0xac   :  { %818 = vmatpush1.bf16.msra.mxu0 %v3553_v46 }
  0xad   :  { %819 = vmatprep.subr.bf16.mxu0 %v3558_v47 }
  0xb0   :  { %820 = vmatpush1.bf16.msra.mxu0 %v3556_v48 }
  0xb3   :  { %822 = vmatmul.mubr.bf16.vlgmr.msra.gmra.mrb[4].mxu0 %v4291_v1  ;;  %v3582_v1 = vld [vmem:[%s5047_s6 + $0x74] ss:$8 sps:$4 sm:$0xff]  }
  0xb4   :  { %1088 = vmatprep.subr.bf16.mxu1 %v3582_v1  ;;  %v3630_v1 = vld [vmem:[%s5046_s5 + $0x74] ss:$8 sps:$4 sm:$0xff]  }
  0xb5   :  { %1089 = vmatpush1.bf16.msra.mxu1 %v3580_v2  ;;  %v3628_v2 = vld [vmem:[%s5046_s5 + $0x70] ss:$8 sps:$4 sm:$0xff]  }
  0xb6   :  { %1090 = vmatprep.subr.bf16.mxu1 %v3585_v3  ;;  %v3633_v3 = vld [vmem:[%s5046_s5 + $0x84] ss:$8 sps:$4 sm:$0xff]  }
  0xb9   :  { %1091 = vmatpush1.bf16.msra.mxu1 %v3583_v4  ;;  %v3631_v4 = vld [vmem:[%s5046_s5 + $0x80] ss:$8 sps:$4 sm:$0xff]  }
  0xba   :  { %1092 = vmatprep.subr.bf16.mxu1 %v3588_v5  ;;  %v3636_v5 = vld [vmem:[%s5046_s5 + $0x94] ss:$8 sps:$4 sm:$0xff]  }
  0xbd   :  { %1093 = vmatpush1.bf16.msra.mxu1 %v3586_v6  ;;  %v3634_v6 = vld [vmem:[%s5046_s5 + $0x90] ss:$8 sps:$4 sm:$0xff]  }
  0xbe   :  { %1094 = vmatprep.subr.bf16.mxu1 %v3591_v7  ;;  %v3639_v7 = vld [vmem:[%s5046_s5 + $0xa4] ss:$8 sps:$4 sm:$0xff]  }
  0xc1   :  { %1095 = vmatpush1.bf16.msra.mxu1 %v3589_v8  ;;  %v3637_v8 = vld [vmem:[%s5046_s5 + $0xa0] ss:$8 sps:$4 sm:$0xff]  }
  0xc2   :  { %1096 = vmatprep.subr.bf16.mxu1 %v3594_v9  ;;  %v3642_v9 = vld [vmem:[%s5046_s5 + $0xb4] ss:$8 sps:$4 sm:$0xff]  }
  0xc5   :  { %1097 = vmatpush1.bf16.msra.mxu1 %v3592_v10  ;;  %v3640_v10 = vld [vmem:[%s5046_s5 + $0xb0] ss:$8 sps:$4 sm:$0xff]  }
  0xc6   :  { %1098 = vmatprep.subr.bf16.mxu1 %v3597_v11  ;;  %v3645_v11 = vld [vmem:[%s5046_s5 + $0xc4] ss:$8 sps:$4 sm:$0xff]  }
  0xc9   :  { %1099 = vmatpush1.bf16.msra.mxu1 %v3595_v12  ;;  %v3643_v12 = vld [vmem:[%s5046_s5 + $0xc0] ss:$8 sps:$4 sm:$0xff]  }
  0xca   :  { %1100 = vmatprep.subr.bf16.mxu1 %v3600_v13  ;;  %v3648_v13 = vld [vmem:[%s5046_s5 + $0xd4] ss:$8 sps:$4 sm:$0xff]  }
  0xcd   :  { %1101 = vmatpush1.bf16.msra.mxu1 %v3598_v14  ;;  %v3646_v14 = vld [vmem:[%s5046_s5 + $0xd0] ss:$8 sps:$4 sm:$0xff]  }
  0xce   :  { %1102 = vmatprep.subr.bf16.mxu1 %v3603_v15  ;;  %v3651_v15 = vld [vmem:[%s5046_s5 + $0xe4] ss:$8 sps:$4 sm:$0xff]  }
  0xd1   :  { %1103 = vmatpush1.bf16.msra.mxu1 %v3601_v16  ;;  %v3649_v16 = vld [vmem:[%s5046_s5 + $0xe0] ss:$8 sps:$4 sm:$0xff]  }
  0xd2   :  { %1104 = vmatprep.subr.bf16.mxu1 %v3606_v18  ;;  %v3654_v18 = vld [vmem:[%s5046_s5 + $0xf4] ss:$8 sps:$4 sm:$0xff]  }
  0xd5   :  { %1105 = vmatpush1.bf16.msra.mxu1 %v3604_v19  ;;  %v3652_v19 = vld [vmem:[%s5046_s5 + $0xf0] ss:$8 sps:$4 sm:$0xff]  }
  0xd6   :  { %1275 = vmatprep.subr.bf16.mxu1 %v3609_v20  ;;  %v3657_v20 = vld [vmem:[%s5048_s7 + $0x4] ss:$8 sps:$4 sm:$0xff]  }
 0x146   :  { %v377_v21 = vpop.f32.mrb[0].mxu0 }
 0x147   :  { %v578_v22 = vpop.f32.mrb[0].mxu1  ;;  %v379_v24 = vpop.f32.mrb[1].mxu0 }
 0x148   :  { %v579_v23 = vadd.f32 %v578_v22, %v377_v21  ;;  %v580_v25 = vpop.f32.mrb[1].mxu1  ;;  %v381_v27 = vpop.f32.mrb[2].mxu0  ;;  %v3655_v21 = vld [vmem:[%s5048_s7] ss:$8 sps:$4 sm:$0xff]   ;;  %v3660_v22 = vld [vmem:[%s5048_s7 + $0x14] ss:$8 sps:$4 sm:$0xff]  }
 0x149   :  { %v581_v26 = vadd.f32 %v580_v25, %v379_v24  ;;  %v582_v28 = vpop.f32.mrb[2].mxu1  ;;  %v382_v29 = vpop.f32.mrb[3].mxu0  ;;  %v3752_v24 = vld [vmem:[%s5052_s11] sm:$0xff]   ;;  %v3753_v25 = vld [vmem:[%s5052_s11 + $0x48] sm:$0xff]  }
 0x14a   :  { %v583_v30 = vpop.f32.mrb[3].mxu1  ;;  %v3663_v27 = vld [vmem:[%s5048_s7 + $0x24] ss:$8 sps:$4 sm:$0xff]   ;;  %v3755_v29 = vld [vmem:[%s5052_s11 + $0x50] sm:$0xff]  }
 0x14b   :  { %v3754_v28 = vld [vmem:[%s5052_s11 + $0x8] sm:$0xff]  }
 0x14c   :  { %v3661_v30 = vld [vmem:[%s5048_s7 + $0x20] ss:$8 sps:$4 sm:$0xff]  }
 0x186   :  { %v823_v37 = vpop.f32.mrb[4].mxu0 }
 0x187   :  { %v830_v39 = vadd.f32 %v823_v37, %v579_v23  ;;  %v825_v40 = vpop.f32.mrb[5].mxu0  ;;  %v3751_v23 = vld [vmem:[%s5052_s11 + $0x40] sm:$0xff]   ;;  %v3664_v37 = vld [vmem:[%s5048_s7 + $0x30] ss:$8 sps:$4 sm:$0xff]  }
 0x188   :  { %v831_v41 = vadd.f32 %v825_v40, %v581_v26  ;;  %v827_v42 = vpop.f32.mrb[6].mxu0  ;;  %v3658_v26 = vld [vmem:[%s5048_s7 + $0x10] ss:$8 sps:$4 sm:$0xff]   ;;  %3325 = vmatprep.subr.bf16.mxu0 %v3751_v23  ;;  %v3759_v40 = vld [vmem:[%s5052_s11 + $0x60] sm:$0xff]  }
 0x189   :  { %v844_v43 = vadd.f32 %v837_v36, %v830_v39  ;;  %v828_v44 = vpop.f32.mrb[7].mxu0  ;;  %3326 = vmatpush3.bf16.msra.mxu0 %v3752_v24  ;;  %v3757_v36 = vld [vmem:[%s5052_s11 + $0x58] sm:$0xff]   ;;  %v3735_v23 = vld [vmem:[#allocation2 + $0xa4] ss:$8 sps:$4 sm:$0xff]   ;;  %v3733_v24 = vld [vmem:[#allocation2 + $0xa0] ss:$8 sps:$4 sm:$0xff]  }
 0x18a   :  { %v845_v45 = vadd.f32 %v841_v38, %v831_v41  ;;  %3327 = vmatprep.subr.bf16.mxu0 %v3753_v25  ;;  %v3669_v38 = vld [vmem:[%s5048_s7 + $0x44] ss:$8 sps:$4 sm:$0xff]   ;;  %v3758_v39 = vld [vmem:[%s5052_s11 + $0x18] sm:$0xff]   ;;  %v3667_v41 = vld [vmem:[%s5048_s7 + $0x40] ss:$8 sps:$4 sm:$0xff]  }
 0x18b   :  { %v846_v46 = vmax.f32 %v844_v43, 0.0  ;;  %v3672_v42 = vld [vmem:[%s5048_s7 + $0x54] ss:$8 sps:$4 sm:$0xff]   ;;  %v3760_v43 = vld [vmem:[%s5052_s11 + $0x20] sm:$0xff]   ;;  %v3670_v44 = vld [vmem:[%s5048_s7 + $0x50] ss:$8 sps:$4 sm:$0xff]  }
 0x18c   :  { %v847_v47 = vmax.f32 %v845_v45, 0.0  ;;  %v3675_v45 = vld [vmem:[%s5048_s7 + $0x64] ss:$8 sps:$4 sm:$0xff]   ;;  %v3738_v25 = vld [vmem:[#allocation2 + $0xb4] ss:$8 sps:$4 sm:$0xff]  }
 0x18d   :  { %v848_v50 = vpack.c.bf16 %v846_v46, %v846_v46  ;;  %3328 = vmatpush3.bf16.msra.mxu0 %v3754_v28  ;;  %v3673_v46 = vld [vmem:[%s5048_s7 + $0x60] ss:$8 sps:$4 sm:$0xff]  }
 0x18e   :  { %v849_v48 = vpack.c.bf16 %v847_v47, %v847_v47  ;;  %3329 = vmatprep.subr.bf16.mxu0 %v3755_v29  ;;  %v3678_v47 = vld [vmem:[%s5048_s7 + $0x74] ss:$8 sps:$4 sm:$0xff]   ;;  %v3739_v28 = vld [vmem:[#allocation2 + $0xc0] ss:$8 sps:$4 sm:$0xff]  }
 0x18f   :  { %v3744_v29 = vld [vmem:[#allocation2 + $0xd4] ss:$8 sps:$4 sm:$0xff]  }
 0x190   :  { %1106 = vmatprep.mubr.bf16.mxu1 %v849_v48  ;;  %v3676_v48 = vld [vmem:[%s5048_s7 + $0x70] ss:$8 sps:$4 sm:$0xff]  }
 0x191   :  { %1107 = vmatmul.mubr.bf16.vlgmr.msra.gmra.mrb[4].mxu1 %v848_v50  ;;  %3330 = vmatpush3.bf16.msra.mxu0 %v3756_v34  ;;  %v3679_v50 = vld [vmem:[%s5048_s7 + $0x80] ss:$8 sps:$4 sm:$0xff]  }
 0x192   :  { %1276 = vmatpush1.bf16.msra.mxu1 %v3607_v49  ;;  %1307 = vmatprep.mubr.bf16.mxu1 %v3984_v0  ;;  %v3681_v49 = vld [vmem:[%s5048_s7 + $0x84] ss:$8 sps:$4 sm:$0xff]   ;;  %v3745_v34 = vld [vmem:[#allocation2 + $0xe0] ss:$8 sps:$4 sm:$0xff]  }
 0x193   :  { %1277 = vmatprep.subr.bf16.mxu1 %v3612_v51  ;;  %3331 = vmatprep.subr.bf16.mxu0 %v3757_v36  ;;  %v3684_v51 = vld [vmem:[%s5048_s7 + $0x94] ss:$8 sps:$4 sm:$0xff]  }
 0x194   :  { %v3750_v36 = vld [vmem:[#allocation2 + $0xf4] ss:$8 sps:$4 sm:$0xff]  }
 0x195   :  { %3332 = vmatpush3.bf16.msra.mxu0 %v3758_v39  ;;  %v3762_v39 = vld [vmem:[%s5052_s11 + $0x28] sm:$0xff]  }
 0x196   :  { %1278 = vmatpush1.bf16.msra.mxu1 %v3610_v52  ;;  %3333 = vmatprep.subr.bf16.mxu0 %v3759_v40  ;;  %v3682_v52 = vld [vmem:[%s5048_s7 + $0x90] ss:$8 sps:$4 sm:$0xff]  }
 0x197   :  { %1279 = vmatprep.subr.bf16.mxu1 %v3615_v53  ;;  %v3687_v53 = vld [vmem:[%s5048_s7 + $0xa4] ss:$8 sps:$4 sm:$0xff]   ;;  %v3763_v40 = vld [vmem:[%s5052_s11 + $0x70] sm:$0xff]  }
 0x199   :  { %3334 = vmatpush3.bf16.msra.mxu0 %v3760_v43  ;;  %v1551_v43 = vld [vmem:[%s5049_s8] sm:$0x3] }
 0x19a   :  { %1280 = vmatpush1.bf16.msra.mxu1 %v3613_v54  ;;  %v3685_v54 = vld [vmem:[%s5048_s7 + $0xa0] ss:$8 sps:$4 sm:$0xff]  }
 0x19b   :  { %1281 = vmatprep.subr.bf16.mxu1 %v3618_v55  ;;  %v3690_v55 = vld [vmem:[%s5048_s7 + $0xb4] ss:$8 sps:$4 sm:$0xff]  }
 0x19e   :  { %1282 = vmatpush1.bf16.msra.mxu1 %v3616_v56  ;;  %v3688_v56 = vld [vmem:[%s5048_s7 + $0xb0] ss:$8 sps:$4 sm:$0xff]  }
 0x19f   :  { %1283 = vmatprep.subr.bf16.mxu1 %v3621_v57  ;;  %v3693_v57 = vld [vmem:[%s5048_s7 + $0xc4] ss:$8 sps:$4 sm:$0xff]  }
 0x1a2   :  { %1284 = vmatpush1.bf16.msra.mxu1 %v3619_v58  ;;  %v3691_v58 = vld [vmem:[%s5048_s7 + $0xc0] ss:$8 sps:$4 sm:$0xff]  }
 0x1a3   :  { %1285 = vmatprep.subr.bf16.mxu1 %v3624_v59  ;;  %v3696_v59 = vld [vmem:[%s5048_s7 + $0xd4] ss:$8 sps:$4 sm:$0xff]  }
 0x1a6   :  { %1286 = vmatpush1.bf16.msra.mxu1 %v3622_v60  ;;  %v3694_v60 = vld [vmem:[%s5048_s7 + $0xd0] ss:$8 sps:$4 sm:$0xff]  }
 0x1a7   :  { %1287 = vmatprep.subr.bf16.mxu1 %v3627_v61  ;;  %v3699_v61 = vld [vmem:[%s5048_s7 + $0xe4] ss:$8 sps:$4 sm:$0xff]  }
 0x1aa   :  { %1288 = vmatpush1.bf16.msra.mxu1 %v3625_v63  ;;  %v3697_v63 = vld [vmem:[%s5048_s7 + $0xe0] ss:$8 sps:$4 sm:$0xff]  }
 0x1ab   :  { %1289 = vmatprep.subr.bf16.mxu1 %v3630_v1  ;;  %v3702_v1 = vld [vmem:[%s5048_s7 + $0xf4] ss:$8 sps:$4 sm:$0xff]  }
 0x1ae   :  { %1290 = vmatpush1.bf16.msra.mxu1 %v3628_v2  ;;  %v3700_v2 = vld [vmem:[%s5048_s7 + $0xf0] ss:$8 sps:$4 sm:$0xff]  }
 0x1af   :  { %1291 = vmatprep.subr.bf16.mxu1 %v3633_v3  ;;  %v3705_v3 = vld [vmem:[#allocation2 + $0x4] ss:$8 sps:$4 sm:$0xff]  }
 0x1b2   :  { %1292 = vmatpush1.bf16.msra.mxu1 %v3631_v4  ;;  %v3703_v4 = vld [vmem:[#allocation2] ss:$8 sps:$4 sm:$0xff]  }
 0x1b3   :  { %1293 = vmatprep.subr.bf16.mxu1 %v3636_v5  ;;  %v3708_v5 = vld [vmem:[#allocation2 + $0x14] ss:$8 sps:$4 sm:$0xff]  }
 0x1b6   :  { %1294 = vmatpush1.bf16.msra.mxu1 %v3634_v6  ;;  %v3706_v6 = vld [vmem:[#allocation2 + $0x10] ss:$8 sps:$4 sm:$0xff]  }
 0x1b7   :  { %1295 = vmatprep.subr.bf16.mxu1 %v3639_v7  ;;  %v3711_v7 = vld [vmem:[#allocation2 + $0x24] ss:$8 sps:$4 sm:$0xff]  }
 0x1ba   :  { %1296 = vmatpush1.bf16.msra.mxu1 %v3637_v8  ;;  %v3709_v8 = vld [vmem:[#allocation2 + $0x20] ss:$8 sps:$4 sm:$0xff]  }
 0x1bb   :  { %1297 = vmatprep.subr.bf16.mxu1 %v3642_v9  ;;  %v3714_v9 = vld [vmem:[#allocation2 + $0x34] ss:$8 sps:$4 sm:$0xff]  }
 0x1be   :  { %1298 = vmatpush1.bf16.msra.mxu1 %v3640_v10  ;;  %v3712_v10 = vld [vmem:[#allocation2 + $0x30] ss:$8 sps:$4 sm:$0xff]  }
 0x1bf   :  { %1299 = vmatprep.subr.bf16.mxu1 %v3645_v11  ;;  %v3717_v11 = vld [vmem:[#allocation2 + $0x44] ss:$8 sps:$4 sm:$0xff]  }
 0x1c2   :  { %1300 = vmatpush1.bf16.msra.mxu1 %v3643_v12  ;;  %v3715_v12 = vld [vmem:[#allocation2 + $0x40] ss:$8 sps:$4 sm:$0xff]  }
 0x1c3   :  { %1301 = vmatprep.subr.bf16.mxu1 %v3648_v13  ;;  %v3720_v13 = vld [vmem:[#allocation2 + $0x54] ss:$8 sps:$4 sm:$0xff]  }
 0x1c6   :  { %1302 = vmatpush1.bf16.msra.mxu1 %v3646_v14  ;;  %v3718_v14 = vld [vmem:[#allocation2 + $0x50] ss:$8 sps:$4 sm:$0xff]  }
 0x1c7   :  { %1303 = vmatprep.subr.bf16.mxu1 %v3651_v15  ;;  %v3723_v15 = vld [vmem:[#allocation2 + $0x64] ss:$8 sps:$4 sm:$0xff]  }
 0x1ca   :  { %1304 = vmatpush1.bf16.msra.mxu1 %v3649_v16  ;;  %v3726_v16 = vld [vmem:[#allocation2 + $0x74] ss:$8 sps:$4 sm:$0xff]  }
 0x1cb   :  { %1305 = vmatprep.subr.bf16.mxu1 %v3654_v18  ;;  %v3724_v18 = vld [vmem:[#allocation2 + $0x70] ss:$8 sps:$4 sm:$0xff]  }
 0x1ce   :  { %1306 = vmatpush1.bf16.msra.mxu1 %v3652_v19  ;;  %v3729_v19 = vld [vmem:[#allocation2 + $0x84] ss:$8 sps:$4 sm:$0xff]  }
 0x1cf   :  { %1508 = vmatprep.subr.bf16.mxu1 %v3657_v20  ;;  %v3727_v20 = vld [vmem:[#allocation2 + $0x80] ss:$8 sps:$4 sm:$0xff]  }
 0x1d1   :  { %1308 = vmatmul.mubr.bf16.vlgmr.msra.gmra.mrb[4].mxu1 %v3984_v0 }
 0x1d2   :  { %1509 = vmatpush1.bf16.msra.mxu1 %v3655_v21  ;;  %1540 = vmatprep.mubr.bf16.mxu1 %v3984_v0  ;;  %v3732_v21 = vld [vmem:[#allocation2 + $0x94] ss:$8 sps:$4 sm:$0xff]  }
 0x1d3   :  { %1510 = vmatprep.subr.bf16.mxu1 %v3660_v22  ;;  %v3730_v22 = vld [vmem:[#allocation2 + $0x90] ss:$8 sps:$4 sm:$0xff]  }
 0x1d6   :  { %1511 = vmatpush1.bf16.msra.mxu1 %v3658_v26  ;;  %v3736_v26 = vld [vmem:[#allocation2 + $0xb0] ss:$8 sps:$4 sm:$0xff]  }
 0x1d7   :  { %1512 = vmatprep.subr.bf16.mxu1 %v3663_v27  ;;  %v3741_v27 = vld [vmem:[#allocation2 + $0xc4] ss:$8 sps:$4 sm:$0xff]  }
 0x1da   :  { %1513 = vmatpush1.bf16.msra.mxu1 %v3661_v30  ;;  %v3742_v30 = vld [vmem:[#allocation2 + $0xd0] ss:$8 sps:$4 sm:$0xff]  }
 0x1db   :  { %1514 = vmatprep.subr.bf16.mxu1 %v3666_v31  ;;  %v3747_v31 = vld [vmem:[#allocation2 + $0xe4] ss:$8 sps:$4 sm:$0xff]  }
 0x1de   :  { %1515 = vmatpush1.bf16.msra.mxu1 %v3664_v37  ;;  %v3748_v37 = vld [vmem:[#allocation2 + $0xf0] ss:$8 sps:$4 sm:$0xff]  }
 0x1df   :  { %1516 = vmatprep.subr.bf16.mxu1 %v3669_v38  ;;  %v3761_v38 = vld [vmem:[%s5052_s11 + $0x68] sm:$0xff]  }
 0x1e0   :  { %3335 = vmatprep.subr.bf16.mxu0 %v3761_v38  ;;  %v3796_v38 = vld [vmem:[%s5056_s15 + $0x104] ss:$16 sps:$4 sm:$0xff]  }
 0x1e1   :  { %3336 = vmatpush3.bf16.msra.mxu0 %v3762_v39  ;;  %v3794_v39 = vld [vmem:[%s5056_s15 + $0x100] ss:$16 sps:$4 sm:$0xff]  }
 0x1e2   :  { %1517 = vmatpush1.bf16.msra.mxu1 %v3667_v41  ;;  %v3764_v41 = vld [vmem:[%s5052_s11 + $0x30] sm:$0xff]   ;;  %3337 = vmatprep.subr.bf16.mxu0 %v3763_v40 }
 0x1e3   :  { %1518 = vmatprep.subr.bf16.mxu1 %v3672_v42  ;;  %v3766_v42 = vld [vmem:[%s5052_s11 + $0x38] sm:$0xff]   ;;  %v3799_v40 = vld [vmem:[%s5056_s15 + $0x124] ss:$16 sps:$4 sm:$0xff]  }
 0x1e5   :  { %3338 = vmatpush3.bf16.msra.mxu0 %v3764_v41  ;;  %v3797_v41 = vld [vmem:[%s5056_s15 + $0x120] ss:$16 sps:$4 sm:$0xff]  }
 0x1e6   :  { %1519 = vmatpush1.bf16.msra.mxu1 %v3670_v44  ;;  %v1597_v44 = vld [vmem:[%s5051_s10] sm:$0x3] }
 0x1e7   :  { %1520 = vmatprep.subr.bf16.mxu1 %v3675_v45  ;;  %v1556_v45 = vrot.slane %v1551_v43, %v4527_v33 }
 0x1ea   :  { %1521 = vmatpush1.bf16.msra.mxu1 %v3673_v46  ;;  %v1602_v46 = vrot.slane %v1597_v44, %v4527_v33 }
 0x1eb   :  { %1522 = vmatprep.subr.bf16.mxu1 %v3678_v47  ;;  %v1560_v47 = vrot.slane %v1551_v43, %v4533_v35  ;;  %v3805_v43 = vld [vmem:[%s5056_s15 + $0x164] ss:$16 sps:$4 sm:$0xff]  }
 0x1ee   :  { %1523 = vmatpush1.bf16.msra.mxu1 %v3676_v48  ;;  %v1606_v48 = vrot.slane %v1597_v44, %v4533_v35  ;;  %v3803_v44 = vld [vmem:[%s5056_s15 + $0x160] ss:$16 sps:$4 sm:$0xff]  }
 0x1ef   :  { %1524 = vmatprep.subr.bf16.mxu1 %v3681_v49  ;;  %v3391_v49 = vadd.f32 %v1602_v46, %v1556_v45  ;;  %v3806_v45 = vld [vmem:[%s5056_s15 + $0x180] ss:$16 sps:$4 sm:$0xff]   ;;  %v3808_v46 = vld [vmem:[%s5056_s15 + $0x184] ss:$16 sps:$4 sm:$0xff]  }
 0x1f2   :  { %1525 = vmatpush1.bf16.msra.mxu1 %v3679_v50  ;;  %v3393_v50 = vadd.f32 %v1606_v48, %v1560_v47  ;;  %v3811_v47 = vld [vmem:[%s5056_s15 + $0x1a4] ss:$16 sps:$4 sm:$0xff]   ;;  %v3809_v48 = vld [vmem:[%s5056_s15 + $0x1a0] ss:$16 sps:$4 sm:$0xff]  }
 0x1f3   :  { %1526 = vmatprep.subr.bf16.mxu1 %v3684_v51 }
 0x1f6   :  { %1527 = vmatpush1.bf16.msra.mxu1 %v3682_v52 }
 0x1f7   :  { %1528 = vmatprep.subr.bf16.mxu1 %v3687_v53 }
 0x1fa   :  { %1529 = vmatpush1.bf16.msra.mxu1 %v3685_v54 }
 0x1fb   :  { %1530 = vmatprep.subr.bf16.mxu1 %v3690_v55 }
 0x1fe   :  { %1531 = vmatpush1.bf16.msra.mxu1 %v3688_v56 }
 0x1ff   :  { %1532 = vmatprep.subr.bf16.mxu1 %v3693_v57 }
 0x202   :  { %1533 = vmatpush1.bf16.msra.mxu1 %v3691_v58 }
 0x203   :  { %1534 = vmatprep.subr.bf16.mxu1 %v3696_v59 }
 0x206   :  { %1535 = vmatpush1.bf16.msra.mxu1 %v3694_v60 }
 0x207   :  { %1536 = vmatprep.subr.bf16.mxu1 %v3699_v61 }
 0x20a   :  { %1537 = vmatpush1.bf16.msra.mxu1 %v3697_v63 }
 0x20b   :  { %1538 = vmatprep.subr.bf16.mxu1 %v3702_v1 }
 0x20e   :  { %1539 = vmatpush1.bf16.msra.mxu1 %v3700_v2 }
 0x20f   :  { %1769 = vmatprep.subr.bf16.mxu1 %v3705_v3 }
 0x211   :  { %1541 = vmatmul.mubr.bf16.vlgmr.msra.gmra.mrb[4].mxu1 %v3984_v0 }
 0x212   :  { %1770 = vmatpush1.bf16.msra.mxu1 %v3703_v4  ;;  %1801 = vmatprep.mubr.bf16.mxu1 %v4283_v62  ;;  %v3721_v62 = vld [vmem:[#allocation2 + $0x60] ss:$8 sps:$4 sm:$0xff]  }
 0x213   :  { %1771 = vmatprep.subr.bf16.mxu1 %v3708_v5 }
 0x216   :  { %1772 = vmatpush1.bf16.msra.mxu1 %v3706_v6 }
 0x217   :  { %1773 = vmatprep.subr.bf16.mxu1 %v3711_v7 }
 0x21a   :  { %1774 = vmatpush1.bf16.msra.mxu1 %v3709_v8 }
 0x21b   :  { %1775 = vmatprep.subr.bf16.mxu1 %v3714_v9  ;;  %v3769_v9 = vld [vmem:[%s5054_s13 + $0x4] ss:$8 sps:$4 sm:$0xff]  }
 0x21e   :  { %1776 = vmatpush1.bf16.msra.mxu1 %v3712_v10  ;;  %v3767_v10 = vld [vmem:[%s5054_s13] ss:$8 sps:$4 sm:$0xff]  }
 0x21f   :  { %1777 = vmatprep.subr.bf16.mxu1 %v3717_v11  ;;  %v3772_v11 = vld [vmem:[%s5056_s15 + $0x4] ss:$16 sps:$4 sm:$0xff]  }
 0x222   :  { %1778 = vmatpush1.bf16.msra.mxu1 %v3715_v12 }
 0x223   :  { %1779 = vmatprep.subr.bf16.mxu1 %v3720_v13 }
 0x226   :  { %1780 = vmatpush1.bf16.msra.mxu1 %v3718_v14 }
 0x227   :  { %1781 = vmatprep.subr.bf16.mxu1 %v3723_v15 }
 0x22a   :  { %1782 = vmatpush1.bf16.msra.mxu1 %v3721_v62 }
 0x22b   :  { %1783 = vmatprep.subr.bf16.mxu1 %v3726_v16 }
 0x22e   :  { %1784 = vmatpush1.bf16.msra.mxu1 %v3724_v18 }
 0x22f   :  { %1785 = vmatprep.subr.bf16.mxu1 %v3729_v19  ;;  %v3770_v19 = vld [vmem:[%s5056_s15] ss:$16 sps:$4 sm:$0xff]  }
 0x232   :  { %1786 = vmatpush1.bf16.msra.mxu1 %v3727_v20 }
 0x233   :  { %1787 = vmatprep.subr.bf16.mxu1 %v3732_v21  ;;  %v3775_v21 = vld [vmem:[%s5056_s15 + $0x24] ss:$16 sps:$4 sm:$0xff]  }
 0x236   :  { %1788 = vmatpush1.bf16.msra.mxu1 %v3730_v22  ;;  %v3773_v22 = vld [vmem:[%s5056_s15 + $0x20] ss:$16 sps:$4 sm:$0xff]  }
 0x237   :  { %1789 = vmatprep.subr.bf16.mxu1 %v3735_v23  ;;  %v3778_v23 = vld [vmem:[%s5056_s15 + $0x44] ss:$16 sps:$4 sm:$0xff]  }
 0x23a   :  { %1790 = vmatpush1.bf16.msra.mxu1 %v3733_v24  ;;  %v3776_v24 = vld [vmem:[%s5056_s15 + $0x40] ss:$16 sps:$4 sm:$0xff]  }
 0x23b   :  { %1791 = vmatprep.subr.bf16.mxu1 %v3738_v25  ;;  %v3781_v25 = vld [vmem:[%s5056_s15 + $0x64] ss:$16 sps:$4 sm:$0xff]  }
 0x23e   :  { %1792 = vmatpush1.bf16.msra.mxu1 %v3736_v26  ;;  %v3779_v26 = vld [vmem:[%s5056_s15 + $0x60] ss:$16 sps:$4 sm:$0xff]  }
 0x23f   :  { %1793 = vmatprep.subr.bf16.mxu1 %v3741_v27  ;;  %v3784_v27 = vld [vmem:[%s5056_s15 + $0x84] ss:$16 sps:$4 sm:$0xff]  }
 0x242   :  { %1794 = vmatpush1.bf16.msra.mxu1 %v3739_v28  ;;  %v3782_v28 = vld [vmem:[%s5056_s15 + $0x80] ss:$16 sps:$4 sm:$0xff]  }
 0x243   :  { %1795 = vmatprep.subr.bf16.mxu1 %v3744_v29  ;;  %v3787_v29 = vld [vmem:[%s5056_s15 + $0xa4] ss:$16 sps:$4 sm:$0xff]  }
 0x246   :  { %1796 = vmatpush1.bf16.msra.mxu1 %v3742_v30  ;;  %v3785_v30 = vld [vmem:[%s5056_s15 + $0xa0] ss:$16 sps:$4 sm:$0xff]  }
 0x247   :  { %1797 = vmatprep.subr.bf16.mxu1 %v3747_v31  ;;  %v3790_v31 = vld [vmem:[%s5056_s15 + $0xc4] ss:$16 sps:$4 sm:$0xff]  }
 0x24a   :  { %1798 = vmatpush1.bf16.msra.mxu1 %v3745_v34  ;;  %v3788_v34 = vld [vmem:[%s5056_s15 + $0xc0] ss:$16 sps:$4 sm:$0xff]  }
 0x24b   :  { %1799 = vmatprep.subr.bf16.mxu1 %v3750_v36  ;;  %v3793_v36 = vld [vmem:[%s5056_s15 + $0xe4] ss:$16 sps:$4 sm:$0xff]  }
 0x24e   :  { %1800 = vmatpush1.bf16.msra.mxu1 %v3748_v37  ;;  %v3791_v37 = vld [vmem:[%s5056_s15 + $0xe0] ss:$16 sps:$4 sm:$0xff]  }
 0x251   :  { %1802 = vmatmul.mubr.bf16.vlgmr.msra.gmra.mrb[4].mxu1 %v4328_v17  ;;  %v3765_v17 = vld [vmem:[%s5052_s11 + $0x78] sm:$0xff]  }
 0x252   :  { %3339 = vmatprep.subr.bf16.mxu0 %v3765_v17  ;;  %v3802_v17 = vld [vmem:[%s5056_s15 + $0x144] ss:$16 sps:$4 sm:$0xff]  }
 0x253   :  { %3340 = vmatpush3.bf16.msra.mxu0 %v3766_v42  ;;  %v3800_v42 = vld [vmem:[%s5056_s15 + $0x140] ss:$16 sps:$4 sm:$0xff]  }
 0x254   :  { %2048 = vmatprep.subr.bf16.mxu0 %v3769_v9 }
 0x324   :  { %v1803_v51 = vpop.f32.mrb[4].mxu1 }
 0x325   :  { %v3392_v52 = vadd.f32 %v3391_v49, %v1803_v51  ;;  %v1805_v53 = vpop.f32.mrb[5].mxu1  ;;  %v3814_v49 = vld [vmem:[%s5056_s15 + $0x1c4] ss:$16 sps:$4 sm:$0xff]  }
 0x326   :  { %v3394_v54 = vadd.f32 %v3393_v50, %v1805_v53  ;;  %v1807_v55 = vpop.f32.mrb[6].mxu1  ;;  %v3812_v50 = vld [vmem:[%s5056_s15 + $0x1c0] ss:$16 sps:$4 sm:$0xff]   ;;  %v3817_v51 = vld [vmem:[%s5056_s15 + $0x1e4] ss:$16 sps:$4 sm:$0xff]  }
 0x327   :  { %v4790_v56 = vmax.f32 %v3392_v52, 0.0  ;;  %v1808_v57 = vpop.f32.mrb[7].mxu1  ;;  %v3815_v52 = vld [vmem:[%s5056_s15 + $0x1e0] ss:$16 sps:$4 sm:$0xff]   ;;  %v3820_v53 = vld [vmem:[%s5056_s15 + $0xc] ss:$16 sps:$4 sm:$0xff]  }
 0x328   :  { %v4792_v58 = vmax.f32 %v3394_v54, 0.0  ;;  %v2022_v54 = vld [vmem:[%s5055_s14] sm:$0x3] }
 0x329   :  { %v1818_v59 = vrot.slane %v4790_v56, 7  ;;  %v1828_v61 = vrot.slane %v4790_v56, 6  ;;  %v2027_v55 = vrot.slane %v2022_v54, %v4527_v33  ;;  %v2031_v57 = vrot.slane %v2022_v54, %v4533_v35  ;;  %v3863_v54 = vld [vmem:[%s5056_s15 + $0x1e8] ss:$16 sps:$4 sm:$0xff]  }
 0x32a   :  { %v1819_v60 = vrot.slane %v4792_v58, 7  ;;  %v1829_v1 = vrot.slane %v4792_v58, 6 }
 0x32b   :  { %v1833_v63 = vsel %vm146_vm1, %v4790_v56, %v1818_v59 }
 0x32c   :  { %v1834_v2 = vsel %vm146_vm1, %v4792_v58, %v1819_v60  ;;  %v1836_v3 = vsel %vm1835_vm3, %v1833_v63, %v1818_v59 }
 0x32d   :  { %v1837_v4 = vsel %vm1835_vm3, %v1834_v2, %v1819_v60  ;;  %v1839_v5 = vsel %vm1838_vm4, %v1836_v3, %v1828_v61 }
 0x32e   :  { %v1840_v6 = vsel %vm1838_vm4, %v1837_v4, %v1829_v1  ;;  %v1841_v8 = vpack.c.bf16 %v1839_v5, %v1839_v5 }
 0x32f   :  { %v1842_v7 = vpack.c.bf16 %v1840_v6, %v1840_v6 }
 0x331   :  { %2010 = vmatprep.mubr.bf16.mxu0 %v1842_v7 }
 0x332   :  { %2011 = vmatmul.mubr.bf16.vlgmr.msra.gmra.mrb[8].mxu0 %v1841_v8 }
 0x333   :  { %2080 = vmatprep.mubr.bf16.mxu0 %v3984_v0  ;;  %2049 = vmatpush1.bf16.msra.mxu0 %v3767_v10  ;;  %v3206_v0 = vld [vmem:[%s5053_s12] ss:$0 sm:$0xff] }
 0x334   :  { %2531 = vmatprep.subr.bf16.mxu0 %v3772_v11 }
 0x405   :  { %v3341_v12 = vpop.f32.mrb[8].mxu0 }
 0x406   :  { %v3342_v13 = vpop.f32.mrb[9].mxu0 }
 0x407   :  { %v3343_v14 = vadd.f32 %v3342_v13, %v3341_v12  ;;  %v3344_v15 = vpop.f32.mrb[10].mxu0 }
 0x408   :  { %v3345_v62 = vpop.f32.mrb[11].mxu0 }
 0x409   :  { %v2013_v16 = vadd.f32 %v3343_v14, %v3206_v0 }
 0x40b   :  { %v2018_v18 = vmax.f32 %v2013_v16, 0.0 }
 0x40d   :  { %v2019_v20 = vpack.c.bf16 %v2018_v18, %v2018_v18 }
 0x40f   :  { %3225 = vmatmul.mubr.msk.bf16.vlgmr.msra.gmra.mrb[12].mxu0 %vm2044_vm5, %v2019_v20 }
 0x410   :  { %2532 = vmatpush1.bf16.msra.mxu0 %v3770_v19 }
 0x411   :  { %2533 = vmatprep.subr.bf16.mxu0 %v3775_v21 }
 0x414   :  { %2534 = vmatpush1.bf16.msra.mxu0 %v3773_v22 }
 0x415   :  { %2535 = vmatprep.subr.bf16.mxu0 %v3778_v23  ;;  %v3818_v23 = vld [vmem:[%s5056_s15 + $0x8] ss:$16 sps:$4 sm:$0xff]  }
 0x418   :  { %2536 = vmatpush1.bf16.msra.mxu0 %v3776_v24 }
 0x419   :  { %2537 = vmatprep.subr.bf16.mxu0 %v3781_v25  ;;  %v3823_v25 = vld [vmem:[%s5056_s15 + $0x2c] ss:$16 sps:$4 sm:$0xff]  }
 0x41c   :  { %2538 = vmatpush1.bf16.msra.mxu0 %v3779_v26  ;;  %v3824_v26 = vld [vmem:[%s5056_s15 + $0x48] ss:$16 sps:$4 sm:$0xff]  }
 0x41d   :  { %2539 = vmatprep.subr.bf16.mxu0 %v3784_v27  ;;  %v3829_v27 = vld [vmem:[%s5056_s15 + $0x6c] ss:$16 sps:$4 sm:$0xff]  }
 0x420   :  { %2540 = vmatpush1.bf16.msra.mxu0 %v3782_v28  ;;  %v3827_v28 = vld [vmem:[%s5056_s15 + $0x68] ss:$16 sps:$4 sm:$0xff]  }
 0x421   :  { %2541 = vmatprep.subr.bf16.mxu0 %v3787_v29  ;;  %v3832_v29 = vld [vmem:[%s5056_s15 + $0x8c] ss:$16 sps:$4 sm:$0xff]  }
 0x424   :  { %2542 = vmatpush1.bf16.msra.mxu0 %v3785_v30  ;;  %v3830_v30 = vld [vmem:[%s5056_s15 + $0x88] ss:$16 sps:$4 sm:$0xff]  }
 0x425   :  { %2543 = vmatprep.subr.bf16.mxu0 %v3790_v31  ;;  %v3835_v31 = vld [vmem:[%s5056_s15 + $0xac] ss:$16 sps:$4 sm:$0xff]  }
 0x428   :  { %2544 = vmatpush1.bf16.msra.mxu0 %v3788_v34  ;;  %v3833_v34 = vld [vmem:[%s5056_s15 + $0xa8] ss:$16 sps:$4 sm:$0xff]  }
 0x429   :  { %2545 = vmatprep.subr.bf16.mxu0 %v3793_v36  ;;  %v3838_v36 = vld [vmem:[%s5056_s15 + $0xcc] ss:$16 sps:$4 sm:$0xff]  }
 0x42c   :  { %2546 = vmatpush1.bf16.msra.mxu0 %v3791_v37  ;;  %v3836_v37 = vld [vmem:[%s5056_s15 + $0xc8] ss:$16 sps:$4 sm:$0xff]  }
 0x42d   :  { %2547 = vmatprep.subr.bf16.mxu0 %v3796_v38  ;;  %v3841_v38 = vld [vmem:[%s5056_s15 + $0xec] ss:$16 sps:$4 sm:$0xff]  }
 0x430   :  { %2548 = vmatpush1.bf16.msra.mxu0 %v3794_v39  ;;  %v3839_v39 = vld [vmem:[%s5056_s15 + $0xe8] ss:$16 sps:$4 sm:$0xff]  }
 0x431   :  { %2549 = vmatprep.subr.bf16.mxu0 %v3799_v40  ;;  %v3844_v40 = vld [vmem:[%s5056_s15 + $0x10c] ss:$16 sps:$4 sm:$0xff]  }
 0x434   :  { %2550 = vmatpush1.bf16.msra.mxu0 %v3797_v41  ;;  %v3842_v41 = vld [vmem:[%s5056_s15 + $0x108] ss:$16 sps:$4 sm:$0xff]  }
 0x435   :  { %2551 = vmatprep.subr.bf16.mxu0 %v3802_v17  ;;  %v3847_v17 = vld [vmem:[%s5056_s15 + $0x12c] ss:$16 sps:$4 sm:$0xff]  }
 0x438   :  { %2552 = vmatpush1.bf16.msra.mxu0 %v3800_v42  ;;  %v3845_v42 = vld [vmem:[%s5056_s15 + $0x128] ss:$16 sps:$4 sm:$0xff]  }
 0x439   :  { %2553 = vmatprep.subr.bf16.mxu0 %v3805_v43  ;;  %v3850_v43 = vld [vmem:[%s5056_s15 + $0x14c] ss:$16 sps:$4 sm:$0xff]  }
 0x43c   :  { %2554 = vmatpush1.bf16.msra.mxu0 %v3803_v44  ;;  %v3848_v44 = vld [vmem:[%s5056_s15 + $0x148] ss:$16 sps:$4 sm:$0xff]  }
 0x43d   :  { %2555 = vmatprep.subr.bf16.mxu0 %v3808_v46  ;;  %v3851_v46 = vld [vmem:[%s5056_s15 + $0x168] ss:$16 sps:$4 sm:$0xff]  }
 0x440   :  { %2556 = vmatpush1.bf16.msra.mxu0 %v3806_v45  ;;  %v3853_v45 = vld [vmem:[%s5056_s15 + $0x16c] ss:$16 sps:$4 sm:$0xff]  }
 0x441   :  { %2557 = vmatprep.subr.bf16.mxu0 %v3811_v47  ;;  %v3856_v47 = vld [vmem:[%s5056_s15 + $0x18c] ss:$16 sps:$4 sm:$0xff]  }
 0x444   :  { %2558 = vmatpush1.bf16.msra.mxu0 %v3809_v48  ;;  %v3854_v48 = vld [vmem:[%s5056_s15 + $0x188] ss:$16 sps:$4 sm:$0xff]  }
 0x445   :  { %2559 = vmatprep.subr.bf16.mxu0 %v3814_v49  ;;  %v3859_v49 = vld [vmem:[%s5056_s15 + $0x1ac] ss:$16 sps:$4 sm:$0xff]  }
 0x448   :  { %2560 = vmatpush1.bf16.msra.mxu0 %v3812_v50  ;;  %v3857_v50 = vld [vmem:[%s5056_s15 + $0x1a8] ss:$16 sps:$4 sm:$0xff]  }
 0x449   :  { %2561 = vmatprep.subr.bf16.mxu0 %v3817_v51  ;;  %v3862_v51 = vld [vmem:[%s5056_s15 + $0x1cc] ss:$16 sps:$4 sm:$0xff]  }
 0x44c   :  { %2562 = vmatpush1.bf16.msra.mxu0 %v3815_v52  ;;  %v3860_v52 = vld [vmem:[%s5056_s15 + $0x1c8] ss:$16 sps:$4 sm:$0xff]  }
 0x44d   :  { %2572 = vmatprep.subr.bf16.mxu0 %v3820_v53  ;;  %v3865_v53 = vld [vmem:[%s5056_s15 + $0x1ec] ss:$16 sps:$4 sm:$0xff]  }
 0x4e2   :  { %v2082_v59 = vpop.f32.mrb[12].mxu0 }
 0x4e3   :  { %v2083_v60 = vadd.f32 %v2082_v59, %v2027_v55  ;;  %v2084_v61 = vpop.f32.mrb[13].mxu0  ;;  %v3866_v55 = vld [vmem:[#allocation5 + $0x40] sm:$0xff]   ;;  %v3868_v59 = vld [vmem:[#allocation5 + $0x48] sm:$0xff]  }
 0x4e4   :  { %v2085_v63 = vadd.f32 %v2084_v61, %v2031_v57  ;;  %v2086_v1 = vpop.f32.mrb[14].mxu0  ;;  %v3867_v57 = vld [vmem:[#allocation5] sm:$0xff]   ;;  %v3870_v61 = vld [vmem:[#allocation5 + $0x50] sm:$0xff]  }
 0x4e5   :  { %v2091_v2 = vrot.slane %v2083_v60, 1  ;;  %v2087_v3 = vpop.f32.mrb[15].mxu0  ;;  %v3872_v1 = vld [vmem:[#allocation5 + $0x58] sm:$0xff]  }
 0x4e6   :  { %v2092_v4 = vrot.slane %v2085_v63, 1  ;;  %v3874_v3 = vld [vmem:[#allocation5 + $0x60] sm:$0xff]  }
 0x4e7   :  { %v2095_v5 = vadd.f32 %v2091_v2, %v2083_v60  ;;  %v3869_v60 = vld [vmem:[#allocation5 + $0x8] sm:$0xff]   ;;  %v3873_v2 = vld [vmem:[#allocation5 + $0x18] sm:$0xff]  }
 0x4e8   :  { %v2096_v6 = vadd.f32 %v2092_v4, %v2085_v63  ;;  %v3871_v63 = vld [vmem:[#allocation5 + $0x10] sm:$0xff]   ;;  %v3875_v4 = vld [vmem:[#allocation5 + $0x20] sm:$0xff]  }
 0x4e9   :  { %v3226_v7 = vmul.f32 -1.442695, %v2095_v5  ;;  %v3876_v5 = vld [vmem:[#allocation5 + $0x68] sm:$0xff]  }
 0x4ea   :  { %v3227_v8 = vmul.f32 -1.442695, %v2096_v6  ;;  %v3877_v6 = vld [vmem:[#allocation5 + $0x28] sm:$0xff]  }
 0x4eb   :  { %3898 = vpow2.f32 %v3226_v7  ;;  %v3878_v7 = vld [vmem:[#allocation5 + $0x70] sm:$0xff]  }
 0x4ec   :  { %3900 = vpow2.f32 %v3227_v8  ;;  %v3879_v8 = vld [vmem:[#allocation5 + $0x30] sm:$0xff]  }
 0x4f5   :  { %v3899_v9 = vpop.eup %3898 }
 0x4f6   :  { %v3901_v10 = vpop.eup %3900  ;;  %v2103_v11 = vadd.f32 1.0, %v3899_v9  ;;  %v3880_v9 = vld [vmem:[#allocation5 + $0x78] sm:$0xff]  }
 0x4f7   :  { %v2104_v12 = vadd.f32 1.0, %v3901_v10  ;;  %v3881_v10 = vld [vmem:[#allocation5 + $0x38] sm:$0xff]  }
 0x4f8   :  { %3902 = vrcp.f32 %v2103_v11  ;;  %v3882_v11 = vld [vmem:[#allocation5 + $0xc0] sm:$0xff]  }
 0x4f9   :  { %3904 = vrcp.f32 %v2104_v12  ;;  %v3883_v12 = vld [vmem:[#allocation5 + $0x80] sm:$0xff]   ;;  %3369 = vmatprep.subr.bf16.mxu1 %v3882_v11 }
 0x4fa   :  { %3370 = vmatpush3.bf16.msra.mxu1 %v3883_v12 }
 0x502   :  { %v3903_v0 = vpop.eup %3902 }
 0x503   :  { %v3905_v13 = vpop.eup %3904  ;;  %v2113_v14 = vrot.slane %v3903_v0, 1  ;;  %v2109_v62 = vmul.f32 %v3903_v0, %v4790_v56  ;;  %v3884_v0 = vld [vmem:[#allocation5 + $0xc8] sm:$0xff]  }
 0x504   :  { %v2114_v15 = vrot.slane %v3905_v13, 1  ;;  %v2110_v18 = vmul.f32 %v3905_v13, %v4792_v58  ;;  %v3885_v13 = vld [vmem:[#allocation5 + $0x88] sm:$0xff]   ;;  %3371 = vmatprep.subr.bf16.mxu1 %v3884_v0 }
 0x505   :  { %v2117_v16 = vmul.f32 %v2113_v14, %v4790_v56  ;;  %v3821_v56 = vld [vmem:[%s5056_s15 + $0x28] ss:$16 sps:$4 sm:$0xff]   ;;  %v3886_v14 = vld [vmem:[#allocation5 + $0xd0] sm:$0xff]   ;;  %3372 = vmatpush3.bf16.msra.mxu1 %v3885_v13 }
 0x506   :  { %v2118_v19 = vmul.f32 %v2114_v15, %v4792_v58  ;;  %v3826_v58 = vld [vmem:[%s5056_s15 + $0x4c] ss:$16 sps:$4 sm:$0xff]   ;;  %v3887_v15 = vld [vmem:[#allocation5 + $0x90] sm:$0xff]   ;;  %3373 = vmatprep.subr.bf16.mxu1 %v3886_v14 }
 0x507   :  { %v2119_v20 = vsel %vm146_vm1, %v2109_v62, %v2117_v16  ;;  %v3888_v62 = vld [vmem:[#allocation5 + $0xd8] sm:$0xff]  }
 0x508   :  { %v2120_v21 = vsel %vm146_vm1, %v2110_v18, %v2118_v19  ;;  %v4925_v24 = vpack.c.bf16 %v2119_v20, %v2119_v20  ;;  %v3889_v16 = vld [vmem:[#allocation5 + $0x98] sm:$0xff]   ;;  %v3890_v18 = vld [vmem:[#allocation5 + $0xe0] sm:$0xff]   ;;  %v3892_v20 = vld [vmem:[#allocation5 + $0xe8] sm:$0xff]  }
 0x509   :  { %v2124_v22 = vpack.c.bf16 %v2120_v21, %v2120_v21  ;;  %3374 = vmatpush3.bf16.msra.mxu1 %v3887_v15  ;;  %v3891_v19 = vld [vmem:[#allocation5 + $0xa0] sm:$0xff]   ;;  %v3893_v21 = vld [vmem:[#allocation5 + $0xa8] sm:$0xff]  }
 0x50a   :  { %3375 = vmatprep.subr.bf16.mxu1 %v3888_v62 }
 0x50b   :  { %2563 = vmatprep.mubr.bf16.mxu0 %v2124_v22 }
 0x50c   :  { %2564 = vmatmul.mubr.bf16.vlgmr.msra.gmra.mrb[16].mxu0 %v4925_v24 }
 0x50d   :  { %2573 = vmatpush1.bf16.msra.mxu0 %v3818_v23  ;;  %2604 = vmatprep.mubr.bf16.mxu0 %v2124_v22  ;;  %v3894_v22 = vld [vmem:[#allocation5 + $0xf0] sm:$0xff]  }
 0x50e   :  { %2574 = vmatprep.subr.bf16.mxu0 %v3823_v25  ;;  %3376 = vmatpush3.bf16.msra.mxu1 %v3889_v16  ;;  %v3895_v23 = vld [vmem:[#allocation5 + $0xb0] sm:$0xff]   ;;  %v3897_v25 = vld [vmem:[#allocation5 + $0xb8] sm:$0xff]  }
 0x50f   :  { %3377 = vmatprep.subr.bf16.mxu1 %v3890_v18 }
 0x511   :  { %2575 = vmatpush1.bf16.msra.mxu0 %v3821_v56  ;;  %v2189_v56 = vld [vmem:[%s5057_s16] sm:$0xf] }
 0x512   :  { %2576 = vmatprep.subr.bf16.mxu0 %v3826_v58  ;;  %3378 = vmatpush3.bf16.msra.mxu1 %v3891_v19  ;;  %v2194_v58 = vrot.slane %v2189_v56, %v4527_v33 }
 0x513   :  { %3379 = vmatprep.subr.bf16.mxu1 %v3892_v20 }
 0x515   :  { %2577 = vmatpush1.bf16.msra.mxu0 %v3824_v26  ;;  %v2198_v26 = vrot.slane %v2189_v56, %v4533_v35 }
 0x516   :  { %2578 = vmatprep.subr.bf16.mxu0 %v3829_v27  ;;  %3380 = vmatpush3.bf16.msra.mxu1 %v3893_v21 }
 0x517   :  { %3381 = vmatprep.subr.bf16.mxu1 %v3894_v22 }
 0x519   :  { %2579 = vmatpush1.bf16.msra.mxu0 %v3827_v28 }
 0x51a   :  { %2580 = vmatprep.subr.bf16.mxu0 %v3832_v29  ;;  %3382 = vmatpush3.bf16.msra.mxu1 %v3895_v23 }
 0x51d   :  { %2581 = vmatpush1.bf16.msra.mxu0 %v3830_v30 }
 0x51e   :  { %2582 = vmatprep.subr.bf16.mxu0 %v3835_v31 }
 0x521   :  { %2583 = vmatpush1.bf16.msra.mxu0 %v3833_v34 }
 0x522   :  { %2584 = vmatprep.subr.bf16.mxu0 %v3838_v36 }
 0x525   :  { %2585 = vmatpush1.bf16.msra.mxu0 %v3836_v37 }
 0x526   :  { %2586 = vmatprep.subr.bf16.mxu0 %v3841_v38 }
 0x529   :  { %2587 = vmatpush1.bf16.msra.mxu0 %v3839_v39 }
 0x52a   :  { %2588 = vmatprep.subr.bf16.mxu0 %v3844_v40  ;;  %v2201_v40 = vsub.s32 2, %v4524_v32 }
 0x52d   :  { %2589 = vmatpush1.bf16.msra.mxu0 %v3842_v41  ;;  %v2205_v41 = vsub.s32 3, %v4524_v32  ;;  %v3292_v32 = vld [vmem:[%s5059_s18] ss:$0 sm:$0xff] }
 0x52e   :  { %2590 = vmatprep.subr.bf16.mxu0 %v3847_v17  ;;  %v2202_v17 = vrot.slane %v2189_v56, %v2201_v40 }
 0x52f   :  { %v2206_v33 = vrot.slane %v2189_v56, %v2205_v41 }
 0x531   :  { %2591 = vmatpush1.bf16.msra.mxu0 %v3845_v42 }
 0x532   :  { %2592 = vmatprep.subr.bf16.mxu0 %v3850_v43 }
 0x535   :  { %2593 = vmatpush1.bf16.msra.mxu0 %v3848_v44 }
 0x536   :  { %2594 = vmatprep.subr.bf16.mxu0 %v3853_v45 }
 0x539   :  { %2595 = vmatpush1.bf16.msra.mxu0 %v3851_v46 }
 0x53a   :  { %2596 = vmatprep.subr.bf16.mxu0 %v3856_v47 }
 0x53d   :  { %2597 = vmatpush1.bf16.msra.mxu0 %v3854_v48 }
 0x53e   :  { %2598 = vmatprep.subr.bf16.mxu0 %v3859_v49 }
 0x541   :  { %2599 = vmatpush1.bf16.msra.mxu0 %v3857_v50 }
 0x542   :  { %2600 = vmatprep.subr.bf16.mxu0 %v3862_v51 }
 0x545   :  { %2601 = vmatpush1.bf16.msra.mxu0 %v3860_v52 }
 0x546   :  { %2602 = vmatprep.subr.bf16.mxu0 %v3865_v53 }
 0x549   :  { %2603 = vmatpush1.bf16.msra.mxu0 %v3863_v54 }
 0x54a   :  { %3347 = vmatprep.subr.bf16.mxu0 %v3866_v55 }
 0x54c   :  { %2605 = vmatmul.mubr.bf16.vlgmr.msra.gmra.mrb[20].mxu0 %v4925_v24  ;;  %v3896_v24 = vld [vmem:[#allocation5 + $0xf8] sm:$0xff]  }
 0x54d   :  { %3348 = vmatpush3.bf16.msra.mxu0 %v3867_v57  ;;  %3383 = vmatprep.subr.bf16.mxu1 %v3896_v24 }
 0x54e   :  { %3349 = vmatprep.subr.bf16.mxu0 %v3868_v59  ;;  %3384 = vmatpush3.bf16.msra.mxu1 %v3897_v25 }
 0x551   :  { %3350 = vmatpush3.bf16.msra.mxu0 %v3869_v60 }
 0x552   :  { %3351 = vmatprep.subr.bf16.mxu0 %v3870_v61 }
 0x555   :  { %3352 = vmatpush3.bf16.msra.mxu0 %v3871_v63 }
 0x556   :  { %3353 = vmatprep.subr.bf16.mxu0 %v3872_v1 }
 0x559   :  { %3354 = vmatpush3.bf16.msra.mxu0 %v3873_v2 }
 0x55a   :  { %3355 = vmatprep.subr.bf16.mxu0 %v3874_v3 }
 0x55d   :  { %3356 = vmatpush3.bf16.msra.mxu0 %v3875_v4 }
 0x55e   :  { %3357 = vmatprep.subr.bf16.mxu0 %v3876_v5 }
 0x561   :  { %3358 = vmatpush3.bf16.msra.mxu0 %v3877_v6 }
 0x562   :  { %3359 = vmatprep.subr.bf16.mxu0 %v3878_v7 }
 0x565   :  { %3360 = vmatpush3.bf16.msra.mxu0 %v3879_v8 }
 0x566   :  { %3361 = vmatprep.subr.bf16.mxu0 %v3880_v9 }
 0x569   :  { %3362 = vmatpush3.bf16.msra.mxu0 %v3881_v10 }
 0x5df   :  { %v2565_v27 = vpop.f32.mrb[16].mxu0 }
 0x5e0   :  { %v2566_v28 = vadd.f32 %v2565_v27, %v2194_v58  ;;  %v2567_v29 = vpop.f32.mrb[17].mxu0 }
 0x5e1   :  { %v2568_v30 = vadd.f32 %v2567_v29, %v2198_v26  ;;  %v2569_v31 = vpop.f32.mrb[18].mxu0 }
 0x5e2   :  { %v2613_v34 = vmax.f32 %v2566_v28, 0.0  ;;  %v2570_v36 = vpop.f32.mrb[19].mxu0 }
 0x5e3   :  { %v2614_v37 = vmax.f32 %v2568_v30, 0.0 }
 0x5e4   :  { %v2617_v39 = vpack.c.bf16 %v2613_v34, %v2613_v34 }
 0x5e5   :  { %v2618_v38 = vpack.c.bf16 %v2614_v37, %v2614_v37 }
 0x5e7   :  { %2916 = vmatprep.mubr.bf16.mxu0 %v2618_v38 }
 0x5e8   :  { %2917 = vmatmul.mubr.bf16.vlgmr.msra.gmra.mrb[24].mxu0 %v2617_v39 }
 0x61f   :  { %v2606_v42 = vpop.f32.mrb[20].mxu0 }
 0x620   :  { %v2607_v35 = vadd.f32 %v2606_v42, %v2202_v17  ;;  %v2608_v43 = vpop.f32.mrb[21].mxu0 }
 0x621   :  { %v2609_v44 = vadd.f32 %v2608_v43, %v2206_v33  ;;  %v2610_v45 = vpop.f32.mrb[22].mxu0 }
 0x622   :  { %v2615_v46 = vmax.f32 %v2607_v35, 0.0  ;;  %v2611_v47 = vpop.f32.mrb[23].mxu0 }
 0x623   :  { %v2616_v48 = vmax.f32 %v2609_v44, 0.0 }
 0x624   :  { %v2619_v50 = vpack.c.bf16 %v2615_v46, %v2615_v46 }
 0x625   :  { %v2620_v49 = vpack.c.bf16 %v2616_v48, %v2616_v48 }
 0x627   :  { %2956 = vmatprep.mubr.bf16.mxu1 %v2620_v49 }
 0x628   :  { %2957 = vmatmul.mubr.bf16.vlgmr.msra.gmra.mrb[8].mxu1 %v2619_v50 }
 0x6bb   :  { %v3363_v51 = vpop.f32.mrb[24].mxu0 }
 0x6bc   :  { %v3364_v52 = vpop.f32.mrb[25].mxu0 }
 0x6bd   :  { %v3365_v53 = vadd.f32 %v3364_v52, %v3363_v51  ;;  %v3366_v54 = vpop.f32.mrb[26].mxu0 }
 0x6be   :  { %v3367_v55 = vpop.f32.mrb[27].mxu0 }
 0x6bf   :  { %v2919_v60 = vadd.f32 %v3365_v53, %v3292_v32 }
 0x6fb   :  { %v3385_v57 = vpop.f32.mrb[8].mxu1 }
 0x6fc   :  { %v3386_v59 = vpop.f32.mrb[9].mxu1 }
 0x6fd   :  { %v3387_v61 = vadd.f32 %v3386_v59, %v3385_v57  ;;  %v3388_v63 = vpop.f32.mrb[10].mxu1 }
 0x6fe   :  { %v3389_v1 = vpop.f32.mrb[11].mxu1 }
 0x6ff   :  { %v2959_v2 = vadd.f32 %v3387_v61, %v2919_v60 }
 0x701   :  { %2964 = vst [vmem:[#allocation7] sm:$0x3] %v2959_v2 }
 0x702   :  { %3961 = shalt.err (!%p3958_p6)
}
 0x703   :  { %s3962_s7 = scalar_lea.hbm %s5060_s19, 32 }
 0x704   :  { %p3963_p7 = scmp.ne.s32.totalorder %s5060_s19, %s3962_s7  ;;  %p3966_p8 = scmp.lt.u32.totalorder %s3962_s7, %s5060_s19 }
 0x706   :  { %p3968_p9 = pnand %p3966_p8, %p3963_p7 }
 0x708   :  { %3971 = shalt.err (!%p3968_p9)
}
 0x709   :  { %2974 = dma.vmem_to_hbm [thread:$0]  %s2972_s1, 32, %s5060_s19, [#allocation4]  }
 0x70a   :  { %3976 = dma.done.wait [#allocation4], 32  }
 0x70b   :  { %3977 = vsyncadd [#allocation4], 4294967264 }
 0x70c   :  { %2978 = vsyncpa [#allocation3], 1 }
 0x70d   :  { %2979 = vsyncpa [#allocation6], 1 }
 0x70e   :  { %2980 = vsyncpa [#allocation4], 1 }

</bundles_post_ra>
